<compile_context>
chip_gen: v7x
topology: tpu7x:2x2x1
jax: 0.10.0
libtpu: 0.0.40
codegen_flags: <defaults>
</compile_context>

<pallas_src>
import jax
import jax.numpy as jnp
from jax import lax
from jax.experimental import pallas as pl
from jax.experimental.pallas import tpu as pltpu


# --------------------------------------------------------------------------
# Fused conv-tower kernel: one batch element per grid step.
# --------------------------------------------------------------------------
def _make_tower_kernel(H, W, n_blocks):
    Q = W + 2                       # padded row length
    Np = (H + 2) * (W + 2)          # number of padded-grid positions

    def kernel(xin_ref, w1_ref, b1_ref, wt_ref, bt_ref, mask_ref,
               out_ref, a_ref):
        mask = mask_ref[...]                                    # [Np, 1] f32

        def conv(a_full, w, b, residual=None):
            # a_full: [NE, Cin] f32, zero-haloed padded row layout.
            # Tap (dy, dx) for every padded position is a statically shifted
            # slice; concat along channels -> one K = 9*Cin MXU matmul
            # (bf16 inputs, f32 accumulation).
            taps = jnp.concatenate(
                [a_full[dy * Q + dx: dy * Q + dx + Np, :].astype(jnp.bfloat16)
                 for dy in range(3) for dx in range(3)], axis=1)
            acc = jnp.dot(taps, w, preferred_element_type=jnp.float32)
            acc = acc + b
            if residual is not None:
                acc = acc + residual
            # ReLU, then force padded-border rows back to zero.
            return jnp.maximum(acc, 0.0) * mask

        # zero-halo activation scratch (halo rows are never written again)
        a_ref[...] = jnp.zeros_like(a_ref)

        # conv1 + relu
        act0 = conv(xin_ref[0], w1_ref[...], b1_ref[...])       # [Np, 32] f32
        a_ref[pl.ds(Q + 1, Np), :] = act0

        # residual tower (fori_loop keeps the Mosaic program compact)
        def block_body(i, carry):
            idx = 2 * i
            res = a_ref[pl.ds(Q + 1, Np), :]
            h1 = conv(a_ref[...], wt_ref[idx], bt_ref[idx])
            a_ref[pl.ds(Q + 1, Np), :] = h1
            h2 = conv(a_ref[...], wt_ref[idx + 1], bt_ref[idx + 1],
                      residual=res)
            a_ref[pl.ds(Q + 1, Np), :] = h2
            return carry

        lax.fori_loop(0, n_blocks, block_body, 0)

        out_ref[0] = a_ref[pl.ds(Q + 1, Np), :].astype(out_ref.dtype)

    return kernel


# --------------------------------------------------------------------------
# MLP head kernel: reduction grid over D, policy + critic fused.
# --------------------------------------------------------------------------
def _make_head_kernel(na):
    def kernel(x_ref, w1_ref, b1_ref, wpc_ref, bpc_ref, pa_ref, v_ref, h_acc):
        k = pl.program_id(0)

        @pl.when(k == 0)
        def _():
            h_acc[...] = jnp.zeros_like(h_acc)

        h_acc[...] += jnp.dot(x_ref[...], w1_ref[...],
                              preferred_element_type=jnp.float32)

        @pl.when(k == pl.num_programs(0) - 1)
        def _():
            h = jnp.maximum(h_acc[...] + b1_ref[...], 0.0)       # linear+relu
            out = jnp.dot(h.astype(jnp.bfloat16), wpc_ref[...],
                          preferred_element_type=jnp.float32) + bpc_ref[...]
            logits = out[:, :na]
            m = jnp.max(logits, axis=-1, keepdims=True)          # softmax dim=1
            e = jnp.exp(logits - m)
            pa_ref[...] = e / jnp.sum(e, axis=-1, keepdims=True)
            v_ref[...] = out[:, na:na + 1]                       # critic value

    return kernel


# --------------------------------------------------------------------------
# Forward pass wrapper.
# --------------------------------------------------------------------------
def resnet_actor_critic_forward(params, x_nchw, *, tk_head=4096):
    """x_nchw: [B, nc, H, H] (PyTorch NCHW layout). Returns (pa, V)."""
    B, nc, H, W = x_nchw.shape
    P, Q = H + 2, W + 2
    Np = P * Q
    NE = Np + 2 * Q + 2

    # ---- input in zero-haloed padded row layout: [B, NE, nc] --------------
    x_nhwc = jnp.transpose(x_nchw, (0, 2, 3, 1)).astype(jnp.float32)
    xp = jnp.pad(x_nhwc, ((0, 0), (1, 1), (1, 1), (0, 0))).reshape(B, Np, nc)
    xin = jnp.pad(xp, ((0, 0), (Q + 1, Q + 1), (0, 0)))

    # interior mask: 1 for real (h, w) positions, 0 for padded-border rows
    rows = jnp.arange(Np)
    hh, ww = rows // Q, rows % Q
    mask = (((hh >= 1) & (hh <= H) & (ww >= 1) & (ww <= W))
            .astype(jnp.float32).reshape(Np, 1))

    w1 = params["conv1_w"].astype(jnp.bfloat16)        # [9*nc, 32]
    b1 = params["conv1_b"].astype(jnp.float32)         # [1, 32]
    wt = params["tower_w"].astype(jnp.bfloat16)        # [12, 288, 32]
    bt = params["tower_b"].astype(jnp.float32)         # [12, 1, 32]
    n_blocks = wt.shape[0] // 2

    tower = pl.pallas_call(
        _make_tower_kernel(H, W, n_blocks),
        out_shape=jax.ShapeDtypeStruct((B, Np, 32), jnp.bfloat16),
        grid=(B,),
        in_specs=[
            pl.BlockSpec((1, NE, nc), lambda b: (b, 0, 0)),
            pl.BlockSpec((9 * nc, 32), lambda b: (0, 0)),
            pl.BlockSpec((1, 32), lambda b: (0, 0)),
            pl.BlockSpec(wt.shape, lambda b: (0, 0, 0)),
            pl.BlockSpec(bt.shape, lambda b: (0, 0, 0)),
            pl.BlockSpec((Np, 1), lambda b: (0, 0)),
        ],
        out_specs=pl.BlockSpec((1, Np, 32), lambda b: (b, 0, 0)),
        scratch_shapes=[pltpu.VMEM((NE, 32), jnp.float32)],
        compiler_params=pltpu.CompilerParams(
            dimension_semantics=("parallel",),
            vmem_limit_bytes=48 * 1024 * 1024),
    )(xin, w1, b1, wt, bt, mask)

    # valid NHWC activation -> PyTorch CHW flatten order (x.view(-1, 32*H*H))
    act = tower.reshape(B, P, Q, 32)[:, 1:H + 1, 1:W + 1, :]     # [B, H, W, 32]
    x_flat = jnp.transpose(act, (0, 3, 1, 2)).reshape(B, 32 * H * W)  # bf16

    # ---- MLP head: reduction grid over D ----------------------------------
    D = 32 * H * W
    tk = min(tk_head, D)
    nk = pl.cdiv(D, tk)
    Dp = nk * tk
    xh = x_flat
    wl = params["linear_w"].astype(jnp.float32)
    if Dp != D:                       # zero-pad the contraction (no-op math)
        xh = jnp.pad(xh, ((0, 0), (0, Dp - D)))
        wl = jnp.pad(wl, ((0, Dp - D), (0, 0)))
    wl = wl.astype(jnp.bfloat16)
    bl = params["linear_b"].astype(jnp.float32)

    na = params["policy_w"].shape[-1]
    wpc = jnp.concatenate([params["policy_w"], params["critic_w"]],
                          axis=1).astype(jnp.bfloat16)           # [256, na+1]
    bpc = jnp.concatenate([params["policy_b"], params["critic_b"]],
                          axis=1).astype(jnp.float32)            # [1, na+1]

    pa, v = pl.pallas_call(
        _make_head_kernel(na),
        out_shape=(jax.ShapeDtypeStruct((B, na), jnp.float32),
                   jax.ShapeDtypeStruct((B, 1), jnp.float32)),
        grid=(nk,),
        in_specs=[
            pl.BlockSpec((B, tk), lambda k: (0, k)),
            pl.BlockSpec((tk, 256), lambda k: (k, 0)),
            pl.BlockSpec((1, 256), lambda k: (0, 0)),
            pl.BlockSpec((256, na + 1), lambda k: (0, 0)),
            pl.BlockSpec((1, na + 1), lambda k: (0, 0)),
        ],
        out_specs=(pl.BlockSpec((B, na), lambda k: (0, 0)),
                   pl.BlockSpec((B, 1), lambda k: (0, 0))),
        scratch_shapes=[pltpu.VMEM((B, 256), jnp.float32)],
        compiler_params=pltpu.CompilerParams(
            dimension_semantics=("arbitrary",),
            vmem_limit_bytes=48 * 1024 * 1024),
    )(xh, wl, bl, wpc, bpc)

    return pa, v.reshape(-1)                                     # V.view(-1)


# --------------------------------------------------------------------------
# Pure-XLA reference (same bf16-matmul / f32-accumulate precision).
# --------------------------------------------------------------------------
def reference_forward(params, x_nchw):
    def conv3x3(x, w_flat, b):
        cin, cout = x.shape[1], w_flat.shape[1]
        w = w_flat.reshape(3, 3, cin, cout)                       # HWIO
        y = lax.conv_general_dilated(
            x.astype(jnp.bfloat16), w.astype(jnp.bfloat16),
            window_strides=(1, 1), padding="SAME",
            dimension_numbers=("NCHW", "HWIO", "NCHW"),
            preferred_element_type=jnp.float32)
        return y + b.reshape(1, cout, 1, 1)

    h = jax.nn.relu(conv3x3(x_nchw.astype(jnp.float32),
                            params["conv1_w"], params["conv1_b"]))
    n_blocks = params["tower_w"].shape[0] // 2
    for i in range(n_blocks):
        res = h
        t = jax.nn.relu(conv3x3(h, params["tower_w"][2 * i],
                                params["tower_b"][2 * i]))
        h = jax.nn.relu(conv3x3(t, params["tower_w"][2 * i + 1],
                                params["tower_b"][2 * i + 1]) + res)
    B = x_nchw.shape[0]
    flat = h.reshape(B, -1).astype(jnp.bfloat16)
    z = jnp.maximum(
        jnp.dot(flat, params["linear_w"].astype(jnp.bfloat16),
                preferred_element_type=jnp.float32) + params["linear_b"], 0.0)
    na = params["policy_w"].shape[-1]
    wpc = jnp.concatenate([params["policy_w"], params["critic_w"]],
                          axis=1).astype(jnp.bfloat16)
    bpc = jnp.concatenate([params["policy_b"], params["critic_b"]], axis=1)
    out = jnp.dot(z.astype(jnp.bfloat16), wpc,
                  preferred_element_type=jnp.float32) + bpc
    pa = jax.nn.softmax(out[:, :na], axis=-1)
    return pa, out[:, na]


# --------------------------------------------------------------------------
# Parameter init (self-consistent layout: conv weights [9*Cin, Cout]).
# --------------------------------------------------------------------------
def init_params(key, H_in, nc, na):
    ks = iter(jax.random.split(key, 64))

    def conv_w(cin, cout):
        w = jax.random.normal(next(ks), (9, cin, cout), jnp.float32)
        return (w / jnp.sqrt(9.0 * cin)).reshape(9 * cin, cout)

    def lin_w(din, dout):
        return jax.random.normal(next(ks), (din, dout), jnp.float32) / jnp.sqrt(din)

    def bias(d):
        return 0.01 * jax.random.normal(next(ks), (1, d), jnp.float32)

    p = {"conv1_w": conv_w(nc, 32), "conv1_b": bias(32)}
    p["tower_w"] = jnp.stack([conv_w(32, 32) for _ in range(12)])   # [12,288,32]
    p["tower_b"] = jnp.stack([bias(32) for _ in range(12)])         # [12,1,32]
    D = 32 * H_in * H_in
    p["linear_w"] = lin_w(D, 256)
    p["linear_b"] = bias(256)
    p["policy_w"] = lin_w(256, na)
    p["policy_b"] = bias(na)
    p["critic_w"] = lin_w(256, 1)
    p["critic_b"] = bias(1)
    return p


# --------------------------------------------------------------------------
if __name__ == "__main__":
    B, nc, H_in, na = 2, 4, 16, 4        # small shapes (real model uses H=100)

    key = jax.random.PRNGKey(0)
    pkey, xkey = jax.random.split(key)
    params = init_params(pkey, H_in, nc, na)
    x = jax.random.normal(xkey, (B, nc, H_in, H_in), jnp.float32)

    fwd = jax.jit(resnet_actor_critic_forward)
    pa, V = jax.block_until_ready(fwd(params, x))

    assert pa.shape == (B, na), pa.shape
    assert V.shape == (B,), V.shape
    assert bool(jnp.all(jnp.isfinite(pa))) and bool(jnp.all(jnp.isfinite(V)))
    assert bool(jnp.allclose(jnp.sum(pa, axis=-1), 1.0, atol=1e-4))

    # numerics check against a pure-XLA reference at matching precision
    pa_ref, V_ref = jax.block_until_ready(jax.jit(reference_forward)(params, x))
    assert bool(jnp.allclose(pa, pa_ref, atol=3e-2)), (pa, pa_ref)
    assert bool(jnp.allclose(V, V_ref, rtol=3e-2, atol=3e-2)), (V, V_ref)

    print("KERNEL_OK")
</pallas_src>

<mosaic_0001>
module attributes {stable_mosaic.version = 11 : i64} {
  func.func @kernel(%arg0: i32, %arg1: memref<1x362x4xf32, #tpu.memory_space<vmem>>, %arg2: memref<36x32xbf16, #tpu.memory_space<vmem>>, %arg3: memref<1x32xf32, #tpu.memory_space<vmem>>, %arg4: memref<12x288x32xbf16, #tpu.memory_space<vmem>>, %arg5: memref<12x1x32xf32, #tpu.memory_space<vmem>>, %arg6: memref<324x1xf32, #tpu.memory_space<vmem>>, %arg7: memref<1x324x32xbf16, #tpu.memory_space<vmem>>, %arg8: memref<362x32xf32, #tpu.memory_space<vmem>>) attributes {dimension_semantics = [#tpu.dimension_semantics<parallel>], iteration_bounds = array<i64: 2>, scalar_prefetch = 0 : i64, scratch_operands = 1 : i64, tpu.core_type = #tpu.core_type<tc>, window_params = [{transform_indices = @transform_0, window_bounds = array<i64: 1, 362, 4>}, {pipeline_mode = #tpu.pipeline_mode<synchronous>, transform_indices = @transform_1, window_bounds = array<i64: 36, 32>}, {pipeline_mode = #tpu.pipeline_mode<synchronous>, transform_indices = @transform_2, window_bounds = array<i64: 1, 32>}, {pipeline_mode = #tpu.pipeline_mode<synchronous>, transform_indices = @transform_3, window_bounds = array<i64: 12, 288, 32>}, {pipeline_mode = #tpu.pipeline_mode<synchronous>, transform_indices = @transform_4, window_bounds = array<i64: 12, 1, 32>}, {pipeline_mode = #tpu.pipeline_mode<synchronous>, transform_indices = @transform_5, window_bounds = array<i64: 324, 1>}, {transform_indices = @transform_6, window_bounds = array<i64: 1, 324, 32>}]} {
    %c0 = arith.constant 0 : index
    %c0_0 = arith.constant 0 : index
    %0 = vector.load %arg6[%c0, %c0_0] : memref<324x1xf32, #tpu.memory_space<vmem>>, vector<324x1xf32>
    %cst = arith.constant 0.000000e+00 : f32
    %1 = vector.broadcast %cst : f32 to vector<362x32xf32>
    %c0_1 = arith.constant 0 : index
    %c0_2 = arith.constant 0 : index
    %2 = vector.load %arg8[%c0_1, %c0_2] : memref<362x32xf32, #tpu.memory_space<vmem>>, vector<362x32xf32>
    tpu.vector_store %arg8[%c0_1, %c0_2], %1 {strides = array<i32>} : memref<362x32xf32, #tpu.memory_space<vmem>>, vector<362x32xf32>,
    %c0_3 = arith.constant 0 : index
    %c0_4 = arith.constant 0 : index
    %c0_5 = arith.constant 0 : index
    %3 = vector.load %arg1[%c0_3, %c0_4, %c0_5] : memref<1x362x4xf32, #tpu.memory_space<vmem>>, vector<1x362x4xf32>
    %4 = vector.shape_cast %3 : vector<1x362x4xf32> to vector<362x4xf32>
    %c0_6 = arith.constant 0 : index
    %c0_7 = arith.constant 0 : index
    %5 = vector.load %arg2[%c0_6, %c0_7] : memref<36x32xbf16, #tpu.memory_space<vmem>>, vector<36x32xbf16>
    %c0_8 = arith.constant 0 : index
    %c0_9 = arith.constant 0 : index
    %6 = vector.load %arg3[%c0_8, %c0_9] : memref<1x32xf32, #tpu.memory_space<vmem>>, vector<1x32xf32>
    %7 = vector.extract_strided_slice %4 {offsets = [0, 0], sizes = [324, 4], strides = [1, 1]} : vector<362x4xf32> to vector<324x4xf32>
    %8 = arith.truncf %7 : vector<324x4xf32> to vector<324x4xbf16>
    %9 = vector.extract_strided_slice %4 {offsets = [1, 0], sizes = [324, 4], strides = [1, 1]} : vector<362x4xf32> to vector<324x4xf32>
    %10 = arith.truncf %9 : vector<324x4xf32> to vector<324x4xbf16>
    %11 = vector.extract_strided_slice %4 {offsets = [2, 0], sizes = [324, 4], strides = [1, 1]} : vector<362x4xf32> to vector<324x4xf32>
    %12 = arith.truncf %11 : vector<324x4xf32> to vector<324x4xbf16>
    %13 = vector.extract_strided_slice %4 {offsets = [18, 0], sizes = [324, 4], strides = [1, 1]} : vector<362x4xf32> to vector<324x4xf32>
    %14 = arith.truncf %13 : vector<324x4xf32> to vector<324x4xbf16>
    %15 = vector.extract_strided_slice %4 {offsets = [19, 0], sizes = [324, 4], strides = [1, 1]} : vector<362x4xf32> to vector<324x4xf32>
    %16 = arith.truncf %15 : vector<324x4xf32> to vector<324x4xbf16>
    %17 = vector.extract_strided_slice %4 {offsets = [20, 0], sizes = [324, 4], strides = [1, 1]} : vector<362x4xf32> to vector<324x4xf32>
    %18 = arith.truncf %17 : vector<324x4xf32> to vector<324x4xbf16>
    %19 = vector.extract_strided_slice %4 {offsets = [36, 0], sizes = [324, 4], strides = [1, 1]} : vector<362x4xf32> to vector<324x4xf32>
    %20 = arith.truncf %19 : vector<324x4xf32> to vector<324x4xbf16>
    %21 = vector.extract_strided_slice %4 {offsets = [37, 0], sizes = [324, 4], strides = [1, 1]} : vector<362x4xf32> to vector<324x4xf32>
    %22 = arith.truncf %21 : vector<324x4xf32> to vector<324x4xbf16>
    %23 = vector.extract_strided_slice %4 {offsets = [38, 0], sizes = [324, 4], strides = [1, 1]} : vector<362x4xf32> to vector<324x4xf32>
    %24 = arith.truncf %23 : vector<324x4xf32> to vector<324x4xbf16>
    %25 = tpu.concatenate %8, %10, %12, %14, %16, %18, %20, %22, %24 in 1 : vector<324x4xbf16>, vector<324x4xbf16>, vector<324x4xbf16>, vector<324x4xbf16>, vector<324x4xbf16>, vector<324x4xbf16>, vector<324x4xbf16>, vector<324x4xbf16>, vector<324x4xbf16> -> vector<324x36xbf16>
    %cst_10 = arith.constant dense<0.000000e+00> : vector<324x32xf32>
    %26 = tpu.matmul %25, %5, %cst_10 {dimension_numbers = #tpu.dot_dimension_numbers<[1], [0], [0], [1], [0, 0, 1, 1], [], []>} : vector<324x36xbf16>, vector<36x32xbf16>, vector<324x32xf32> -> vector<324x32xf32>
    %27 = vector.broadcast %6 : vector<1x32xf32> to vector<324x32xf32>
    %28 = arith.addf %26, %27 : vector<324x32xf32>
    %cst_11 = arith.constant 0.000000e+00 : f32
    %29 = vector.broadcast %cst_11 : f32 to vector<324x32xf32>
    %30 = arith.maximumf %28, %29 : vector<324x32xf32>
    %31 = vector.broadcast %0 : vector<324x1xf32> to vector<324x32xf32>
    %32 = arith.mulf %30, %31 : vector<324x32xf32>
    %c19 = arith.constant 19 : index
    %c0_12 = arith.constant 0 : index
    %33 = vector.load %arg8[%c19, %c0_12] : memref<362x32xf32, #tpu.memory_space<vmem>>, vector<324x32xf32>
    tpu.vector_store %arg8[%c19, %c0_12], %32 {strides = array<i32>} : memref<362x32xf32, #tpu.memory_space<vmem>>, vector<324x32xf32>,
    %c0_i32 = arith.constant 0 : i32
    %c6_i32 = arith.constant 6 : i32
    %34 = arith.addi %c0_i32, %c6_i32 : i32
    %c1_i32 = arith.constant 1 : i32
    scf.for %arg9 = %c0_i32 to %34 step %c1_i32  : i32 {
      %c2_i32 = arith.constant 2 : i32
      %40 = arith.muli %c2_i32, %arg9 : i32
      %c19_19 = arith.constant 19 : index
      %c0_20 = arith.constant 0 : index
      %41 = vector.load %arg8[%c19_19, %c0_20] : memref<362x32xf32, #tpu.memory_space<vmem>>, vector<324x32xf32>
      %c0_21 = arith.constant 0 : index
      %c0_22 = arith.constant 0 : index
      %42 = vector.load %arg8[%c0_21, %c0_22] : memref<362x32xf32, #tpu.memory_space<vmem>>, vector<362x32xf32>
      %43 = arith.index_cast %40 : i32 to index
      %c0_23 = arith.constant 0 : index
      %c0_24 = arith.constant 0 : index
      %44 = vector.load %arg4[%43, %c0_23, %c0_24] : memref<12x288x32xbf16, #tpu.memory_space<vmem>>, vector<1x288x32xbf16>
      %45 = vector.shape_cast %44 : vector<1x288x32xbf16> to vector<288x32xbf16>
      %46 = arith.index_cast %40 : i32 to index
      %c0_25 = arith.constant 0 : index
      %c0_26 = arith.constant 0 : index
      %47 = vector.load %arg5[%46, %c0_25, %c0_26] : memref<12x1x32xf32, #tpu.memory_space<vmem>>, vector<1x1x32xf32>
      %48 = vector.shape_cast %47 : vector<1x1x32xf32> to vector<1x32xf32>
      %49 = vector.extract_strided_slice %42 {offsets = [0, 0], sizes = [324, 32], strides = [1, 1]} : vector<362x32xf32> to vector<324x32xf32>
      %50 = arith.truncf %49 : vector<324x32xf32> to vector<324x32xbf16>
      %51 = vector.extract_strided_slice %42 {offsets = [1, 0], sizes = [324, 32], strides = [1, 1]} : vector<362x32xf32> to vector<324x32xf32>
      %52 = arith.truncf %51 : vector<324x32xf32> to vector<324x32xbf16>
      %53 = vector.extract_strided_slice %42 {offsets = [2, 0], sizes = [324, 32], strides = [1, 1]} : vector<362x32xf32> to vector<324x32xf32>
      %54 = arith.truncf %53 : vector<324x32xf32> to vector<324x32xbf16>
      %55 = vector.extract_strided_slice %42 {offsets = [18, 0], sizes = [324, 32], strides = [1, 1]} : vector<362x32xf32> to vector<324x32xf32>
      %56 = arith.truncf %55 : vector<324x32xf32> to vector<324x32xbf16>
      %57 = vector.extract_strided_slice %42 {offsets = [19, 0], sizes = [324, 32], strides = [1, 1]} : vector<362x32xf32> to vector<324x32xf32>
      %58 = arith.truncf %57 : vector<324x32xf32> to vector<324x32xbf16>
      %59 = vector.extract_strided_slice %42 {offsets = [20, 0], sizes = [324, 32], strides = [1, 1]} : vector<362x32xf32> to vector<324x32xf32>
      %60 = arith.truncf %59 : vector<324x32xf32> to vector<324x32xbf16>
      %61 = vector.extract_strided_slice %42 {offsets = [36, 0], sizes = [324, 32], strides = [1, 1]} : vector<362x32xf32> to vector<324x32xf32>
      %62 = arith.truncf %61 : vector<324x32xf32> to vector<324x32xbf16>
      %63 = vector.extract_strided_slice %42 {offsets = [37, 0], sizes = [324, 32], strides = [1, 1]} : vector<362x32xf32> to vector<324x32xf32>
      %64 = arith.truncf %63 : vector<324x32xf32> to vector<324x32xbf16>
      %65 = vector.extract_strided_slice %42 {offsets = [38, 0], sizes = [324, 32], strides = [1, 1]} : vector<362x32xf32> to vector<324x32xf32>
      %66 = arith.truncf %65 : vector<324x32xf32> to vector<324x32xbf16>
      %67 = tpu.concatenate %50, %52, %54, %56, %58, %60, %62, %64, %66 in 1 : vector<324x32xbf16>, vector<324x32xbf16>, vector<324x32xbf16>, vector<324x32xbf16>, vector<324x32xbf16>, vector<324x32xbf16>, vector<324x32xbf16>, vector<324x32xbf16>, vector<324x32xbf16> -> vector<324x288xbf16>
      %cst_27 = arith.constant dense<0.000000e+00> : vector<324x32xf32>
      %68 = tpu.matmul %67, %45, %cst_27 {dimension_numbers = #tpu.dot_dimension_numbers<[1], [0], [0], [1], [0, 0, 1, 1], [], []>} : vector<324x288xbf16>, vector<288x32xbf16>, vector<324x32xf32> -> vector<324x32xf32>
      %69 = vector.broadcast %48 : vector<1x32xf32> to vector<324x32xf32>
      %70 = arith.addf %68, %69 : vector<324x32xf32>
      %cst_28 = arith.constant 0.000000e+00 : f32
      %71 = vector.broadcast %cst_28 : f32 to vector<324x32xf32>
      %72 = arith.maximumf %70, %71 : vector<324x32xf32>
      %73 = vector.broadcast %0 : vector<324x1xf32> to vector<324x32xf32>
      %74 = arith.mulf %72, %73 : vector<324x32xf32>
      %c19_29 = arith.constant 19 : index
      %c0_30 = arith.constant 0 : index
      %75 = vector.load %arg8[%c19_29, %c0_30] : memref<362x32xf32, #tpu.memory_space<vmem>>, vector<324x32xf32>
      tpu.vector_store %arg8[%c19_29, %c0_30], %74 {strides = array<i32>} : memref<362x32xf32, #tpu.memory_space<vmem>>, vector<324x32xf32>,
      %c0_31 = arith.constant 0 : index
      %c0_32 = arith.constant 0 : index
      %76 = vector.load %arg8[%c0_31, %c0_32] : memref<362x32xf32, #tpu.memory_space<vmem>>, vector<362x32xf32>
      %c1_i32_33 = arith.constant 1 : i32
      %77 = arith.addi %40, %c1_i32_33 : i32
      %78 = arith.index_cast %77 : i32 to index
      %c0_34 = arith.constant 0 : index
      %c0_35 = arith.constant 0 : index
      %79 = vector.load %arg4[%78, %c0_34, %c0_35] : memref<12x288x32xbf16, #tpu.memory_space<vmem>>, vector<1x288x32xbf16>
      %80 = vector.shape_cast %79 : vector<1x288x32xbf16> to vector<288x32xbf16>
      %c1_i32_36 = arith.constant 1 : i32
      %81 = arith.addi %40, %c1_i32_36 : i32
      %82 = arith.index_cast %81 : i32 to index
      %c0_37 = arith.constant 0 : index
      %c0_38 = arith.constant 0 : index
      %83 = vector.load %arg5[%82, %c0_37, %c0_38] : memref<12x1x32xf32, #tpu.memory_space<vmem>>, vector<1x1x32xf32>
      %84 = vector.shape_cast %83 : vector<1x1x32xf32> to vector<1x32xf32>
      %85 = vector.extract_strided_slice %76 {offsets = [0, 0], sizes = [324, 32], strides = [1, 1]} : vector<362x32xf32> to vector<324x32xf32>
      %86 = arith.truncf %85 : vector<324x32xf32> to vector<324x32xbf16>
      %87 = vector.extract_strided_slice %76 {offsets = [1, 0], sizes = [324, 32], strides = [1, 1]} : vector<362x32xf32> to vector<324x32xf32>
      %88 = arith.truncf %87 : vector<324x32xf32> to vector<324x32xbf16>
      %89 = vector.extract_strided_slice %76 {offsets = [2, 0], sizes = [324, 32], strides = [1, 1]} : vector<362x32xf32> to vector<324x32xf32>
      %90 = arith.truncf %89 : vector<324x32xf32> to vector<324x32xbf16>
      %91 = vector.extract_strided_slice %76 {offsets = [18, 0], sizes = [324, 32], strides = [1, 1]} : vector<362x32xf32> to vector<324x32xf32>
      %92 = arith.truncf %91 : vector<324x32xf32> to vector<324x32xbf16>
      %93 = vector.extract_strided_slice %76 {offsets = [19, 0], sizes = [324, 32], strides = [1, 1]} : vector<362x32xf32> to vector<324x32xf32>
      %94 = arith.truncf %93 : vector<324x32xf32> to vector<324x32xbf16>
      %95 = vector.extract_strided_slice %76 {offsets = [20, 0], sizes = [324, 32], strides = [1, 1]} : vector<362x32xf32> to vector<324x32xf32>
      %96 = arith.truncf %95 : vector<324x32xf32> to vector<324x32xbf16>
      %97 = vector.extract_strided_slice %76 {offsets = [36, 0], sizes = [324, 32], strides = [1, 1]} : vector<362x32xf32> to vector<324x32xf32>
      %98 = arith.truncf %97 : vector<324x32xf32> to vector<324x32xbf16>
      %99 = vector.extract_strided_slice %76 {offsets = [37, 0], sizes = [324, 32], strides = [1, 1]} : vector<362x32xf32> to vector<324x32xf32>
      %100 = arith.truncf %99 : vector<324x32xf32> to vector<324x32xbf16>
      %101 = vector.extract_strided_slice %76 {offsets = [38, 0], sizes = [324, 32], strides = [1, 1]} : vector<362x32xf32> to vector<324x32xf32>
      %102 = arith.truncf %101 : vector<324x32xf32> to vector<324x32xbf16>
      %103 = tpu.concatenate %86, %88, %90, %92, %94, %96, %98, %100, %102 in 1 : vector<324x32xbf16>, vector<324x32xbf16>, vector<324x32xbf16>, vector<324x32xbf16>, vector<324x32xbf16>, vector<324x32xbf16>, vector<324x32xbf16>, vector<324x32xbf16>, vector<324x32xbf16> -> vector<324x288xbf16>
      %cst_39 = arith.constant dense<0.000000e+00> : vector<324x32xf32>
      %104 = tpu.matmul %103, %80, %cst_39 {dimension_numbers = #tpu.dot_dimension_numbers<[1], [0], [0], [1], [0, 0, 1, 1], [], []>} : vector<324x288xbf16>, vector<288x32xbf16>, vector<324x32xf32> -> vector<324x32xf32>
      %105 = vector.broadcast %84 : vector<1x32xf32> to vector<324x32xf32>
      %106 = arith.addf %104, %105 : vector<324x32xf32>
      %107 = arith.addf %106, %41 : vector<324x32xf32>
      %cst_40 = arith.constant 0.000000e+00 : f32
      %108 = vector.broadcast %cst_40 : f32 to vector<324x32xf32>
      %109 = arith.maximumf %107, %108 : vector<324x32xf32>
      %110 = vector.broadcast %0 : vector<324x1xf32> to vector<324x32xf32>
      %111 = arith.mulf %109, %110 : vector<324x32xf32>
      %c19_41 = arith.constant 19 : index
      %c0_42 = arith.constant 0 : index
      %112 = vector.load %arg8[%c19_41, %c0_42] : memref<362x32xf32, #tpu.memory_space<vmem>>, vector<324x32xf32>
      tpu.vector_store %arg8[%c19_41, %c0_42], %111 {strides = array<i32>} : memref<362x32xf32, #tpu.memory_space<vmem>>, vector<324x32xf32>,
    }
    %c6_i32_13 = arith.constant 6 : i32
    %c19_14 = arith.constant 19 : index
    %c0_15 = arith.constant 0 : index
    %35 = vector.load %arg8[%c19_14, %c0_15] : memref<362x32xf32, #tpu.memory_space<vmem>>, vector<324x32xf32>
    %36 = arith.truncf %35 : vector<324x32xf32> to vector<324x32xbf16>
    %c0_16 = arith.constant 0 : index
    %c0_17 = arith.constant 0 : index
    %c0_18 = arith.constant 0 : index
    %37 = vector.load %arg7[%c0_16, %c0_17, %c0_18] : memref<1x324x32xbf16, #tpu.memory_space<vmem>>, vector<1x324x32xbf16>
    %38 = vector.shape_cast %37 : vector<1x324x32xbf16> to vector<324x32xbf16>
    %39 = vector.shape_cast %36 : vector<324x32xbf16> to vector<1x324x32xbf16>
    tpu.vector_store %arg7[%c0_16, %c0_17, %c0_18], %39 {strides = array<i32>} : memref<1x324x32xbf16, #tpu.memory_space<vmem>>, vector<1x324x32xbf16>,
    return
  }
  func.func @transform_0(%arg0: i32) -> (i32, i32, i32) {
    %c0_i32 = arith.constant 0 : i32
    %c0_i32_0 = arith.constant 0 : i32
    %c0_i32_1 = arith.constant 0 : i32
    return %arg0, %c0_i32, %c0_i32_0 : i32, i32, i32
  }
  func.func @transform_1(%arg0: i32) -> (i32, i32) {
    %c0_i32 = arith.constant 0 : i32
    %c0_i32_0 = arith.constant 0 : i32
    %c0_i32_1 = arith.constant 0 : i32
    return %c0_i32, %c0_i32_0 : i32, i32
  }
  func.func @transform_2(%arg0: i32) -> (i32, i32) {
    %c0_i32 = arith.constant 0 : i32
    %c0_i32_0 = arith.constant 0 : i32
    %c0_i32_1 = arith.constant 0 : i32
    return %c0_i32, %c0_i32_0 : i32, i32
  }
  func.func @transform_3(%arg0: i32) -> (i32, i32, i32) {
    %c0_i32 = arith.constant 0 : i32
    %c0_i32_0 = arith.constant 0 : i32
    %c0_i32_1 = arith.constant 0 : i32
    %c0_i32_2 = arith.constant 0 : i32
    return %c0_i32, %c0_i32_0, %c0_i32_1 : i32, i32, i32
  }
  func.func @transform_4(%arg0: i32) -> (i32, i32, i32) {
    %c0_i32 = arith.constant 0 : i32
    %c0_i32_0 = arith.constant 0 : i32
    %c0_i32_1 = arith.constant 0 : i32
    %c0_i32_2 = arith.constant 0 : i32
    return %c0_i32, %c0_i32_0, %c0_i32_1 : i32, i32, i32
  }
  func.func @transform_5(%arg0: i32) -> (i32, i32) {
    %c0_i32 = arith.constant 0 : i32
    %c0_i32_0 = arith.constant 0 : i32
    %c0_i32_1 = arith.constant 0 : i32
    return %c0_i32, %c0_i32_0 : i32, i32
  }
  func.func @transform_6(%arg0: i32) -> (i32, i32, i32) {
    %c0_i32 = arith.constant 0 : i32
    %c0_i32_0 = arith.constant 0 : i32
    %c0_i32_1 = arith.constant 0 : i32
    return %arg0, %c0_i32, %c0_i32_0 : i32, i32, i32
  }
}

module attributes {stable_mosaic.version = 11 : i64} {
  func.func @kernel(%arg0: i32, %arg1: memref<2x4096xbf16, #tpu.memory_space<vmem>>, %arg2: memref<4096x256xbf16, #tpu.memory_space<vmem>>, %arg3: memref<1x256xf32, #tpu.memory_space<vmem>>, %arg4: memref<256x5xbf16, #tpu.memory_space<vmem>>, %arg5: memref<1x5xf32, #tpu.memory_space<vmem>>, %arg6: memref<2x4xf32, #tpu.memory_space<vmem>>, %arg7: memref<2x1xf32, #tpu.memory_space<vmem>>, %arg8: memref<2x256xf32, #tpu.memory_space<vmem>>) attributes {dimension_semantics = [#tpu.dimension_semantics<arbitrary>], iteration_bounds = array<i64: 2>, scalar_prefetch = 0 : i64, scratch_operands = 1 : i64, tpu.core_type = #tpu.core_type<tc>, window_params = [{transform_indices = @transform_0, window_bounds = array<i64: 2, 4096>}, {transform_indices = @transform_1, window_bounds = array<i64: 4096, 256>}, {pipeline_mode = #tpu.pipeline_mode<synchronous>, transform_indices = @transform_2, window_bounds = array<i64: 1, 256>}, {pipeline_mode = #tpu.pipeline_mode<synchronous>, transform_indices = @transform_3, window_bounds = array<i64: 256, 5>}, {pipeline_mode = #tpu.pipeline_mode<synchronous>, transform_indices = @transform_4, window_bounds = array<i64: 1, 5>}, {pipeline_mode = #tpu.pipeline_mode<synchronous>, transform_indices = @transform_5, window_bounds = array<i64: 2, 4>}, {pipeline_mode = #tpu.pipeline_mode<synchronous>, transform_indices = @transform_6, window_bounds = array<i64: 2, 1>}]} {
    %c0_i32 = arith.constant 0 : i32
    %0 = arith.cmpi eq, %arg0, %c0_i32 : i32
    %1 = arith.extui %0 : i1 to i32
    %c0_i32_0 = arith.constant 0 : i32
    %2 = arith.cmpi ne, %1, %c0_i32_0 : i32
    scf.if %2 {
      %cst_9 = arith.constant 0.000000e+00 : f32
      %12 = vector.broadcast %cst_9 : f32 to vector<2x256xf32>
      %c0_10 = arith.constant 0 : index
      %c0_11 = arith.constant 0 : index
      %13 = vector.load %arg8[%c0_10, %c0_11] : memref<2x256xf32, #tpu.memory_space<vmem>>, vector<2x256xf32>
      tpu.vector_store %arg8[%c0_10, %c0_11], %12 {strides = array<i32>} : memref<2x256xf32, #tpu.memory_space<vmem>>, vector<2x256xf32>,
    } else {
    }
    %c0 = arith.constant 0 : index
    %c0_1 = arith.constant 0 : index
    %3 = vector.load %arg8[%c0, %c0_1] : memref<2x256xf32, #tpu.memory_space<vmem>>, vector<2x256xf32>
    %c0_2 = arith.constant 0 : index
    %c0_3 = arith.constant 0 : index
    %4 = vector.load %arg1[%c0_2, %c0_3] : memref<2x4096xbf16, #tpu.memory_space<vmem>>, vector<2x4096xbf16>
    %c0_4 = arith.constant 0 : index
    %c0_5 = arith.constant 0 : index
    %5 = vector.load %arg2[%c0_4, %c0_5] : memref<4096x256xbf16, #tpu.memory_space<vmem>>, vector<4096x256xbf16>
    %cst = arith.constant dense<0.000000e+00> : vector<2x256xf32>
    %6 = tpu.matmul %4, %5, %cst {dimension_numbers = #tpu.dot_dimension_numbers<[1], [0], [0], [1], [0, 0, 1, 1], [], []>} : vector<2x4096xbf16>, vector<4096x256xbf16>, vector<2x256xf32> -> vector<2x256xf32>
    %7 = arith.addf %3, %6 : vector<2x256xf32>
    %c0_6 = arith.constant 0 : index
    %c0_7 = arith.constant 0 : index
    %8 = vector.load %arg8[%c0_6, %c0_7] : memref<2x256xf32, #tpu.memory_space<vmem>>, vector<2x256xf32>
    tpu.vector_store %arg8[%c0_6, %c0_7], %7 {strides = array<i32>} : memref<2x256xf32, #tpu.memory_space<vmem>>, vector<2x256xf32>,
    %c1_i32 = arith.constant 1 : i32
    %9 = arith.cmpi eq, %arg0, %c1_i32 : i32
    %10 = arith.extui %9 : i1 to i32
    %c0_i32_8 = arith.constant 0 : i32
    %11 = arith.cmpi ne, %10, %c0_i32_8 : i32
    scf.if %11 {
      %c0_9 = arith.constant 0 : index
      %c0_10 = arith.constant 0 : index
      %12 = vector.load %arg8[%c0_9, %c0_10] : memref<2x256xf32, #tpu.memory_space<vmem>>, vector<2x256xf32>
      %c0_11 = arith.constant 0 : index
      %c0_12 = arith.constant 0 : index
      %13 = vector.load %arg3[%c0_11, %c0_12] : memref<1x256xf32, #tpu.memory_space<vmem>>, vector<1x256xf32>
      %14 = vector.broadcast %13 : vector<1x256xf32> to vector<2x256xf32>
      %15 = arith.addf %12, %14 : vector<2x256xf32>
      %cst_13 = arith.constant 0.000000e+00 : f32
      %16 = vector.broadcast %cst_13 : f32 to vector<2x256xf32>
      %17 = arith.maximumf %15, %16 : vector<2x256xf32>
      %18 = arith.truncf %17 : vector<2x256xf32> to vector<2x256xbf16>
      %c0_14 = arith.constant 0 : index
      %c0_15 = arith.constant 0 : index
      %19 = vector.load %arg4[%c0_14, %c0_15] : memref<256x5xbf16, #tpu.memory_space<vmem>>, vector<256x5xbf16>
      %cst_16 = arith.constant dense<0.000000e+00> : vector<2x5xf32>
      %20 = tpu.matmul %18, %19, %cst_16 {dimension_numbers = #tpu.dot_dimension_numbers<[1], [0], [0], [1], [0, 0, 1, 1], [], []>} : vector<2x256xbf16>, vector<256x5xbf16>, vector<2x5xf32> -> vector<2x5xf32>
      %c0_17 = arith.constant 0 : index
      %c0_18 = arith.constant 0 : index
      %21 = vector.load %arg5[%c0_17, %c0_18] : memref<1x5xf32, #tpu.memory_space<vmem>>, vector<1x5xf32>
      %22 = vector.broadcast %21 : vector<1x5xf32> to vector<2x5xf32>
      %23 = arith.addf %20, %22 : vector<2x5xf32>
      %24 = vector.extract_strided_slice %23 {offsets = [0, 0], sizes = [2, 4], strides = [1, 1]} : vector<2x5xf32> to vector<2x4xf32>
      %cst_19 = arith.constant dense<0xFF800000> : vector<2xf32>
      %25 = vector.multi_reduction <maximumf>, %24, %cst_19 [1] : vector<2x4xf32> to vector<2xf32>
      %26 = vector.shape_cast %25 : vector<2xf32> to vector<2x1xf32>
      %27 = vector.broadcast %26 : vector<2x1xf32> to vector<2x4xf32>
      %28 = arith.subf %24, %27 : vector<2x4xf32>
      %29 = math.exp %28 : vector<2x4xf32>
      %cst_20 = arith.constant dense<0.000000e+00> : vector<2xf32>
      %30 = vector.multi_reduction <add>, %29, %cst_20 [1] : vector<2x4xf32> to vector<2xf32>
      %31 = vector.shape_cast %30 : vector<2xf32> to vector<2x1xf32>
      %32 = vector.broadcast %31 : vector<2x1xf32> to vector<2x4xf32>
      %33 = arith.divf %29, %32 : vector<2x4xf32>
      %c0_21 = arith.constant 0 : index
      %c0_22 = arith.constant 0 : index
      %34 = vector.load %arg6[%c0_21, %c0_22] : memref<2x4xf32, #tpu.memory_space<vmem>>, vector<2x4xf32>
      tpu.vector_store %arg6[%c0_21, %c0_22], %33 {strides = array<i32>} : memref<2x4xf32, #tpu.memory_space<vmem>>, vector<2x4xf32>,
      %35 = vector.extract_strided_slice %23 {offsets = [0, 4], sizes = [2, 1], strides = [1, 1]} : vector<2x5xf32> to vector<2x1xf32>
      %c0_23 = arith.constant 0 : index
      %c0_24 = arith.constant 0 : index
      %36 = vector.load %arg7[%c0_23, %c0_24] : memref<2x1xf32, #tpu.memory_space<vmem>>, vector<2x1xf32>
      tpu.vector_store %arg7[%c0_23, %c0_24], %35 {strides = array<i32>} : memref<2x1xf32, #tpu.memory_space<vmem>>, vector<2x1xf32>,
    } else {
    }
    return
  }
  func.func @transform_0(%arg0: i32) -> (i32, i32) {
    %c0_i32 = arith.constant 0 : i32
    %c0_i32_0 = arith.constant 0 : i32
    return %c0_i32, %arg0 : i32, i32
  }
  func.func @transform_1(%arg0: i32) -> (i32, i32) {
    %c0_i32 = arith.constant 0 : i32
    %c0_i32_0 = arith.constant 0 : i32
    return %arg0, %c0_i32 : i32, i32
  }
  func.func @transform_2(%arg0: i32) -> (i32, i32) {
    %c0_i32 = arith.constant 0 : i32
    %c0_i32_0 = arith.constant 0 : i32
    %c0_i32_1 = arith.constant 0 : i32
    return %c0_i32, %c0_i32_0 : i32, i32
  }
  func.func @transform_3(%arg0: i32) -> (i32, i32) {
    %c0_i32 = arith.constant 0 : i32
    %c0_i32_0 = arith.constant 0 : i32
    %c0_i32_1 = arith.constant 0 : i32
    return %c0_i32, %c0_i32_0 : i32, i32
  }
  func.func @transform_4(%arg0: i32) -> (i32, i32) {
    %c0_i32 = arith.constant 0 : i32
    %c0_i32_0 = arith.constant 0 : i32
    %c0_i32_1 = arith.constant 0 : i32
    return %c0_i32, %c0_i32_0 : i32, i32
  }
  func.func @transform_5(%arg0: i32) -> (i32, i32) {
    %c0_i32 = arith.constant 0 : i32
    %c0_i32_0 = arith.constant 0 : i32
    %c0_i32_1 = arith.constant 0 : i32
    return %c0_i32, %c0_i32_0 : i32, i32
  }
  func.func @transform_6(%arg0: i32) -> (i32, i32) {
    %c0_i32 = arith.constant 0 : i32
    %c0_i32_0 = arith.constant 0 : i32
    %c0_i32_1 = arith.constant 0 : i32
    return %c0_i32, %c0_i32_0 : i32, i32
  }
}

</mosaic_0001>

<bundles_post_ra>
// kernel: resnet_actor_critic_forward.3
= control target key start
LH: loop header
LB: loop body
LE: loop exit
PB: predicated region body
PF: predicated region fallthrough
CT: control target
= control target key end

     0   :  { %12 = vsyncpa [#allocation4], 0  ;;  %s6051_s21 = smov 0   ;;  %s6829_s0 = inlined_call_operand.vmem [shape: bf16[2,8192], index: 0, kind: input, shape index: {}]   ;;  %s6830_s1 = inlined_call_operand.vmem [shape: bf16[8192,256], index: 1, kind: input, shape index: {}]   ;;  %s6831_s2 = inlined_call_operand.vmem [shape: f32[1,256], index: 2, kind: input, shape index: {}]   ;;  %s6832_s3 = inlined_call_operand.vmem [shape: bf16[256,5], index: 3, kind: input, shape index: {}]   ;;  %s6833_s4 = inlined_call_operand.vmem [shape: f32[1,5], index: 4, kind: input, shape index: {}]   ;;  %s6834_s5 = inlined_call_operand.hbm [shape: f32[2,4], index: 5, kind: output, shape index: {0}]   ;;  %s6835_s6 = inlined_call_operand.vmem [shape: f32[2,1], index: 6, kind: output, shape index: {1}]  }
   0x1 LB: > { %s6057_s22 = sadd.s32 4294967295, %s6009_s21   ;;  %p4541_p0 = scmp.ge.s32.totalorder %s6009_s21, 1  ;;  %s6009_s21 = sphi %s6051_s21, %s18_s21  }
   0x2   : > { %p218_p1 = scmp.lt.s32.totalorder %s6009_s21, 3 }
   0x4   : > { %p219_p2 = pnand %p4541_p0, %p218_p1 }
   0x5   : > { %s4542_s23 = sshll.u32 (!%p219_p2), %s6057_s22, 5  ;;  %s4543_s24 = sshll.u32 (!%p219_p2), %s6057_s22, 9 }
   0x6   : > { %222 = sbr.rel (%p219_p2) target bundleno = 1333 (0x535), region = 40  ;;  %p249_p3 = scmp.lt.s32.totalorder (!%p219_p2), %s4542_s23, 63 }
   0x7   : > { %p254_p4 = scmp.lt.s32.totalorder (!%p219_p2), %s4543_s24, 1023  ;;  %p4546_p5 = scmp.ne.s32.totalorder (!%p219_p2), %s6057_s22, 0 }
   0xd   : > { %s6837_s23 = smov (!%p249_p3, %s4542_s23), 63  ;;  %s6839_s24 = smov (!%p254_p4, %s4543_s24), 1023 }
   0xe   : > { %s6066_s27 = scalar_lea.vmem %s6829_s0, %s6837_s23  ;;  %s5081_s28 = sshll.u32 %s6839_s24, 3  ;;  %v6011_v0 = vmov (!%p4546_p5), 0.0  }
   0xf   : > { %s6071_s7 = scalar_lea.vmem %s6830_s1, %s5081_s28  ;;  %264 = sbr.rel (%p4546_p5) target bundleno = 22 (0x16), region = 44  ;;  %265 = vst [vmem:[#allocation2] sm:$0xf] (!%p4546_p5), %v6011_v0 }
  0x16 PF: > { %v5181_v1 = vld [vmem:[%s6071_s7 + $0x4] ss:$8 sps:$4 sm:$0xff]   ;;  %v5185_v3 = vld [vmem:[%s6071_s7] ss:$8 sps:$4 sm:$0xff]   ;;  %v5187_v5 = vld [vmem:[%s6071_s7 + $0x14] ss:$8 sps:$4 sm:$0xff]   ;;  %v791_v39 = vlaneseq }
  0x17   : > { %v5183_v2 = vld [vmem:[%s6071_s7 + $0x804] ss:$8 sps:$4 sm:$0xff]   ;;  %3575 = vmatprep.subr.bf16.mxu1 %v5181_v1  ;;  %v5186_v4 = vld [vmem:[%s6071_s7 + $0x800] ss:$8 sps:$4 sm:$0xff]   ;;  %v5189_v6 = vld [vmem:[%s6071_s7 + $0x814] ss:$8 sps:$4 sm:$0xff]  }
  0x18   : > { %3903 = vmatprep.subr.bf16.mxu0 %v5183_v2  ;;  %3576 = vmatpush1.bf16.msra.mxu1 %v5185_v3  ;;  %v5191_v7 = vld [vmem:[%s6071_s7 + $0x10] ss:$8 sps:$4 sm:$0xff]   ;;  %v5193_v9 = vld [vmem:[%s6071_s7 + $0x24] ss:$8 sps:$4 sm:$0xff]   ;;  %v5197_v11 = vld [vmem:[%s6071_s7 + $0x20] ss:$8 sps:$4 sm:$0xff]  }
  0x19   : > { %3904 = vmatpush1.bf16.msra.mxu0 %v5186_v4  ;;  %3577 = vmatprep.subr.bf16.mxu1 %v5187_v5  ;;  %v5192_v8 = vld [vmem:[%s6071_s7 + $0x810] ss:$8 sps:$4 sm:$0xff]   ;;  %v5195_v10 = vld [vmem:[%s6071_s7 + $0x824] ss:$8 sps:$4 sm:$0xff]   ;;  %v5198_v12 = vld [vmem:[%s6071_s7 + $0x820] ss:$8 sps:$4 sm:$0xff]  }
  0x1a   : > { %3905 = vmatprep.subr.bf16.mxu0 %v5189_v6  ;;  %v5199_v13 = vld [vmem:[%s6071_s7 + $0x34] ss:$8 sps:$4 sm:$0xff]   ;;  %v5203_v15 = vld [vmem:[%s6071_s7 + $0x30] ss:$8 sps:$4 sm:$0xff]   ;;  %v5205_v17 = vld [vmem:[%s6071_s7 + $0x44] ss:$8 sps:$4 sm:$0xff]  }
  0x1b   : > { %v5201_v14 = vld [vmem:[%s6071_s7 + $0x834] ss:$8 sps:$4 sm:$0xff]   ;;  %v5204_v16 = vld [vmem:[%s6071_s7 + $0x830] ss:$8 sps:$4 sm:$0xff]   ;;  %v5207_v18 = vld [vmem:[%s6071_s7 + $0x844] ss:$8 sps:$4 sm:$0xff]  }
  0x1c   : > { %3578 = vmatpush1.bf16.msra.mxu1 %v5191_v7  ;;  %v5209_v19 = vld [vmem:[%s6071_s7 + $0x40] ss:$8 sps:$4 sm:$0xff]   ;;  %v5211_v21 = vld [vmem:[%s6071_s7 + $0x54] ss:$8 sps:$4 sm:$0xff]   ;;  %v5215_v23 = vld [vmem:[%s6071_s7 + $0x50] ss:$8 sps:$4 sm:$0xff]  }
  0x1d   : > { %3906 = vmatpush1.bf16.msra.mxu0 %v5192_v8  ;;  %3579 = vmatprep.subr.bf16.mxu1 %v5193_v9  ;;  %v5210_v20 = vld [vmem:[%s6071_s7 + $0x840] ss:$8 sps:$4 sm:$0xff]   ;;  %v5213_v22 = vld [vmem:[%s6071_s7 + $0x854] ss:$8 sps:$4 sm:$0xff]   ;;  %v5216_v24 = vld [vmem:[%s6071_s7 + $0x850] ss:$8 sps:$4 sm:$0xff]  }
  0x1e   : > { %3907 = vmatprep.subr.bf16.mxu0 %v5195_v10  ;;  %v5217_v25 = vld [vmem:[%s6071_s7 + $0x64] ss:$8 sps:$4 sm:$0xff]   ;;  %v5221_v27 = vld [vmem:[%s6071_s7 + $0x60] ss:$8 sps:$4 sm:$0xff]   ;;  %v5223_v29 = vld [vmem:[%s6071_s7 + $0x74] ss:$8 sps:$4 sm:$0xff]  }
  0x1f   : > { %v5219_v26 = vld [vmem:[%s6071_s7 + $0x864] ss:$8 sps:$4 sm:$0xff]   ;;  %v5222_v28 = vld [vmem:[%s6071_s7 + $0x860] ss:$8 sps:$4 sm:$0xff]   ;;  %v5225_v30 = vld [vmem:[%s6071_s7 + $0x874] ss:$8 sps:$4 sm:$0xff]  }
  0x20   : > { %3580 = vmatpush1.bf16.msra.mxu1 %v5197_v11  ;;  %v5227_v31 = vld [vmem:[%s6071_s7 + $0x70] ss:$8 sps:$4 sm:$0xff]   ;;  %v5229_v33 = vld [vmem:[%s6071_s7 + $0x84] ss:$8 sps:$4 sm:$0xff]   ;;  %v5233_v35 = vld [vmem:[%s6071_s7 + $0x80] ss:$8 sps:$4 sm:$0xff]  }
  0x21   : > { %3908 = vmatpush1.bf16.msra.mxu0 %v5198_v12  ;;  %3581 = vmatprep.subr.bf16.mxu1 %v5199_v13  ;;  %v5228_v32 = vld [vmem:[%s6071_s7 + $0x870] ss:$8 sps:$4 sm:$0xff]   ;;  %v5231_v34 = vld [vmem:[%s6071_s7 + $0x884] ss:$8 sps:$4 sm:$0xff]   ;;  %v5234_v36 = vld [vmem:[%s6071_s7 + $0x880] ss:$8 sps:$4 sm:$0xff]  }
  0x22   : > { %3909 = vmatprep.subr.bf16.mxu0 %v5201_v14  ;;  %v6012_v37 = vmov 1966171168   ;;  %v5235_v40 = vld [vmem:[%s6071_s7 + $0x94] ss:$8 sps:$4 sm:$0xff]   ;;  %v5239_v42 = vld [vmem:[%s6071_s7 + $0x90] ss:$8 sps:$4 sm:$0xff]  }
  0x23   : > { %v789_v38 = vunpack.c.l.s4 %v6012_v37  ;;  %v5237_v41 = vld [vmem:[%s6071_s7 + $0x894] ss:$8 sps:$4 sm:$0xff]   ;;  %v6113_v44 = vshrl.u32 %v791_v39, 7  ;;  %v5240_v45 = vld [vmem:[%s6071_s7 + $0x890] ss:$8 sps:$4 sm:$0xff]   ;;  %v6126_v53 = vld [vmem:[%s6066_s27] sm:$0xff] }
  0x24   : > { %3582 = vmatpush1.bf16.msra.mxu1 %v5203_v15  ;;  %v5241_v46 = vld [vmem:[%s6071_s7 + $0xa4] ss:$8 sps:$4 sm:$0xff]   ;;  %v5245_v48 = vld [vmem:[%s6071_s7 + $0xa0] ss:$8 sps:$4 sm:$0xff]   ;;  %v5247_v51 = vld [vmem:[%s6071_s7 + $0xb4] ss:$8 sps:$4 sm:$0xff]  }
  0x25   : > { %3910 = vmatpush1.bf16.msra.mxu0 %v5204_v16  ;;  %3583 = vmatprep.subr.bf16.mxu1 %v5205_v17  ;;  %v790_v43 = vunpack.c.0.s8 %v789_v38  ;;  %v5243_v47 = vld [vmem:[%s6071_s7 + $0x8a4] ss:$8 sps:$4 sm:$0xff]   ;;  %v5246_v49 = vld [vmem:[%s6071_s7 + $0x8a0] ss:$8 sps:$4 sm:$0xff]   ;;  %v5249_v52 = vld [vmem:[%s6071_s7 + $0x8b4] ss:$8 sps:$4 sm:$0xff]  }
  0x26   : > { %3911 = vmatprep.subr.bf16.mxu0 %v5207_v18  ;;  %v5251_v54 = vld [vmem:[%s6071_s7 + $0xb0] ss:$8 sps:$4 sm:$0xff]   ;;  %v5253_v58 = vld [vmem:[%s6071_s7 + $0xc4] ss:$8 sps:$4 sm:$0xff]   ;;  %v5257_v0 = vld [vmem:[%s6071_s7 + $0xc0] ss:$8 sps:$4 sm:$0xff]  }
  0x27   : > { %v6121_v50 = vsub.s32 %v790_v43, %v6113_v44  ;;  %v5252_v56 = vld [vmem:[%s6071_s7 + $0x8b0] ss:$8 sps:$4 sm:$0xff]   ;;  %v5255_v59 = vld [vmem:[%s6071_s7 + $0x8c4] ss:$8 sps:$4 sm:$0xff]   ;;  %v5258_v1 = vld [vmem:[%s6071_s7 + $0x8c0] ss:$8 sps:$4 sm:$0xff]  }
  0x28   : > { %3584 = vmatpush1.bf16.msra.mxu1 %v5209_v19  ;;  %v6133_v57 = vld [vmem:[%s6066_s27 + $0x10] sm:$0xff]  ;;  %v5265_v7 = vld [vmem:[%s6071_s7 + $0xe4] ss:$8 sps:$4 sm:$0xff]   ;;  %v5269_v9 = vld [vmem:[%s6071_s7 + $0xe0] ss:$8 sps:$4 sm:$0xff]   ;;  %p5059_p6 = scmp.ne.s32.totalorder %s6057_s22, 1 }
  0x29   : > { %3912 = vmatpush1.bf16.msra.mxu0 %v5210_v20  ;;  %3585 = vmatprep.subr.bf16.mxu1 %v5211_v21  ;;  %v794_v55 = vrot.slane %v6126_v53, %v6121_v50  ;;  %v892_v61 = vrot.slane %v6133_v57, %v6121_v50  ;;  %v5259_v2 = vld [vmem:[%s6071_s7 + $0xd4] ss:$8 sps:$4 sm:$0xff]   ;;  %v5263_v5 = vld [vmem:[%s6071_s7 + $0xd0] ss:$8 sps:$4 sm:$0xff]   ;;  %v5267_v8 = vld [vmem:[%s6071_s7 + $0x8e4] ss:$8 sps:$4 sm:$0xff]  }
  0x2a   : > { %3913 = vmatprep.subr.bf16.mxu0 %v5213_v22  ;;  %v5261_v3 = vld [vmem:[%s6071_s7 + $0x8d4] ss:$8 sps:$4 sm:$0xff]   ;;  %v5264_v6 = vld [vmem:[%s6071_s7 + $0x8d0] ss:$8 sps:$4 sm:$0xff]   ;;  %v5270_v10 = vld [vmem:[%s6071_s7 + $0x8e0] ss:$8 sps:$4 sm:$0xff]  }
  0x2b   : > { %v802_v60 = vcombine.high %v794_v55, %v794_v55  ;;  %v900_v63 = vcombine.high %v892_v61, %v892_v61  ;;  %v5271_v11 = vld [vmem:[%s6071_s7 + $0xf4] ss:$8 sps:$4 sm:$0xff]   ;;  %v5275_v13 = vld [vmem:[%s6071_s7 + $0xf0] ss:$8 sps:$4 sm:$0xff]   ;;  %v5280_v15 = vld [vmem:[%s6071_s7 + $0x104] ss:$8 sps:$4 sm:$0xff]   ;;  %v6158_v17 = vrot.slane %v794_v55, %v6121_v50  ;;  %v6161_v18 = vrot.slane %v892_v61, %v6121_v50 }
  0x2c   : > { %3586 = vmatpush1.bf16.msra.mxu1 %v5215_v23  ;;  %v5273_v12 = vld [vmem:[%s6071_s7 + $0x8f4] ss:$8 sps:$4 sm:$0xff]   ;;  %v5276_v14 = vld [vmem:[%s6071_s7 + $0x8f0] ss:$8 sps:$4 sm:$0xff]   ;;  %v5284_v16 = vld [vmem:[%s6071_s7 + $0x904] ss:$8 sps:$4 sm:$0xff]  }
  0x2d   : > { %3914 = vmatpush1.bf16.msra.mxu0 %v5216_v24  ;;  %3587 = vmatprep.subr.bf16.mxu1 %v5217_v25  ;;  %v824_v62 = vrot.slane %v802_v60, %v6121_v50  ;;  %v922_v4 = vrot.slane %v900_v63, %v6121_v50  ;;  %v5278_v19 = vld [vmem:[%s6071_s7 + $0x100] ss:$8 sps:$4 sm:$0xff]   ;;  %v5287_v21 = vld [vmem:[%s6071_s7 + $0x114] ss:$8 sps:$4 sm:$0xff]   ;;  %v5285_v25 = vld [vmem:[%s6071_s7 + $0x110] ss:$8 sps:$4 sm:$0xff]  }
  0x2e   : > { %3915 = vmatprep.subr.bf16.mxu0 %v5219_v26  ;;  %v5282_v20 = vld [vmem:[%s6071_s7 + $0x900] ss:$8 sps:$4 sm:$0xff]   ;;  %v5290_v22 = vld [vmem:[%s6071_s7 + $0x914] ss:$8 sps:$4 sm:$0xff]   ;;  %v5288_v26 = vld [vmem:[%s6071_s7 + $0x910] ss:$8 sps:$4 sm:$0xff]  }
  0x2f   : > { %3607 = vmatprep.mubr.bf16.mxu1 %v824_v62  ;;  %3935 = vmatprep.mubr.bf16.mxu0 %v922_v4  ;;  %v834_v23 = vcombine.high %v824_v62, %v824_v62  ;;  %v932_v24 = vcombine.high %v922_v4, %v922_v4  ;;  %v5303_v37 = vld [vmem:[%s6071_s7 + $0x140] ss:$8 sps:$4 sm:$0xff]   ;;  %v5311_v39 = vld [vmem:[%s6071_s7 + $0x154] ss:$8 sps:$4 sm:$0xff]   ;;  %v5317_v43 = vld [vmem:[%s6071_s7 + $0x164] ss:$8 sps:$4 sm:$0xff]  }
  0x30   : > { %3588 = vmatpush1.bf16.msra.mxu1 %v5221_v27  ;;  %v5293_v27 = vld [vmem:[%s6071_s7 + $0x124] ss:$8 sps:$4 sm:$0xff]   ;;  %v5306_v38 = vld [vmem:[%s6071_s7 + $0x940] ss:$8 sps:$4 sm:$0xff]   ;;  %v5338_v60 = vld [vmem:[%s6071_s7 + $0x994] ss:$8 sps:$4 sm:$0xff]  }
  0x31   : > { %3916 = vmatpush1.bf16.msra.mxu0 %v5222_v28  ;;  %3589 = vmatprep.subr.bf16.mxu1 %v5223_v29  ;;  %v5296_v28 = vld [vmem:[%s6071_s7 + $0x924] ss:$8 sps:$4 sm:$0xff]   ;;  %v5291_v29 = vld [vmem:[%s6071_s7 + $0x120] ss:$8 sps:$4 sm:$0xff]   ;;  %v5333_v61 = vld [vmem:[%s6071_s7 + $0x190] ss:$8 sps:$4 sm:$0xff]  }
  0x32   : > { %3917 = vmatprep.subr.bf16.mxu0 %v5225_v30  ;;  %v5294_v30 = vld [vmem:[%s6071_s7 + $0x920] ss:$8 sps:$4 sm:$0xff]   ;;  %v5332_v55 = vld [vmem:[%s6071_s7 + $0x984] ss:$8 sps:$4 sm:$0xff]   ;;  %v5336_v62 = vld [vmem:[%s6071_s7 + $0x990] ss:$8 sps:$4 sm:$0xff]  }
  0x33   : > { %v5341_v63 = vld [vmem:[%s6071_s7 + $0x1a4] ss:$8 sps:$4 sm:$0xff]   ;;  %v5350_v4 = vld [vmem:[%s6071_s7 + $0x9b4] ss:$8 sps:$4 sm:$0xff]   ;;  %vm4458_vm0 = vcmask (!%p5059_p6), 25600   ;;  %s6014_s24 = smov (!%p5059_p6), 124  }
  0x34   : > { %3590 = vmatpush1.bf16.msra.mxu1 %v5227_v31  ;;  %v5299_v31 = vld [vmem:[%s6071_s7 + $0x134] ss:$8 sps:$4 sm:$0xff]   ;;  %vm4475_vm1 = vcmask (!%p5059_p6), 1024  }
  0x35   : > { %3918 = vmatpush1.bf16.msra.mxu0 %v5228_v32  ;;  %3591 = vmatprep.subr.bf16.mxu1 %v5229_v33  ;;  %v5302_v32 = vld [vmem:[%s6071_s7 + $0x934] ss:$8 sps:$4 sm:$0xff]   ;;  %v5297_v33 = vld [vmem:[%s6071_s7 + $0x130] ss:$8 sps:$4 sm:$0xff]  }
  0x36   : > { %3919 = vmatprep.subr.bf16.mxu0 %v5231_v34  ;;  %v5300_v34 = vld [vmem:[%s6071_s7 + $0x930] ss:$8 sps:$4 sm:$0xff]  }
  0x38   : > { %3592 = vmatpush1.bf16.msra.mxu1 %v5233_v35  ;;  %v5305_v35 = vld [vmem:[%s6071_s7 + $0x144] ss:$8 sps:$4 sm:$0xff]  }
  0x39   : > { %3920 = vmatpush1.bf16.msra.mxu0 %v5234_v36  ;;  %3593 = vmatprep.subr.bf16.mxu1 %v5235_v40  ;;  %v5308_v36 = vld [vmem:[%s6071_s7 + $0x944] ss:$8 sps:$4 sm:$0xff]   ;;  %v5314_v40 = vld [vmem:[%s6071_s7 + $0x954] ss:$8 sps:$4 sm:$0xff]  }
  0x3a   : > { %3921 = vmatprep.subr.bf16.mxu0 %v5237_v41  ;;  %v5309_v41 = vld [vmem:[%s6071_s7 + $0x150] ss:$8 sps:$4 sm:$0xff]  }
  0x3c   : > { %3594 = vmatpush1.bf16.msra.mxu1 %v5239_v42  ;;  %v5312_v42 = vld [vmem:[%s6071_s7 + $0x950] ss:$8 sps:$4 sm:$0xff]  }
  0x3d   : > { %3922 = vmatpush1.bf16.msra.mxu0 %v5240_v45  ;;  %3595 = vmatprep.subr.bf16.mxu1 %v5241_v46  ;;  %v5320_v45 = vld [vmem:[%s6071_s7 + $0x964] ss:$8 sps:$4 sm:$0xff]   ;;  %v5315_v46 = vld [vmem:[%s6071_s7 + $0x160] ss:$8 sps:$4 sm:$0xff]  }
  0x3e   : > { %3923 = vmatprep.subr.bf16.mxu0 %v5243_v47  ;;  %v5318_v47 = vld [vmem:[%s6071_s7 + $0x960] ss:$8 sps:$4 sm:$0xff]  }
  0x40   : > { %3596 = vmatpush1.bf16.msra.mxu1 %v5245_v48  ;;  %v5323_v48 = vld [vmem:[%s6071_s7 + $0x174] ss:$8 sps:$4 sm:$0xff]  }
  0x41   : > { %3924 = vmatpush1.bf16.msra.mxu0 %v5246_v49  ;;  %3597 = vmatprep.subr.bf16.mxu1 %v5247_v51  ;;  %v5326_v49 = vld [vmem:[%s6071_s7 + $0x974] ss:$8 sps:$4 sm:$0xff]   ;;  %v5321_v51 = vld [vmem:[%s6071_s7 + $0x170] ss:$8 sps:$4 sm:$0xff]  }
  0x42   : > { %3925 = vmatprep.subr.bf16.mxu0 %v5249_v52  ;;  %v5324_v52 = vld [vmem:[%s6071_s7 + $0x970] ss:$8 sps:$4 sm:$0xff]  }
  0x44   : > { %3598 = vmatpush1.bf16.msra.mxu1 %v5251_v54  ;;  %v5329_v54 = vld [vmem:[%s6071_s7 + $0x184] ss:$8 sps:$4 sm:$0xff]  }
  0x45   : > { %3926 = vmatpush1.bf16.msra.mxu0 %v5252_v56  ;;  %3599 = vmatprep.subr.bf16.mxu1 %v5253_v58  ;;  %v5327_v56 = vld [vmem:[%s6071_s7 + $0x180] ss:$8 sps:$4 sm:$0xff]  }
  0x46   : > { %3927 = vmatprep.subr.bf16.mxu0 %v5255_v59  ;;  %v5330_v58 = vld [vmem:[%s6071_s7 + $0x980] ss:$8 sps:$4 sm:$0xff]   ;;  %v5335_v59 = vld [vmem:[%s6071_s7 + $0x194] ss:$8 sps:$4 sm:$0xff]  }
  0x48   : > { %3600 = vmatpush1.bf16.msra.mxu1 %v5257_v0  ;;  %v5344_v0 = vld [vmem:[%s6071_s7 + $0x9a4] ss:$8 sps:$4 sm:$0xff]  }
  0x49   : > { %3928 = vmatpush1.bf16.msra.mxu0 %v5258_v1  ;;  %3601 = vmatprep.subr.bf16.mxu1 %v5259_v2  ;;  %v5339_v1 = vld [vmem:[%s6071_s7 + $0x1a0] ss:$8 sps:$4 sm:$0xff]  }
  0x4a   : > { %3929 = vmatprep.subr.bf16.mxu0 %v5261_v3  ;;  %v5342_v2 = vld [vmem:[%s6071_s7 + $0x9a0] ss:$8 sps:$4 sm:$0xff]   ;;  %v5347_v3 = vld [vmem:[%s6071_s7 + $0x1b4] ss:$8 sps:$4 sm:$0xff]  }
  0x4c   : > { %3602 = vmatpush1.bf16.msra.mxu1 %v5263_v5  ;;  %v5345_v5 = vld [vmem:[%s6071_s7 + $0x1b0] ss:$8 sps:$4 sm:$0xff]  }
  0x4d   : > { %3930 = vmatpush1.bf16.msra.mxu0 %v5264_v6  ;;  %3603 = vmatprep.subr.bf16.mxu1 %v5265_v7  ;;  %v5348_v6 = vld [vmem:[%s6071_s7 + $0x9b0] ss:$8 sps:$4 sm:$0xff]   ;;  %v5353_v7 = vld [vmem:[%s6071_s7 + $0x1c4] ss:$8 sps:$4 sm:$0xff]  }
  0x4e   : > { %3931 = vmatprep.subr.bf16.mxu0 %v5267_v8  ;;  %v5356_v8 = vld [vmem:[%s6071_s7 + $0x9c4] ss:$8 sps:$4 sm:$0xff]  }
  0x50   : > { %3604 = vmatpush1.bf16.msra.mxu1 %v5269_v9  ;;  %v5351_v9 = vld [vmem:[%s6071_s7 + $0x1c0] ss:$8 sps:$4 sm:$0xff]  }
  0x51   : > { %3932 = vmatpush1.bf16.msra.mxu0 %v5270_v10  ;;  %3605 = vmatprep.subr.bf16.mxu1 %v5271_v11  ;;  %v5354_v10 = vld [vmem:[%s6071_s7 + $0x9c0] ss:$8 sps:$4 sm:$0xff]   ;;  %v5359_v11 = vld [vmem:[%s6071_s7 + $0x1d4] ss:$8 sps:$4 sm:$0xff]  }
  0x52   : > { %3933 = vmatprep.subr.bf16.mxu0 %v5273_v12  ;;  %v5362_v12 = vld [vmem:[%s6071_s7 + $0x9d4] ss:$8 sps:$4 sm:$0xff]  }
  0x54   : > { %3606 = vmatpush1.bf16.msra.mxu1 %v5275_v13  ;;  %v5357_v13 = vld [vmem:[%s6071_s7 + $0x1d0] ss:$8 sps:$4 sm:$0xff]  }
  0x55   : > { %3934 = vmatpush1.bf16.msra.mxu0 %v5276_v14  ;;  %3616 = vmatprep.subr.bf16.mxu1 %v5280_v15  ;;  %v5360_v14 = vld [vmem:[%s6071_s7 + $0x9d0] ss:$8 sps:$4 sm:$0xff]   ;;  %v5365_v15 = vld [vmem:[%s6071_s7 + $0x1e4] ss:$8 sps:$4 sm:$0xff]  }
  0x56   : > { %3944 = vmatprep.subr.bf16.mxu0 %v5284_v16  ;;  %v5368_v16 = vld [vmem:[%s6071_s7 + $0x9e4] ss:$8 sps:$4 sm:$0xff]  }
  0x57   : > { %3608 = vmatmul.mubr.bf16.vlgmr.msra.gmra.mrb[0].mxu1 %v6158_v17 }
  0x58   : > { %3936 = vmatmul.mubr.bf16.vlgmr.msra.gmra.mrb[0].mxu0 %v6161_v18  ;;  %3617 = vmatpush1.bf16.msra.mxu1 %v5278_v19  ;;  %v787_v19 = vcombine.high %v6126_v53, %v6126_v53  ;;  %v5369_v53 = vld [vmem:[%s6071_s7 + $0x1f0] ss:$8 sps:$4 sm:$0xff]  }
  0x59   : > { %3945 = vmatpush1.bf16.msra.mxu0 %v5282_v20  ;;  %3618 = vmatprep.subr.bf16.mxu1 %v5287_v21  ;;  %v885_v20 = vcombine.high %v6133_v57, %v6133_v57  ;;  %v5363_v21 = vld [vmem:[%s6071_s7 + $0x1e0] ss:$8 sps:$4 sm:$0xff]   ;;  %v5372_v57 = vld [vmem:[%s6071_s7 + $0x9f0] ss:$8 sps:$4 sm:$0xff]  }
  0x5a   : > { %3946 = vmatprep.subr.bf16.mxu0 %v5290_v22  ;;  %3648 = vmatprep.mubr.bf16.mxu1 %v834_v23  ;;  %v5366_v22 = vld [vmem:[%s6071_s7 + $0x9e0] ss:$8 sps:$4 sm:$0xff]   ;;  %v5371_v23 = vld [vmem:[%s6071_s7 + $0x1f4] ss:$8 sps:$4 sm:$0xff]  }
  0x5b   : > { %3976 = vmatprep.mubr.bf16.mxu0 %v932_v24  ;;  %v5374_v24 = vld [vmem:[%s6071_s7 + $0x9f4] ss:$8 sps:$4 sm:$0xff]  }
  0x5c   : > { %3619 = vmatpush1.bf16.msra.mxu1 %v5285_v25  ;;  %v6230_v25 = vrot.slane %v787_v19, %v6121_v50  ;;  %v5441_v19 = vld [vmem:[%s6071_s7 + $0x2b0] ss:$8 sps:$4 sm:$0xff]  }
  0x5d   : > { %3947 = vmatpush1.bf16.msra.mxu0 %v5288_v26  ;;  %3620 = vmatprep.subr.bf16.mxu1 %v5293_v27  ;;  %v6233_v26 = vrot.slane %v885_v20, %v6121_v50  ;;  %v5377_v27 = vld [vmem:[%s6071_s7 + $0x204] ss:$8 sps:$4 sm:$0xff]   ;;  %v5444_v20 = vld [vmem:[%s6071_s7 + $0xab0] ss:$8 sps:$4 sm:$0xff]  }
  0x5e   : > { %3948 = vmatprep.subr.bf16.mxu0 %v5296_v28  ;;  %v5380_v28 = vld [vmem:[%s6071_s7 + $0xa04] ss:$8 sps:$4 sm:$0xff]  }
  0x60   : > { %3621 = vmatpush1.bf16.msra.mxu1 %v5291_v29  ;;  %v803_v29 = vcombine.high %v6230_v25, %v6230_v25 }
  0x61   : > { %3949 = vmatpush1.bf16.msra.mxu0 %v5294_v30  ;;  %3622 = vmatprep.subr.bf16.mxu1 %v5299_v31  ;;  %v901_v30 = vcombine.high %v6233_v26, %v6233_v26  ;;  %v832_v31 = vcombine.high %v6158_v17, %v6158_v17 }
  0x62   : > { %3950 = vmatprep.subr.bf16.mxu0 %v5302_v32  ;;  %v930_v32 = vcombine.high %v6161_v18, %v6161_v18  ;;  %v5381_v18 = vld [vmem:[%s6071_s7 + $0x210] ss:$8 sps:$4 sm:$0xff]  }
  0x63   : > { %v6255_v17 = vrot.slane %v901_v30, %v6121_v50  ;;  %v5464_v30 = vld [vmem:[%s6071_s7 + $0xae4] ss:$8 sps:$4 sm:$0xff]  }
  0x64   : > { %3623 = vmatpush1.bf16.msra.mxu1 %v5297_v33  ;;  %v5375_v33 = vld [vmem:[%s6071_s7 + $0x200] ss:$8 sps:$4 sm:$0xff]  }
  0x65   : > { %3951 = vmatpush1.bf16.msra.mxu0 %v5300_v34  ;;  %3624 = vmatprep.subr.bf16.mxu1 %v5305_v35  ;;  %v5378_v34 = vld [vmem:[%s6071_s7 + $0xa00] ss:$8 sps:$4 sm:$0xff]   ;;  %v5383_v35 = vld [vmem:[%s6071_s7 + $0x214] ss:$8 sps:$4 sm:$0xff]  }
  0x66   : > { %3952 = vmatprep.subr.bf16.mxu0 %v5308_v36  ;;  %v5386_v36 = vld [vmem:[%s6071_s7 + $0xa14] ss:$8 sps:$4 sm:$0xff]  }
  0x68   : > { %3625 = vmatpush1.bf16.msra.mxu1 %v5303_v37  ;;  %v6252_v37 = vrot.slane %v803_v29, %v6121_v50  ;;  %v5461_v29 = vld [vmem:[%s6071_s7 + $0x2e4] ss:$8 sps:$4 sm:$0xff]  }
  0x69   : > { %3953 = vmatpush1.bf16.msra.mxu0 %v5306_v38  ;;  %3626 = vmatprep.subr.bf16.mxu1 %v5311_v39  ;;  %v5384_v38 = vld [vmem:[%s6071_s7 + $0xa10] ss:$8 sps:$4 sm:$0xff]   ;;  %v5389_v39 = vld [vmem:[%s6071_s7 + $0x224] ss:$8 sps:$4 sm:$0xff]  }
  0x6a   : > { %3954 = vmatprep.subr.bf16.mxu0 %v5314_v40  ;;  %v5392_v40 = vld [vmem:[%s6071_s7 + $0xa24] ss:$8 sps:$4 sm:$0xff]  }
  0x6c   : > { %3627 = vmatpush1.bf16.msra.mxu1 %v5309_v41  ;;  %v5387_v41 = vld [vmem:[%s6071_s7 + $0x220] ss:$8 sps:$4 sm:$0xff]  }
  0x6d   : > { %3955 = vmatpush1.bf16.msra.mxu0 %v5312_v42  ;;  %3628 = vmatprep.subr.bf16.mxu1 %v5317_v43  ;;  %v5390_v42 = vld [vmem:[%s6071_s7 + $0xa20] ss:$8 sps:$4 sm:$0xff]   ;;  %v5395_v43 = vld [vmem:[%s6071_s7 + $0x234] ss:$8 sps:$4 sm:$0xff]  }
  0x6e   : > { %3956 = vmatprep.subr.bf16.mxu0 %v5320_v45  ;;  %v5398_v45 = vld [vmem:[%s6071_s7 + $0xa34] ss:$8 sps:$4 sm:$0xff]  }
  0x70   : > { %3629 = vmatpush1.bf16.msra.mxu1 %v5315_v46  ;;  %v5393_v46 = vld [vmem:[%s6071_s7 + $0x230] ss:$8 sps:$4 sm:$0xff]  }
  0x71   : > { %3957 = vmatpush1.bf16.msra.mxu0 %v5318_v47  ;;  %3630 = vmatprep.subr.bf16.mxu1 %v5323_v48  ;;  %v5396_v47 = vld [vmem:[%s6071_s7 + $0xa30] ss:$8 sps:$4 sm:$0xff]   ;;  %v5401_v48 = vld [vmem:[%s6071_s7 + $0x244] ss:$8 sps:$4 sm:$0xff]  }
  0x72   : > { %3958 = vmatprep.subr.bf16.mxu0 %v5326_v49  ;;  %v5404_v49 = vld [vmem:[%s6071_s7 + $0xa44] ss:$8 sps:$4 sm:$0xff]  }
  0x74   : > { %3631 = vmatpush1.bf16.msra.mxu1 %v5321_v51  ;;  %v5399_v51 = vld [vmem:[%s6071_s7 + $0x240] ss:$8 sps:$4 sm:$0xff]  }
  0x75   : > { %3959 = vmatpush1.bf16.msra.mxu0 %v5324_v52  ;;  %3632 = vmatprep.subr.bf16.mxu1 %v5329_v54  ;;  %v5402_v52 = vld [vmem:[%s6071_s7 + $0xa40] ss:$8 sps:$4 sm:$0xff]   ;;  %v5407_v54 = vld [vmem:[%s6071_s7 + $0x254] ss:$8 sps:$4 sm:$0xff]  }
  0x76   : > { %3960 = vmatprep.subr.bf16.mxu0 %v5332_v55  ;;  %v5410_v55 = vld [vmem:[%s6071_s7 + $0xa54] ss:$8 sps:$4 sm:$0xff]  }
  0x78   : > { %3633 = vmatpush1.bf16.msra.mxu1 %v5327_v56  ;;  %v5405_v56 = vld [vmem:[%s6071_s7 + $0x250] ss:$8 sps:$4 sm:$0xff]  }
  0x79   : > { %3961 = vmatpush1.bf16.msra.mxu0 %v5330_v58  ;;  %3634 = vmatprep.subr.bf16.mxu1 %v5335_v59  ;;  %v5408_v58 = vld [vmem:[%s6071_s7 + $0xa50] ss:$8 sps:$4 sm:$0xff]   ;;  %v5413_v59 = vld [vmem:[%s6071_s7 + $0x264] ss:$8 sps:$4 sm:$0xff]  }
  0x7a   : > { %3962 = vmatprep.subr.bf16.mxu0 %v5338_v60  ;;  %v5416_v60 = vld [vmem:[%s6071_s7 + $0xa64] ss:$8 sps:$4 sm:$0xff]  }
  0x7c   : > { %3635 = vmatpush1.bf16.msra.mxu1 %v5333_v61  ;;  %v5411_v61 = vld [vmem:[%s6071_s7 + $0x260] ss:$8 sps:$4 sm:$0xff]  }
  0x7d   : > { %3963 = vmatpush1.bf16.msra.mxu0 %v5336_v62  ;;  %3636 = vmatprep.subr.bf16.mxu1 %v5341_v63  ;;  %v5414_v62 = vld [vmem:[%s6071_s7 + $0xa60] ss:$8 sps:$4 sm:$0xff]   ;;  %v5419_v63 = vld [vmem:[%s6071_s7 + $0x274] ss:$8 sps:$4 sm:$0xff]  }
  0x7e   : > { %3964 = vmatprep.subr.bf16.mxu0 %v5344_v0  ;;  %v5422_v0 = vld [vmem:[%s6071_s7 + $0xa74] ss:$8 sps:$4 sm:$0xff]  }
  0x80   : > { %3637 = vmatpush1.bf16.msra.mxu1 %v5339_v1  ;;  %v5417_v1 = vld [vmem:[%s6071_s7 + $0x270] ss:$8 sps:$4 sm:$0xff]  }
  0x81   : > { %3965 = vmatpush1.bf16.msra.mxu0 %v5342_v2  ;;  %3638 = vmatprep.subr.bf16.mxu1 %v5347_v3  ;;  %v5420_v2 = vld [vmem:[%s6071_s7 + $0xa70] ss:$8 sps:$4 sm:$0xff]   ;;  %v5425_v3 = vld [vmem:[%s6071_s7 + $0x284] ss:$8 sps:$4 sm:$0xff]  }
  0x82   : > { %3966 = vmatprep.subr.bf16.mxu0 %v5350_v4  ;;  %v5428_v4 = vld [vmem:[%s6071_s7 + $0xa84] ss:$8 sps:$4 sm:$0xff]  }
  0x84   : > { %3639 = vmatpush1.bf16.msra.mxu1 %v5345_v5  ;;  %v5423_v5 = vld [vmem:[%s6071_s7 + $0x280] ss:$8 sps:$4 sm:$0xff]  }
  0x85   : > { %3967 = vmatpush1.bf16.msra.mxu0 %v5348_v6  ;;  %3640 = vmatprep.subr.bf16.mxu1 %v5353_v7  ;;  %v5426_v6 = vld [vmem:[%s6071_s7 + $0xa80] ss:$8 sps:$4 sm:$0xff]   ;;  %v5431_v7 = vld [vmem:[%s6071_s7 + $0x294] ss:$8 sps:$4 sm:$0xff]  }
  0x86   : > { %3968 = vmatprep.subr.bf16.mxu0 %v5356_v8  ;;  %v5434_v8 = vld [vmem:[%s6071_s7 + $0xa94] ss:$8 sps:$4 sm:$0xff]  }
  0x88   : > { %3641 = vmatpush1.bf16.msra.mxu1 %v5351_v9  ;;  %v5429_v9 = vld [vmem:[%s6071_s7 + $0x290] ss:$8 sps:$4 sm:$0xff]  }
  0x89   : > { %3969 = vmatpush1.bf16.msra.mxu0 %v5354_v10  ;;  %3642 = vmatprep.subr.bf16.mxu1 %v5359_v11  ;;  %v5432_v10 = vld [vmem:[%s6071_s7 + $0xa90] ss:$8 sps:$4 sm:$0xff]   ;;  %v5437_v11 = vld [vmem:[%s6071_s7 + $0x2a4] ss:$8 sps:$4 sm:$0xff]  }
  0x8a   : > { %3970 = vmatprep.subr.bf16.mxu0 %v5362_v12  ;;  %v5440_v12 = vld [vmem:[%s6071_s7 + $0xaa4] ss:$8 sps:$4 sm:$0xff]  }
  0x8c   : > { %3643 = vmatpush1.bf16.msra.mxu1 %v5357_v13  ;;  %v5435_v13 = vld [vmem:[%s6071_s7 + $0x2a0] ss:$8 sps:$4 sm:$0xff]  }
  0x8d   : > { %3971 = vmatpush1.bf16.msra.mxu0 %v5360_v14  ;;  %3644 = vmatprep.subr.bf16.mxu1 %v5365_v15  ;;  %v5438_v14 = vld [vmem:[%s6071_s7 + $0xaa0] ss:$8 sps:$4 sm:$0xff]   ;;  %v5443_v15 = vld [vmem:[%s6071_s7 + $0x2b4] ss:$8 sps:$4 sm:$0xff]  }
  0x8e   : > { %3972 = vmatprep.subr.bf16.mxu0 %v5368_v16  ;;  %v5446_v16 = vld [vmem:[%s6071_s7 + $0xab4] ss:$8 sps:$4 sm:$0xff]  }
  0x90   : > { %3645 = vmatpush1.bf16.msra.mxu1 %v5363_v21  ;;  %v5449_v21 = vld [vmem:[%s6071_s7 + $0x2c4] ss:$8 sps:$4 sm:$0xff]  }
  0x91   : > { %3973 = vmatpush1.bf16.msra.mxu0 %v5366_v22  ;;  %3646 = vmatprep.subr.bf16.mxu1 %v5371_v23  ;;  %v5452_v22 = vld [vmem:[%s6071_s7 + $0xac4] ss:$8 sps:$4 sm:$0xff]   ;;  %v5447_v23 = vld [vmem:[%s6071_s7 + $0x2c0] ss:$8 sps:$4 sm:$0xff]  }
  0x92   : > { %3974 = vmatprep.subr.bf16.mxu0 %v5374_v24  ;;  %v5450_v24 = vld [vmem:[%s6071_s7 + $0xac0] ss:$8 sps:$4 sm:$0xff]  }
  0x94   : > { %3647 = vmatpush1.bf16.msra.mxu1 %v5369_v53  ;;  %v5455_v53 = vld [vmem:[%s6071_s7 + $0x2d4] ss:$8 sps:$4 sm:$0xff]  }
  0x95   : > { %3975 = vmatpush1.bf16.msra.mxu0 %v5372_v57  ;;  %3657 = vmatprep.subr.bf16.mxu1 %v5377_v27  ;;  %v5458_v57 = vld [vmem:[%s6071_s7 + $0xad4] ss:$8 sps:$4 sm:$0xff]   ;;  %v5453_v27 = vld [vmem:[%s6071_s7 + $0x2d0] ss:$8 sps:$4 sm:$0xff]  }
  0x96   : > { %3985 = vmatprep.subr.bf16.mxu0 %v5380_v28  ;;  %v5456_v28 = vld [vmem:[%s6071_s7 + $0xad0] ss:$8 sps:$4 sm:$0xff]  }
  0x97   : > { %3649 = vmatmul.mubr.bf16.vlgmr.msra.gmra.mrb[0].mxu1 %v832_v31  ;;  %v5459_v31 = vld [vmem:[%s6071_s7 + $0x2e0] ss:$8 sps:$4 sm:$0xff]  }
  0x98   : > { %3977 = vmatmul.mubr.bf16.vlgmr.msra.gmra.mrb[0].mxu0 %v930_v32  ;;  %3658 = vmatpush1.bf16.msra.mxu1 %v5375_v33  ;;  %v5462_v32 = vld [vmem:[%s6071_s7 + $0xae0] ss:$8 sps:$4 sm:$0xff]   ;;  %v5467_v33 = vld [vmem:[%s6071_s7 + $0x2f4] ss:$8 sps:$4 sm:$0xff]  }
  0x99   : > { %3986 = vmatpush1.bf16.msra.mxu0 %v5378_v34  ;;  %3659 = vmatprep.subr.bf16.mxu1 %v5383_v35  ;;  %v5470_v34 = vld [vmem:[%s6071_s7 + $0xaf4] ss:$8 sps:$4 sm:$0xff]   ;;  %v5465_v35 = vld [vmem:[%s6071_s7 + $0x2f0] ss:$8 sps:$4 sm:$0xff]  }
  0x9a   : > { %3987 = vmatprep.subr.bf16.mxu0 %v5386_v36  ;;  %3689 = vmatprep.mubr.bf16.mxu1 %v6252_v37  ;;  %v5468_v36 = vld [vmem:[%s6071_s7 + $0xaf0] ss:$8 sps:$4 sm:$0xff]  }
  0x9b   : > { %4017 = vmatprep.mubr.bf16.mxu0 %v6255_v17 }
  0x9c   : > { %3660 = vmatpush1.bf16.msra.mxu1 %v5381_v18  ;;  %v5473_v18 = vld [vmem:[%s6071_s7 + $0x304] ss:$8 sps:$4 sm:$0xff]  }
  0x9d   : > { %3988 = vmatpush1.bf16.msra.mxu0 %v5384_v38  ;;  %3661 = vmatprep.subr.bf16.mxu1 %v5389_v39  ;;  %v5476_v38 = vld [vmem:[%s6071_s7 + $0xb04] ss:$8 sps:$4 sm:$0xff]   ;;  %v6321_v39 = vrot.slane %v6230_v25, %v6121_v50  ;;  %v835_v25 = vcombine.high %v6252_v37, %v6252_v37 }
  0x9e   : > { %3989 = vmatprep.subr.bf16.mxu0 %v5392_v40  ;;  %v6325_v40 = vrot.slane %v6233_v26, %v6121_v50  ;;  %v5477_v26 = vld [vmem:[%s6071_s7 + $0x310] ss:$8 sps:$4 sm:$0xff]   ;;  %v5485_v37 = vld [vmem:[%s6071_s7 + $0x324] ss:$8 sps:$4 sm:$0xff]  }
  0xa0   : > { %3662 = vmatpush1.bf16.msra.mxu1 %v5387_v41  ;;  %v5471_v41 = vld [vmem:[%s6071_s7 + $0x300] ss:$8 sps:$4 sm:$0xff]  }
  0xa1   : > { %3990 = vmatpush1.bf16.msra.mxu0 %v5390_v42  ;;  %3663 = vmatprep.subr.bf16.mxu1 %v5395_v43  ;;  %v5474_v42 = vld [vmem:[%s6071_s7 + $0xb00] ss:$8 sps:$4 sm:$0xff]   ;;  %v5479_v43 = vld [vmem:[%s6071_s7 + $0x314] ss:$8 sps:$4 sm:$0xff]  }
  0xa2   : > { %3991 = vmatprep.subr.bf16.mxu0 %v5398_v45  ;;  %v5482_v45 = vld [vmem:[%s6071_s7 + $0xb14] ss:$8 sps:$4 sm:$0xff]  }
  0xa4   : > { %3664 = vmatpush1.bf16.msra.mxu1 %v5393_v46  ;;  %v933_v46 = vcombine.high %v6255_v17, %v6255_v17  ;;  %v5483_v17 = vld [vmem:[%s6071_s7 + $0x320] ss:$8 sps:$4 sm:$0xff]  }
  0xa5   : > { %3992 = vmatpush1.bf16.msra.mxu0 %v5396_v47  ;;  %3665 = vmatprep.subr.bf16.mxu1 %v5401_v48  ;;  %v5480_v47 = vld [vmem:[%s6071_s7 + $0xb10] ss:$8 sps:$4 sm:$0xff]   ;;  %v5488_v48 = vld [vmem:[%s6071_s7 + $0xb24] ss:$8 sps:$4 sm:$0xff]  }
  0xa6   : > { %3993 = vmatprep.subr.bf16.mxu0 %v5404_v49  ;;  %v5486_v49 = vld [vmem:[%s6071_s7 + $0xb20] ss:$8 sps:$4 sm:$0xff]  }
  0xa8   : > { %3666 = vmatpush1.bf16.msra.mxu1 %v5399_v51  ;;  %v5491_v51 = vld [vmem:[%s6071_s7 + $0x334] ss:$8 sps:$4 sm:$0xff]  }
  0xa9   : > { %3994 = vmatpush1.bf16.msra.mxu0 %v5402_v52  ;;  %3667 = vmatprep.subr.bf16.mxu1 %v5407_v54  ;;  %v5494_v52 = vld [vmem:[%s6071_s7 + $0xb34] ss:$8 sps:$4 sm:$0xff]   ;;  %v5489_v54 = vld [vmem:[%s6071_s7 + $0x330] ss:$8 sps:$4 sm:$0xff]  }
  0xaa   : > { %3995 = vmatprep.subr.bf16.mxu0 %v5410_v55  ;;  %v5492_v55 = vld [vmem:[%s6071_s7 + $0xb30] ss:$8 sps:$4 sm:$0xff]  }
  0xac   : > { %3668 = vmatpush1.bf16.msra.mxu1 %v5405_v56  ;;  %v5497_v56 = vld [vmem:[%s6071_s7 + $0x344] ss:$8 sps:$4 sm:$0xff]  }
  0xad   : > { %3996 = vmatpush1.bf16.msra.mxu0 %v5408_v58  ;;  %3669 = vmatprep.subr.bf16.mxu1 %v5413_v59  ;;  %v5500_v58 = vld [vmem:[%s6071_s7 + $0xb44] ss:$8 sps:$4 sm:$0xff]   ;;  %v5495_v59 = vld [vmem:[%s6071_s7 + $0x340] ss:$8 sps:$4 sm:$0xff]  }
  0xae   : > { %3997 = vmatprep.subr.bf16.mxu0 %v5416_v60  ;;  %v5498_v60 = vld [vmem:[%s6071_s7 + $0xb40] ss:$8 sps:$4 sm:$0xff]  }
  0xb0   : > { %3670 = vmatpush1.bf16.msra.mxu1 %v5411_v61  ;;  %v5503_v61 = vld [vmem:[%s6071_s7 + $0x354] ss:$8 sps:$4 sm:$0xff]  }
  0xb1   : > { %3998 = vmatpush1.bf16.msra.mxu0 %v5414_v62  ;;  %3671 = vmatprep.subr.bf16.mxu1 %v5419_v63  ;;  %v5506_v62 = vld [vmem:[%s6071_s7 + $0xb54] ss:$8 sps:$4 sm:$0xff]   ;;  %v5501_v63 = vld [vmem:[%s6071_s7 + $0x350] ss:$8 sps:$4 sm:$0xff]  }
  0xb2   : > { %3999 = vmatprep.subr.bf16.mxu0 %v5422_v0  ;;  %v5504_v0 = vld [vmem:[%s6071_s7 + $0xb50] ss:$8 sps:$4 sm:$0xff]  }
  0xb4   : > { %3672 = vmatpush1.bf16.msra.mxu1 %v5417_v1  ;;  %v5509_v1 = vld [vmem:[%s6071_s7 + $0x364] ss:$8 sps:$4 sm:$0xff]  }
  0xb5   : > { %4000 = vmatpush1.bf16.msra.mxu0 %v5420_v2  ;;  %3673 = vmatprep.subr.bf16.mxu1 %v5425_v3  ;;  %v5512_v2 = vld [vmem:[%s6071_s7 + $0xb64] ss:$8 sps:$4 sm:$0xff]   ;;  %v5507_v3 = vld [vmem:[%s6071_s7 + $0x360] ss:$8 sps:$4 sm:$0xff]  }
  0xb6   : > { %4001 = vmatprep.subr.bf16.mxu0 %v5428_v4  ;;  %v5510_v4 = vld [vmem:[%s6071_s7 + $0xb60] ss:$8 sps:$4 sm:$0xff]  }
  0xb8   : > { %3674 = vmatpush1.bf16.msra.mxu1 %v5423_v5  ;;  %v5515_v5 = vld [vmem:[%s6071_s7 + $0x374] ss:$8 sps:$4 sm:$0xff]  }
  0xb9   : > { %4002 = vmatpush1.bf16.msra.mxu0 %v5426_v6  ;;  %3675 = vmatprep.subr.bf16.mxu1 %v5431_v7  ;;  %v5518_v6 = vld [vmem:[%s6071_s7 + $0xb74] ss:$8 sps:$4 sm:$0xff]   ;;  %v5513_v7 = vld [vmem:[%s6071_s7 + $0x370] ss:$8 sps:$4 sm:$0xff]  }
  0xba   : > { %4003 = vmatprep.subr.bf16.mxu0 %v5434_v8  ;;  %v5516_v8 = vld [vmem:[%s6071_s7 + $0xb70] ss:$8 sps:$4 sm:$0xff]  }
  0xbc   : > { %3676 = vmatpush1.bf16.msra.mxu1 %v5429_v9  ;;  %v5521_v9 = vld [vmem:[%s6071_s7 + $0x384] ss:$8 sps:$4 sm:$0xff]  }
  0xbd   : > { %4004 = vmatpush1.bf16.msra.mxu0 %v5432_v10  ;;  %3677 = vmatprep.subr.bf16.mxu1 %v5437_v11  ;;  %v5524_v10 = vld [vmem:[%s6071_s7 + $0xb84] ss:$8 sps:$4 sm:$0xff]   ;;  %v5519_v11 = vld [vmem:[%s6071_s7 + $0x380] ss:$8 sps:$4 sm:$0xff]  }
  0xbe   : > { %4005 = vmatprep.subr.bf16.mxu0 %v5440_v12  ;;  %v5522_v12 = vld [vmem:[%s6071_s7 + $0xb80] ss:$8 sps:$4 sm:$0xff]  }
  0xc0   : > { %3678 = vmatpush1.bf16.msra.mxu1 %v5435_v13  ;;  %v5527_v13 = vld [vmem:[%s6071_s7 + $0x394] ss:$8 sps:$4 sm:$0xff]  }
  0xc1   : > { %4006 = vmatpush1.bf16.msra.mxu0 %v5438_v14  ;;  %3679 = vmatprep.subr.bf16.mxu1 %v5443_v15  ;;  %v5530_v14 = vld [vmem:[%s6071_s7 + $0xb94] ss:$8 sps:$4 sm:$0xff]   ;;  %v5525_v15 = vld [vmem:[%s6071_s7 + $0x390] ss:$8 sps:$4 sm:$0xff]  }
  0xc2   : > { %4007 = vmatprep.subr.bf16.mxu0 %v5446_v16  ;;  %v5528_v16 = vld [vmem:[%s6071_s7 + $0xb90] ss:$8 sps:$4 sm:$0xff]  }
  0xc4   : > { %3680 = vmatpush1.bf16.msra.mxu1 %v5441_v19  ;;  %v5533_v19 = vld [vmem:[%s6071_s7 + $0x3a4] ss:$8 sps:$4 sm:$0xff]  }
  0xc5   : > { %4008 = vmatpush1.bf16.msra.mxu0 %v5444_v20  ;;  %3681 = vmatprep.subr.bf16.mxu1 %v5449_v21  ;;  %v5536_v20 = vld [vmem:[%s6071_s7 + $0xba4] ss:$8 sps:$4 sm:$0xff]   ;;  %v5531_v21 = vld [vmem:[%s6071_s7 + $0x3a0] ss:$8 sps:$4 sm:$0xff]  }
  0xc6   : > { %4009 = vmatprep.subr.bf16.mxu0 %v5452_v22  ;;  %v5534_v22 = vld [vmem:[%s6071_s7 + $0xba0] ss:$8 sps:$4 sm:$0xff]  }
  0xc8   : > { %3682 = vmatpush1.bf16.msra.mxu1 %v5447_v23  ;;  %v5539_v23 = vld [vmem:[%s6071_s7 + $0x3b4] ss:$8 sps:$4 sm:$0xff]  }
  0xc9   : > { %4010 = vmatpush1.bf16.msra.mxu0 %v5450_v24  ;;  %3683 = vmatprep.subr.bf16.mxu1 %v5455_v53  ;;  %v5542_v24 = vld [vmem:[%s6071_s7 + $0xbb4] ss:$8 sps:$4 sm:$0xff]   ;;  %v5537_v53 = vld [vmem:[%s6071_s7 + $0x3b0] ss:$8 sps:$4 sm:$0xff]  }
  0xca   : > { %4011 = vmatprep.subr.bf16.mxu0 %v5458_v57  ;;  %v5540_v57 = vld [vmem:[%s6071_s7 + $0xbb0] ss:$8 sps:$4 sm:$0xff]  }
  0xcc   : > { %3684 = vmatpush1.bf16.msra.mxu1 %v5453_v27  ;;  %v5545_v27 = vld [vmem:[%s6071_s7 + $0x3c4] ss:$8 sps:$4 sm:$0xff]  }
  0xcd   : > { %4012 = vmatpush1.bf16.msra.mxu0 %v5456_v28  ;;  %3685 = vmatprep.subr.bf16.mxu1 %v5461_v29  ;;  %v5548_v28 = vld [vmem:[%s6071_s7 + $0xbc4] ss:$8 sps:$4 sm:$0xff]   ;;  %v5543_v29 = vld [vmem:[%s6071_s7 + $0x3c0] ss:$8 sps:$4 sm:$0xff]  }
  0xce   : > { %4013 = vmatprep.subr.bf16.mxu0 %v5464_v30  ;;  %v5546_v30 = vld [vmem:[%s6071_s7 + $0xbc0] ss:$8 sps:$4 sm:$0xff]  }
  0xd0   : > { %3686 = vmatpush1.bf16.msra.mxu1 %v5459_v31  ;;  %v5551_v31 = vld [vmem:[%s6071_s7 + $0x3d4] ss:$8 sps:$4 sm:$0xff]  }
  0xd1   : > { %4014 = vmatpush1.bf16.msra.mxu0 %v5462_v32  ;;  %3687 = vmatprep.subr.bf16.mxu1 %v5467_v33  ;;  %v5554_v32 = vld [vmem:[%s6071_s7 + $0xbd4] ss:$8 sps:$4 sm:$0xff]   ;;  %v5549_v33 = vld [vmem:[%s6071_s7 + $0x3d0] ss:$8 sps:$4 sm:$0xff]  }
  0xd2   : > { %4015 = vmatprep.subr.bf16.mxu0 %v5470_v34  ;;  %v5552_v34 = vld [vmem:[%s6071_s7 + $0xbd0] ss:$8 sps:$4 sm:$0xff]  }
  0xd4   : > { %3688 = vmatpush1.bf16.msra.mxu1 %v5465_v35  ;;  %v5557_v35 = vld [vmem:[%s6071_s7 + $0x3e4] ss:$8 sps:$4 sm:$0xff]  }
  0xd5   : > { %4016 = vmatpush1.bf16.msra.mxu0 %v5468_v36  ;;  %3698 = vmatprep.subr.bf16.mxu1 %v5473_v18  ;;  %v5560_v36 = vld [vmem:[%s6071_s7 + $0xbe4] ss:$8 sps:$4 sm:$0xff]   ;;  %v5555_v18 = vld [vmem:[%s6071_s7 + $0x3e0] ss:$8 sps:$4 sm:$0xff]  }
  0xd6   : > { %4026 = vmatprep.subr.bf16.mxu0 %v5476_v38  ;;  %v5558_v38 = vld [vmem:[%s6071_s7 + $0xbe0] ss:$8 sps:$4 sm:$0xff]  }
  0xd7   : > { %3690 = vmatmul.mubr.bf16.vlgmr.msra.gmra.mrb[0].mxu1 %v6321_v39 }
  0xd8   : > { %4018 = vmatmul.mubr.bf16.vlgmr.msra.gmra.mrb[0].mxu0 %v6325_v40  ;;  %3699 = vmatpush1.bf16.msra.mxu1 %v5471_v41  ;;  %v6392_v41 = vld [vmem:[%s6066_s27 + $0x8] sm:$0xff] }
  0xd9   : > { %4027 = vmatpush1.bf16.msra.mxu0 %v5474_v42  ;;  %3700 = vmatprep.subr.bf16.mxu1 %v5479_v43  ;;  %v6395_v42 = vld [vmem:[%s6066_s27 + $0x18] sm:$0xff] }
  0xda   : > { %4028 = vmatprep.subr.bf16.mxu0 %v5482_v45  ;;  %3730 = vmatprep.mubr.bf16.mxu1 %v835_v25  ;;  %v5563_v43 = vld [vmem:[%s6071_s7 + $0x3f4] ss:$8 sps:$4 sm:$0xff]   ;;  %v6401_v25 = vrot.slane %v6392_v41, %v6121_v50 }
  0xdb   : > { %4058 = vmatprep.mubr.bf16.mxu0 %v933_v46  ;;  %v5566_v45 = vld [vmem:[%s6071_s7 + $0xbf4] ss:$8 sps:$4 sm:$0xff]   ;;  %v6405_v46 = vrot.slane %v6395_v42, %v6121_v50 }
  0xdc   : > { %3701 = vmatpush1.bf16.msra.mxu1 %v5477_v26  ;;  %v5561_v26 = vld [vmem:[%s6071_s7 + $0x3f0] ss:$8 sps:$4 sm:$0xff]  }
  0xdd   : > { %4029 = vmatpush1.bf16.msra.mxu0 %v5480_v47  ;;  %3702 = vmatprep.subr.bf16.mxu1 %v5485_v37  ;;  %v5564_v47 = vld [vmem:[%s6071_s7 + $0xbf0] ss:$8 sps:$4 sm:$0xff]   ;;  %v5569_v37 = vld [vmem:[%s6071_s7 + $0x404] ss:$8 sps:$4 sm:$0xff]  }
  0xde   : > { %4030 = vmatprep.subr.bf16.mxu0 %v5488_v48  ;;  %v5572_v48 = vld [vmem:[%s6071_s7 + $0xc04] ss:$8 sps:$4 sm:$0xff]  }
  0xe0   : > { %3703 = vmatpush1.bf16.msra.mxu1 %v5483_v17  ;;  %v851_v17 = vcombine.high %v6401_v25, %v6401_v25 }
  0xe1   : > { %4031 = vmatpush1.bf16.msra.mxu0 %v5486_v49  ;;  %3704 = vmatprep.subr.bf16.mxu1 %v5491_v51  ;;  %v949_v49 = vcombine.high %v6405_v46, %v6405_v46  ;;  %v5567_v51 = vld [vmem:[%s6071_s7 + $0x400] ss:$8 sps:$4 sm:$0xff]  }
  0xe2   : > { %4032 = vmatprep.subr.bf16.mxu0 %v5494_v52  ;;  %v5570_v52 = vld [vmem:[%s6071_s7 + $0xc00] ss:$8 sps:$4 sm:$0xff]  }
  0xe4   : > { %3705 = vmatpush1.bf16.msra.mxu1 %v5489_v54  ;;  %v833_v54 = vcombine.high %v6321_v39, %v6321_v39  ;;  %v5573_v39 = vld [vmem:[%s6071_s7 + $0x410] ss:$8 sps:$4 sm:$0xff]  }
  0xe5   : > { %4033 = vmatpush1.bf16.msra.mxu0 %v5492_v55  ;;  %3706 = vmatprep.subr.bf16.mxu1 %v5497_v56  ;;  %v931_v55 = vcombine.high %v6325_v40, %v6325_v40  ;;  %v5575_v56 = vld [vmem:[%s6071_s7 + $0x414] ss:$8 sps:$4 sm:$0xff]   ;;  %v5576_v40 = vld [vmem:[%s6071_s7 + $0xc10] ss:$8 sps:$4 sm:$0xff]  }
  0xe6   : > { %4034 = vmatprep.subr.bf16.mxu0 %v5500_v58  ;;  %v5578_v58 = vld [vmem:[%s6071_s7 + $0xc14] ss:$8 sps:$4 sm:$0xff]  }
  0xe8   : > { %3707 = vmatpush1.bf16.msra.mxu1 %v5495_v59  ;;  %v6424_v59 = vrot.slane %v851_v17, %v6121_v50  ;;  %v5645_v17 = vld [vmem:[%s6071_s7 + $0x4d0] ss:$8 sps:$4 sm:$0xff]  }
  0xe9   : > { %4035 = vmatpush1.bf16.msra.mxu0 %v5498_v60  ;;  %3708 = vmatprep.subr.bf16.mxu1 %v5503_v61  ;;  %v6427_v60 = vrot.slane %v949_v49, %v6121_v50  ;;  %v5581_v61 = vld [vmem:[%s6071_s7 + $0x424] ss:$8 sps:$4 sm:$0xff]   ;;  %v5648_v49 = vld [vmem:[%s6071_s7 + $0xcd0] ss:$8 sps:$4 sm:$0xff]  }
  0xea   : > { %4036 = vmatprep.subr.bf16.mxu0 %v5506_v62  ;;  %v5584_v62 = vld [vmem:[%s6071_s7 + $0xc24] ss:$8 sps:$4 sm:$0xff]  }
  0xec   : > { %3709 = vmatpush1.bf16.msra.mxu1 %v5501_v63  ;;  %v5579_v63 = vld [vmem:[%s6071_s7 + $0x420] ss:$8 sps:$4 sm:$0xff]  }
  0xed   : > { %4037 = vmatpush1.bf16.msra.mxu0 %v5504_v0  ;;  %3710 = vmatprep.subr.bf16.mxu1 %v5509_v1  ;;  %v5582_v0 = vld [vmem:[%s6071_s7 + $0xc20] ss:$8 sps:$4 sm:$0xff]   ;;  %v5587_v1 = vld [vmem:[%s6071_s7 + $0x434] ss:$8 sps:$4 sm:$0xff]  }
  0xee   : > { %4038 = vmatprep.subr.bf16.mxu0 %v5512_v2  ;;  %v5590_v2 = vld [vmem:[%s6071_s7 + $0xc34] ss:$8 sps:$4 sm:$0xff]  }
  0xf0   : > { %3711 = vmatpush1.bf16.msra.mxu1 %v5507_v3  ;;  %v5585_v3 = vld [vmem:[%s6071_s7 + $0x430] ss:$8 sps:$4 sm:$0xff]  }
  0xf1   : > { %4039 = vmatpush1.bf16.msra.mxu0 %v5510_v4  ;;  %3712 = vmatprep.subr.bf16.mxu1 %v5515_v5  ;;  %v5588_v4 = vld [vmem:[%s6071_s7 + $0xc30] ss:$8 sps:$4 sm:$0xff]   ;;  %v5593_v5 = vld [vmem:[%s6071_s7 + $0x444] ss:$8 sps:$4 sm:$0xff]  }
  0xf2   : > { %4040 = vmatprep.subr.bf16.mxu0 %v5518_v6  ;;  %v5596_v6 = vld [vmem:[%s6071_s7 + $0xc44] ss:$8 sps:$4 sm:$0xff]  }
  0xf4   : > { %3713 = vmatpush1.bf16.msra.mxu1 %v5513_v7  ;;  %v5591_v7 = vld [vmem:[%s6071_s7 + $0x440] ss:$8 sps:$4 sm:$0xff]  }
  0xf5   : > { %4041 = vmatpush1.bf16.msra.mxu0 %v5516_v8  ;;  %3714 = vmatprep.subr.bf16.mxu1 %v5521_v9  ;;  %v5594_v8 = vld [vmem:[%s6071_s7 + $0xc40] ss:$8 sps:$4 sm:$0xff]   ;;  %v5599_v9 = vld [vmem:[%s6071_s7 + $0x454] ss:$8 sps:$4 sm:$0xff]  }
  0xf6   : > { %4042 = vmatprep.subr.bf16.mxu0 %v5524_v10  ;;  %v5602_v10 = vld [vmem:[%s6071_s7 + $0xc54] ss:$8 sps:$4 sm:$0xff]  }
  0xf8   : > { %3715 = vmatpush1.bf16.msra.mxu1 %v5519_v11  ;;  %v5597_v11 = vld [vmem:[%s6071_s7 + $0x450] ss:$8 sps:$4 sm:$0xff]  }
  0xf9   : > { %4043 = vmatpush1.bf16.msra.mxu0 %v5522_v12  ;;  %3716 = vmatprep.subr.bf16.mxu1 %v5527_v13  ;;  %v5600_v12 = vld [vmem:[%s6071_s7 + $0xc50] ss:$8 sps:$4 sm:$0xff]   ;;  %v5605_v13 = vld [vmem:[%s6071_s7 + $0x464] ss:$8 sps:$4 sm:$0xff]  }
  0xfa   : > { %4044 = vmatprep.subr.bf16.mxu0 %v5530_v14  ;;  %v5608_v14 = vld [vmem:[%s6071_s7 + $0xc64] ss:$8 sps:$4 sm:$0xff]  }
  0xfc   : > { %3717 = vmatpush1.bf16.msra.mxu1 %v5525_v15  ;;  %v5603_v15 = vld [vmem:[%s6071_s7 + $0x460] ss:$8 sps:$4 sm:$0xff]  }
  0xfd   : > { %4045 = vmatpush1.bf16.msra.mxu0 %v5528_v16  ;;  %3718 = vmatprep.subr.bf16.mxu1 %v5533_v19  ;;  %v5606_v16 = vld [vmem:[%s6071_s7 + $0xc60] ss:$8 sps:$4 sm:$0xff]   ;;  %v5611_v19 = vld [vmem:[%s6071_s7 + $0x474] ss:$8 sps:$4 sm:$0xff]  }
  0xfe   : > { %4046 = vmatprep.subr.bf16.mxu0 %v5536_v20  ;;  %v5614_v20 = vld [vmem:[%s6071_s7 + $0xc74] ss:$8 sps:$4 sm:$0xff]  }
 0x100   : > { %3719 = vmatpush1.bf16.msra.mxu1 %v5531_v21  ;;  %v5609_v21 = vld [vmem:[%s6071_s7 + $0x470] ss:$8 sps:$4 sm:$0xff]  }
 0x101   : > { %4047 = vmatpush1.bf16.msra.mxu0 %v5534_v22  ;;  %3720 = vmatprep.subr.bf16.mxu1 %v5539_v23  ;;  %v5612_v22 = vld [vmem:[%s6071_s7 + $0xc70] ss:$8 sps:$4 sm:$0xff]   ;;  %v5617_v23 = vld [vmem:[%s6071_s7 + $0x484] ss:$8 sps:$4 sm:$0xff]  }
 0x102   : > { %4048 = vmatprep.subr.bf16.mxu0 %v5542_v24  ;;  %v5620_v24 = vld [vmem:[%s6071_s7 + $0xc84] ss:$8 sps:$4 sm:$0xff]  }
 0x104   : > { %3721 = vmatpush1.bf16.msra.mxu1 %v5537_v53  ;;  %v5615_v53 = vld [vmem:[%s6071_s7 + $0x480] ss:$8 sps:$4 sm:$0xff]  }
 0x105   : > { %4049 = vmatpush1.bf16.msra.mxu0 %v5540_v57  ;;  %3722 = vmatprep.subr.bf16.mxu1 %v5545_v27  ;;  %v5618_v57 = vld [vmem:[%s6071_s7 + $0xc80] ss:$8 sps:$4 sm:$0xff]   ;;  %v5623_v27 = vld [vmem:[%s6071_s7 + $0x494] ss:$8 sps:$4 sm:$0xff]  }
 0x106   : > { %4050 = vmatprep.subr.bf16.mxu0 %v5548_v28  ;;  %v5626_v28 = vld [vmem:[%s6071_s7 + $0xc94] ss:$8 sps:$4 sm:$0xff]  }
 0x108   : > { %3723 = vmatpush1.bf16.msra.mxu1 %v5543_v29  ;;  %v5621_v29 = vld [vmem:[%s6071_s7 + $0x490] ss:$8 sps:$4 sm:$0xff]  }
 0x109   : > { %4051 = vmatpush1.bf16.msra.mxu0 %v5546_v30  ;;  %3724 = vmatprep.subr.bf16.mxu1 %v5551_v31  ;;  %v5624_v30 = vld [vmem:[%s6071_s7 + $0xc90] ss:$8 sps:$4 sm:$0xff]   ;;  %v5629_v31 = vld [vmem:[%s6071_s7 + $0x4a4] ss:$8 sps:$4 sm:$0xff]  }
 0x10a   : > { %4052 = vmatprep.subr.bf16.mxu0 %v5554_v32  ;;  %v5632_v32 = vld [vmem:[%s6071_s7 + $0xca4] ss:$8 sps:$4 sm:$0xff]  }
 0x10c   : > { %3725 = vmatpush1.bf16.msra.mxu1 %v5549_v33  ;;  %v5627_v33 = vld [vmem:[%s6071_s7 + $0x4a0] ss:$8 sps:$4 sm:$0xff]  }
 0x10d   : > { %4053 = vmatpush1.bf16.msra.mxu0 %v5552_v34  ;;  %3726 = vmatprep.subr.bf16.mxu1 %v5557_v35  ;;  %v5630_v34 = vld [vmem:[%s6071_s7 + $0xca0] ss:$8 sps:$4 sm:$0xff]   ;;  %v5635_v35 = vld [vmem:[%s6071_s7 + $0x4b4] ss:$8 sps:$4 sm:$0xff]  }
 0x10e   : > { %4054 = vmatprep.subr.bf16.mxu0 %v5560_v36  ;;  %v5638_v36 = vld [vmem:[%s6071_s7 + $0xcb4] ss:$8 sps:$4 sm:$0xff]  }
 0x110   : > { %3727 = vmatpush1.bf16.msra.mxu1 %v5555_v18  ;;  %v5633_v18 = vld [vmem:[%s6071_s7 + $0x4b0] ss:$8 sps:$4 sm:$0xff]  }
 0x111   : > { %4055 = vmatpush1.bf16.msra.mxu0 %v5558_v38  ;;  %3728 = vmatprep.subr.bf16.mxu1 %v5563_v43  ;;  %v5636_v38 = vld [vmem:[%s6071_s7 + $0xcb0] ss:$8 sps:$4 sm:$0xff]   ;;  %v5641_v43 = vld [vmem:[%s6071_s7 + $0x4c4] ss:$8 sps:$4 sm:$0xff]  }
 0x112   : > { %4056 = vmatprep.subr.bf16.mxu0 %v5566_v45  ;;  %v5644_v45 = vld [vmem:[%s6071_s7 + $0xcc4] ss:$8 sps:$4 sm:$0xff]  }
 0x114   : > { %3729 = vmatpush1.bf16.msra.mxu1 %v5561_v26  ;;  %v5639_v26 = vld [vmem:[%s6071_s7 + $0x4c0] ss:$8 sps:$4 sm:$0xff]  }
 0x115   : > { %4057 = vmatpush1.bf16.msra.mxu0 %v5564_v47  ;;  %3739 = vmatprep.subr.bf16.mxu1 %v5569_v37  ;;  %v5642_v47 = vld [vmem:[%s6071_s7 + $0xcc0] ss:$8 sps:$4 sm:$0xff]   ;;  %v5647_v37 = vld [vmem:[%s6071_s7 + $0x4d4] ss:$8 sps:$4 sm:$0xff]  }
 0x116   : > { %4067 = vmatprep.subr.bf16.mxu0 %v5572_v48  ;;  %v5650_v48 = vld [vmem:[%s6071_s7 + $0xcd4] ss:$8 sps:$4 sm:$0xff]  }
 0x117   : > { %3731 = vmatmul.mubr.bf16.vlgmr.msra.gmra.mrb[0].mxu1 %v833_v54  ;;  %v5651_v54 = vld [vmem:[%s6071_s7 + $0x4e0] ss:$8 sps:$4 sm:$0xff]  }
 0x118   : > { %4059 = vmatmul.mubr.bf16.vlgmr.msra.gmra.mrb[0].mxu0 %v931_v55  ;;  %3740 = vmatpush1.bf16.msra.mxu1 %v5567_v51  ;;  %v5653_v51 = vld [vmem:[%s6071_s7 + $0x4e4] ss:$8 sps:$4 sm:$0xff]   ;;  %v5654_v55 = vld [vmem:[%s6071_s7 + $0xce0] ss:$8 sps:$4 sm:$0xff]  }
 0x119   : > { %4068 = vmatpush1.bf16.msra.mxu0 %v5570_v52  ;;  %3741 = vmatprep.subr.bf16.mxu1 %v5575_v56  ;;  %v5656_v52 = vld [vmem:[%s6071_s7 + $0xce4] ss:$8 sps:$4 sm:$0xff]   ;;  %v5659_v56 = vld [vmem:[%s6071_s7 + $0x4f4] ss:$8 sps:$4 sm:$0xff]  }
 0x11a   : > { %4069 = vmatprep.subr.bf16.mxu0 %v5578_v58  ;;  %3771 = vmatprep.mubr.bf16.mxu1 %v6424_v59  ;;  %v5662_v58 = vld [vmem:[%s6071_s7 + $0xcf4] ss:$8 sps:$4 sm:$0xff]  }
 0x11b   : > { %4099 = vmatprep.mubr.bf16.mxu0 %v6427_v60 }
 0x11c   : > { %3742 = vmatpush1.bf16.msra.mxu1 %v5573_v39  ;;  %v5657_v39 = vld [vmem:[%s6071_s7 + $0x4f0] ss:$8 sps:$4 sm:$0xff]  }
 0x11d   : > { %4070 = vmatpush1.bf16.msra.mxu0 %v5576_v40  ;;  %3743 = vmatprep.subr.bf16.mxu1 %v5581_v61  ;;  %v5660_v40 = vld [vmem:[%s6071_s7 + $0xcf0] ss:$8 sps:$4 sm:$0xff]   ;;  %v5665_v61 = vld [vmem:[%s6071_s7 + $0x504] ss:$8 sps:$4 sm:$0xff]  }
 0x11e   : > { %4071 = vmatprep.subr.bf16.mxu0 %v5584_v62  ;;  %v5668_v62 = vld [vmem:[%s6071_s7 + $0xd04] ss:$8 sps:$4 sm:$0xff]  }
 0x120   : > { %3744 = vmatpush1.bf16.msra.mxu1 %v5579_v63  ;;  %v6493_v63 = vrot.slane %v6401_v25, %v6121_v50  ;;  %v883_v25 = vcombine.high %v6424_v59, %v6424_v59  ;;  %v5677_v59 = vld [vmem:[%s6071_s7 + $0x524] ss:$8 sps:$4 sm:$0xff]  }
 0x121   : > { %4072 = vmatpush1.bf16.msra.mxu0 %v5582_v0  ;;  %3745 = vmatprep.subr.bf16.mxu1 %v5587_v1  ;;  %v6497_v0 = vrot.slane %v6405_v46, %v6121_v50  ;;  %v5663_v1 = vld [vmem:[%s6071_s7 + $0x500] ss:$8 sps:$4 sm:$0xff]   ;;  %v5669_v46 = vld [vmem:[%s6071_s7 + $0x510] ss:$8 sps:$4 sm:$0xff]  }
 0x122   : > { %4073 = vmatprep.subr.bf16.mxu0 %v5590_v2  ;;  %v5666_v2 = vld [vmem:[%s6071_s7 + $0xd00] ss:$8 sps:$4 sm:$0xff]  }
 0x124   : > { %3746 = vmatpush1.bf16.msra.mxu1 %v5585_v3  ;;  %v5671_v3 = vld [vmem:[%s6071_s7 + $0x514] ss:$8 sps:$4 sm:$0xff]  }
 0x125   : > { %4074 = vmatpush1.bf16.msra.mxu0 %v5588_v4  ;;  %3747 = vmatprep.subr.bf16.mxu1 %v5593_v5  ;;  %v5674_v4 = vld [vmem:[%s6071_s7 + $0xd14] ss:$8 sps:$4 sm:$0xff]   ;;  %v981_v5 = vcombine.high %v6427_v60, %v6427_v60  ;;  %v5675_v60 = vld [vmem:[%s6071_s7 + $0x520] ss:$8 sps:$4 sm:$0xff]  }
 0x126   : > { %4075 = vmatprep.subr.bf16.mxu0 %v5596_v6  ;;  %v5672_v6 = vld [vmem:[%s6071_s7 + $0xd10] ss:$8 sps:$4 sm:$0xff]  }
 0x128   : > { %3748 = vmatpush1.bf16.msra.mxu1 %v5591_v7  ;;  %v5680_v7 = vld [vmem:[%s6071_s7 + $0xd24] ss:$8 sps:$4 sm:$0xff]  }
 0x129   : > { %4076 = vmatpush1.bf16.msra.mxu0 %v5594_v8  ;;  %3749 = vmatprep.subr.bf16.mxu1 %v5599_v9  ;;  %v5678_v8 = vld [vmem:[%s6071_s7 + $0xd20] ss:$8 sps:$4 sm:$0xff]   ;;  %v5683_v9 = vld [vmem:[%s6071_s7 + $0x534] ss:$8 sps:$4 sm:$0xff]  }
 0x12a   : > { %4077 = vmatprep.subr.bf16.mxu0 %v5602_v10  ;;  %v5686_v10 = vld [vmem:[%s6071_s7 + $0xd34] ss:$8 sps:$4 sm:$0xff]  }
 0x12c   : > { %3750 = vmatpush1.bf16.msra.mxu1 %v5597_v11  ;;  %v5681_v11 = vld [vmem:[%s6071_s7 + $0x530] ss:$8 sps:$4 sm:$0xff]  }
 0x12d   : > { %4078 = vmatpush1.bf16.msra.mxu0 %v5600_v12  ;;  %3751 = vmatprep.subr.bf16.mxu1 %v5605_v13  ;;  %v5684_v12 = vld [vmem:[%s6071_s7 + $0xd30] ss:$8 sps:$4 sm:$0xff]   ;;  %v5689_v13 = vld [vmem:[%s6071_s7 + $0x544] ss:$8 sps:$4 sm:$0xff]  }
 0x12e   : > { %4079 = vmatprep.subr.bf16.mxu0 %v5608_v14  ;;  %v5692_v14 = vld [vmem:[%s6071_s7 + $0xd44] ss:$8 sps:$4 sm:$0xff]  }
 0x130   : > { %3752 = vmatpush1.bf16.msra.mxu1 %v5603_v15  ;;  %v5687_v15 = vld [vmem:[%s6071_s7 + $0x540] ss:$8 sps:$4 sm:$0xff]  }
 0x131   : > { %4080 = vmatpush1.bf16.msra.mxu0 %v5606_v16  ;;  %3753 = vmatprep.subr.bf16.mxu1 %v5611_v19  ;;  %v5690_v16 = vld [vmem:[%s6071_s7 + $0xd40] ss:$8 sps:$4 sm:$0xff]   ;;  %v5695_v19 = vld [vmem:[%s6071_s7 + $0x554] ss:$8 sps:$4 sm:$0xff]  }
 0x132   : > { %4081 = vmatprep.subr.bf16.mxu0 %v5614_v20  ;;  %v5698_v20 = vld [vmem:[%s6071_s7 + $0xd54] ss:$8 sps:$4 sm:$0xff]  }
 0x134   : > { %3754 = vmatpush1.bf16.msra.mxu1 %v5609_v21  ;;  %v5693_v21 = vld [vmem:[%s6071_s7 + $0x550] ss:$8 sps:$4 sm:$0xff]  }
 0x135   : > { %4082 = vmatpush1.bf16.msra.mxu0 %v5612_v22  ;;  %3755 = vmatprep.subr.bf16.mxu1 %v5617_v23  ;;  %v5696_v22 = vld [vmem:[%s6071_s7 + $0xd50] ss:$8 sps:$4 sm:$0xff]   ;;  %v5701_v23 = vld [vmem:[%s6071_s7 + $0x564] ss:$8 sps:$4 sm:$0xff]  }
 0x136   : > { %4083 = vmatprep.subr.bf16.mxu0 %v5620_v24  ;;  %v5704_v24 = vld [vmem:[%s6071_s7 + $0xd64] ss:$8 sps:$4 sm:$0xff]  }
 0x138   : > { %3756 = vmatpush1.bf16.msra.mxu1 %v5615_v53  ;;  %v5699_v53 = vld [vmem:[%s6071_s7 + $0x560] ss:$8 sps:$4 sm:$0xff]  }
 0x139   : > { %4084 = vmatpush1.bf16.msra.mxu0 %v5618_v57  ;;  %3757 = vmatprep.subr.bf16.mxu1 %v5623_v27  ;;  %v5702_v57 = vld [vmem:[%s6071_s7 + $0xd60] ss:$8 sps:$4 sm:$0xff]   ;;  %v5707_v27 = vld [vmem:[%s6071_s7 + $0x574] ss:$8 sps:$4 sm:$0xff]  }
 0x13a   : > { %4085 = vmatprep.subr.bf16.mxu0 %v5626_v28  ;;  %v5710_v28 = vld [vmem:[%s6071_s7 + $0xd74] ss:$8 sps:$4 sm:$0xff]  }
 0x13c   : > { %3758 = vmatpush1.bf16.msra.mxu1 %v5621_v29  ;;  %v5705_v29 = vld [vmem:[%s6071_s7 + $0x570] ss:$8 sps:$4 sm:$0xff]  }
 0x13d   : > { %4086 = vmatpush1.bf16.msra.mxu0 %v5624_v30  ;;  %3759 = vmatprep.subr.bf16.mxu1 %v5629_v31  ;;  %v5708_v30 = vld [vmem:[%s6071_s7 + $0xd70] ss:$8 sps:$4 sm:$0xff]   ;;  %v5713_v31 = vld [vmem:[%s6071_s7 + $0x584] ss:$8 sps:$4 sm:$0xff]  }
 0x13e   : > { %4087 = vmatprep.subr.bf16.mxu0 %v5632_v32  ;;  %v5716_v32 = vld [vmem:[%s6071_s7 + $0xd84] ss:$8 sps:$4 sm:$0xff]  }
 0x140   : > { %3760 = vmatpush1.bf16.msra.mxu1 %v5627_v33  ;;  %v5711_v33 = vld [vmem:[%s6071_s7 + $0x580] ss:$8 sps:$4 sm:$0xff]  }
 0x141   : > { %4088 = vmatpush1.bf16.msra.mxu0 %v5630_v34  ;;  %3761 = vmatprep.subr.bf16.mxu1 %v5635_v35  ;;  %v5714_v34 = vld [vmem:[%s6071_s7 + $0xd80] ss:$8 sps:$4 sm:$0xff]   ;;  %v5719_v35 = vld [vmem:[%s6071_s7 + $0x594] ss:$8 sps:$4 sm:$0xff]  }
 0x142   : > { %4089 = vmatprep.subr.bf16.mxu0 %v5638_v36  ;;  %v5722_v36 = vld [vmem:[%s6071_s7 + $0xd94] ss:$8 sps:$4 sm:$0xff]  }
 0x144   : > { %3762 = vmatpush1.bf16.msra.mxu1 %v5633_v18  ;;  %v5717_v18 = vld [vmem:[%s6071_s7 + $0x590] ss:$8 sps:$4 sm:$0xff]  }
 0x145   : > { %4090 = vmatpush1.bf16.msra.mxu0 %v5636_v38  ;;  %3763 = vmatprep.subr.bf16.mxu1 %v5641_v43  ;;  %v5720_v38 = vld [vmem:[%s6071_s7 + $0xd90] ss:$8 sps:$4 sm:$0xff]   ;;  %v5725_v43 = vld [vmem:[%s6071_s7 + $0x5a4] ss:$8 sps:$4 sm:$0xff]  }
 0x146   : > { %4091 = vmatprep.subr.bf16.mxu0 %v5644_v45  ;;  %v5728_v45 = vld [vmem:[%s6071_s7 + $0xda4] ss:$8 sps:$4 sm:$0xff]  }
 0x148   : > { %3764 = vmatpush1.bf16.msra.mxu1 %v5639_v26  ;;  %v5723_v26 = vld [vmem:[%s6071_s7 + $0x5a0] ss:$8 sps:$4 sm:$0xff]  }
 0x149   : > { %4092 = vmatpush1.bf16.msra.mxu0 %v5642_v47  ;;  %3765 = vmatprep.subr.bf16.mxu1 %v5647_v37  ;;  %v5726_v47 = vld [vmem:[%s6071_s7 + $0xda0] ss:$8 sps:$4 sm:$0xff]   ;;  %v5731_v37 = vld [vmem:[%s6071_s7 + $0x5b4] ss:$8 sps:$4 sm:$0xff]  }
 0x14a   : > { %4093 = vmatprep.subr.bf16.mxu0 %v5650_v48  ;;  %v5734_v48 = vld [vmem:[%s6071_s7 + $0xdb4] ss:$8 sps:$4 sm:$0xff]  }
 0x14c   : > { %3766 = vmatpush1.bf16.msra.mxu1 %v5645_v17  ;;  %v5729_v17 = vld [vmem:[%s6071_s7 + $0x5b0] ss:$8 sps:$4 sm:$0xff]  }
 0x14d   : > { %4094 = vmatpush1.bf16.msra.mxu0 %v5648_v49  ;;  %3767 = vmatprep.subr.bf16.mxu1 %v5653_v51  ;;  %v5732_v49 = vld [vmem:[%s6071_s7 + $0xdb0] ss:$8 sps:$4 sm:$0xff]   ;;  %v5737_v51 = vld [vmem:[%s6071_s7 + $0x5c4] ss:$8 sps:$4 sm:$0xff]  }
 0x14e   : > { %4095 = vmatprep.subr.bf16.mxu0 %v5656_v52  ;;  %v5740_v52 = vld [vmem:[%s6071_s7 + $0xdc4] ss:$8 sps:$4 sm:$0xff]  }
 0x150   : > { %3768 = vmatpush1.bf16.msra.mxu1 %v5651_v54  ;;  %v5735_v54 = vld [vmem:[%s6071_s7 + $0x5c0] ss:$8 sps:$4 sm:$0xff]  }
 0x151   : > { %4096 = vmatpush1.bf16.msra.mxu0 %v5654_v55  ;;  %3769 = vmatprep.subr.bf16.mxu1 %v5659_v56  ;;  %v5738_v55 = vld [vmem:[%s6071_s7 + $0xdc0] ss:$8 sps:$4 sm:$0xff]   ;;  %v5743_v56 = vld [vmem:[%s6071_s7 + $0x5d4] ss:$8 sps:$4 sm:$0xff]  }
 0x152   : > { %4097 = vmatprep.subr.bf16.mxu0 %v5662_v58  ;;  %v5746_v58 = vld [vmem:[%s6071_s7 + $0xdd4] ss:$8 sps:$4 sm:$0xff]  }
 0x154   : > { %3770 = vmatpush1.bf16.msra.mxu1 %v5657_v39  ;;  %v5741_v39 = vld [vmem:[%s6071_s7 + $0x5d0] ss:$8 sps:$4 sm:$0xff]  }
 0x155   : > { %4098 = vmatpush1.bf16.msra.mxu0 %v5660_v40  ;;  %3780 = vmatprep.subr.bf16.mxu1 %v5665_v61  ;;  %v5744_v40 = vld [vmem:[%s6071_s7 + $0xdd0] ss:$8 sps:$4 sm:$0xff]   ;;  %v5749_v61 = vld [vmem:[%s6071_s7 + $0x5e4] ss:$8 sps:$4 sm:$0xff]  }
 0x156   : > { %4108 = vmatprep.subr.bf16.mxu0 %v5668_v62  ;;  %v5752_v62 = vld [vmem:[%s6071_s7 + $0xde4] ss:$8 sps:$4 sm:$0xff]  }
 0x157   : > { %3772 = vmatmul.mubr.bf16.vlgmr.msra.gmra.mrb[0].mxu1 %v6493_v63 }
 0x158   : > { %4100 = vmatmul.mubr.bf16.vlgmr.msra.gmra.mrb[0].mxu0 %v6497_v0  ;;  %3781 = vmatpush1.bf16.msra.mxu1 %v5663_v1  ;;  %v836_v1 = vcombine.high %v6392_v41, %v6392_v41  ;;  %v5753_v41 = vld [vmem:[%s6071_s7 + $0x5f0] ss:$8 sps:$4 sm:$0xff]  }
 0x159   : > { %4109 = vmatpush1.bf16.msra.mxu0 %v5666_v2  ;;  %3782 = vmatprep.subr.bf16.mxu1 %v5671_v3  ;;  %v934_v2 = vcombine.high %v6395_v42, %v6395_v42  ;;  %v5747_v3 = vld [vmem:[%s6071_s7 + $0x5e0] ss:$8 sps:$4 sm:$0xff]   ;;  %v5756_v42 = vld [vmem:[%s6071_s7 + $0xdf0] ss:$8 sps:$4 sm:$0xff]  }
 0x15a   : > { %4110 = vmatprep.subr.bf16.mxu0 %v5674_v4  ;;  %3812 = vmatprep.mubr.bf16.mxu1 %v883_v25  ;;  %v5750_v4 = vld [vmem:[%s6071_s7 + $0xde0] ss:$8 sps:$4 sm:$0xff]   ;;  %v5755_v25 = vld [vmem:[%s6071_s7 + $0x5f4] ss:$8 sps:$4 sm:$0xff]  }
 0x15b   : > { %4140 = vmatprep.mubr.bf16.mxu0 %v981_v5  ;;  %v5758_v5 = vld [vmem:[%s6071_s7 + $0xdf4] ss:$8 sps:$4 sm:$0xff]  }
 0x15c   : > { %3783 = vmatpush1.bf16.msra.mxu1 %v5669_v46  ;;  %v6570_v46 = vrot.slane %v836_v1, %v6121_v50  ;;  %v5825_v1 = vld [vmem:[%s6071_s7 + $0x6b0] ss:$8 sps:$4 sm:$0xff]  }
 0x15d   : > { %4111 = vmatpush1.bf16.msra.mxu0 %v5672_v6  ;;  %3784 = vmatprep.subr.bf16.mxu1 %v5677_v59  ;;  %v6573_v6 = vrot.slane %v934_v2, %v6121_v50  ;;  %v5761_v59 = vld [vmem:[%s6071_s7 + $0x604] ss:$8 sps:$4 sm:$0xff]   ;;  %v5828_v2 = vld [vmem:[%s6071_s7 + $0xeb0] ss:$8 sps:$4 sm:$0xff]  }
 0x15e   : > { %4112 = vmatprep.subr.bf16.mxu0 %v5680_v7  ;;  %v5764_v7 = vld [vmem:[%s6071_s7 + $0xe04] ss:$8 sps:$4 sm:$0xff]  }
 0x160   : > { %3785 = vmatpush1.bf16.msra.mxu1 %v5675_v60  ;;  %v852_v60 = vcombine.high %v6570_v46, %v6570_v46 }
 0x161   : > { %4113 = vmatpush1.bf16.msra.mxu0 %v5678_v8  ;;  %3786 = vmatprep.subr.bf16.mxu1 %v5683_v9  ;;  %v950_v8 = vcombine.high %v6573_v6, %v6573_v6  ;;  %v881_v9 = vcombine.high %v6493_v63, %v6493_v63 }
 0x162   : > { %4114 = vmatprep.subr.bf16.mxu0 %v5686_v10  ;;  %v979_v10 = vcombine.high %v6497_v0, %v6497_v0  ;;  %v5765_v0 = vld [vmem:[%s6071_s7 + $0x610] ss:$8 sps:$4 sm:$0xff]  }
 0x163   : > { %v6595_v63 = vrot.slane %v950_v8, %v6121_v50  ;;  %v5848_v8 = vld [vmem:[%s6071_s7 + $0xee4] ss:$8 sps:$4 sm:$0xff]  }
 0x164   : > { %3787 = vmatpush1.bf16.msra.mxu1 %v5681_v11  ;;  %v5759_v11 = vld [vmem:[%s6071_s7 + $0x600] ss:$8 sps:$4 sm:$0xff]  }
 0x165   : > { %4115 = vmatpush1.bf16.msra.mxu0 %v5684_v12  ;;  %3788 = vmatprep.subr.bf16.mxu1 %v5689_v13  ;;  %v5762_v12 = vld [vmem:[%s6071_s7 + $0xe00] ss:$8 sps:$4 sm:$0xff]   ;;  %v5767_v13 = vld [vmem:[%s6071_s7 + $0x614] ss:$8 sps:$4 sm:$0xff]  }
 0x166   : > { %4116 = vmatprep.subr.bf16.mxu0 %v5692_v14  ;;  %v5770_v14 = vld [vmem:[%s6071_s7 + $0xe14] ss:$8 sps:$4 sm:$0xff]  }
 0x168   : > { %3789 = vmatpush1.bf16.msra.mxu1 %v5687_v15  ;;  %v6592_v15 = vrot.slane %v852_v60, %v6121_v50  ;;  %v5845_v60 = vld [vmem:[%s6071_s7 + $0x6e4] ss:$8 sps:$4 sm:$0xff]  }
 0x169   : > { %4117 = vmatpush1.bf16.msra.mxu0 %v5690_v16  ;;  %3790 = vmatprep.subr.bf16.mxu1 %v5695_v19  ;;  %v5768_v16 = vld [vmem:[%s6071_s7 + $0xe10] ss:$8 sps:$4 sm:$0xff]   ;;  %v5773_v19 = vld [vmem:[%s6071_s7 + $0x624] ss:$8 sps:$4 sm:$0xff]  }
 0x16a   : > { %4118 = vmatprep.subr.bf16.mxu0 %v5698_v20  ;;  %v5776_v20 = vld [vmem:[%s6071_s7 + $0xe24] ss:$8 sps:$4 sm:$0xff]  }
 0x16c   : > { %3791 = vmatpush1.bf16.msra.mxu1 %v5693_v21  ;;  %v5771_v21 = vld [vmem:[%s6071_s7 + $0x620] ss:$8 sps:$4 sm:$0xff]  }
 0x16d   : > { %4119 = vmatpush1.bf16.msra.mxu0 %v5696_v22  ;;  %3792 = vmatprep.subr.bf16.mxu1 %v5701_v23  ;;  %v5774_v22 = vld [vmem:[%s6071_s7 + $0xe20] ss:$8 sps:$4 sm:$0xff]   ;;  %v5779_v23 = vld [vmem:[%s6071_s7 + $0x634] ss:$8 sps:$4 sm:$0xff]  }
 0x16e   : > { %4120 = vmatprep.subr.bf16.mxu0 %v5704_v24  ;;  %v5782_v24 = vld [vmem:[%s6071_s7 + $0xe34] ss:$8 sps:$4 sm:$0xff]  }
 0x170   : > { %3793 = vmatpush1.bf16.msra.mxu1 %v5699_v53  ;;  %v5777_v53 = vld [vmem:[%s6071_s7 + $0x630] ss:$8 sps:$4 sm:$0xff]  }
 0x171   : > { %4121 = vmatpush1.bf16.msra.mxu0 %v5702_v57  ;;  %3794 = vmatprep.subr.bf16.mxu1 %v5707_v27  ;;  %v5780_v57 = vld [vmem:[%s6071_s7 + $0xe30] ss:$8 sps:$4 sm:$0xff]   ;;  %v5785_v27 = vld [vmem:[%s6071_s7 + $0x644] ss:$8 sps:$4 sm:$0xff]  }
 0x172   : > { %4122 = vmatprep.subr.bf16.mxu0 %v5710_v28  ;;  %v5788_v28 = vld [vmem:[%s6071_s7 + $0xe44] ss:$8 sps:$4 sm:$0xff]  }
 0x174   : > { %3795 = vmatpush1.bf16.msra.mxu1 %v5705_v29  ;;  %v5783_v29 = vld [vmem:[%s6071_s7 + $0x640] ss:$8 sps:$4 sm:$0xff]  }
 0x175   : > { %4123 = vmatpush1.bf16.msra.mxu0 %v5708_v30  ;;  %3796 = vmatprep.subr.bf16.mxu1 %v5713_v31  ;;  %v5786_v30 = vld [vmem:[%s6071_s7 + $0xe40] ss:$8 sps:$4 sm:$0xff]   ;;  %v5791_v31 = vld [vmem:[%s6071_s7 + $0x654] ss:$8 sps:$4 sm:$0xff]  }
 0x176   : > { %4124 = vmatprep.subr.bf16.mxu0 %v5716_v32  ;;  %v5794_v32 = vld [vmem:[%s6071_s7 + $0xe54] ss:$8 sps:$4 sm:$0xff]  }
 0x178   : > { %3797 = vmatpush1.bf16.msra.mxu1 %v5711_v33  ;;  %v5789_v33 = vld [vmem:[%s6071_s7 + $0x650] ss:$8 sps:$4 sm:$0xff]  }
 0x179   : > { %4125 = vmatpush1.bf16.msra.mxu0 %v5714_v34  ;;  %3798 = vmatprep.subr.bf16.mxu1 %v5719_v35  ;;  %v5792_v34 = vld [vmem:[%s6071_s7 + $0xe50] ss:$8 sps:$4 sm:$0xff]   ;;  %v5797_v35 = vld [vmem:[%s6071_s7 + $0x664] ss:$8 sps:$4 sm:$0xff]  }
 0x17a   : > { %4126 = vmatprep.subr.bf16.mxu0 %v5722_v36  ;;  %v5800_v36 = vld [vmem:[%s6071_s7 + $0xe64] ss:$8 sps:$4 sm:$0xff]  }
 0x17c   : > { %3799 = vmatpush1.bf16.msra.mxu1 %v5717_v18  ;;  %v5795_v18 = vld [vmem:[%s6071_s7 + $0x660] ss:$8 sps:$4 sm:$0xff]  }
 0x17d   : > { %4127 = vmatpush1.bf16.msra.mxu0 %v5720_v38  ;;  %3800 = vmatprep.subr.bf16.mxu1 %v5725_v43  ;;  %v5798_v38 = vld [vmem:[%s6071_s7 + $0xe60] ss:$8 sps:$4 sm:$0xff]   ;;  %v5803_v43 = vld [vmem:[%s6071_s7 + $0x674] ss:$8 sps:$4 sm:$0xff]  }
 0x17e   : > { %4128 = vmatprep.subr.bf16.mxu0 %v5728_v45  ;;  %v5806_v45 = vld [vmem:[%s6071_s7 + $0xe74] ss:$8 sps:$4 sm:$0xff]  }
 0x180   : > { %3801 = vmatpush1.bf16.msra.mxu1 %v5723_v26  ;;  %v5801_v26 = vld [vmem:[%s6071_s7 + $0x670] ss:$8 sps:$4 sm:$0xff]  }
 0x181   : > { %4129 = vmatpush1.bf16.msra.mxu0 %v5726_v47  ;;  %3802 = vmatprep.subr.bf16.mxu1 %v5731_v37  ;;  %v5804_v47 = vld [vmem:[%s6071_s7 + $0xe70] ss:$8 sps:$4 sm:$0xff]   ;;  %v5809_v37 = vld [vmem:[%s6071_s7 + $0x684] ss:$8 sps:$4 sm:$0xff]  }
 0x182   : > { %4130 = vmatprep.subr.bf16.mxu0 %v5734_v48  ;;  %v5812_v48 = vld [vmem:[%s6071_s7 + $0xe84] ss:$8 sps:$4 sm:$0xff]  }
 0x184   : > { %3803 = vmatpush1.bf16.msra.mxu1 %v5729_v17  ;;  %v5807_v17 = vld [vmem:[%s6071_s7 + $0x680] ss:$8 sps:$4 sm:$0xff]  }
 0x185   : > { %4131 = vmatpush1.bf16.msra.mxu0 %v5732_v49  ;;  %3804 = vmatprep.subr.bf16.mxu1 %v5737_v51  ;;  %v5810_v49 = vld [vmem:[%s6071_s7 + $0xe80] ss:$8 sps:$4 sm:$0xff]   ;;  %v5815_v51 = vld [vmem:[%s6071_s7 + $0x694] ss:$8 sps:$4 sm:$0xff]  }
 0x186   : > { %4132 = vmatprep.subr.bf16.mxu0 %v5740_v52  ;;  %v5818_v52 = vld [vmem:[%s6071_s7 + $0xe94] ss:$8 sps:$4 sm:$0xff]  }
 0x188   : > { %3805 = vmatpush1.bf16.msra.mxu1 %v5735_v54  ;;  %v5813_v54 = vld [vmem:[%s6071_s7 + $0x690] ss:$8 sps:$4 sm:$0xff]  }
 0x189   : > { %4133 = vmatpush1.bf16.msra.mxu0 %v5738_v55  ;;  %3806 = vmatprep.subr.bf16.mxu1 %v5743_v56  ;;  %v5816_v55 = vld [vmem:[%s6071_s7 + $0xe90] ss:$8 sps:$4 sm:$0xff]   ;;  %v5821_v56 = vld [vmem:[%s6071_s7 + $0x6a4] ss:$8 sps:$4 sm:$0xff]  }
 0x18a   : > { %4134 = vmatprep.subr.bf16.mxu0 %v5746_v58  ;;  %v5824_v58 = vld [vmem:[%s6071_s7 + $0xea4] ss:$8 sps:$4 sm:$0xff]  }
 0x18c   : > { %3807 = vmatpush1.bf16.msra.mxu1 %v5741_v39  ;;  %v5819_v39 = vld [vmem:[%s6071_s7 + $0x6a0] ss:$8 sps:$4 sm:$0xff]  }
 0x18d   : > { %4135 = vmatpush1.bf16.msra.mxu0 %v5744_v40  ;;  %3808 = vmatprep.subr.bf16.mxu1 %v5749_v61  ;;  %v5822_v40 = vld [vmem:[%s6071_s7 + $0xea0] ss:$8 sps:$4 sm:$0xff]   ;;  %v5827_v61 = vld [vmem:[%s6071_s7 + $0x6b4] ss:$8 sps:$4 sm:$0xff]  }
 0x18e   : > { %4136 = vmatprep.subr.bf16.mxu0 %v5752_v62  ;;  %v5830_v62 = vld [vmem:[%s6071_s7 + $0xeb4] ss:$8 sps:$4 sm:$0xff]  }
 0x190   : > { %3809 = vmatpush1.bf16.msra.mxu1 %v5747_v3  ;;  %v5833_v3 = vld [vmem:[%s6071_s7 + $0x6c4] ss:$8 sps:$4 sm:$0xff]  }
 0x191   : > { %4137 = vmatpush1.bf16.msra.mxu0 %v5750_v4  ;;  %3810 = vmatprep.subr.bf16.mxu1 %v5755_v25  ;;  %v5836_v4 = vld [vmem:[%s6071_s7 + $0xec4] ss:$8 sps:$4 sm:$0xff]   ;;  %v5831_v25 = vld [vmem:[%s6071_s7 + $0x6c0] ss:$8 sps:$4 sm:$0xff]  }
 0x192   : > { %4138 = vmatprep.subr.bf16.mxu0 %v5758_v5  ;;  %v5834_v5 = vld [vmem:[%s6071_s7 + $0xec0] ss:$8 sps:$4 sm:$0xff]  }
 0x194   : > { %3811 = vmatpush1.bf16.msra.mxu1 %v5753_v41  ;;  %v5839_v41 = vld [vmem:[%s6071_s7 + $0x6d4] ss:$8 sps:$4 sm:$0xff]  }
 0x195   : > { %4139 = vmatpush1.bf16.msra.mxu0 %v5756_v42  ;;  %3821 = vmatprep.subr.bf16.mxu1 %v5761_v59  ;;  %v5842_v42 = vld [vmem:[%s6071_s7 + $0xed4] ss:$8 sps:$4 sm:$0xff]   ;;  %v5837_v59 = vld [vmem:[%s6071_s7 + $0x6d0] ss:$8 sps:$4 sm:$0xff]  }
 0x196   : > { %4149 = vmatprep.subr.bf16.mxu0 %v5764_v7  ;;  %v5840_v7 = vld [vmem:[%s6071_s7 + $0xed0] ss:$8 sps:$4 sm:$0xff]  }
 0x197   : > { %3813 = vmatmul.mubr.bf16.vlgmr.msra.gmra.mrb[0].mxu1 %v881_v9  ;;  %v5843_v9 = vld [vmem:[%s6071_s7 + $0x6e0] ss:$8 sps:$4 sm:$0xff]  }
 0x198   : > { %4141 = vmatmul.mubr.bf16.vlgmr.msra.gmra.mrb[0].mxu0 %v979_v10  ;;  %3822 = vmatpush1.bf16.msra.mxu1 %v5759_v11  ;;  %v5846_v10 = vld [vmem:[%s6071_s7 + $0xee0] ss:$8 sps:$4 sm:$0xff]   ;;  %v5851_v11 = vld [vmem:[%s6071_s7 + $0x6f4] ss:$8 sps:$4 sm:$0xff]  }
 0x199   : > { %4150 = vmatpush1.bf16.msra.mxu0 %v5762_v12  ;;  %3823 = vmatprep.subr.bf16.mxu1 %v5767_v13  ;;  %v5854_v12 = vld [vmem:[%s6071_s7 + $0xef4] ss:$8 sps:$4 sm:$0xff]   ;;  %v5849_v13 = vld [vmem:[%s6071_s7 + $0x6f0] ss:$8 sps:$4 sm:$0xff]  }
 0x19a   : > { %4151 = vmatprep.subr.bf16.mxu0 %v5770_v14  ;;  %3853 = vmatprep.mubr.bf16.mxu1 %v6592_v15  ;;  %v5852_v14 = vld [vmem:[%s6071_s7 + $0xef0] ss:$8 sps:$4 sm:$0xff]  }
 0x19b   : > { %4181 = vmatprep.mubr.bf16.mxu0 %v6595_v63 }
 0x19c   : > { %3824 = vmatpush1.bf16.msra.mxu1 %v5765_v0  ;;  %v5858_v0 = vld [vmem:[%s6071_s7 + $0x704] ss:$8 sps:$4 sm:$0xff]  }
 0x19d   : > { %4152 = vmatpush1.bf16.msra.mxu0 %v5768_v16  ;;  %3825 = vmatprep.subr.bf16.mxu1 %v5773_v19  ;;  %v5862_v16 = vld [vmem:[%s6071_s7 + $0xf04] ss:$8 sps:$4 sm:$0xff]   ;;  %v6661_v19 = vrot.slane %v6570_v46, %v6121_v50  ;;  %v884_v46 = vcombine.high %v6592_v15, %v6592_v15 }
 0x19e   : > { %4153 = vmatprep.subr.bf16.mxu0 %v5776_v20  ;;  %v6665_v20 = vrot.slane %v6573_v6, %v6121_v50  ;;  %v5863_v50 = vld [vmem:[%s6071_s7 + $0x710] ss:$8 sps:$4 sm:$0xff]   ;;  %v5871_v15 = vld [vmem:[%s6071_s7 + $0x724] ss:$8 sps:$4 sm:$0xff]  }
 0x19f   : > { %v5866_v6 = vld [vmem:[%s6071_s7 + $0xf10] ss:$8 sps:$4 sm:$0xff]  }
 0x1a0   : > { %3826 = vmatpush1.bf16.msra.mxu1 %v5771_v21  ;;  %v5856_v21 = vld [vmem:[%s6071_s7 + $0x700] ss:$8 sps:$4 sm:$0xff]  }
 0x1a1   : > { %4154 = vmatpush1.bf16.msra.mxu0 %v5774_v22  ;;  %3827 = vmatprep.subr.bf16.mxu1 %v5779_v23  ;;  %v5860_v22 = vld [vmem:[%s6071_s7 + $0xf00] ss:$8 sps:$4 sm:$0xff]   ;;  %v5865_v23 = vld [vmem:[%s6071_s7 + $0x714] ss:$8 sps:$4 sm:$0xff]  }
 0x1a2   : > { %4155 = vmatprep.subr.bf16.mxu0 %v5782_v24  ;;  %v5868_v24 = vld [vmem:[%s6071_s7 + $0xf14] ss:$8 sps:$4 sm:$0xff]  }
 0x1a4   : > { %3828 = vmatpush1.bf16.msra.mxu1 %v5777_v53  ;;  %v982_v53 = vcombine.high %v6595_v63, %v6595_v63  ;;  %v5869_v63 = vld [vmem:[%s6071_s7 + $0x720] ss:$8 sps:$4 sm:$0xff]  }
 0x1a5   : > { %4156 = vmatpush1.bf16.msra.mxu0 %v5780_v57  ;;  %3829 = vmatprep.subr.bf16.mxu1 %v5785_v27  ;;  %v5874_v57 = vld [vmem:[%s6071_s7 + $0xf24] ss:$8 sps:$4 sm:$0xff]   ;;  %v5872_v27 = vld [vmem:[%s6071_s7 + $0xf20] ss:$8 sps:$4 sm:$0xff]  }
 0x1a6   : > { %4157 = vmatprep.subr.bf16.mxu0 %v5788_v28  ;;  %v5877_v28 = vld [vmem:[%s6071_s7 + $0x734] ss:$8 sps:$4 sm:$0xff]  }
 0x1a8   : > { %3830 = vmatpush1.bf16.msra.mxu1 %v5783_v29  ;;  %v5880_v29 = vld [vmem:[%s6071_s7 + $0xf34] ss:$8 sps:$4 sm:$0xff]  }
 0x1a9   : > { %4158 = vmatpush1.bf16.msra.mxu0 %v5786_v30  ;;  %3831 = vmatprep.subr.bf16.mxu1 %v5791_v31  ;;  %v5875_v30 = vld [vmem:[%s6071_s7 + $0x730] ss:$8 sps:$4 sm:$0xff]  }
 0x1aa   : > { %4159 = vmatprep.subr.bf16.mxu0 %v5794_v32  ;;  %v5878_v31 = vld [vmem:[%s6071_s7 + $0xf30] ss:$8 sps:$4 sm:$0xff]   ;;  %v5883_v32 = vld [vmem:[%s6071_s7 + $0x744] ss:$8 sps:$4 sm:$0xff]  }
 0x1ac   : > { %3832 = vmatpush1.bf16.msra.mxu1 %v5789_v33  ;;  %v5886_v33 = vld [vmem:[%s6071_s7 + $0xf44] ss:$8 sps:$4 sm:$0xff]  }
 0x1ad   : > { %4160 = vmatpush1.bf16.msra.mxu0 %v5792_v34  ;;  %3833 = vmatprep.subr.bf16.mxu1 %v5797_v35  ;;  %v5881_v34 = vld [vmem:[%s6071_s7 + $0x740] ss:$8 sps:$4 sm:$0xff]  }
 0x1ae   : > { %4161 = vmatprep.subr.bf16.mxu0 %v5800_v36  ;;  %v5884_v35 = vld [vmem:[%s6071_s7 + $0xf40] ss:$8 sps:$4 sm:$0xff]   ;;  %v5889_v36 = vld [vmem:[%s6071_s7 + $0x754] ss:$8 sps:$4 sm:$0xff]  }
 0x1b0   : > { %3834 = vmatpush1.bf16.msra.mxu1 %v5795_v18  ;;  %v5892_v18 = vld [vmem:[%s6071_s7 + $0xf54] ss:$8 sps:$4 sm:$0xff]  }
 0x1b1   : > { %4162 = vmatpush1.bf16.msra.mxu0 %v5798_v38  ;;  %3835 = vmatprep.subr.bf16.mxu1 %v5803_v43  ;;  %v5887_v38 = vld [vmem:[%s6071_s7 + $0x750] ss:$8 sps:$4 sm:$0xff]  }
 0x1b2   : > { %4163 = vmatprep.subr.bf16.mxu0 %v5806_v45  ;;  %v5890_v43 = vld [vmem:[%s6071_s7 + $0xf50] ss:$8 sps:$4 sm:$0xff]   ;;  %v5895_v45 = vld [vmem:[%s6071_s7 + $0x764] ss:$8 sps:$4 sm:$0xff]  }
 0x1b4   : > { %3836 = vmatpush1.bf16.msra.mxu1 %v5801_v26  ;;  %v5898_v26 = vld [vmem:[%s6071_s7 + $0xf64] ss:$8 sps:$4 sm:$0xff]  }
 0x1b5   : > { %4164 = vmatpush1.bf16.msra.mxu0 %v5804_v47  ;;  %3837 = vmatprep.subr.bf16.mxu1 %v5809_v37  ;;  %v5893_v47 = vld [vmem:[%s6071_s7 + $0x760] ss:$8 sps:$4 sm:$0xff]  }
 0x1b6   : > { %4165 = vmatprep.subr.bf16.mxu0 %v5812_v48  ;;  %v5896_v37 = vld [vmem:[%s6071_s7 + $0xf60] ss:$8 sps:$4 sm:$0xff]   ;;  %v5901_v48 = vld [vmem:[%s6071_s7 + $0x774] ss:$8 sps:$4 sm:$0xff]  }
 0x1b8   : > { %3838 = vmatpush1.bf16.msra.mxu1 %v5807_v17  ;;  %v5904_v17 = vld [vmem:[%s6071_s7 + $0xf74] ss:$8 sps:$4 sm:$0xff]  }
 0x1b9   : > { %4166 = vmatpush1.bf16.msra.mxu0 %v5810_v49  ;;  %3839 = vmatprep.subr.bf16.mxu1 %v5815_v51  ;;  %v5899_v49 = vld [vmem:[%s6071_s7 + $0x770] ss:$8 sps:$4 sm:$0xff]  }
 0x1ba   : > { %4167 = vmatprep.subr.bf16.mxu0 %v5818_v52  ;;  %v5902_v51 = vld [vmem:[%s6071_s7 + $0xf70] ss:$8 sps:$4 sm:$0xff]   ;;  %v5907_v52 = vld [vmem:[%s6071_s7 + $0x784] ss:$8 sps:$4 sm:$0xff]  }
 0x1bc   : > { %3840 = vmatpush1.bf16.msra.mxu1 %v5813_v54  ;;  %v5910_v54 = vld [vmem:[%s6071_s7 + $0xf84] ss:$8 sps:$4 sm:$0xff]  }
 0x1bd   : > { %4168 = vmatpush1.bf16.msra.mxu0 %v5816_v55  ;;  %3841 = vmatprep.subr.bf16.mxu1 %v5821_v56  ;;  %v5905_v55 = vld [vmem:[%s6071_s7 + $0x780] ss:$8 sps:$4 sm:$0xff]  }
 0x1be   : > { %4169 = vmatprep.subr.bf16.mxu0 %v5824_v58  ;;  %v5908_v56 = vld [vmem:[%s6071_s7 + $0xf80] ss:$8 sps:$4 sm:$0xff]   ;;  %v5913_v58 = vld [vmem:[%s6071_s7 + $0x794] ss:$8 sps:$4 sm:$0xff]  }
 0x1c0   : > { %3842 = vmatpush1.bf16.msra.mxu1 %v5819_v39  ;;  %v5916_v39 = vld [vmem:[%s6071_s7 + $0xf94] ss:$8 sps:$4 sm:$0xff]  }
 0x1c1   : > { %4170 = vmatpush1.bf16.msra.mxu0 %v5822_v40  ;;  %3843 = vmatprep.subr.bf16.mxu1 %v5827_v61  ;;  %v5911_v40 = vld [vmem:[%s6071_s7 + $0x790] ss:$8 sps:$4 sm:$0xff]  }
 0x1c2   : > { %4171 = vmatprep.subr.bf16.mxu0 %v5830_v62  ;;  %v5914_v61 = vld [vmem:[%s6071_s7 + $0xf90] ss:$8 sps:$4 sm:$0xff]   ;;  %v5919_v62 = vld [vmem:[%s6071_s7 + $0x7a4] ss:$8 sps:$4 sm:$0xff]  }
 0x1c4   : > { %3844 = vmatpush1.bf16.msra.mxu1 %v5825_v1  ;;  %v5922_v1 = vld [vmem:[%s6071_s7 + $0xfa4] ss:$8 sps:$4 sm:$0xff]  }
 0x1c5   : > { %4172 = vmatpush1.bf16.msra.mxu0 %v5828_v2  ;;  %3845 = vmatprep.subr.bf16.mxu1 %v5833_v3  ;;  %v5917_v2 = vld [vmem:[%s6071_s7 + $0x7a0] ss:$8 sps:$4 sm:$0xff]  }
 0x1c6   : > { %4173 = vmatprep.subr.bf16.mxu0 %v5836_v4  ;;  %v5920_v3 = vld [vmem:[%s6071_s7 + $0xfa0] ss:$8 sps:$4 sm:$0xff]   ;;  %v5925_v4 = vld [vmem:[%s6071_s7 + $0x7b4] ss:$8 sps:$4 sm:$0xff]  }
 0x1c8   : > { %3846 = vmatpush1.bf16.msra.mxu1 %v5831_v25  ;;  %v5928_v25 = vld [vmem:[%s6071_s7 + $0xfb4] ss:$8 sps:$4 sm:$0xff]  }
 0x1c9   : > { %4174 = vmatpush1.bf16.msra.mxu0 %v5834_v5  ;;  %3847 = vmatprep.subr.bf16.mxu1 %v5839_v41  ;;  %v5923_v5 = vld [vmem:[%s6071_s7 + $0x7b0] ss:$8 sps:$4 sm:$0xff]  }
 0x1ca   : > { %4175 = vmatprep.subr.bf16.mxu0 %v5842_v42  ;;  %v5926_v41 = vld [vmem:[%s6071_s7 + $0xfb0] ss:$8 sps:$4 sm:$0xff]   ;;  %v5931_v42 = vld [vmem:[%s6071_s7 + $0x7c4] ss:$8 sps:$4 sm:$0xff]  }
 0x1cc   : > { %3848 = vmatpush1.bf16.msra.mxu1 %v5837_v59  ;;  %v5934_v59 = vld [vmem:[%s6071_s7 + $0xfc4] ss:$8 sps:$4 sm:$0xff]  }
 0x1cd   : > { %4176 = vmatpush1.bf16.msra.mxu0 %v5840_v7  ;;  %3849 = vmatprep.subr.bf16.mxu1 %v5845_v60  ;;  %v5929_v7 = vld [vmem:[%s6071_s7 + $0x7c0] ss:$8 sps:$4 sm:$0xff]  }
 0x1ce   : > { %4177 = vmatprep.subr.bf16.mxu0 %v5848_v8  ;;  %v5932_v60 = vld [vmem:[%s6071_s7 + $0xfc0] ss:$8 sps:$4 sm:$0xff]   ;;  %v5937_v8 = vld [vmem:[%s6071_s7 + $0x7d4] ss:$8 sps:$4 sm:$0xff]  }
 0x1d0   : > { %3850 = vmatpush1.bf16.msra.mxu1 %v5843_v9  ;;  %v5940_v9 = vld [vmem:[%s6071_s7 + $0xfd4] ss:$8 sps:$4 sm:$0xff]  }
 0x1d1   : > { %4178 = vmatpush1.bf16.msra.mxu0 %v5846_v10  ;;  %3851 = vmatprep.subr.bf16.mxu1 %v5851_v11  ;;  %v5935_v10 = vld [vmem:[%s6071_s7 + $0x7d0] ss:$8 sps:$4 sm:$0xff]  }
 0x1d2   : > { %4179 = vmatprep.subr.bf16.mxu0 %v5854_v12  ;;  %v5938_v11 = vld [vmem:[%s6071_s7 + $0xfd0] ss:$8 sps:$4 sm:$0xff]   ;;  %v5943_v12 = vld [vmem:[%s6071_s7 + $0x7e4] ss:$8 sps:$4 sm:$0xff]  }
 0x1d4   : > { %3852 = vmatpush1.bf16.msra.mxu1 %v5849_v13  ;;  %v5946_v13 = vld [vmem:[%s6071_s7 + $0xfe4] ss:$8 sps:$4 sm:$0xff]  }
 0x1d5   : > { %4180 = vmatpush1.bf16.msra.mxu0 %v5852_v14  ;;  %3862 = vmatprep.subr.bf16.mxu1 %v5858_v0  ;;  %v5941_v14 = vld [vmem:[%s6071_s7 + $0x7e0] ss:$8 sps:$4 sm:$0xff]  }
 0x1d6   : > { %4190 = vmatprep.subr.bf16.mxu0 %v5862_v16  ;;  %v5944_v0 = vld [vmem:[%s6071_s7 + $0xfe0] ss:$8 sps:$4 sm:$0xff]   ;;  %v5949_v16 = vld [vmem:[%s6071_s7 + $0x7f4] ss:$8 sps:$4 sm:$0xff]  }
 0x1d7   : > { %3854 = vmatmul.mubr.bf16.vlgmr.msra.gmra.mrb[0].mxu1 %v6661_v19 }
 0x1d8   : > { %4182 = vmatmul.mubr.bf16.vlgmr.msra.gmra.mrb[0].mxu0 %v6665_v20  ;;  %3863 = vmatpush1.bf16.msra.mxu1 %v5856_v21  ;;  %v5952_v21 = vld [vmem:[%s6071_s7 + $0xff4] ss:$8 sps:$4 sm:$0xff]  }
 0x1d9   : > { %4191 = vmatpush1.bf16.msra.mxu0 %v5860_v22  ;;  %3864 = vmatprep.subr.bf16.mxu1 %v5865_v23  ;;  %v5947_v22 = vld [vmem:[%s6071_s7 + $0x7f0] ss:$8 sps:$4 sm:$0xff]  }
 0x1da   : > { %4192 = vmatprep.subr.bf16.mxu0 %v5868_v24  ;;  %3894 = vmatprep.mubr.bf16.mxu1 %v884_v46  ;;  %v5950_v23 = vld [vmem:[%s6071_s7 + $0xff0] ss:$8 sps:$4 sm:$0xff]   ;;  %v882_v24 = vcombine.high %v6661_v19, %v6661_v19  ;;  %v980_v46 = vcombine.high %v6665_v20, %v6665_v20 }
 0x1db   : > { %4222 = vmatprep.mubr.bf16.mxu0 %v982_v53  ;;  %v6013_v53 = vmov 1983009808  }
 0x1dc   : > { %3865 = vmatpush1.bf16.msra.mxu1 %v5863_v50  ;;  %v4235_v50 = vunpack.c.l.s4 %v6013_v53 }
 0x1dd   : > { %4193 = vmatpush1.bf16.msra.mxu0 %v5866_v6  ;;  %3866 = vmatprep.subr.bf16.mxu1 %v5871_v15 }
 0x1de   : > { %4194 = vmatprep.subr.bf16.mxu0 %v5874_v57  ;;  %v4236_v6 = vunpack.c.0.s8 %v4235_v50 }
 0x1e0   : > { %3867 = vmatpush1.bf16.msra.mxu1 %v5869_v63 }
 0x1e1   : > { %4195 = vmatpush1.bf16.msra.mxu0 %v5872_v27  ;;  %3868 = vmatprep.subr.bf16.mxu1 %v5877_v28 }
 0x1e2   : > { %4196 = vmatprep.subr.bf16.mxu0 %v5880_v29 }
 0x1e4   : > { %3869 = vmatpush1.bf16.msra.mxu1 %v5875_v30  ;;  %v4239_v30 = vsub.s32 %v4236_v6, %v6113_v44 }
 0x1e5   : > { %4197 = vmatpush1.bf16.msra.mxu0 %v5878_v31  ;;  %3870 = vmatprep.subr.bf16.mxu1 %v5883_v32 }
 0x1e6   : > { %4198 = vmatprep.subr.bf16.mxu0 %v5886_v33 }
 0x1e8   : > { %3871 = vmatpush1.bf16.msra.mxu1 %v5881_v34  ;;  %v266_v34 = vld [vmem:[#allocation2] sm:$0xf] }
 0x1e9   : > { %4199 = vmatpush1.bf16.msra.mxu0 %v5884_v35  ;;  %3872 = vmatprep.subr.bf16.mxu1 %v5889_v36 }
 0x1ea   : > { %4200 = vmatprep.subr.bf16.mxu0 %v5892_v18  ;;  %v5953_v18 = vld [vmem:[%s6832_s3 + $0x40] sm:$0xff] (!%p5059_p6)  }
 0x1ec   : > { %3873 = vmatpush1.bf16.msra.mxu1 %v5887_v38  ;;  %v5954_v38 = vld [vmem:[%s6832_s3] sm:$0xff] (!%p5059_p6)  }
 0x1ed   : > { %4201 = vmatpush1.bf16.msra.mxu0 %v5890_v43  ;;  %3874 = vmatprep.subr.bf16.mxu1 %v5895_v45  ;;  %v5955_v43 = vld [vmem:[%s6832_s3 + $0x48] sm:$0xff] (!%p5059_p6)  }
 0x1ee   : > { %4202 = vmatprep.subr.bf16.mxu0 %v5898_v26  ;;  %v5956_v45 = vld [vmem:[%s6832_s3 + $0x8] sm:$0xff] (!%p5059_p6)   ;;  %v5957_v26 = vld [vmem:[%s6832_s3 + $0x50] sm:$0xff] (!%p5059_p6)  }
 0x1f0   : > { %3875 = vmatpush1.bf16.msra.mxu1 %v5893_v47  ;;  %v5958_v47 = vld [vmem:[%s6832_s3 + $0x10] sm:$0xff] (!%p5059_p6)  }
 0x1f1   : > { %4203 = vmatpush1.bf16.msra.mxu0 %v5896_v37  ;;  %3876 = vmatprep.subr.bf16.mxu1 %v5901_v48  ;;  %v5959_v37 = vld [vmem:[%s6832_s3 + $0x58] sm:$0xff] (!%p5059_p6)  }
 0x1f2   : > { %4204 = vmatprep.subr.bf16.mxu0 %v5904_v17  ;;  %v5960_v48 = vld [vmem:[%s6832_s3 + $0x18] sm:$0xff] (!%p5059_p6)   ;;  %v5961_v17 = vld [vmem:[%s6832_s3 + $0x60] sm:$0xff] (!%p5059_p6)  }
 0x1f4   : > { %3877 = vmatpush1.bf16.msra.mxu1 %v5899_v49  ;;  %v4253_v49 = vsub.s32 (!%p5059_p6), 0, %v6113_v44 }
 0x1f5   : > { %4205 = vmatpush1.bf16.msra.mxu0 %v5902_v51  ;;  %3878 = vmatprep.subr.bf16.mxu1 %v5907_v52  ;;  %v4257_v51 = vsub.s32 (!%p5059_p6), 1, %v6113_v44  ;;  %v5962_v52 = vld [vmem:[%s6832_s3 + $0x20] sm:$0xff] (!%p5059_p6)   ;;  %v5964_v44 = vld [vmem:[%s6832_s3 + $0x28] sm:$0xff] (!%p5059_p6)  }
 0x1f6   : > { %4206 = vmatprep.subr.bf16.mxu0 %v5910_v54  ;;  %v5963_v54 = vld [vmem:[%s6832_s3 + $0x68] sm:$0xff] (!%p5059_p6)  }
 0x1f8   : > { %3879 = vmatpush1.bf16.msra.mxu1 %v5905_v55  ;;  %v4249_v55 = vld [vmem:[%s6831_s2] sm:$0x3] (!%p5059_p6) }
 0x1f9   : > { %4207 = vmatpush1.bf16.msra.mxu0 %v5908_v56  ;;  %3880 = vmatprep.subr.bf16.mxu1 %v5913_v58  ;;  %v4254_v56 = vrot.slane (!%p5059_p6), %v4249_v55, %v4253_v49  ;;  %v4258_v58 = vrot.slane (!%p5059_p6), %v4249_v55, %v4257_v51 }
 0x1fa   : > { %4208 = vmatprep.subr.bf16.mxu0 %v5916_v39 }
 0x1fb   : > { %v4259_v39 = vcombine.low (!%p5059_p6), %v4254_v56, %v4258_v58 }
 0x1fc   : > { %3881 = vmatpush1.bf16.msra.mxu1 %v5911_v40  ;;  %v5965_v40 = vld [vmem:[%s6832_s3 + $0x70] sm:$0xff] (!%p5059_p6)  }
 0x1fd   : > { %4209 = vmatpush1.bf16.msra.mxu0 %v5914_v61  ;;  %3882 = vmatprep.subr.bf16.mxu1 %v5919_v62  ;;  %v4266_v62 = vrot.slane (!%p5059_p6), %v4259_v39, %v4239_v30 }
 0x1fe   : > { %4210 = vmatprep.subr.bf16.mxu0 %v5922_v1  ;;  %v5966_v1 = vld [vmem:[%s6832_s3 + $0x30] sm:$0xff] (!%p5059_p6)  }
 0x200   : > { %3883 = vmatpush1.bf16.msra.mxu1 %v5917_v2 }
 0x201   : > { %4211 = vmatpush1.bf16.msra.mxu0 %v5920_v3  ;;  %3884 = vmatprep.subr.bf16.mxu1 %v5925_v4  ;;  %v5967_v3 = vld [vmem:[%s6832_s3 + $0x78] sm:$0xff] (!%p5059_p6)  }
 0x202   : > { %4212 = vmatprep.subr.bf16.mxu0 %v5928_v25  ;;  %v5968_v25 = vld [vmem:[%s6832_s3 + $0x38] sm:$0xff] (!%p5059_p6)  }
 0x204   : > { %3885 = vmatpush1.bf16.msra.mxu1 %v5923_v5 }
 0x205   : > { %4213 = vmatpush1.bf16.msra.mxu0 %v5926_v41  ;;  %3886 = vmatprep.subr.bf16.mxu1 %v5931_v42 }
 0x206   : > { %4214 = vmatprep.subr.bf16.mxu0 %v5934_v59 }
 0x208   : > { %3887 = vmatpush1.bf16.msra.mxu1 %v5929_v7 }
 0x209   : > { %4215 = vmatpush1.bf16.msra.mxu0 %v5932_v60  ;;  %3888 = vmatprep.subr.bf16.mxu1 %v5937_v8  ;;  %v5060_v60 = vld [vmem:[%s6833_s4] ss:$0 sm:$0xff] (!%p5059_p6) }
 0x20a   : > { %4216 = vmatprep.subr.bf16.mxu0 %v5940_v9 }
 0x20c   : > { %3889 = vmatpush1.bf16.msra.mxu1 %v5935_v10 }
 0x20d   : > { %4217 = vmatpush1.bf16.msra.mxu0 %v5938_v11  ;;  %3890 = vmatprep.subr.bf16.mxu1 %v5943_v12 }
 0x20e   : > { %4218 = vmatprep.subr.bf16.mxu0 %v5946_v13 }
 0x210   : > { %3891 = vmatpush1.bf16.msra.mxu1 %v5941_v14 }
 0x211   : > { %4219 = vmatpush1.bf16.msra.mxu0 %v5944_v0  ;;  %3892 = vmatprep.subr.bf16.mxu1 %v5949_v16 }
 0x212   : > { %4220 = vmatprep.subr.bf16.mxu0 %v5952_v21 }
 0x214   : > { %3893 = vmatpush1.bf16.msra.mxu1 %v5947_v22 }
 0x215   : > { %4221 = vmatpush1.bf16.msra.mxu0 %v5950_v23 }
 0x216   : > { %5082 = vmatprep.subr.bf16.mxu0 (!%p5059_p6), %v5953_v18 }
 0x217   : > { %3895 = vmatmul.mubr.bf16.vlgmr.msra.gmra.mrb[0].mxu1 %v882_v24 }
 0x218   : > { %4223 = vmatmul.mubr.bf16.vlgmr.msra.gmra.mrb[0].mxu0 %v980_v46 }
 0x219   : > { %5083 = vmatpush3.bf16.msra.mxu0 (!%p5059_p6), %v5954_v38 }
 0x21a   : > { %5084 = vmatprep.subr.bf16.mxu0 (!%p5059_p6), %v5955_v43 }
 0x21d   : > { %5085 = vmatpush3.bf16.msra.mxu0 (!%p5059_p6), %v5956_v45 }
 0x21e   : > { %5086 = vmatprep.subr.bf16.mxu0 (!%p5059_p6), %v5957_v26 }
 0x221   : > { %5087 = vmatpush3.bf16.msra.mxu0 (!%p5059_p6), %v5958_v47 }
 0x222   : > { %5088 = vmatprep.subr.bf16.mxu0 (!%p5059_p6), %v5959_v37 }
 0x225   : > { %5089 = vmatpush3.bf16.msra.mxu0 (!%p5059_p6), %v5960_v48 }
 0x226   : > { %5090 = vmatprep.subr.bf16.mxu0 (!%p5059_p6), %v5961_v17 }
 0x229   : > { %5091 = vmatpush3.bf16.msra.mxu0 (!%p5059_p6), %v5962_v52 }
 0x22a   : > { %5092 = vmatprep.subr.bf16.mxu0 (!%p5059_p6), %v5963_v54 }
 0x22d   : > { %5093 = vmatpush3.bf16.msra.mxu0 (!%p5059_p6), %v5964_v44 }
 0x22e   : > { %5094 = vmatprep.subr.bf16.mxu0 (!%p5059_p6), %v5965_v40 }
 0x231   : > { %5095 = vmatpush3.bf16.msra.mxu0 (!%p5059_p6), %v5966_v1 }
 0x232   : > { %5096 = vmatprep.subr.bf16.mxu0 (!%p5059_p6), %v5967_v3 }
 0x235   : > { %5097 = vmatpush3.bf16.msra.mxu0 (!%p5059_p6), %v5968_v25 }
 0x2ea   : > { %v3896_v15 = vpop.f32.mrb[0].mxu1 }
 0x2eb   : > { %v4224_v57 = vpop.f32.mrb[0].mxu0  ;;  %v3898_v27 = vpop.f32.mrb[1].mxu1 }
 0x2ec   : > { %v5104_v63 = vadd.f32 %v4224_v57, %v3896_v15  ;;  %v4226_v28 = vpop.f32.mrb[1].mxu0  ;;  %v3900_v31 = vpop.f32.mrb[2].mxu1 }
 0x2ed   : > { %v5105_v29 = vadd.f32 %v4226_v28, %v3898_v27  ;;  %v4228_v19 = vpop.f32.mrb[2].mxu0  ;;  %v3901_v32 = vpop.f32.mrb[3].mxu1 }
 0x2ee   : > { %v4229_v33 = vpop.f32.mrb[3].mxu0 }
 0x2ef   : > { %v4233_v20 = vcombine.low %v5104_v63, %v5105_v29  ;;  %4247 = sbr.rel (%p5059_p6) target bundleno = 1308 (0x51c), region = 48 }
 0x2f1   : > { %v4240_v35 = vrot.slane %v4233_v20, %v4239_v30 }
 0x2f3   : > { %v4242_v36 = vadd.f32 %v4240_v35, %v266_v34 }
 0x2f5   : > { %4243 = vst [vmem:[#allocation2] sm:$0xf] %v4242_v36 }
 0x2fc   : > { %v4248_v61 = vld [vmem:[#allocation2] sm:$0xf] }
 0x2fd   : > { %v4268_v2 = vadd.f32 %v4266_v62, %v4248_v61 }
 0x2ff   : > { %v4269_v4 = vmax.f32 %v4268_v2, 0.0 }
 0x301   : > { %v4277_v5 = vrot.slane %v4269_v4, %v4239_v30 }
 0x303   : > { %v4278_v41 = vcombine.high %v4277_v5, %v4277_v5  ;;  %v4281_v42 = vpack.c.bf16 %v4277_v5, %v4277_v5 }
 0x305   : > { %v4282_v59 = vpack.c.bf16 %v4278_v41, %v4278_v41 }
 0x307   : > { %4450 = vmatprep.mubr.bf16.mxu0 %v4282_v59 }
 0x308   : > { %4451 = vmatmul.mubr.bf16.vlgmr.msra.gmra.mrb[0].mxu0 %v4281_v42 }
 0x3db   : > { %v5098_v7 = vpop.f32.mrb[0].mxu0 }
 0x3dc   : > { %v5099_v8 = vpop.f32.mrb[1].mxu0 }
 0x3dd   : > { %v5100_v9 = vadd.f32 %v5099_v8, %v5098_v7  ;;  %v5101_v10 = vpop.f32.mrb[2].mxu0 }
 0x3de   : > { %v5102_v11 = vpop.f32.mrb[3].mxu0 }
 0x3df   : > { %v4453_v12 = vadd.f32 %v5100_v9, %v5060_v60 }
 0x3e1   : > { %4472 = vrot.lane.b32.xlu1 %v4453_v12, %s6014_s24  ;;  %v4459_v13 = vsel %vm4458_vm0, %v4453_v12, -inf }
 0x3e2   : > { %4460 = vmax.xlane.f32.xlu0 %v4459_v13 }
 0x453   : > { %v4473_v14 = vpop.permute.xlu1 %4472 }
 0x454   : > { %4476 = vst.msk [vmem:[%s6835_s6] sm:$0x3] %vm4475_vm1, %v4473_v14 }
 0x46f   : > { %v4461_v0 = vpop.xlane.xlu0 %4460 }
 0x470   : > { %v4462_v16 = vsub.f32 %v4453_v12, %v4461_v0 }
 0x472   : > { %v4463_v21 = vmul.f32 1.442695, %v4462_v16 }
 0x474   : > { %5969 = vpow2.f32 %v4463_v21 }
 0x47e   : > { %v5970_v22 = vpop.eup %5969 }
 0x47f   : > { %v4465_v23 = vsel %vm4458_vm0, %v5970_v22, 0.0 }
 0x480   : > { %4466 = vadd.xlane.f32.xlu0 %v4465_v23 }
 0x50d   : > { %v4467_v24 = vpop.xlane.xlu0 %4466 }
 0x50e   : > { %5971 = vrcp.f32 %v4467_v24 }
 0x518   : > { %v5972_v46 = vpop.eup %5971 }
 0x519   : > { %v4469_v53 = vmul.f32 %v5972_v46, %v5970_v22 }
 0x51b   : > { %4470 = vst.msk [vmem:[#allocation3] sm:$0x3] %vm4458_vm0, %v4469_v53 }
 0x51c PF: > { %p5166_p7 = scmp.eq.s32.totalorder %s6057_s22, 1  ;;  %s6015_s27 = smov [#allocation3]  }
 0x51d   : > { %s4484_s28 = sshll.u32 %s6015_s27, 4  ;;  %s4485_s28 = int_to_ptr.vmem [resolvable:$true] %s4484_s28 }
 0x51e   : > { %s5973_s29 = scalar_lea.vmem %s4485_s28, 32  ;;  %p5980_p11 = scmp.lt.s32.totalorder %s4485_s28, %s4485_s28 }
 0x51f   : > { %p5974_p8 = scmp.ne.s32.totalorder %s4485_s28, %s5973_s29  ;;  %p5981_p12 = scmp.lt.s32.totalorder %s5973_s29, %s5973_s29 }
 0x521   : > { %p5975_p9 = pnand %p5974_p8, %p5166_p7  ;;  %p5982_p13 = por %p5981_p12, %p5980_p11 }
 0x523   : > { %p5976_p10 = pneg %p5975_p9 }
 0x525   : > { %p5983_p0 = pnand %p5982_p13, %p5976_p10 }
 0x527   : > { %5986 = shalt.err (!%p5983_p0)
}
 0x528   : > { %s5987_s8 = scalar_lea.hbm %s6834_s5, 32 }
 0x529   : > { %p5988_p1 = scmp.ne.s32.totalorder %s6834_s5, %s5987_s8  ;;  %p5993_p4 = scmp.lt.u32.totalorder %s5987_s8, %s6834_s5 }
 0x52b   : > { %p5989_p2 = pnand %p5988_p1, %p5166_p7 }
 0x52d   : > { %p5990_p3 = pneg %p5989_p2 }
 0x52f   : > { %p5995_p5 = pnand %p5993_p4, %p5990_p3 }
 0x531   : > { %5998 = shalt.err (!%p5995_p5)
}
 0x532   : > { %5163 = dma.vmem_to_hbm [thread:$0]  (%p5166_p7), %s4485_s28, 32, %s6834_s5, [#allocation4]  }
 0x533   : > { %6004 = dma.done.wait (%p5166_p7), [#allocation4], 32  }
 0x534   : > { %6006 = vsyncadd (%p5166_p7), [#allocation4], 4294967264 }
 0x535 PF: > { %s18_s21 = sadd.s32 1, %s6009_s21  }
 0x536   : > { %p15_p6 = scmp.ge.s32.totalorder %s18_s21, 4  }
 0x538   :  { %17 = sbr.rel (!%p15_p6) target bundleno = 1 (0x1), region = 86 }
 0x53f   :  { %4503 = vsyncpa [#allocation4], 1 }
 0x540   :  { %4505 = vsyncpa [#allocation4 + $0x1], 1 }

// kernel: resnet_actor_critic_forward.2
= control target key start
LH: loop header
LB: loop body
LE: loop exit
PB: predicated region body
PF: predicated region fallthrough
CT: control target
= control target key end

     0   :  { %11 = vsyncpa [#allocation4], 0  ;;  %s12042_s0 = inlined_call_operand.vmem [shape: f32[2,362,4], index: 0, kind: input, shape index: {}]   ;;  %s12043_s1 = inlined_call_operand.vmem [shape: bf16[36,32], index: 1, kind: input, shape index: {}]   ;;  %s12044_s2 = inlined_call_operand.hbm [shape: f32[1,32], index: 2, kind: input, shape index: {}]   ;;  %s12045_s3 = inlined_call_operand.vmem [shape: bf16[12,288,32], index: 3, kind: input, shape index: {}]   ;;  %s12046_s4 = inlined_call_operand.hbm [shape: f32[12,1,32], index: 4, kind: input, shape index: {}]   ;;  %s12047_s5 = inlined_call_operand.vmem [shape: f32[324,1], index: 5, kind: input, shape index: {}]   ;;  %s12048_s6 = inlined_call_operand.vmem [shape: bf16[2,324,32], index: 6, kind: output, shape index: {}]  }
   0x1   :  { %12 = vsyncpa [#allocation6], 0  ;;  %s7399_s21 = smov 0  }
   0x2 LB: > { %s7405_s22 = sadd.s32 4294967295, %s7337_s21   ;;  %p6454_p0 = scmp.ge.s32.totalorder %s7337_s21, 1  ;;  %s7337_s21 = sphi %s7399_s21, %s18_s21  }
   0x3   : > { %p180_p1 = scmp.lt.s32.totalorder %s7337_s21, 3  ;;  %p12049_p2 = scmp.eq.s32.totalorder %s7405_s22, 0 }
   0x4   : > { %s7343_s23 = smov [#allocation3]   ;;  %s7344_s26 = smov [#allocation5]  }
   0x5   : > { %s196_s24 = sshll.u32 %s7343_s23, 4  ;;  %p7410_p3 = pnand %p6454_p0, %p180_p1  ;;  %s197_s24 = int_to_ptr.vmem [resolvable:$true] %s196_s24 }
   0x6   : > { %s209_s27 = sshll.u32 %s7344_s26, 4  ;;  %s7263_s7 = scalar_lea.hbm %s12044_s2, 16  ;;  %s7422_s27 = int_to_ptr.vmem [resolvable:$true] %s209_s27 }
   0x7   : > { %s12235_s25 = scalar_select %p7410_p3, 1, 0 }
   0x8   : > { %p7173_p4 = pneg %p7410_p3  ;;  %p7264_p6 = scmp.ne.s32.totalorder %s12044_s2, %s7263_s7 }
   0x9   : > { %p7270_p10 = scmp.lt.u32.totalorder %s7263_s7, %s12044_s2 }
   0xa   : > { %p7418_p5 = pnand %p12049_p2, %p7173_p4 }
   0xc   : > { %p7265_p7 = pneg %p7418_p5 }
   0xe   : > { %p7266_p8 = pnand %p7265_p7, %p7264_p6 }
  0x10   : > { %p7267_p9 = pneg %p7266_p8 }
  0x12   : > { %p7272_p11 = pnand %p7270_p10, %p7267_p9 }
  0x14   : > { %7275 = shalt.err (!%p7272_p11)
}
  0x15   : > { %s7276_s12 = scalar_lea.vmem %s197_s24, 16  ;;  %s7283_s13 = scalar_lea.vmem %s197_s24, 32 }
  0x16   : > { %p7277_p12 = scmp.ne.s32.totalorder %s197_s24, %s7276_s12  ;;  %p7284_p1 = scmp.lt.s32.totalorder %s197_s24, %s197_s24 }
  0x17   : > { %p7285_p4 = scmp.lt.s32.totalorder %s7283_s13, %s7276_s12 }
  0x18   : > { %p7279_p13 = pnand %p7277_p12, %p7265_p7 }
  0x19   : > { %p7286_p2 = por %p7285_p4, %p7284_p1 }
  0x1a   : > { %p7280_p0 = pneg %p7279_p13 }
  0x1c   : > { %p7287_p3 = pnand %p7286_p2, %p7280_p0 }
  0x1e   : > { %7290 = shalt.err (!%p7287_p3)
}
  0x1f   : > { %7176 = dma.hbm_to_vmem [thread:$0]  (!%p7418_p5), %s12044_s2, 16, %s197_s24, [#allocation4]  }
  0x20   : > { %s7291_s18 = scalar_lea.hbm %s12046_s4, 192 }
  0x21   : > { %p7292_p6 = scmp.ne.s32.totalorder %s12046_s4, %s7291_s18  ;;  %p7298_p3 = scmp.lt.u32.totalorder %s7291_s18, %s12046_s4 }
  0x23   : > { %p7294_p8 = pnand %p7292_p6, %p7265_p7 }
  0x25   : > { %p7295_p2 = pneg %p7294_p8 }
  0x27   : > { %p7300_p9 = pnand %p7298_p3, %p7295_p2 }
  0x29   : > { %7303 = shalt.err (!%p7300_p9)
}
  0x2a   : > { %s7304_s24 = scalar_lea.vmem %s7422_s27, 192  ;;  %p7312_p13 = scmp.lt.s32.totalorder %s7422_s27, %s7422_s27 }
  0x2b   : > { %p7305_p10 = scmp.ne.s32.totalorder %s7422_s27, %s7304_s24  ;;  %p7313_p0 = scmp.lt.s32.totalorder %s7304_s24, %s7304_s24 }
  0x2d   : > { %p7307_p11 = pnand %p7305_p10, %p7265_p7  ;;  %p7314_p1 = por %p7313_p0, %p7312_p13 }
  0x2f   : > { %p7308_p12 = pneg %p7307_p11 }
  0x31   : > { %p7315_p4 = pnand %p7314_p1, %p7308_p12 }
  0x33   : > { %7318 = shalt.err (!%p7315_p4)
}
  0x34   : > { %s7345_s29 = smov 16   ;;  %s7346_s30 = smov 1  }
  0x35   : > { %7179 = dma.hbm_to_vmem [thread:$0]  (!%p7418_p5), %s12046_s4, 192, %s7422_s27, [#allocation6], %s7345_s29, %s7345_s29, %s7346_s30  }
  0x36   : > { %p12237_p6 = scmp.ne.s32.totalorder %s12235_s25, 0 }
  0x38   : > { %236 = sbr.rel (%p12237_p6) target bundleno = 2146 (0x862), region = 44 }
  0x3f   : > { %p12238_p7 = scmp.eq.s32.totalorder %s7405_s22, 0 }
  0x41   : > { %7328 = dma.done.wait (%p12238_p7), [#allocation4], 16   ;;  %p12239_p8 = pmov %p12238_p7 }
  0x42   : > { %p12240_p2 = pmov %p12238_p7 }
  0x43   : > { %7330 = vsyncadd (%p12239_p8), [#allocation4], 4294967280 }
  0x44   : > { %7332 = dma.done.wait (%p12240_p2), [#allocation6], 192   ;;  %p12241_p3 = pmov %p12240_p2 }
  0x45   : > { %vm322_vm0 = vcmask 261120   ;;  %vm12115_vm1 = vcmask 254976   ;;  %p270_p9 = scmp.lt.s32.totalorder %s7405_s22, 1  ;;  %v12051_v0 = vmov 0.0   ;;  %vm448_vm2 = vsmask.f32 7424 }
  0x46   : > { %7334 = vsyncadd (%p12241_p3), [#allocation6], 4294967104  ;;  %323 = vst.msk [vmem:[#allocation2] sm:$0xff] %vm322_vm0, %v12051_v0  ;;  %6766 = vmatprep.subr.bf16.mxu0 %v12051_v0  ;;  %7032 = vmatprep.subr.bf16.mxu1 %v12051_v0  ;;  %vm679_vm3 = vcmask 1046528   ;;  %vm811_vm4 = vsmask.f32 6400 }
  0x47   : > { %324 = vst.msk [vmem:[#allocation2 + $0x8] sm:$0xff] %vm322_vm0, %v12051_v0  ;;  %366 = vst.msk [vmem:[#allocation2 + $0x158] sm:$0xff] %vm322_vm0, %v12051_v0  ;;  %s12649_s22 = smov (!%p270_p9, %s7405_s22), 1  ;;  %s7349_s14 = smov 8   ;;  %vm1079_vm5 = vsmask.f32 5376 }
  0x48   : > { %367 = vst.msk [vmem:[#allocation2 + $0x160] sm:$0xff] %vm322_vm0, %v12051_v0  ;;  %325 = vst.msk [vmem:[#allocation2 + $0x10] sm:$0xff] %vm322_vm0, %v12051_v0  ;;  %s7163_s25 = smul.u32 368, %s12649_s22  ;;  %s7350_s15 = smov 12   ;;  %vm1707_vm6 = vcmask 1041408   ;;  %vm947_vm7 = vcmask 1045504  }
  0x49   : > { %369 = vst.msk [vmem:[#allocation2 + $0x168] sm:$0x3] %vm12115_vm1, %v12051_v0  ;;  %s7164_s27 = smul.u32 164, %s12649_s22  ;;  %s7348_s22 = smov 4   ;;  %vm7352_vm8 = vmmov 0   ;;  %vm1216_vm9 = vcmask 1044480  }
  0x4a   : > { %326 = vst.msk [vmem:[#allocation2 + $0x18] sm:$0xff] %vm322_vm0, %v12051_v0  ;;  %327 = vst.msk [vmem:[#allocation2 + $0x20] sm:$0xff] %vm322_vm0, %v12051_v0  ;;  %s7582_s10 = scalar_lea.vmem %s12042_s0, %s7163_s25  ;;  %s7351_s18 = smov 16   ;;  %vm1300_vm10 = vcmask 31744   ;;  %vm1343_vm11 = vcmask 64512   ;;  %vm1386_vm12 = vcmask 97280  }
  0x4b   : > { %328 = vst.msk [vmem:[#allocation2 + $0x28] sm:$0xff] %vm322_vm0, %v12051_v0  ;;  %329 = vst.msk [vmem:[#allocation2 + $0x30] sm:$0xff] %vm322_vm0, %v12051_v0  ;;  %s7587_s13 = scalar_lea.vmem %s12048_s6, %s7164_s27  ;;  %v374_v1 = vld [vmem:[%s7582_s10 + $0x20] sm:$0xff]  ;;  %v375_v2 = vld [vmem:[%s7582_s10 + $0x28] sm:$0xff]  ;;  %s7353_s24 = smov 20   ;;  %vm1429_vm13 = vcmask 130048  }
  0x4c   : > { %330 = vst.msk [vmem:[#allocation2 + $0x38] sm:$0xff] %vm322_vm0, %v12051_v0  ;;  %331 = vst.msk [vmem:[#allocation2 + $0x40] sm:$0xff] %vm322_vm0, %v12051_v0  ;;  %v376_v3 = vld [vmem:[%s7582_s10 + $0x30] sm:$0xff]  ;;  %v377_v4 = vld [vmem:[%s7582_s10 + $0x38] sm:$0xff]  ;;  %v7593_v5 = vpack.c.bf16 %v375_v2, %v374_v1  ;;  %s7354_s29 = smov 28   ;;  %s7355_s30 = smov 24  }
  0x4d   : > { %332 = vst.msk [vmem:[#allocation2 + $0x48] sm:$0xff] %vm322_vm0, %v12051_v0  ;;  %333 = vst.msk [vmem:[#allocation2 + $0x50] sm:$0xff] %vm322_vm0, %v12051_v0  ;;  %v370_v6 = vld [vmem:[%s7582_s10] sm:$0xff]  ;;  %v371_v7 = vld [vmem:[%s7582_s10 + $0x8] sm:$0xff]  ;;  %v7597_v8 = vpack.c.bf16 %v377_v4, %v376_v3  ;;  %s7356_s7 = smov 32   ;;  %vm1472_vm14 = vcmask 162816  }
  0x4e   : > { %334 = vst.msk [vmem:[#allocation2 + $0x58] sm:$0xff] %vm322_vm0, %v12051_v0  ;;  %335 = vst.msk [vmem:[#allocation2 + $0x60] sm:$0xff] %vm322_vm0, %v12051_v0  ;;  %v372_v9 = vld [vmem:[%s7582_s10 + $0x10] sm:$0xff]  ;;  %v373_v10 = vld [vmem:[%s7582_s10 + $0x18] sm:$0xff]  ;;  %v7601_v11 = vpack.c.bf16 %v371_v7, %v370_v6  ;;  %v7605_v13 = vshll.u32 %v7593_v5, 16  ;;  %v7608_v14 = vshrl.u32 %v7593_v5, 16 }
  0x4f   : > { %336 = vst.msk [vmem:[#allocation2 + $0x68] sm:$0xff] %vm322_vm0, %v12051_v0  ;;  %337 = vst.msk [vmem:[#allocation2 + $0x70] sm:$0xff] %vm322_vm0, %v12051_v0  ;;  %v378_v12 = vld [vmem:[%s7582_s10 + $0x40] sm:$0xff]  ;;  %v7610_v15 = vpack.c.bf16 %v373_v10, %v372_v9  ;;  %v379_v16 = vld [vmem:[%s7582_s10 + $0x48] sm:$0xff]  ;;  %v7616_v19 = vshll.u32 %v7597_v8, 16  ;;  %v7627_v27 = vshrl.u32 %v7597_v8, 16 }
  0x50   : > { %338 = vst.msk [vmem:[#allocation2 + $0x78] sm:$0xff] %vm322_vm0, %v12051_v0  ;;  %339 = vst.msk [vmem:[#allocation2 + $0x80] sm:$0xff] %vm322_vm0, %v12051_v0  ;;  %v380_v17 = vld [vmem:[%s7582_s10 + $0x50] sm:$0xff]  ;;  %v381_v18 = vld [vmem:[%s7582_s10 + $0x58] sm:$0xff]  ;;  %v450_v20 = vshrl.u32 %v7601_v11, 16  ;;  %v452_v21 = vshll.u32 %v7601_v11, 16  ;;  %v7620_v22 = vpack.c.bf16 %v379_v16, %v378_v12 }
  0x51   : > { %340 = vst.msk [vmem:[#allocation2 + $0x88] sm:$0xff] %vm322_vm0, %v12051_v0  ;;  %341 = vst.msk [vmem:[#allocation2 + $0x90] sm:$0xff] %vm322_vm0, %v12051_v0  ;;  %v382_v23 = vld [vmem:[%s7582_s10 + $0x60] sm:$0xff]  ;;  %v383_v24 = vld [vmem:[%s7582_s10 + $0x68] sm:$0xff]  ;;  %v467_v25 = vrot.slane %v7605_v13, 1  ;;  %v12053_v26 = vshll.u32 %v7610_v15, 16  ;;  %v7634_v32 = vpack.c.bf16 %v381_v18, %v380_v17 }
  0x52   : > { %342 = vst.msk [vmem:[#allocation2 + $0x98] sm:$0xff] %vm322_vm0, %v12051_v0  ;;  %343 = vst.msk [vmem:[#allocation2 + $0xa0] sm:$0xff] %vm322_vm0, %v12051_v0  ;;  %v12054_v28 = vshrl.u32 %v7610_v15, 16  ;;  %v475_v29 = vrot.slane %v7616_v19, 1  ;;  %v454_v30 = vrot.slane %v452_v21, 1  ;;  %v7632_v31 = vshll.u32 %v7620_v22, 16 }
  0x53   : > { %344 = vst.msk [vmem:[#allocation2 + $0xa8] sm:$0xff] %vm322_vm0, %v12051_v0  ;;  %345 = vst.msk [vmem:[#allocation2 + $0xb0] sm:$0xff] %vm322_vm0, %v12051_v0  ;;  %v471_v33 = vor.u32 %v7608_v14, %v467_v25  ;;  %v459_v34 = vrot.slane %v12053_v26, 1  ;;  %v7639_v35 = vpack.c.bf16 %v383_v24, %v382_v23  ;;  %v7642_v36 = vshrl.u32 %v7620_v22, 16  ;;  %v384_v37 = vld [vmem:[%s7582_s10 + $0x70] sm:$0xff]  ;;  %v385_v42 = vld [vmem:[%s7582_s10 + $0x78] sm:$0xff] }
  0x54   : > { %346 = vst.msk [vmem:[#allocation2 + $0xb8] sm:$0xff] %vm322_vm0, %v12051_v0  ;;  %347 = vst.msk [vmem:[#allocation2 + $0xc0] sm:$0xff] %vm322_vm0, %v12051_v0  ;;  %v455_v38 = vor.u32 %v454_v30, %v450_v20  ;;  %v479_v39 = vor.u32 %v7627_v27, %v475_v29  ;;  %v483_v40 = vrot.slane %v7632_v31, 1  ;;  %v7648_v41 = vshll.u32 %v7634_v32, 16  ;;  %v386_v43 = vld [vmem:[%s7582_s10 + $0x80] sm:$0xff]  ;;  %v387_v44 = vld [vmem:[%s7582_s10 + $0x88] sm:$0xff] }
  0x55   : > { %348 = vst.msk [vmem:[#allocation2 + $0xc8] sm:$0xff] %vm322_vm0, %v12051_v0  ;;  %349 = vst.msk [vmem:[#allocation2 + $0xd0] sm:$0xff] %vm322_vm0, %v12051_v0  ;;  %v476_v45 = vsel %vm448_vm2, %v471_v33, %v475_v29  ;;  %v463_v46 = vor.u32 %v12054_v28, %v459_v34  ;;  %v7657_v47 = vshrl.u32 %v7634_v32, 16  ;;  %v7660_v48 = vshll.u32 %v7639_v35, 16  ;;  %v388_v49 = vld [vmem:[%s7582_s10 + $0x90] sm:$0xff]  ;;  %v389_v50 = vld [vmem:[%s7582_s10 + $0x98] sm:$0xff] }
  0x56   : > { %350 = vst.msk [vmem:[#allocation2 + $0xd8] sm:$0xff] %vm322_vm0, %v12051_v0  ;;  %351 = vst.msk [vmem:[#allocation2 + $0xe0] sm:$0xff] %vm322_vm0, %v12051_v0  ;;  %620 = vrot.lane.b32.xlu1 %v476_v45, %s7348_s22  ;;  %v460_v51 = vsel %vm448_vm2, %v455_v38, %v459_v34  ;;  %v491_v52 = vrot.slane %v7648_v41, 1  ;;  %v487_v53 = vor.u32 %v7642_v36, %v483_v40  ;;  %v390_v54 = vld [vmem:[%s7582_s10 + $0xa0] sm:$0xff]  ;;  %v391_v55 = vld [vmem:[%s7582_s10 + $0xa8] sm:$0xff]  ;;  %v7680_v62 = vshrl.u32 %v7639_v35, 16 }
  0x57   : > { %352 = vst.msk [vmem:[#allocation2 + $0xe8] sm:$0xff] %vm322_vm0, %v12051_v0  ;;  %353 = vst.msk [vmem:[#allocation2 + $0xf0] sm:$0xff] %vm322_vm0, %v12051_v0  ;;  %616 = vrot.lane.b32.xlu0 %v460_v51, %s7348_s22  ;;  %v484_v56 = vsel %vm448_vm2, %v479_v39, %v483_v40  ;;  %v499_v57 = vrot.slane %v7660_v48, 1  ;;  %v7673_v58 = vpack.c.bf16 %v385_v42, %v384_v37  ;;  %v392_v1 = vld [vmem:[%s7582_s10 + $0xb0] sm:$0xff]  ;;  %v393_v7 = vld [vmem:[%s7582_s10 + $0xb8] sm:$0xff]  ;;  %vm1515_vm15 = vcmask 195584  }
  0x58   : > { %354 = vst.msk [vmem:[#allocation2 + $0xf8] sm:$0xff] %vm322_vm0, %v12051_v0  ;;  %355 = vst.msk [vmem:[#allocation2 + $0x100] sm:$0xff] %vm322_vm0, %v12051_v0  ;;  %v7675_v59 = vpack.c.bf16 %v387_v44, %v386_v43  ;;  %v468_v60 = vsel %vm448_vm2, %v463_v46, %v467_v25  ;;  %v495_v61 = vor.u32 %v7657_v47, %v491_v52  ;;  %v394_v9 = vld [vmem:[%s7582_s10 + $0xc0] sm:$0xff]  ;;  %v395_v10 = vld [vmem:[%s7582_s10 + $0xc8] sm:$0xff]  ;;  %vm1664_vm1 = vcmask 293888   ;;  %s9361_s23 = smov 0  }
  0x59   : > { %356 = vst.msk [vmem:[#allocation2 + $0x108] sm:$0xff] %vm322_vm0, %v12051_v0  ;;  %357 = vst.msk [vmem:[#allocation2 + $0x110] sm:$0xff] %vm322_vm0, %v12051_v0  ;;  %v7682_v63 = vpack.c.bf16 %v389_v50, %v388_v49  ;;  %v7686_v2 = vshll.u32 %v7673_v58, 16  ;;  %v7689_v3 = vshrl.u32 %v7673_v58, 16  ;;  %v7694_v6 = vpack.c.bf16 %v391_v55, %v390_v54  ;;  %v396_v20 = vld [vmem:[%s7582_s10 + $0xd0] sm:$0xff]  ;;  %v397_v29 = vld [vmem:[%s7582_s10 + $0xd8] sm:$0xff] }
  0x5a   : > { %358 = vst.msk [vmem:[#allocation2 + $0x118] sm:$0xff] %vm322_vm0, %v12051_v0  ;;  %359 = vst.msk [vmem:[#allocation2 + $0x120] sm:$0xff] %vm322_vm0, %v12051_v0  ;;  %v7692_v4 = vshll.u32 %v7675_v59, 16  ;;  %622 = vrot.lane.b32.xlu1 %v484_v56, %s7348_s22  ;;  %v500_v12 = vsel %vm448_vm2, %v495_v61, %v499_v57  ;;  %v492_v16 = vsel %vm448_vm2, %v487_v53, %v491_v52  ;;  %v7719_v33 = vshrl.u32 %v7675_v59, 16  ;;  %v398_v39 = vld [vmem:[%s7582_s10 + $0xe0] sm:$0xff]  ;;  %v399_v40 = vld [vmem:[%s7582_s10 + $0xe8] sm:$0xff] }
  0x5b   : > { %360 = vst.msk [vmem:[#allocation2 + $0x128] sm:$0xff] %vm322_vm0, %v12051_v0  ;;  %361 = vst.msk [vmem:[#allocation2 + $0x130] sm:$0xff] %vm322_vm0, %v12051_v0  ;;  %v7703_v17 = vshll.u32 %v7682_v63, 16  ;;  %v7706_v18 = vshrl.u32 %v7682_v63, 16  ;;  %618 = vrot.lane.b32.xlu0 %v468_v60, %s7348_s22  ;;  %v507_v21 = vrot.slane %v7686_v2, 1  ;;  %v503_v24 = vor.u32 %v7680_v62, %v499_v57  ;;  %v400_v46 = vld [vmem:[%s7582_s10 + $0xf0] sm:$0xff] }
  0x5c   : > { %362 = vst.msk [vmem:[#allocation2 + $0x138] sm:$0xff] %vm322_vm0, %v12051_v0  ;;  %363 = vst.msk [vmem:[#allocation2 + $0x140] sm:$0xff] %vm322_vm0, %v12051_v0  ;;  %v515_v23 = vrot.slane %v7692_v4, 1  ;;  %v7714_v25 = vshll.u32 %v7694_v6, 16  ;;  %v7721_v34 = vpack.c.bf16 %v393_v7, %v392_v1  ;;  %v7723_v37 = vpack.c.bf16 %v395_v10, %v394_v9  ;;  %v401_v49 = vld [vmem:[%s7582_s10 + $0xf8] sm:$0xff]  ;;  %v402_v54 = vld [vmem:[%s7582_s10 + $0x100] sm:$0xff] }
  0x5d   : > { %364 = vst.msk [vmem:[#allocation2 + $0x148] sm:$0xff] %vm322_vm0, %v12051_v0  ;;  %365 = vst.msk [vmem:[#allocation2 + $0x150] sm:$0xff] %vm322_vm0, %v12051_v0  ;;  %v523_v30 = vrot.slane %v7703_v17, 1  ;;  %v511_v38 = vor.u32 %v7689_v3, %v507_v21  ;;  %v7735_v45 = vshrl.u32 %v7694_v6, 16  ;;  %v7747_v53 = vpack.c.bf16 %v397_v29, %v396_v20  ;;  %v403_v55 = vld [vmem:[%s7582_s10 + $0x108] sm:$0xff]  ;;  %v404_v20 = vld [vmem:[%s7582_s10 + $0x110] sm:$0xff] }
  0x5e   : > { %12242 = vst [vmem:[#allocation9_spill] sm:$0xff] %v7593_v5  ;;  %12243 = vst [vmem:[#allocation10_spill] sm:$0xff] %v7597_v8  ;;  %626 = vrot.lane.b32.xlu1 %v500_v12, %s7348_s22  ;;  %v531_v43 = vrot.slane %v7714_v25, 1  ;;  %v7732_v44 = vshll.u32 %v7721_v34, 16  ;;  %v7742_v51 = vshrl.u32 %v7721_v34, 16  ;;  %v7745_v52 = vshll.u32 %v7723_v37, 16 }
  0x5f   : > { %12244 = vst [vmem:[#allocation11_spill] sm:$0xff] %v7601_v11  ;;  %12245 = vst [vmem:[#allocation12_spill] sm:$0xff] %v7682_v63  ;;  %v527_v42 = vor.u32 %v7706_v18, %v523_v30  ;;  %624 = vrot.lane.b32.xlu0 %v492_v16, %s7348_s22  ;;  %v516_v50 = vsel %vm448_vm2, %v511_v38, %v515_v23  ;;  %v508_v56 = vsel %vm448_vm2, %v503_v24, %v507_v21  ;;  %v405_v21 = vld [vmem:[%s7582_s10 + $0x118] sm:$0xff] }
  0x60   : > { %12246 = vst [vmem:[#allocation13_spill] sm:$0xff] %v7692_v4  ;;  %12247 = vst [vmem:[#allocation14_spill] sm:$0xff] %v7703_v17  ;;  %v519_v57 = vor.u32 %v7719_v33, %v515_v23  ;;  %v539_v60 = vrot.slane %v7732_v44, 1  ;;  %v7754_v61 = vpack.c.bf16 %v399_v40, %v398_v39  ;;  %v7757_v1 = vshll.u32 %v7747_v53, 16  ;;  %v406_v39 = vld [vmem:[%s7582_s10 + $0x120] sm:$0xff]  ;;  %v407_v40 = vld [vmem:[%s7582_s10 + $0x128] sm:$0xff] }
  0x61   : > { %12248 = vst [vmem:[#allocation15_spill] sm:$0xff] %v7706_v18  ;;  %12249 = vst [vmem:[#allocation16_spill] sm:$0xff] %v7714_v25  ;;  %v7759_v7 = vpack.c.bf16 %v401_v49, %v400_v46  ;;  %v532_v9 = vsel %vm448_vm2, %v527_v42, %v531_v43  ;;  %v7764_v10 = vshrl.u32 %v7747_v53, 16  ;;  %v7769_v16 = vpack.c.bf16 %v403_v55, %v402_v54  ;;  %v409_v0 = vld [vmem:[%s7582_s10 + $0x138] sm:$0xff] }
  0x62   : > { %12250 = vst [vmem:[#allocation17_spill] sm:$0xff] %v7719_v33  ;;  %12251 = vst [vmem:[#allocation18_spill] sm:$0xff] %v7721_v34  ;;  %630 = vrot.lane.b32.xlu1 %v516_v50, %s7348_s22  ;;  %v7767_v12 = vshll.u32 %v7754_v61, 16  ;;  %v543_v23 = vor.u32 %v7742_v51, %v539_v60  ;;  %v547_v24 = vrot.slane %v7745_v52, 1  ;;  %v555_v29 = vrot.slane %v7757_v1, 1 }
  0x63   : > { %12252 = vst [vmem:[#allocation19_spill] sm:$0xff] %v7723_v37  ;;  %12253 = vst [vmem:[#allocation20_spill] sm:$0xff] %v7732_v44  ;;  %628 = vrot.lane.b32.xlu0 %v508_v56, %s7348_s22  ;;  %v7778_v38 = vshll.u32 %v7759_v7, 16  ;;  %v524_v42 = vsel %vm448_vm2, %v519_v57, %v523_v30  ;;  %v535_v46 = vor.u32 %v7735_v45, %v531_v43  ;;  %v7785_v49 = vshrl.u32 %v7723_v37, 16  ;;  %v408_v56 = vld [vmem:[%s7582_s10 + $0x130] sm:$0xff] }
  0x64   : > { %12254 = vst [vmem:[#allocation21_spill] sm:$0xff] %v7735_v45  ;;  %12255 = vst [vmem:[#allocation22_spill] sm:$0xff] %v7742_v51  ;;  %v563_v50 = vrot.slane %v7767_v12, 1  ;;  %v7789_v54 = vshrl.u32 %v7759_v7, 16  ;;  %v7791_v55 = vpack.c.bf16 %v405_v21, %v404_v20  ;;  %v559_v26 = vor.u32 %v7764_v10, %v555_v29  ;;  %v7814_v51 = vld [vmem:[%s7582_s10 + $0x140] sm:$0xff] }
  0x65   : > { %12256 = vst [vmem:[#allocation23_spill] sm:$0xff] %v7745_v52  ;;  %12257 = vst [vmem:[#allocation24_spill] sm:$0xff] %v7747_v53  ;;  %v571_v30 = vrot.slane %v7778_v38, 1  ;;  %v7799_v43 = vshll.u32 %v7769_v16, 16  ;;  %v7801_v57 = vpack.c.bf16 %v407_v40, %v406_v39  ;;  %v548_v28 = vsel %vm448_vm2, %v543_v23, %v547_v24 }
  0x66   : > { %12258 = vst [vmem:[#allocation25_spill] sm:$0xff] %v7785_v49  ;;  %12259 = vst [vmem:[#allocation26_spill] sm:$0xff] %v7791_v55  ;;  %634 = vrot.lane.b32.xlu1 %v532_v9, %s7348_s22  ;;  %v7806_v20 = vshll.u32 %v7791_v55, 16  ;;  %v540_v21 = vsel %vm448_vm2, %v535_v46, %v539_v60  ;;  %v551_v9 = vor.u32 %v7785_v49, %v547_v24  ;;  %v7811_v44 = vshrl.u32 %v7754_v61, 16 }
  0x67   : > { %632 = vrot.lane.b32.xlu0 %v524_v42, %s7348_s22  ;;  %v7816_v25 = vpack.c.bf16 %v409_v0, %v408_v56  ;;  %v564_v39 = vsel %vm448_vm2, %v559_v26, %v563_v50  ;;  %v575_v23 = vor.u32 %v7789_v54, %v571_v30  ;;  %v579_v40 = vrot.slane %v7799_v43, 1 }
  0x68   : > { %12260 = vst [vmem:[#allocation27_spill] sm:$0xff] %v7806_v20  ;;  %v7823_v42 = vshll.u32 %v7801_v57, 16  ;;  %v587_v60 = vrot.slane %v7806_v20, 1  ;;  %v7828_v24 = vshrl.u32 %v7791_v55, 16  ;;  %v7832_v0 = vpack.c.bf16 %v7814_v51, %v7814_v51 }
  0x69   : > { %v7835_v26 = vshll.u32 %v7816_v25, 16  ;;  %v567_v46 = vor.u32 %v7811_v44, %v563_v50  ;;  %v7840_v56 = vshrl.u32 %v7769_v16, 16  ;;  %v7849_v4 = vshrl.u32 %v7816_v25, 16 }
  0x6a   : > { %638 = vrot.lane.b32.xlu1 %v548_v28, %s7348_s22  ;;  %12261 = vst [vmem:[#allocation28_spill] sm:$0xff] %v7823_v42  ;;  %12262 = vst [vmem:[#allocation29_spill] sm:$0xff] %v7828_v24  ;;  %v556_v28 = vsel %vm448_vm2, %v551_v9, %v555_v29  ;;  %v595_v45 = vrot.slane %v7823_v42, 1  ;;  %v591_v17 = vor.u32 %v7828_v24, %v587_v60  ;;  %v609_v29 = vshll.u32 %v7832_v0, 16 }
  0x6b   : > { %636 = vrot.lane.b32.xlu0 %v540_v21, %s7348_s22  ;;  %12263 = vst [vmem:[#allocation30_spill] sm:$0xff] %v7835_v26  ;;  %v580_v21 = vsel %vm448_vm2, %v575_v23, %v579_v40  ;;  %v603_v18 = vrot.slane %v7835_v26, 1  ;;  %12264 = vst [vmem:[#allocation31_spill] sm:$0xff] %v7849_v4  ;;  %v572_v50 = vsel %vm448_vm2, %v567_v46, %v571_v30  ;;  %v680_v30 = vrot.slane %v7601_v11, 1 }
  0x6c   : > { %v583_v9 = vor.u32 %v7840_v56, %v579_v40  ;;  %v596_v23 = vsel %vm448_vm2, %v591_v17, %v595_v45  ;;  %v611_v26 = vrot.slane %v609_v29, 1  ;;  %v681_v40 = vrot.slane %v7610_v15, 1 }
  0x6d   : > { %v613_v17 = vshrl.u32 %v7832_v0, 16  ;;  %v683_v29 = vrot.slane %v7593_v5, 1  ;;  %v827_v24 = vrot.slane %v7657_v47, 1  ;;  %v828_v52 = vrot.slane %v7648_v41, 2 }
  0x6e   : > { %642 = vrot.lane.b32.xlu1 %v564_v39, %s7348_s22  ;;  %v7855_v39 = vshrl.u32 %v7801_v57, 16  ;;  %v588_v42 = vsel %vm448_vm2, %v583_v9, %v587_v60  ;;  %v685_v60 = vrot.slane %v7597_v8, 1  ;;  %v682_v9 = vsel %vm679_vm3, %v680_v30, %v681_v40 }
  0x6f   : > { %640 = vrot.lane.b32.xlu0 %v556_v28, %s7348_s22  ;;  %v607_v28 = vor.u32 %v7849_v4, %v603_v18  ;;  %v823_v4 = vrot.slane %v7642_v36, 1  ;;  %v832_v5 = vrot.slane %v7660_v48, 2 }
  0x70   : > { %12265 = vst [vmem:[#allocation32_spill] sm:$0xff] %v7855_v39  ;;  %v599_v33 = vor.u32 %v7855_v39, %v595_v45  ;;  %v12266_v45 = vshrl.u32 %v7610_v15, 16 }
  0x71   : > { %v612_v46 = vsel %vm448_vm2, %v607_v28, %v611_v26  ;;  %v816_v28 = vrot.slane %v7605_v13, 2 }
  0x72   : > { %646 = vrot.lane.b32.xlu1 %v580_v21, %s7348_s22  ;;  %v604_v21 = vsel %vm448_vm2, %v599_v33, %v603_v18  ;;  %v819_v18 = vrot.slane %v7627_v27, 1  ;;  %v820_v33 = vrot.slane %v7616_v19, 2 }
  0x73   : > { %644 = vrot.lane.b32.xlu0 %v572_v50, %s7348_s22  ;;  %v812_v50 = vrot.slane %v12266_v45, 1  ;;  %v615_v45 = vor.u32 %v613_v17, %v611_v26  ;;  %v829_v17 = vor.u32 %v828_v52, %v827_v24  ;;  %v1080_v52 = vrot.slane %v7608_v14, 2 }
  0x74   : > { %v821_v20 = vor.u32 %v820_v33, %v819_v18  ;;  %v1083_v18 = vrot.slane %v7627_v27, 2  ;;  %v860_v33 = vrot.slane %v7757_v1, 2 }
  0x76   : > { %650 = vrot.lane.b32.xlu1 %v596_v23, %s7348_s22  ;;  %v12267_v23 = vshll.u32 %v7610_v15, 16 }
  0x77   : > { %648 = vrot.lane.b32.xlu0 %v588_v42, %s7348_s22  ;;  %v815_v42 = vrot.slane %v7608_v14, 1  ;;  %v693_v14 = vrot.slane %v7673_v58, 1 }
  0x78   : > { %v813_v11 = vrot.slane %v12267_v23, 2  ;;  %v824_v23 = vrot.slane %v7632_v31, 2 }
  0x79   : > { %v817_v39 = vor.u32 %v816_v28, %v815_v42 }
  0x7a   : > { %654 = vrot.lane.b32.xlu1 %v612_v46, %s7348_s22  ;;  %v814_v30 = vor.u32 %v813_v11, %v812_v50  ;;  %v831_v46 = vrot.slane %v7680_v62, 1  ;;  %v825_v8 = vor.u32 %v824_v23, %v823_v4  ;;  %v687_v11 = vrot.slane %v7620_v22, 1 }
  0x7b   : > { %652 = vrot.lane.b32.xlu0 %v604_v21, %s7348_s22  ;;  %v7895_v26 = vsel %vm811_vm4, %v817_v39, %v821_v20  ;;  %v7899_v21 = vsel %vm679_vm3, %v683_v29, %v685_v60  ;;  %v689_v50 = vrot.slane %v7634_v32, 1  ;;  %v695_v23 = vrot.slane %v7675_v59, 1 }
  0x7c   : > { %v7889_v49 = vsel %vm811_vm4, %v814_v30, %v817_v39  ;;  %v7903_v4 = vsel %vm811_vm4, %v821_v20, %v825_v8  ;;  %v7905_v42 = vor.u32 %v832_v5, %v831_v46  ;;  %v7911_v28 = vsel %vm811_vm4, %v825_v8, %v829_v17 }
  0x7d   : > { %v1081_v39 = vrot.slane %v7605_v13, 3  ;;  %v691_v5 = vrot.slane %v7639_v35, 1  ;;  %v1084_v20 = vrot.slane %v7616_v19, 3  ;;  %v7927_v8 = vsel %vm679_vm3, %v687_v11, %v689_v50 }
  0x7e   : > { %721 = vrot.lane.b32.xlu1 %v682_v9, %s7349_s14  ;;  %v7908_v9 = vsel %vm679_vm3, %v681_v40, %v683_v29  ;;  %v7916_v24 = vsel %vm811_vm4, %v829_v17, %v7905_v42  ;;  %v7931_v13 = vsel %vm679_vm3, %v685_v60, %v687_v11  ;;  %v859_v29 = vrot.slane %v7764_v10, 1 }
  0x7f   : > { %656 = vrot.lane.b32.xlu0 %v615_v45, %s7348_s22  ;;  %v1082_v40 = vor.u32 %v1081_v39, %v1080_v52  ;;  %v1085_v27 = vor.u32 %v1084_v20, %v1083_v18  ;;  %v1087_v45 = vrot.slane %v7642_v36, 2  ;;  %v1088_v30 = vrot.slane %v7632_v31, 3 }
  0x80   : > { %v7945_v60 = vsel %vm679_vm3, %v691_v5, %v693_v14  ;;  %v697_v46 = vrot.slane %v7682_v63, 1  ;;  %v7949_v11 = vor.u32 %v860_v33, %v859_v29  ;;  %v7952_v17 = vsel %vm679_vm3, %v689_v50, %v691_v5 }
  0x81   : > { %v7938_v19 = vsel %vm1079_vm5, %v1082_v40, %v1085_v27  ;;  %v1089_v52 = vor.u32 %v1088_v30, %v1087_v45  ;;  %v1123_v36 = vrot.slane %v7764_v10, 2  ;;  %v699_v31 = vrot.slane %v7694_v6, 1 }
  0x82   : > { %725 = vrot.lane.b32.xlu1 %v7899_v21, %s7349_s14  ;;  %v701_v39 = vrot.slane %v7721_v34, 1  ;;  %v1124_v20 = vrot.slane %v7757_v1, 3  ;;  %v7966_v50 = vsel %vm679_vm3, %v695_v23, %v697_v46  ;;  %v1127_v10 = vrot.slane %v7811_v44, 2 }
  0x83   : > { %723 = vrot.lane.b32.xlu0 %v7908_v9, %s7349_s14  ;;  %v7960_v18 = vsel %vm1079_vm5, %v1085_v27, %v1089_v52  ;;  %v1128_v5 = vrot.slane %v7767_v12, 3  ;;  %v863_v40 = vrot.slane %v7811_v44, 1  ;;  %v7972_v29 = vsel %vm679_vm3, %v693_v14, %v695_v23 }
  0x84   : > { %v7974_v33 = vor.u32 %v1124_v20, %v1123_v36  ;;  %v864_v27 = vrot.slane %v7767_v12, 2  ;;  %v1091_v45 = vrot.slane %v7657_v47, 2  ;;  %v1092_v30 = vrot.slane %v7648_v41, 3 }
  0x85   : > { %v7977_v1 = vor.u32 %v1128_v5, %v1127_v10  ;;  %v1131_v34 = vrot.slane %v7789_v54, 2  ;;  %v1132_v44 = vrot.slane %v7778_v38, 3  ;;  %v702_v14 = vsel %vm679_vm3, %v699_v31, %v701_v39 }
  0x86   : > { %729 = vrot.lane.b32.xlu1 %v7927_v8, %s7349_s14  ;;  %12268 = vst [vmem:[#allocation33_spill] sm:$0xff] %v7974_v33  ;;  %v865_v63 = vor.u32 %v864_v27, %v863_v40  ;;  %v703_v12 = vrot.slane %v7723_v37, 1  ;;  %v705_v23 = vrot.slane %v7747_v53, 1  ;;  %v1093_v47 = vor.u32 %v1092_v30, %v1091_v45 }
  0x87   : > { %727 = vrot.lane.b32.xlu0 %v7931_v13, %s7349_s14  ;;  %v700_v41 = vsel %vm679_vm3, %v697_v46, %v699_v31  ;;  %v1133_v20 = vor.u32 %v1132_v44, %v1131_v34  ;;  %v867_v10 = vrot.slane %v7789_v54, 1  ;;  %v868_v40 = vrot.slane %v7778_v38, 2 }
  0x88   : > { %v7993_v36 = vsel %vm811_vm4, %v7949_v11, %v865_v63  ;;  %v7997_v5 = vsel %vm1079_vm5, %v1089_v52, %v1093_v47  ;;  %v1095_v46 = vrot.slane %v7680_v62, 2  ;;  %v1096_v31 = vrot.slane %v7660_v48, 3 }
  0x89   : > { %v8003_v27 = vsel %vm1079_vm5, %v7977_v1, %v1133_v20  ;;  %v706_v34 = vsel %vm679_vm3, %v703_v12, %v705_v23  ;;  %v707_v54 = vrot.slane %v7754_v61, 1  ;;  %v709_v52 = vrot.slane %v7759_v7, 1 }
  0x8a   : > { %733 = vrot.lane.b32.xlu1 %v7945_v60, %s7349_s14  ;;  %12269 = vst [vmem:[#allocation34_spill] sm:$0xff] %v8003_v27  ;;  %v869_v45 = vor.u32 %v868_v40, %v867_v10  ;;  %v704_v38 = vsel %vm679_vm3, %v701_v39, %v703_v12  ;;  %v8012_v30 = vor.u32 %v1096_v31, %v1095_v46  ;;  %v1135_v62 = vrot.slane %v7840_v56, 2 }
  0x8b   : > { %731 = vrot.lane.b32.xlu0 %v7952_v17, %s7349_s14  ;;  %v710_v27 = vsel %vm679_vm3, %v707_v54, %v709_v52  ;;  %v711_v10 = vrot.slane %v7769_v16, 1  ;;  %v713_v39 = vrot.slane %v7791_v55, 1  ;;  %v1136_v12 = vrot.slane %v7799_v43, 3 }
  0x8c   : > { %12270 = vst [vmem:[#allocation35_spill] sm:$0xff] %v8012_v30  ;;  %v8015_v44 = vsel %vm811_vm4, %v865_v63, %v869_v45  ;;  %v8020_v48 = vsel %vm1079_vm5, %v1093_v47, %v8012_v30  ;;  %v708_v63 = vsel %vm679_vm3, %v705_v23, %v707_v54  ;;  %v871_v47 = vrot.slane %v7840_v56, 1 }
  0x8d   : > { %12271 = vst [vmem:[#allocation36_spill] sm:$0xff] %v8020_v48  ;;  %v8029_v40 = vor.u32 %v1136_v12, %v1135_v62  ;;  %v872_v46 = vrot.slane %v7799_v43, 2  ;;  %v714_v31 = vsel %vm679_vm3, %v711_v10, %v713_v39  ;;  %v715_v30 = vrot.slane %v7801_v57, 1 }
  0x8e   : > { %737 = vrot.lane.b32.xlu1 %v7966_v50, %s7349_s14  ;;  %v717_v55 = vrot.slane %v7816_v25, 1  ;;  %v712_v23 = vsel %vm679_vm3, %v709_v52, %v711_v10  ;;  %v719_v12 = vrot.slane %v7832_v0, 1  ;;  %v835_v10 = vrot.slane %v7689_v3, 1 }
  0x8f   : > { %735 = vrot.lane.b32.xlu0 %v7972_v29, %s7349_s14  ;;  %v8040_v48 = vsel %vm1079_vm5, %v1133_v20, %v8029_v40  ;;  %v8043_v54 = vor.u32 %v872_v46, %v871_v47  ;;  %v716_v62 = vsel %vm679_vm3, %v713_v39, %v715_v30  ;;  %v836_v39 = vrot.slane %v7686_v2, 2  ;;  %v12274_v46 = vld [vmem:[#allocation9_spill] sm:$0xff] }
  0x90   : > { %v718_v56 = vsel %vm679_vm3, %v715_v30, %v717_v55  ;;  %v720_v20 = vsel %vm679_vm3, %v717_v55, %v719_v12  ;;  %v948_v47 = vrot.slane %v7610_v15, 2 }
  0x91   : > { %v8048_v43 = vsel %vm811_vm4, %v869_v45, %v8043_v54 }
  0x92   : > { %741 = vrot.lane.b32.xlu1 %v702_v14, %s7349_s14 }
  0x93   : > { %739 = vrot.lane.b32.xlu0 %v700_v41, %s7349_s14 }
  0x96   : > { %745 = vrot.lane.b32.xlu1 %v706_v34, %s7349_s14 }
  0x97   : > { %743 = vrot.lane.b32.xlu0 %v704_v38, %s7349_s14 }
  0x9a   : > { %749 = vrot.lane.b32.xlu1 %v710_v27, %s7349_s14 }
  0x9b   : > { %747 = vrot.lane.b32.xlu0 %v708_v63, %s7349_s14 }
  0x9e   : > { %753 = vrot.lane.b32.xlu1 %v714_v31, %s7349_s14 }
  0x9f   : > { %751 = vrot.lane.b32.xlu0 %v712_v23, %s7349_s14 }
  0xa2   : > { %757 = vrot.lane.b32.xlu1 %v718_v56, %s7349_s14 }
  0xa3   : > { %755 = vrot.lane.b32.xlu0 %v716_v62, %s7349_s14 }
  0xa6   : > { %761 = vrot.lane.b32.xlu1 %v719_v12, %s7349_s14 }
  0xa7   : > { %759 = vrot.lane.b32.xlu0 %v720_v20, %s7349_s14 }
  0xaa   : > { %771 = vrot.lane.b32.xlu1 %v7899_v21, %s7350_s15  ;;  %v411_v21 = vld [vmem:[%s7582_s10 + $0x148] sm:$0xff] }
  0xab   : > { %769 = vrot.lane.b32.xlu0 %v7908_v9, %s7350_s15  ;;  %v8081_v9 = vld [vmem:[%s7582_s10 + $0x150] sm:$0xff] }
  0xae   : > { %775 = vrot.lane.b32.xlu1 %v7927_v8, %s7350_s15  ;;  %v8085_v8 = vpack.c.bf16 %v411_v21, %v7814_v51  ;;  %v12275_v21 = vld [vmem:[#allocation10_spill] sm:$0xff] }
  0xaf   : > { %773 = vrot.lane.b32.xlu0 %v7931_v13, %s7350_s15  ;;  %v8090_v13 = vpack.c.bf16 %v8081_v9, %v8081_v9 }
  0xb2   : > { %779 = vrot.lane.b32.xlu1 %v7945_v60, %s7350_s15  ;;  %v765_v60 = vrot.slane %v8085_v8, 1 }
  0xb3   : > { %777 = vrot.lane.b32.xlu0 %v7952_v17, %s7350_s15  ;;  %v767_v17 = vrot.slane %v8090_v13, 1 }
  0xb5   : > { %v768_v51 = vsel %vm679_vm3, %v765_v60, %v767_v17 }
  0xb6   : > { %783 = vrot.lane.b32.xlu1 %v7966_v50, %s7350_s15 }
  0xb7   : > { %781 = vrot.lane.b32.xlu0 %v7972_v29, %s7350_s15 }
  0xba   : > { %787 = vrot.lane.b32.xlu1 %v702_v14, %s7350_s15 }
  0xbb   : > { %785 = vrot.lane.b32.xlu0 %v700_v41, %s7350_s15  ;;  %v766_v41 = vsel %vm679_vm3, %v717_v55, %v765_v60  ;;  %v7224_v55 = vld [vmem:[%s12043_s1 + $0x8] sm:$0xff]  }
  0xbe   : > { %791 = vrot.lane.b32.xlu1 %v706_v34, %s7350_s15  ;;  %v7223_v34 = vld [vmem:[%s12043_s1] sm:$0xff]  }
  0xbf   : > { %789 = vrot.lane.b32.xlu0 %v704_v38, %s7350_s15  ;;  %6767 = vmatpush3.bf16.msra.mxu0 %v7223_v34  ;;  %v12273_v38 = vmov 0.0  }
  0xc0   : > { %7035 = vmatpush3.bf16.msra.mxu1 %v7223_v34  ;;  %6768 = vmatprep.subr.bf16.mxu0 %v12273_v38  ;;  %v12277_v34 = vld [vmem:[#allocation25_spill] sm:$0xff] }
  0xc1   : > { %7033 = vmatprep.subr.bf16.mxu1 %v12273_v38  ;;  %6772 = vmatprep.mubr.msk.bf16.mxu0 %vm7352_vm8, %v12273_v38 }
  0xc2   : > { %795 = vrot.lane.b32.xlu1 %v710_v27, %s7350_s15  ;;  %6816 = vmatprep.mubr.msk.bf16.mxu1 %vm7352_vm8, %v12273_v38 }
  0xc3   : > { %793 = vrot.lane.b32.xlu0 %v708_v63, %s7350_s15  ;;  %6769 = vmatpush3.bf16.msra.mxu0 %v7224_v55 }
  0xc4   : > { %7036 = vmatpush3.bf16.msra.mxu1 %v7224_v55  ;;  %6770 = vmatprep.subr.bf16.mxu0 %v12273_v38  ;;  %v855_v55 = vrot.slane %v12277_v34, 1 }
  0xc5   : > { %7034 = vmatprep.subr.bf16.mxu1 %v12273_v38 }
  0xc6   : > { %799 = vrot.lane.b32.xlu1 %v714_v31, %s7350_s15  ;;  %v949_v31 = vrot.slane %v12274_v46, 2 }
  0xc7   : > { %797 = vrot.lane.b32.xlu0 %v712_v23, %s7350_s15 }
  0xc8   : > { %v8096_v50 = vpop.permute.xlu1 %620 }
  0xc9   : > { %v8098_v29 = vpop.permute.xlu0 %616 }
  0xca   : > { %803 = vrot.lane.b32.xlu1 %v718_v56, %s7350_s15 }
  0xcb   : > { %801 = vrot.lane.b32.xlu0 %v716_v62, %s7350_s15  ;;  %v8144_v62 = vor.u32 %v836_v39, %v835_v10 }
  0xcc   : > { %v8103_v14 = vpop.permute.xlu1 %622 }
  0xcd   : > { %12272 = vst [vmem:[#allocation37_spill] sm:$0xff] %v8103_v14  ;;  %v8106_v27 = vpop.permute.xlu0 %618  ;;  %v838_v20 = vsel %vm811_vm4, %v7905_v42, %v8144_v62  ;;  %v12278_v42 = vld [vmem:[#allocation23_spill] sm:$0xff]  ;;  %v1240_v14 = vrot.slane %v7754_v61, 3 }
  0xce   : > { %807 = vrot.lane.b32.xlu1 %v768_v51, %s7350_s15  ;;  %v856_v10 = vrot.slane %v12278_v42, 2 }
  0xcf   : > { %805 = vrot.lane.b32.xlu0 %v766_v41, %s7350_s15  ;;  %v1218_v41 = vrot.slane %v12275_v21, 3 }
  0xd0   : > { %v8113_v52 = vpop.permute.xlu1 %626 }
  0xd1   : > { %v8115_v45 = vpop.permute.xlu0 %624 }
  0xd2   : > { %905 = vrot.lane.b32.xlu1 %v7889_v49, %s7351_s18  ;;  %v7225_v49 = vld [vmem:[%s12043_s1 + $0x10] ss:$0 sps:$4 sm:$0x33]  }
  0xd3   : > { %809 = vrot.lane.b32.xlu0 %v767_v17, %s7350_s15  ;;  %v1709_v23 = vsel %vm1707_vm6, %v7225_v49, 0  ;;  %v953_v49 = vrot.slane %v7620_v22, 2  ;;  %vm1558_vm6 = vcmask 228352  }
  0xd4   : > { %v8125_v30 = vpop.permute.xlu1 %630  ;;  %6771 = vmatpush3.bf16.msra.mxu0 %v1709_v23  ;;  %7037 = vmatpush3.bf16.msra.mxu1 %v1709_v23  ;;  %v8183_v23 = vor.u32 %v856_v10, %v855_v55 }
  0xd5   : > { %v8129_v63 = vpop.permute.xlu0 %628 }
  0xd6   : > { %909 = vrot.lane.b32.xlu1 %v7903_v4, %s7351_s18  ;;  %12280 = vst [vmem:[#allocation39_spill] sm:$0xff] %v8183_v23 }
  0xd7   : > { %907 = vrot.lane.b32.xlu0 %v7895_v26, %s7351_s18  ;;  %v950_v26 = vsel %vm947_vm7, %v948_v47, %v949_v31 }
  0xd8   : > { %v8142_v56 = vpop.permute.xlu1 %634 }
  0xd9   : > { %v8146_v12 = vpop.permute.xlu0 %632 }
  0xda   : > { %913 = vrot.lane.b32.xlu1 %v7916_v24, %s7351_s18  ;;  %v951_v24 = vrot.slane %v12275_v21, 2  ;;  %v12101_v21 = vrot.slane %v7723_v37, 2 }
  0xdb   : > { %911 = vrot.lane.b32.xlu0 %v7911_v28, %s7351_s18  ;;  %v1217_v28 = vrot.slane %v12274_v46, 3 }
  0xdc   : > { %v8157_v4 = vpop.permute.xlu1 %638  ;;  %v952_v51 = vsel %vm947_vm7, %v949_v31, %v951_v24 }
  0xdd   : > { %v8163_v60 = vpop.permute.xlu0 %636  ;;  %v1219_v31 = vsel %vm1216_vm9, %v1217_v28, %v1218_v41  ;;  %v971_v28 = vrot.slane %v7747_v53, 2 }
  0xde   : > { %989 = vrot.lane.b32.xlu1 %v950_v26, %s7353_s24 }
  0xdf   : > { %915 = vrot.lane.b32.xlu0 %v838_v20, %s7351_s18 }
  0xe0   : > { %v8168_v17 = vpop.permute.xlu1 %642 }
  0xe1   : > { %12276 = vst [vmem:[#allocation9_spill] sm:$0xff] %v8168_v17  ;;  %v8174_v39 = vpop.permute.xlu0 %640  ;;  %v862_v17 = vsel %vm811_vm4, %v8183_v23, %v7949_v11  ;;  %v973_v11 = vrot.slane %v7754_v61, 2  ;;  %v12105_v23 = vrot.slane %v7747_v53, 3 }
  0xe2   : > { %12279 = vst [vmem:[#allocation38_spill] sm:$0xff] %v8174_v39  ;;  %1173 = vrot.lane.b32.xlu1 %v7938_v19, %s7354_s29  ;;  %v954_v19 = vsel %vm947_vm7, %v951_v24, %v953_v49  ;;  %v8207_v24 = vsel %vm947_vm7, %v12101_v21, %v971_v28 }
  0xe3   : > { %1037 = vrot.lane.b32.xlu0 %v952_v51, %s7355_s30  ;;  %12281 = vst [vmem:[#allocation40_spill] sm:$0xff] %v8207_v24  ;;  %v974_v21 = vsel %vm947_vm7, %v971_v28, %v973_v11  ;;  %v1310_v28 = vsel %vm1300_vm10, %v7620_v22, %v8115_v45 }
  0xe4   : > { %v8180_v47 = vpop.permute.xlu1 %646 }
  0xe5   : > { %v8185_v26 = vpop.permute.xlu0 %644 }
  0xe6   : > { %991 = vrot.lane.b32.xlu1 %v952_v51, %s7353_s24  ;;  %v1220_v51 = vrot.slane %v7620_v22, 3  ;;  %v1314_v22 = vsel %vm1300_vm10, %v7639_v35, %v8129_v63 }
  0xe7   : > { %1258 = vrot.lane.b32.xlu0 %v1219_v31, %s7356_s7 }
  0xe8   : > { %v8190_v20 = vpop.permute.xlu1 %650 }
  0xe9   : > { %v8197_v55 = vpop.permute.xlu0 %648 }
  0xea   : > { %1039 = vrot.lane.b32.xlu1 %v954_v19, %s7355_s30 }
  0xeb   : > { %927 = vrot.lane.b32.xlu0 %v862_v17, %s7351_s18  ;;  %v1221_v17 = vsel %vm1216_vm9, %v1218_v41, %v1220_v51  ;;  %v1130_v41 = vsel %vm1079_vm5, %v7974_v33, %v7977_v1  ;;  %v975_v1 = vrot.slane %v7759_v7, 2 }
  0xec   : > { %v8202_v10 = vpop.permute.xlu1 %654 }
  0xed   : > { %v8210_v31 = vpop.permute.xlu0 %652  ;;  %v976_v63 = vsel %vm947_vm7, %v973_v11, %v975_v1 }
  0xee   : > { %1175 = vrot.lane.b32.xlu1 %v7960_v18, %s7354_s29  ;;  %v1241_v18 = vsel %vm1216_vm9, %v12105_v23, %v1240_v14  ;;  %v955_v23 = vrot.slane %v7634_v32, 2 }
  0xef   : > { %1011 = vrot.lane.b32.xlu0 %v8207_v24, %s7353_s24 }
  0xf0   : > { %v8219_v42 = vpop.permute.xlu1 %721 }
  0xf1   : > { %v8222_v34 = vpop.permute.xlu0 %656 }
  0xf2   : > { %1260 = vrot.lane.b32.xlu1 %v1221_v17, %s7356_s7 }
  0xf3   : > { %1059 = vrot.lane.b32.xlu0 %v974_v21, %s7355_s30 }
  0xf4   : > { %v8229_v24 = vpop.permute.xlu1 %725 }
  0xf5   : > { %v8234_v37 = vpop.permute.xlu0 %723 }
  0xf6   : > { %1280 = vrot.lane.b32.xlu1 %v1241_v18, %s7356_s7  ;;  %v956_v18 = vsel %vm947_vm7, %v953_v49, %v955_v23  ;;  %v1318_v49 = vsel %vm1300_vm10, %v7675_v59, %v8146_v12 }
  0xf7   : > { %1195 = vrot.lane.b32.xlu0 %v1130_v41, %s7354_s29  ;;  %v1312_v41 = vsel %vm1300_vm10, %v7634_v32, %v8113_v52  ;;  %v1222_v52 = vrot.slane %v7634_v32, 3  ;;  %v1322_v32 = vsel %vm1300_vm10, %v7694_v6, %v8163_v60  ;;  %v957_v60 = vrot.slane %v7639_v35, 2 }
  0xf8   : > { %v730_v17 = vpop.permute.xlu1 %729 }
  0xf9   : > { %v8243_v53 = vsel %vm1343_vm11, %v1310_v28, %v730_v17  ;;  %v8245_v39 = vpop.permute.xlu0 %727  ;;  %v1223_v11 = vsel %vm1216_vm9, %v1220_v51, %v1222_v52 }
  0xfa   : > { %12282 = vst [vmem:[#allocation41_spill] sm:$0xff] %v8245_v39  ;;  %929 = vrot.lane.b32.xlu1 %v7993_v36, %s7351_s18 }
  0xfb   : > { %993 = vrot.lane.b32.xlu0 %v954_v19, %s7353_s24 }
  0xfc   : > { %v734_v45 = vpop.permute.xlu1 %733 }
  0xfd   : > { %v8259_v28 = vsel %vm1343_vm11, %v1314_v22, %v734_v45  ;;  %v732_v17 = vpop.permute.xlu0 %731  ;;  %v1316_v22 = vsel %vm1300_vm10, %v7673_v58, %v8125_v30  ;;  %v1242_v30 = vrot.slane %v7759_v7, 3 }
  0xfe   : > { %v8262_v36 = vsel %vm1343_vm11, %v1312_v41, %v732_v17  ;;  %1013 = vrot.lane.b32.xlu1 %v974_v21, %s7353_s24  ;;  %v12283_v17 = vld [vmem:[#allocation12_spill] sm:$0xff] }
  0xff   : > { %1041 = vrot.lane.b32.xlu0 %v956_v18, %s7355_s30  ;;  %v1243_v33 = vsel %vm1216_vm9, %v1240_v14, %v1242_v30  ;;  %v12110_v14 = vrot.slane %v7639_v35, 3 }
 0x100   : > { %v738_v19 = vpop.permute.xlu1 %737 }
 0x101   : > { %v8275_v45 = vsel %vm1343_vm11, %v1318_v49, %v738_v19  ;;  %v736_v41 = vpop.permute.xlu0 %735  ;;  %v1320_v49 = vsel %vm1300_vm10, %v12283_v17, %v8142_v56  ;;  %v958_v56 = vsel %vm947_vm7, %v955_v23, %v957_v60 }
 0x102   : > { %v8278_v21 = vsel %vm1343_vm11, %v1316_v22, %v736_v41  ;;  %1061 = vrot.lane.b32.xlu1 %v976_v63, %s7355_s30 }
 0x103   : > { %1177 = vrot.lane.b32.xlu0 %v7997_v5, %s7354_s29  ;;  %v12284_v5 = vld [vmem:[#allocation34_spill] sm:$0xff] }
 0x104   : > { %v742_v12 = vpop.permute.xlu1 %741 }
 0x105   : > { %v8292_v19 = vsel %vm1343_vm11, %v1322_v32, %v742_v12  ;;  %v740_v22 = vpop.permute.xlu0 %739  ;;  %v1330_v32 = vsel %vm1300_vm10, %v7754_v61, %v8185_v26  ;;  %v977_v61 = vrot.slane %v7769_v16, 2  ;;  %v1332_v26 = vsel %vm1300_vm10, %v7759_v7, %v8180_v47 }
 0x106   : > { %v8295_v41 = vsel %vm1343_vm11, %v1320_v49, %v740_v22  ;;  %1197 = vrot.lane.b32.xlu1 %v12284_v5, %s7354_s29  ;;  %v1338_v7 = vsel %vm1300_vm10, %v7801_v57, %v8210_v31 }
 0x107   : > { %1262 = vrot.lane.b32.xlu0 %v1223_v11, %s7356_s7 }
 0x108   : > { %v8301_v51 = vpop.permute.xlu1 %745 }
 0x109   : > { %v8304_v39 = vpop.permute.xlu0 %743 }
 0x10a   : > { %995 = vrot.lane.b32.xlu1 %v956_v18, %s7353_s24 }
 0x10b   : > { %1282 = vrot.lane.b32.xlu0 %v1243_v33, %s7356_s7  ;;  %v1334_v33 = vsel %vm1300_vm10, %v7769_v16, %v8197_v55  ;;  %v1225_v55 = vsel %vm1216_vm9, %v1222_v52, %v12110_v14  ;;  %v1340_v52 = vsel %vm1300_vm10, %v7816_v25, %v8202_v10  ;;  %v1100_v10 = vrot.slane %v7686_v2, 3 }
 0x10c   : > { %v750_v12 = vpop.permute.xlu1 %749 }
 0x10d   : > { %v8313_v11 = vsel %vm1343_vm11, %v1330_v32, %v750_v12  ;;  %v8315_v49 = vpop.permute.xlu0 %747  ;;  %v12109_v32 = vrot.slane %v7769_v16, 3  ;;  %v978_v12 = vsel %vm947_vm7, %v975_v1, %v977_v61  ;;  %v1342_v1 = vsel %vm1300_vm10, %v7832_v0, %v8222_v34 }
 0x10e   : > { %1043 = vrot.lane.b32.xlu1 %v958_v56, %s7355_s30  ;;  %v959_v0 = vrot.slane %v7673_v58, 2  ;;  %v1099_v34 = vrot.slane %v7689_v3, 2 }
 0x10f   : > { %931 = vrot.lane.b32.xlu0 %v8015_v44, %s7351_s18  ;;  %v12285_v44 = vld [vmem:[#allocation36_spill] sm:$0xff]  ;;  %v1245_v31 = vsel %vm1216_vm9, %v1242_v30, %v12109_v32  ;;  %v12289_v32 = vld [vmem:[#allocation35_spill] sm:$0xff] }
 0x110   : > { %v754_v23 = vpop.permute.xlu1 %753  ;;  %v1101_v3 = vor.u32 %v1100_v10, %v1099_v34 }
 0x111   : > { %v8329_v18 = vsel %vm1343_vm11, %v1334_v33, %v754_v23  ;;  %v752_v22 = vpop.permute.xlu0 %751  ;;  %v12286_v33 = vld [vmem:[#allocation26_spill] sm:$0xff] }
 0x112   : > { %v8332_v5 = vsel %vm1343_vm11, %v1332_v26, %v752_v22  ;;  %1179 = vrot.lane.b32.xlu1 %v12285_v44, %s7354_s29  ;;  %v1336_v23 = vsel %vm1300_vm10, %v12286_v33, %v8190_v20  ;;  %v1102_v14 = vsel %vm1079_vm5, %v12289_v32, %v1101_v3 }
 0x113   : > { %1015 = vrot.lane.b32.xlu0 %v976_v63, %s7353_s24 }
 0x114   : > { %v758_v47 = vpop.permute.xlu1 %757 }
 0x115   : > { %v8349_v26 = vsel %vm1343_vm11, %v1338_v7, %v758_v47  ;;  %v756_v63 = vpop.permute.xlu0 %755 }
 0x116   : > { %v8352_v22 = vsel %vm1343_vm11, %v1336_v23, %v756_v63  ;;  %1264 = vrot.lane.b32.xlu1 %v1225_v55, %s7356_s7  ;;  %v12111_v23 = vrot.slane %v12286_v33, 2  ;;  %v12287_v63 = vld [vmem:[#allocation29_spill] sm:$0xff] }
 0x117   : > { %1063 = vrot.lane.b32.xlu0 %v978_v12, %s7355_s30 }
 0x118   : > { %v762_v20 = vpop.permute.xlu1 %761  ;;  %v980_v2 = vsel %vm947_vm7, %v977_v61, %v12111_v23  ;;  %v7357_v61 = vmov 0  }
 0x119   : > { %v8366_v44 = vsel %vm1343_vm11, %v1342_v1, %v762_v20  ;;  %v760_v7 = vpop.permute.xlu0 %759  ;;  %7221 = vset.pattern.permute.xlu0 %v7357_v61  ;;  %7222 = vset.pattern.permute.xlu1 %v7357_v61  ;;  %v12293_v61 = vld [vmem:[#allocation17_spill] sm:$0xff] }
 0x11a   : > { %v8369_v55 = vsel %vm1343_vm11, %v1340_v52, %v760_v7  ;;  %1284 = vrot.lane.b32.xlu1 %v1245_v31, %s7356_s7  ;;  %v1139_v31 = vrot.slane %v12287_v63, 2  ;;  %v960_v52 = vsel %vm947_vm7, %v957_v60, %v959_v0  ;;  %v1226_v60 = vrot.slane %v7673_v58, 3 }
 0x11b   : > { %1199 = vrot.lane.b32.xlu0 %v8040_v48, %s7354_s29  ;;  %v12288_v48 = vld [vmem:[#allocation27_spill] sm:$0xff] }
 0x11c   : > { %v8374_v30 = vpop.permute.xlu1 %771  ;;  %v1140_v1 = vrot.slane %v12288_v48, 3 }
 0x11d   : > { %v8379_v47 = vpop.permute.xlu0 %769 }
 0x11e   : > { %933 = vrot.lane.b32.xlu1 %v8048_v43, %s7351_s18  ;;  %v8397_v43 = vor.u32 %v1140_v1, %v1139_v31  ;;  %v1246_v1 = vrot.slane %v12286_v33, 3 }
 0x11f   : > { %997 = vrot.lane.b32.xlu0 %v958_v56, %s7353_s24 }
 0x120   : > { %v8387_v20 = vpop.permute.xlu1 %775  ;;  %v1142_v32 = vsel %vm1079_vm5, %v8029_v40, %v8397_v43 }
 0x121   : > { %v8390_v7 = vpop.permute.xlu0 %773 }
 0x122   : > { %1017 = vrot.lane.b32.xlu1 %v978_v12, %s7353_s24 }
 0x123   : > { %1045 = vrot.lane.b32.xlu0 %v960_v52, %s7355_s30 }
 0x124   : > { %v780_v56 = vpop.permute.xlu1 %779 }
 0x125   : > { %v8404_v34 = vsel %vm1386_vm12, %v8262_v36, %v780_v56  ;;  %v778_v12 = vpop.permute.xlu0 %777  ;;  %v12291_v36 = vrot.slane %v7639_v35, 3  ;;  %v876_v56 = vrot.slane %v12288_v48, 2  ;;  %v12112_v35 = vrot.slane %v7675_v59, 2 }
 0x126   : > { %12290 = vst [vmem:[#allocation12_spill] sm:$0xff] %v8404_v34  ;;  %v8408_v10 = vsel %vm1386_vm12, %v8243_v53, %v778_v12  ;;  %1065 = vrot.lane.b32.xlu1 %v980_v2, %s7355_s30  ;;  %v875_v53 = vrot.slane %v12287_v63, 1  ;;  %v12294_v63 = vld [vmem:[#allocation13_spill] sm:$0xff]  ;;  %v12295_v34 = vrot.slane %v7769_v16, 3 }
 0x127   : > { %1181 = vrot.lane.b32.xlu0 %v1102_v14, %s7354_s29  ;;  %v1227_v31 = vsel %vm1216_vm9, %v12291_v36, %v1226_v60  ;;  %v1103_v36 = vrot.slane %v12293_v61, 2  ;;  %v1104_v23 = vrot.slane %v12294_v63, 3  ;;  %v962_v16 = vsel %vm947_vm7, %v959_v0, %v12112_v35 }
 0x128   : > { %v784_v58 = vpop.permute.xlu1 %783 }
 0x129   : > { %v8423_v12 = vsel %vm1386_vm12, %v8278_v21, %v784_v58  ;;  %v782_v14 = vpop.permute.xlu0 %781  ;;  %v1247_v21 = vsel %vm1216_vm9, %v12295_v34, %v1246_v1  ;;  %v877_v58 = vor.u32 %v876_v56, %v875_v53 }
 0x12a   : > { %12292 = vst [vmem:[#allocation34_spill] sm:$0xff] %v8423_v12  ;;  %v8427_v40 = vsel %vm1386_vm12, %v8259_v28, %v782_v14  ;;  %1201 = vrot.lane.b32.xlu1 %v1142_v32, %s7354_s29 }
 0x12b   : > { %1266 = vrot.lane.b32.xlu0 %v1227_v31, %s7356_s7  ;;  %v1105_v31 = vor.u32 %v1104_v23, %v1103_v36  ;;  %v981_v23 = vrot.slane %v7801_v57, 2  ;;  %v12299_v36 = vld [vmem:[#allocation32_spill] sm:$0xff] }
 0x12c   : > { %v788_v48 = vpop.permute.xlu1 %787 }
 0x12d   : > { %v8439_v28 = vsel %vm1386_vm12, %v8295_v41, %v788_v48  ;;  %v786_v14 = vpop.permute.xlu0 %785  ;;  %v878_v41 = vsel %vm811_vm4, %v8043_v54, %v877_v58  ;;  %v1143_v48 = vrot.slane %v12299_v36, 2  ;;  %v12300_v54 = vld [vmem:[#allocation28_spill] sm:$0xff] }
 0x12e   : > { %12296 = vst [vmem:[#allocation36_spill] sm:$0xff] %v8439_v28  ;;  %v8443_v32 = vsel %vm1386_vm12, %v8275_v45, %v786_v14  ;;  %999 = vrot.lane.b32.xlu1 %v960_v52, %s7353_s24  ;;  %v1106_v45 = vsel %vm1079_vm5, %v1101_v3, %v1105_v31  ;;  %v1228_v52 = vrot.slane %v7675_v59, 3  ;;  %v1248_v3 = vrot.slane %v7801_v57, 3 }
 0x12f   : > { %12297 = vst [vmem:[#allocation26_spill] sm:$0xff] %v8443_v32  ;;  %1286 = vrot.lane.b32.xlu0 %v1247_v21, %s7356_s7  ;;  %v1144_v21 = vrot.slane %v12300_v54, 3  ;;  %v839_v28 = vrot.slane %v12293_v61, 1  ;;  %v840_v32 = vrot.slane %v12294_v63, 2  ;;  %v880_v63 = vrot.slane %v12300_v54, 2 }
 0x130   : > { %v8450_v34 = vpop.permute.xlu1 %791  ;;  %v1249_v57 = vsel %vm1216_vm9, %v1246_v1, %v1248_v3  ;;  %v12302_v1 = vld [vmem:[#allocation15_spill] sm:$0xff] }
 0x131   : > { %v790_v53 = vpop.permute.xlu0 %789  ;;  %v8491_v61 = vor.u32 %v840_v32, %v839_v28  ;;  %v1107_v28 = vrot.slane %v12302_v1, 2  ;;  %v12303_v32 = vld [vmem:[#allocation14_spill] sm:$0xff] }
 0x132   : > { %v8456_v56 = vsel %vm1386_vm12, %v8292_v19, %v790_v53  ;;  %1047 = vrot.lane.b32.xlu1 %v962_v16, %s7355_s30  ;;  %v1229_v19 = vsel %vm1216_vm9, %v1226_v60, %v1228_v52  ;;  %v12301_v53 = vrot.slane %v12286_v33, 2 }
 0x133   : > { %12298 = vst [vmem:[#allocation29_spill] sm:$0xff] %v8456_v56  ;;  %935 = vrot.lane.b32.xlu0 %v878_v41, %s7351_s18  ;;  %v1145_v56 = vor.u32 %v1144_v21, %v1143_v48 }
 0x134   : > { %v8462_v0 = vpop.permute.xlu1 %795  ;;  %v982_v35 = vsel %vm947_vm7, %v12301_v53, %v981_v23 }
 0x135   : > { %v8467_v14 = vpop.permute.xlu0 %793  ;;  %v1146_v60 = vsel %vm1079_vm5, %v8397_v43, %v1145_v56  ;;  %v963_v43 = vrot.slane %v12283_v17, 2 }
 0x136   : > { %1183 = vrot.lane.b32.xlu1 %v1106_v45, %s7354_s29 }
 0x137   : > { %1019 = vrot.lane.b32.xlu0 %v980_v2, %s7353_s24 }
 0x138   : > { %v800_v41 = vpop.permute.xlu1 %799 }
 0x139   : > { %v8480_v12 = vsel %vm1386_vm12, %v8332_v5, %v800_v41  ;;  %v798_v45 = vpop.permute.xlu0 %797  ;;  %v879_v5 = vrot.slane %v12299_v36, 1  ;;  %v1108_v36 = vrot.slane %v12303_v32, 3 }
 0x13a   : > { %v8484_v2 = vsel %vm1386_vm12, %v8313_v11, %v798_v45  ;;  %1268 = vrot.lane.b32.xlu1 %v1229_v19, %s7356_s7  ;;  %v12304_v45 = vrot.slane %v7675_v59, 2 }
 0x13b   : > { %1067 = vrot.lane.b32.xlu0 %v982_v35, %s7355_s30  ;;  %v8511_v19 = vor.u32 %v880_v63, %v879_v5  ;;  %v12113_v63 = vrot.slane %v7816_v25, 2 }
 0x13c   : > { %v804_v33 = vpop.permute.xlu1 %803 }
 0x13d   : > { %v8497_v11 = vsel %vm1386_vm12, %v8352_v22, %v804_v33  ;;  %v802_v48 = vpop.permute.xlu0 %801  ;;  %v842_v22 = vsel %vm811_vm4, %v8144_v62, %v8491_v61  ;;  %v964_v62 = vsel %vm947_vm7, %v12304_v45, %v963_v43 }
 0x13e   : > { %v8501_v21 = vsel %vm1386_vm12, %v8329_v18, %v802_v48  ;;  %1288 = vrot.lane.b32.xlu1 %v1249_v57, %s7356_s7  ;;  %v8528_v57 = vor.u32 %v1108_v36, %v1107_v28  ;;  %v12305_v48 = vld [vmem:[#allocation31_spill] sm:$0xff]  ;;  %v12306_v28 = vld [vmem:[#allocation30_spill] sm:$0xff] }
 0x13f   : > { %1203 = vrot.lane.b32.xlu0 %v1146_v60, %s7354_s29  ;;  %v1148_v36 = vrot.slane %v12306_v28, 3 }
 0x140   : > { %v808_v54 = vpop.permute.xlu1 %807  ;;  %v1110_v59 = vsel %vm1079_vm5, %v1105_v31, %v8528_v57  ;;  %v12114_v31 = vrot.slane %v7816_v25, 3 }
 0x141   : > { %v8515_v18 = vsel %vm1386_vm12, %v8369_v55, %v808_v54  ;;  %v806_v41 = vpop.permute.xlu0 %805  ;;  %v882_v55 = vsel %vm811_vm4, %v877_v58, %v8511_v19  ;;  %v1147_v58 = vrot.slane %v12305_v48, 2 }
 0x142   : > { %v8519_v53 = vsel %vm1386_vm12, %v8349_v26, %v806_v41  ;;  %1001 = vrot.lane.b32.xlu1 %v962_v16, %s7353_s24  ;;  %v1230_v16 = vrot.slane %v12283_v17, 3  ;;  %v984_v41 = vsel %vm947_vm7, %v981_v23, %v12113_v63 }
 0x143   : > { %917 = vrot.lane.b32.xlu0 %v842_v22, %s7351_s18  ;;  %v8559_v45 = vor.u32 %v1148_v36, %v1147_v58  ;;  %v12307_v36 = vld [vmem:[#allocation11_spill] sm:$0xff] }
 0x144   : > { %v906_v33 = vpop.permute.xlu1 %905 }
 0x145   : > { %v810_v60 = vpop.permute.xlu0 %809  ;;  %v1150_v23 = vsel %vm1079_vm5, %v1145_v56, %v8559_v45 }
 0x146   : > { %v8534_v26 = vsel %vm1386_vm12, %v8366_v44, %v810_v60  ;;  %1049 = vrot.lane.b32.xlu1 %v964_v62, %s7355_s30  ;;  %v1231_v44 = vsel %vm1216_vm9, %v1228_v52, %v1230_v16  ;;  %v844_v60 = vrot.slane %v12303_v32, 2  ;;  %v884_v32 = vrot.slane %v12306_v28, 2  ;;  %v12308_v28 = vld [vmem:[#allocation21_spill] sm:$0xff] }
 0x147   : > { %937 = vrot.lane.b32.xlu0 %v882_v55, %s7351_s18  ;;  %v843_v55 = vrot.slane %v12302_v1, 1  ;;  %v883_v1 = vrot.slane %v12305_v48, 1  ;;  %v965_v48 = vrot.slane %v7694_v6, 2 }
 0x148   : > { %v8541_v5 = vpop.permute.xlu1 %909 }
 0x149   : > { %v8546_v54 = vpop.permute.xlu0 %907  ;;  %v8572_v58 = vor.u32 %v844_v60, %v843_v55  ;;  %v1111_v55 = vrot.slane %v12308_v28, 2 }
 0x14a   : > { %1185 = vrot.lane.b32.xlu1 %v1110_v59, %s7354_s29 }
 0x14b   : > { %1021 = vrot.lane.b32.xlu0 %v982_v35, %s7353_s24  ;;  %v1251_v35 = vsel %vm1216_vm9, %v1248_v3, %v12114_v31 }
 0x14c   : > { %v8554_v22 = vpop.permute.xlu1 %913 }
 0x14d   : > { %v8563_v59 = vpop.permute.xlu0 %911 }
 0x14e   : > { %1270 = vrot.lane.b32.xlu1 %v1231_v44, %s7356_s7  ;;  %v1302_v44 = vsel %vm1300_vm10, %v12307_v36, %v8098_v29  ;;  %v12309_v29 = vld [vmem:[#allocation16_spill] sm:$0xff] }
 0x14f   : > { %1069 = vrot.lane.b32.xlu0 %v984_v41, %s7355_s30  ;;  %v1345_v3 = vsel %vm1343_vm11, %v1302_v44, %v8219_v42  ;;  %v1112_v60 = vrot.slane %v12309_v29, 3  ;;  %v846_v42 = vsel %vm811_vm4, %v8491_v61, %v8572_v58  ;;  %v848_v17 = vrot.slane %v12309_v29, 2 }
 0x150   : > { %v990_v52 = vpop.permute.xlu1 %989  ;;  %v1388_v56 = vsel %vm1386_vm12, %v1345_v3, %v8379_v47 }
 0x151   : > { %v8579_v63 = vpop.permute.xlu0 %915  ;;  %v1431_v36 = vsel %vm1429_vm13, %v1388_v56, %v906_v33  ;;  %v8605_v33 = vsel %vm947_vm7, %v963_v43, %v965_v48  ;;  %v8607_v61 = vor.u32 %v1112_v60, %v1111_v55  ;;  %v1232_v55 = vrot.slane %v7694_v6, 3 }
 0x152   : > { %1290 = vrot.lane.b32.xlu1 %v1251_v35, %s7356_s7  ;;  %v8594_v35 = vor.u32 %v884_v32, %v883_v1  ;;  %v1474_v44 = vsel %vm1472_vm14, %v1431_v36, %v990_v52  ;;  %v888_v1 = vshrl.u32 %v8085_v8, 16  ;;  %v891_v52 = vshll.u32 %v8085_v8, 16 }
 0x153   : > { %1205 = vrot.lane.b32.xlu0 %v1150_v23, %s7354_s29  ;;  %v1114_v43 = vsel %vm1079_vm5, %v8528_v57, %v8607_v61 }
 0x154   : > { %v1174_v31 = vpop.permute.xlu1 %1173  ;;  %v1152_v60 = vrot.slane %v891_v52, 3 }
 0x155   : > { %v1038_v47 = vpop.permute.xlu0 %1037 }
 0x156   : > { %v1517_v23 = vsel %vm1515_vm15, %v1474_v44, %v1038_v47  ;;  %1003 = vrot.lane.b32.xlu1 %v964_v62, %s7353_s24  ;;  %v886_v62 = vsel %vm811_vm4, %v8511_v19, %v8594_v35  ;;  %v1151_v19 = vrot.slane %v888_v1, 2  ;;  %v1304_v47 = vsel %vm1300_vm10, %v7610_v15, %v8106_v27 }
 0x157   : > { %919 = vrot.lane.b32.xlu0 %v846_v42, %s7351_s18  ;;  %v1560_v3 = vsel %vm1558_vm6, %v1517_v23, %v1174_v31  ;;  %v8625_v31 = vrot.slane %v8085_v8, 2  ;;  %v1347_v57 = vsel %vm1343_vm11, %v1304_v47, %v8234_v37  ;;  %v1233_v23 = vsel %vm1216_vm9, %v1230_v16, %v1232_v55 }
 0x158   : > { %v992_v32 = vpop.permute.xlu1 %991  ;;  %v1390_v15 = vsel %vm1386_vm12, %v1347_v57, %v8374_v30  ;;  %v12311_v30 = vld [vmem:[#allocation18_spill] sm:$0xff] }
 0x159   : > { %v1259_v56 = vpop.permute.xlu0 %1258  ;;  %v1433_v16 = vsel %vm1429_vm13, %v1390_v15, %v8546_v54 }
 0x15a   : > { %v1602_v36 = vsel %vm322_vm0, %v1560_v3, %v1259_v56  ;;  %1051 = vrot.lane.b32.xlu1 %v8605_v33, %s7355_s30  ;;  %v8642_v3 = vor.u32 %v1152_v60, %v1151_v19  ;;  %v12310_v56 = vrot.slane %v7816_v25, 2  ;;  %v1324_v19 = vsel %vm1300_vm10, %v12311_v30, %v8157_v4 }
 0x15b   : > { %939 = vrot.lane.b32.xlu0 %v886_v62, %s7351_s18  ;;  %6773 = vmatmul.mubr.msk.bf16.vlgmr.msra.gmra.mrb[0].mxu0 %vm1664_vm1, %v1602_v36  ;;  %v1252_v62 = vrot.slane %v8085_v8, 3  ;;  %v890_v4 = vrot.slane %v888_v1, 1  ;;  %v1367_v15 = vsel %vm1343_vm11, %v1324_v19, %v8304_v39  ;;  %v12313_v1 = vld [vmem:[#allocation22_spill] sm:$0xff] }
 0x15c   : > { %v1040_v42 = vpop.permute.xlu1 %1039  ;;  %6776 = vmatprep.mubr.msk.bf16.mxu0 %vm7352_vm8, %v12273_v38  ;;  %v8650_v37 = vsel %vm947_vm7, %v12310_v56, %v8625_v31  ;;  %v1154_v29 = vsel %vm1079_vm5, %v8559_v45, %v8642_v3  ;;  %v967_v45 = vrot.slane %v12311_v30, 2 }
 0x15d   : > { %v928_v44 = vpop.permute.xlu0 %927 }
 0x15e   : > { %1187 = vrot.lane.b32.xlu1 %v1114_v43, %s7354_s29  ;;  %v1476_v43 = vsel %vm1472_vm14, %v1433_v16, %v992_v32  ;;  %v1410_v16 = vsel %vm1386_vm12, %v1367_v15, %v8450_v34 }
 0x15f   : > { %1023 = vrot.lane.b32.xlu0 %v984_v41, %s7353_s24  ;;  %v847_v41 = vrot.slane %v12308_v28, 1  ;;  %v1519_v60 = vsel %vm1515_vm15, %v1476_v43, %v1040_v42  ;;  %v12312_v28 = vrot.slane %v7816_v25, 3  ;;  %v893_v42 = vrot.slane %v891_v52, 2 }
 0x160   : > { %v1176_v27 = vpop.permute.xlu1 %1175  ;;  %v1115_v52 = vrot.slane %v12313_v1, 2 }
 0x161   : > { %v1012_v36 = vpop.permute.xlu0 %1011  ;;  %v1253_v54 = vsel %vm1216_vm9, %v12312_v28, %v1252_v62  ;;  %v1562_v32 = vsel %vm1558_vm6, %v1519_v60, %v1176_v27  ;;  %v8673_v57 = vor.u32 %v848_v17, %v847_v41  ;;  %v1453_v27 = vsel %vm1429_vm13, %v1410_v16, %v928_v44  ;;  %v12314_v41 = vld [vmem:[#allocation20_spill] sm:$0xff] }
 0x162   : > { %1272 = vrot.lane.b32.xlu1 %v1233_v23, %s7356_s7  ;;  %v413_v23 = vld [vmem:[%s7582_s10 + $0x158] sm:$0xff]  ;;  %v1116_v39 = vrot.slane %v12314_v41, 3  ;;  %v1496_v34 = vsel %vm1472_vm14, %v1453_v27, %v1012_v36  ;;  %v8697_v44 = vor.u32 %v893_v42, %v890_v4  ;;  %v1306_v16 = vsel %vm1300_vm10, %v12274_v46, %v8096_v50 }
 0x163   : > { %1071 = vrot.lane.b32.xlu0 %v8650_v37, %s7355_s30  ;;  %v8689_v17 = vpack.c.bf16 %v413_v23, %v8081_v9  ;;  %v850_v19 = vsel %vm811_vm4, %v8572_v58, %v8673_v57  ;;  %v8708_v9 = vsel %vm947_vm7, %v965_v48, %v967_v45  ;;  %v1234_v48 = vrot.slane %v12311_v30, 3 }
 0x164   : > { %v1261_v47 = vpop.permute.xlu1 %1260  ;;  %v8712_v36 = vor.u32 %v1116_v39, %v1115_v52  ;;  %v851_v39 = vrot.slane %v12313_v1, 1  ;;  %v1349_v50 = vsel %vm1343_vm11, %v1306_v16, %v8229_v24  ;;  %v12315_v1 = vld [vmem:[#allocation38_spill] sm:$0xff] }
 0x165   : > { %v1604_v56 = vsel %vm322_vm0, %v1562_v32, %v1261_v47  ;;  %v1060_v25 = vpop.permute.xlu0 %1059  ;;  %v1159_v32 = vshll.u32 %v8689_v17, 16  ;;  %v895_v47 = vsel %vm811_vm4, %v8594_v35, %v8697_v44  ;;  %v1033_v35 = vrot.slane %v8689_v17, 2 }
 0x166   : > { %1292 = vrot.lane.b32.xlu1 %v1253_v54, %s7356_s7  ;;  %6777 = vmatmul.mubr.msk.bf16.gmra.mrb[4].mxu0 %vm1664_vm1, %v1604_v56  ;;  %v1539_v60 = vsel %vm1515_vm15, %v1496_v34, %v1060_v25  ;;  %v1118_v42 = vsel %vm1079_vm5, %v8607_v61, %v8712_v36  ;;  %v1235_v27 = vsel %vm1216_vm9, %v1232_v55, %v1234_v48  ;;  %v1254_v61 = vrot.slane %v8689_v17, 3 }
 0x167   : > { %1207 = vrot.lane.b32.xlu0 %v1154_v29, %s7354_s29  ;;  %6780 = vmatprep.mubr.msk.bf16.mxu0 %vm7352_vm8, %v12273_v38  ;;  %v1156_v29 = vshrl.u32 %v8689_v17, 16  ;;  %v1161_v15 = vrot.slane %v1159_v32, 3  ;;  %v852_v34 = vrot.slane %v12314_v41, 2  ;;  %v1034_v6 = vsel %vm947_vm7, %v8625_v31, %v1033_v35 }
 0x168   : > { %v1281_v43 = vpop.permute.xlu1 %1280  ;;  %v897_v55 = vshrl.u32 %v8090_v13, 16 }
 0x169   : > { %v1196_v28 = vpop.permute.xlu0 %1195  ;;  %v1158_v23 = vrot.slane %v1156_v29, 2 }
 0x16a   : > { %v1582_v54 = vsel %vm1558_vm6, %v1539_v60, %v1196_v28  ;;  %1005 = vrot.lane.b32.xlu1 %v8605_v33, %s7353_s24  ;;  %v12316_v60 = vld [vmem:[#allocation19_spill] sm:$0xff] }
 0x16b   : > { %921 = vrot.lane.b32.xlu0 %v850_v19, %s7351_s18  ;;  %v1624_v58 = vsel %vm322_vm0, %v1582_v54, %v1281_v43  ;;  %v8742_v52 = vor.u32 %v1161_v15, %v1158_v23  ;;  %v1392_v43 = vsel %vm1386_vm12, %v1349_v50, %v8390_v7  ;;  %v1326_v41 = vsel %vm1300_vm10, %v12316_v60, %v12315_v1  ;;  %v414_v23 = vld [vmem:[%s7582_s10 + $0x160] sm:$0xff]  ;;  %v415_v15 = vld [vmem:[%s7582_s10 + $0x168] sm:$0x3] }
 0x16c   : > { %6817 = vmatmul.mubr.msk.bf16.vlgmr.msra.gmra.mrb[0].mxu1 %vm1664_vm1, %v1624_v58  ;;  %v930_v33 = vpop.permute.xlu1 %929  ;;  %v1435_v24 = vsel %vm1429_vm13, %v1392_v43, %v8541_v5  ;;  %v1255_v7 = vsel %vm1216_vm9, %v1252_v62, %v1254_v61  ;;  %v8772_v58 = vor.u32 %v852_v34, %v851_v39  ;;  %v1369_v5 = vsel %vm1343_vm11, %v1326_v41, %v8301_v51 }
 0x16d   : > { %v994_v4 = vpop.permute.xlu0 %993  ;;  %6820 = vmatprep.mubr.msk.bf16.mxu1 %vm7352_vm8, %v12273_v38  ;;  %v1163_v54 = vsel %vm1079_vm5, %v8642_v3, %v8742_v52  ;;  %v987_v1 = vrot.slane %v8090_v13, 2 }
 0x16e   : > { %1053 = vrot.lane.b32.xlu1 %v8708_v9, %s7355_s30  ;;  %v1478_v28 = vsel %vm1472_vm14, %v1435_v24, %v994_v4 }
 0x16f   : > { %941 = vrot.lane.b32.xlu0 %v895_v47, %s7351_s18  ;;  %v899_v47 = vrot.slane %v897_v55, 1 }
 0x170   : > { %v1014_v56 = vpop.permute.xlu1 %1013 }
 0x171   : > { %v1042_v25 = vpop.permute.xlu0 %1041 }
 0x172   : > { %1189 = vrot.lane.b32.xlu1 %v1118_v42, %s7354_s29  ;;  %v1521_v29 = vsel %vm1515_vm15, %v1478_v28, %v1042_v25  ;;  %v1412_v42 = vsel %vm1386_vm12, %v1369_v5, %v8467_v14  ;;  %v12317_v25 = vld [vmem:[#allocation25_spill] sm:$0xff]  ;;  %v12318_v14 = vld [vmem:[#allocation23_spill] sm:$0xff] }
 0x173   : > { %1025 = vrot.lane.b32.xlu0 %v8650_v37, %s7353_s24  ;;  %v900_v37 = vshll.u32 %v8090_v13, 16  ;;  %v1455_v3 = vsel %vm1429_vm13, %v1412_v42, %v930_v33  ;;  %v1120_v39 = vrot.slane %v12318_v14, 3  ;;  %v854_v33 = vsel %vm811_vm4, %v8673_v57, %v8772_v58  ;;  %v12320_v5 = vld [vmem:[#allocation37_spill] sm:$0xff] }
 0x174   : > { %v1062_v46 = vpop.permute.xlu1 %1061  ;;  %v1498_v51 = vsel %vm1472_vm14, %v1455_v3, %v1014_v56  ;;  %v8798_v56 = vpack.c.bf16 %v415_v15, %v414_v23  ;;  %v12319_v57 = vrot.slane %v12316_v60, 2  ;;  %v1236_v42 = vrot.slane %v12316_v60, 3 }
 0x175   : > { %v1178_v19 = vpop.permute.xlu0 %1177  ;;  %v902_v4 = vrot.slane %v900_v37, 2  ;;  %v1541_v34 = vsel %vm1515_vm15, %v1498_v51, %v1062_v46 }
 0x176   : > { %1274 = vrot.lane.b32.xlu1 %v1235_v27, %s7356_s7  ;;  %v1564_v8 = vsel %vm1558_vm6, %v1521_v29, %v1178_v19  ;;  %v1119_v27 = vrot.slane %v12317_v25, 2  ;;  %v970_v46 = vsel %vm947_vm7, %v967_v45, %v12319_v57  ;;  %v1165_v28 = vshrl.u32 %v8798_v56, 16  ;;  %v12321_v45 = vld [vmem:[#allocation10_spill] sm:$0xff]  ;;  %v12323_v25 = vld [vmem:[#allocation9_spill] sm:$0xff] }
 0x177   : > { %1073 = vrot.lane.b32.xlu0 %v1034_v6, %s7355_s30  ;;  %v8794_v6 = vor.u32 %v902_v4, %v899_v47  ;;  %v1308_v29 = vsel %vm1300_vm10, %v12321_v45, %v12320_v5  ;;  %v988_v4 = vsel %vm947_vm7, %v8625_v31, %v987_v1  ;;  %v1256_v60 = vrot.slane %v8798_v56, 3  ;;  %v12327_v5 = vld [vmem:[#allocation33_spill] sm:$0xff] }
 0x178   : > { %v1198_v32 = vpop.permute.xlu1 %1197  ;;  %v8811_v19 = vor.u32 %v1120_v39, %v1119_v27  ;;  %v1167_v15 = vrot.slane %v1165_v28, 2  ;;  %v12324_v27 = vld [vmem:[#allocation24_spill] sm:$0xff] }
 0x179   : > { %v1263_v62 = vpop.permute.xlu0 %1262  ;;  %v1584_v55 = vsel %vm1558_vm6, %v1541_v34, %v1198_v32  ;;  %v904_v24 = vsel %vm811_vm4, %v8697_v44, %v8794_v6  ;;  %v12322_v32 = vld [vmem:[#allocation41_spill] sm:$0xff]  ;;  %v1328_v14 = vsel %vm1300_vm10, %v12324_v27, %v12323_v25 }
 0x17a   : > { %v1606_v16 = vsel %vm322_vm0, %v1564_v8, %v1263_v62  ;;  %1294 = vrot.lane.b32.xlu1 %v1255_v7, %s7356_s7  ;;  %v1168_v7 = vshll.u32 %v8798_v56, 16  ;;  %v1351_v47 = vsel %vm1343_vm11, %v1308_v29, %v12322_v32  ;;  %v1122_v44 = vsel %vm1079_vm5, %v8712_v36, %v8811_v19 }
 0x17b   : > { %1209 = vrot.lane.b32.xlu0 %v1163_v54, %s7354_s29  ;;  %6781 = vmatmul.mubr.msk.bf16.gmra.mrb[8].mxu0 %vm1664_vm1, %v1606_v16  ;;  %v1394_v8 = vsel %vm1386_vm12, %v1351_v47, %v8387_v20  ;;  %v1237_v20 = vsel %vm1216_vm9, %v1234_v48, %v1236_v42  ;;  %v1371_v30 = vsel %vm1343_vm11, %v1328_v14, %v8315_v49 }
 0x17c   : > { %v996_v50 = vpop.permute.xlu1 %995  ;;  %6784 = vmatprep.mubr.msk.bf16.mxu0 %vm7352_vm8, %v12273_v38  ;;  %v1170_v3 = vrot.slane %v1168_v7, 3  ;;  %v1437_v16 = vsel %vm1429_vm13, %v1394_v8, %v8563_v59  ;;  %v1414_v56 = vsel %vm1386_vm12, %v1371_v30, %v8462_v0  ;;  %v286_v30 = vld [vmem:[%s12047_s5 + $0x28] sm:$0xff] }
 0x17d   : > { %v1283_v37 = vpop.permute.xlu0 %1282  ;;  %v1480_v36 = vsel %vm1472_vm14, %v1437_v16, %v996_v50  ;;  %v281_v16 = vld [vmem:[%s12047_s5] sm:$0xff] }
 0x17e   : > { %v1626_v43 = vsel %vm322_vm0, %v1584_v55, %v1283_v37  ;;  %1007 = vrot.lane.b32.xlu1 %v8708_v9, %s7353_s24  ;;  %v446_v9 = vpack.c.bf16 %v414_v23, %v414_v23  ;;  %v1171_v50 = vor.u32 %v1170_v3, %v1167_v15 }
 0x17f   : > { %923 = vrot.lane.b32.xlu0 %v854_v33, %s7351_s18  ;;  %6821 = vmatmul.mubr.msk.bf16.gmra.mrb[4].mxu1 %vm1664_vm1, %v1626_v43 }
 0x180   : > { %v1044_v41 = vpop.permute.xlu1 %1043  ;;  %6824 = vmatprep.mubr.msk.bf16.mxu1 %vm7352_vm8, %v12273_v38  ;;  %v8838_v23 = vrot.slane %v446_v9, 2  ;;  %v1172_v0 = vsel %vm1079_vm5, %v8742_v52, %v1171_v50 }
 0x181   : > { %v932_v54 = vpop.permute.xlu0 %931  ;;  %v1523_v31 = vsel %vm1515_vm15, %v1480_v36, %v1044_v41  ;;  %v283_v36 = vld [vmem:[%s12047_s5 + $0x10] sm:$0xff] }
 0x182   : > { %1055 = vrot.lane.b32.xlu1 %v970_v46, %s7355_s30  ;;  %v1036_v34 = vsel %vm947_vm7, %v1033_v35, %v8838_v23  ;;  %v1457_v55 = vsel %vm1429_vm13, %v1414_v56, %v932_v54  ;;  %v1257_v35 = vsel %vm1216_vm9, %v1254_v61, %v1256_v60  ;;  %v12326_v54 = vld [vmem:[#allocation40_spill] sm:$0xff] }
 0x183   : > { %943 = vrot.lane.b32.xlu0 %v904_v24, %s7351_s18  ;;  %v12325_v24 = vld [vmem:[#allocation39_spill] sm:$0xff] }
 0x184   : > { %v1180_v62 = vpop.permute.xlu1 %1179  ;;  %v858_v9 = vsel %vm811_vm4, %v8772_v58, %v12325_v24  ;;  %v1126_v58 = vsel %vm1079_vm5, %v8811_v19, %v12327_v5  ;;  %v287_v56 = vld [vmem:[%s12047_s5 + $0x30] sm:$0xff] }
 0x185   : > { %v1016_v51 = vpop.permute.xlu0 %1015  ;;  %v1566_v59 = vsel %vm1558_vm6, %v1523_v31, %v1180_v62  ;;  %v291_v24 = vld [vmem:[%s12047_s5 + $0x50] sm:$0xff] }
 0x186   : > { %1191 = vrot.lane.b32.xlu1 %v1122_v44, %s7354_s29  ;;  %v1500_v49 = vsel %vm1472_vm14, %v1457_v55, %v1016_v51 }
 0x187   : > { %1027 = vrot.lane.b32.xlu0 %v988_v4, %s7353_s24 }
 0x188   : > { %v1265_v39 = vpop.permute.xlu1 %1264 }
 0x189   : > { %v1608_v48 = vsel %vm322_vm0, %v1566_v59, %v1265_v39  ;;  %v1064_v33 = vpop.permute.xlu0 %1063  ;;  %v285_v39 = vld [vmem:[%s12047_s5 + $0x20] sm:$0xff] }
 0x18a   : > { %1276 = vrot.lane.b32.xlu1 %v1237_v20, %s7356_s7  ;;  %6785 = vmatmul.mubr.msk.bf16.gmra.mrb[12].mxu0 %vm1664_vm1, %v1608_v48  ;;  %v1543_v43 = vsel %vm1515_vm15, %v1500_v49, %v1064_v33  ;;  %v284_v20 = vld [vmem:[%s12047_s5 + $0x18] sm:$0xff] }
 0x18b   : > { %1075 = vrot.lane.b32.xlu0 %v1036_v34, %s7355_s30  ;;  %6788 = vmatprep.mubr.msk.bf16.mxu0 %vm7352_vm8, %v12273_v38  ;;  %v288_v49 = vld [vmem:[%s12047_s5 + $0x38] sm:$0xff] }
 0x18c   : > { %v1285_v37 = vpop.permute.xlu1 %1284 }
 0x18d   : > { %v1200_v57 = vpop.permute.xlu0 %1199 }
 0x18e   : > { %v1586_v41 = vsel %vm1558_vm6, %v1543_v43, %v1200_v57  ;;  %1296 = vrot.lane.b32.xlu1 %v1257_v35, %s7356_s7  ;;  %v289_v57 = vld [vmem:[%s12047_s5 + $0x40] sm:$0xff] }
 0x18f   : > { %1211 = vrot.lane.b32.xlu0 %v1172_v0, %s7354_s29  ;;  %v1628_v17 = vsel %vm322_vm0, %v1586_v41, %v1285_v37 }
 0x190   : > { %6825 = vmatmul.mubr.msk.bf16.gmra.mrb[8].mxu1 %vm1664_vm1, %v1628_v17  ;;  %v934_v61 = vpop.permute.xlu1 %933  ;;  %v290_v17 = vld [vmem:[%s12047_s5 + $0x48] sm:$0xff] }
 0x191   : > { %v998_v28 = vpop.permute.xlu0 %997  ;;  %6828 = vmatprep.mubr.msk.bf16.mxu1 %vm7352_vm8, %v12273_v38 }
 0x192   : > { %1009 = vrot.lane.b32.xlu1 %v970_v46, %s7353_s24  ;;  %v1439_v46 = vsel %vm1429_vm13, %v8408_v10, %v8554_v22  ;;  %v1459_v10 = vsel %vm1429_vm13, %v8484_v2, %v934_v61 }
 0x193   : > { %925 = vrot.lane.b32.xlu0 %v858_v9, %s7351_s18  ;;  %v1482_v32 = vsel %vm1472_vm14, %v1439_v46, %v998_v28  ;;  %v292_v28 = vld [vmem:[%s12047_s5 + $0x58] sm:$0xff] }
 0x194   : > { %v1018_v52 = vpop.permute.xlu1 %1017 }
 0x195   : > { %v1046_v7 = vpop.permute.xlu0 %1045  ;;  %v1502_v13 = vsel %vm1472_vm14, %v1459_v10, %v1018_v52 }
 0x196   : > { %1057 = vrot.lane.b32.xlu1 %v12326_v54, %s7355_s30  ;;  %v1525_v19 = vsel %vm1515_vm15, %v1482_v32, %v1046_v7  ;;  %v293_v54 = vld [vmem:[%s12047_s5 + $0x60] sm:$0xff] }
 0x197   : > { %945 = vrot.lane.b32.xlu0 %v8794_v6, %s7351_s18  ;;  %v12328_v6 = vrot.slane %v12324_v27, 3 }
 0x198   : > { %v1066_v45 = vpop.permute.xlu1 %1065 }
 0x199   : > { %v1182_v29 = vpop.permute.xlu0 %1181  ;;  %v1239_v47 = vsel %vm1216_vm9, %v1236_v42, %v12328_v6 }
 0x19a   : > { %1193 = vrot.lane.b32.xlu1 %v1126_v58, %s7354_s29  ;;  %v1568_v4 = vsel %vm1558_vm6, %v1525_v19, %v1182_v29  ;;  %v294_v58 = vld [vmem:[%s12047_s5 + $0x68] sm:$0xff] }
 0x19b   : > { %1029 = vrot.lane.b32.xlu0 %v987_v1, %s7353_s24  ;;  %v1545_v1 = vsel %vm1515_vm15, %v1502_v13, %v1066_v45  ;;  %v298_v13 = vld [vmem:[%s12047_s5 + $0x88] sm:$0xff] }
 0x19c   : > { %v1202_v44 = vpop.permute.xlu1 %1201 }
 0x19d   : > { %v1267_v8 = vpop.permute.xlu0 %1266  ;;  %v1588_v62 = vsel %vm1558_vm6, %v1545_v1, %v1202_v44 }
 0x19e   : > { %v1610_v22 = vsel %vm322_vm0, %v1568_v4, %v1267_v8  ;;  %1278 = vrot.lane.b32.xlu1 %v1239_v47, %s7356_s7  ;;  %v296_v47 = vld [vmem:[%s12047_s5 + $0x78] sm:$0xff]  ;;  %v297_v8 = vld [vmem:[%s12047_s5 + $0x80] sm:$0xff] }
 0x19f   : > { %1077 = vrot.lane.b32.xlu0 %v8838_v23, %s7355_s30  ;;  %6789 = vmatmul.mubr.msk.bf16.gmra.mrb[16].mxu0 %vm1664_vm1, %v1610_v22  ;;  %v282_v23 = vld [vmem:[%s12047_s5 + $0x8] sm:$0xff] }
 0x1a0   : > { %v1000_v42 = vpop.permute.xlu1 %999  ;;  %6792 = vmatprep.mubr.msk.bf16.mxu0 %vm7352_vm8, %v12273_v38 }
 0x1a1   : > { %v1287_v2 = vpop.permute.xlu0 %1286 }
 0x1a2   : > { %v1630_v15 = vsel %vm322_vm0, %v1588_v62, %v1287_v2  ;;  %1298 = vrot.lane.b32.xlu1 %v1256_v60, %s7356_s7  ;;  %v12329_v60 = vld [vmem:[#allocation12_spill] sm:$0xff] }
 0x1a3   : > { %1213 = vrot.lane.b32.xlu0 %v1171_v50, %s7354_s29  ;;  %6829 = vmatmul.mubr.msk.bf16.gmra.mrb[12].mxu1 %vm1664_vm1, %v1630_v15  ;;  %v1441_v25 = vsel %vm1429_vm13, %v12329_v60, %v8579_v63  ;;  %v299_v2 = vld [vmem:[%s12047_s5 + $0x90] sm:$0xff] }
 0x1a4   : > { %v1048_v3 = vpop.permute.xlu1 %1047  ;;  %6832 = vmatprep.mubr.msk.bf16.mxu1 %vm7352_vm8, %v12273_v38  ;;  %v1484_v14 = vsel %vm1472_vm14, %v1441_v25, %v1000_v42  ;;  %v303_v25 = vld [vmem:[%s12047_s5 + $0xb0] sm:$0xff] }
 0x1a5   : > { %v936_v51 = vpop.permute.xlu0 %935  ;;  %v1527_v59 = vsel %vm1515_vm15, %v1484_v14, %v1048_v3  ;;  %v304_v14 = vld [vmem:[%s12047_s5 + $0xb8] sm:$0xff] }
 0x1a6   : > { %1959 = vperm.xlu1 %7222, %v282_v23   ;;  %v1461_v33 = vsel %vm1429_vm13, %v8480_v12, %v936_v51  ;;  %v300_v23 = vld [vmem:[%s12047_s5 + $0x98] sm:$0xff] }
 0x1a7   : > { %1954 = vperm.xlu0 %7221, %v281_v16   ;;  %v301_v16 = vld [vmem:[%s12047_s5 + $0xa0] sm:$0xff] }
 0x1a8   : > { %v1184_v31 = vpop.permute.xlu1 %1183 }
 0x1a9   : > { %v1020_v27 = vpop.permute.xlu0 %1019  ;;  %v1570_v34 = vsel %vm1558_vm6, %v1527_v59, %v1184_v31 }
 0x1aa   : > { %1964 = vperm.xlu1 %7222, %v283_v36   ;;  %v1504_v55 = vsel %vm1472_vm14, %v1461_v33, %v1020_v27  ;;  %v302_v36 = vld [vmem:[%s12047_s5 + $0xa8] sm:$0xff] }
 0x1ab   : > { %1969 = vperm.xlu0 %7221, %v284_v20   ;;  %v12330_v20 = vld [vmem:[#allocation34_spill] sm:$0xff] }
 0x1ac   : > { %v1269_v50 = vpop.permute.xlu1 %1268 }
 0x1ad   : > { %v1612_v63 = vsel %vm322_vm0, %v1570_v34, %v1269_v50  ;;  %v1068_v48 = vpop.permute.xlu0 %1067  ;;  %v305_v50 = vld [vmem:[%s12047_s5 + $0xc0] sm:$0xff] }
 0x1ae   : > { %6793 = vmatmul.mubr.msk.bf16.gmra.mrb[20].mxu0 %vm1664_vm1, %v1612_v63  ;;  %1974 = vperm.xlu1 %7222, %v285_v39   ;;  %v1547_v37 = vsel %vm1515_vm15, %v1504_v55, %v1068_v48  ;;  %v306_v48 = vld [vmem:[%s12047_s5 + $0xc8] sm:$0xff] }
 0x1af   : > { %1979 = vperm.xlu0 %7221, %v286_v30   ;;  %6796 = vmatprep.mubr.msk.bf16.mxu0 %vm7352_vm8, %v12273_v38 }
 0x1b0   : > { %v1289_v35 = vpop.permute.xlu1 %1288 }
 0x1b1   : > { %v1204_v0 = vpop.permute.xlu0 %1203 }
 0x1b2   : > { %v1590_v12 = vsel %vm1558_vm6, %v1547_v37, %v1204_v0  ;;  %1984 = vperm.xlu1 %7222, %v287_v56   ;;  %v308_v0 = vld [vmem:[%s12047_s5 + $0xd8] sm:$0xff] }
 0x1b3   : > { %1989 = vperm.xlu0 %7221, %v288_v49   ;;  %v1632_v43 = vsel %vm322_vm0, %v1590_v12, %v1289_v35  ;;  %v307_v35 = vld [vmem:[%s12047_s5 + $0xd0] sm:$0xff] }
 0x1b4   : > { %6833 = vmatmul.mubr.msk.bf16.gmra.mrb[16].mxu1 %vm1664_vm1, %v1632_v43  ;;  %v1002_v41 = vpop.permute.xlu1 %1001 }
 0x1b5   : > { %v918_v61 = vpop.permute.xlu0 %917  ;;  %6836 = vmatprep.mubr.msk.bf16.mxu1 %vm7352_vm8, %v12273_v38 }
 0x1b6   : > { %1994 = vperm.xlu1 %7222, %v289_v57   ;;  %v1443_v7 = vsel %vm1429_vm13, %v8427_v40, %v918_v61  ;;  %v295_v40 = vld [vmem:[%s12047_s5 + $0x70] sm:$0xff]  ;;  %v310_v61 = vld [vmem:[%s12047_s5 + $0xe8] sm:$0xff] }
 0x1b7   : > { %1999 = vperm.xlu0 %7221, %v290_v17   ;;  %v1486_v29 = vsel %vm1472_vm14, %v1443_v7, %v1002_v41  ;;  %v309_v41 = vld [vmem:[%s12047_s5 + $0xe0] sm:$0xff] }
 0x1b8   : > { %v1050_v9 = vpop.permute.xlu1 %1049 }
 0x1b9   : > { %v938_v52 = vpop.permute.xlu0 %937  ;;  %v1529_v46 = vsel %vm1515_vm15, %v1486_v29, %v1050_v9  ;;  %v311_v9 = vld [vmem:[%s12047_s5 + $0xf0] sm:$0xff]  ;;  %v314_v29 = vld [vmem:[%s12047_s5 + $0x108] sm:$0xff] }
 0x1ba   : > { %2004 = vperm.xlu1 %7222, %v291_v24   ;;  %v1463_v4 = vsel %vm1429_vm13, %v8501_v21, %v938_v52  ;;  %v312_v52 = vld [vmem:[%s12047_s5 + $0xf8] sm:$0xff] }
 0x1bb   : > { %2009 = vperm.xlu0 %7221, %v292_v28  }
 0x1bc   : > { %v1186_v5 = vpop.permute.xlu1 %1185 }
 0x1bd   : > { %v1022_v45 = vpop.permute.xlu0 %1021  ;;  %v1572_v32 = vsel %vm1558_vm6, %v1529_v46, %v1186_v5 }
 0x1be   : > { %2014 = vperm.xlu1 %7222, %v293_v54   ;;  %v1506_v10 = vsel %vm1472_vm14, %v1463_v4, %v1022_v45  ;;  %v12331_v54 = vld [vmem:[#allocation26_spill] sm:$0xff] }
 0x1bf   : > { %2019 = vperm.xlu0 %7221, %v294_v58   ;;  %v313_v58 = vld [vmem:[%s12047_s5 + $0x100] sm:$0xff] }
 0x1c0   : > { %v1271_v6 = vpop.permute.xlu1 %1270 }
 0x1c1   : > { %v1614_v19 = vsel %vm322_vm0, %v1572_v32, %v1271_v6  ;;  %v1070_v44 = vpop.permute.xlu0 %1069  ;;  %v315_v6 = vld [vmem:[%s12047_s5 + $0x110] sm:$0xff] }
 0x1c2   : > { %6797 = vmatmul.mubr.msk.bf16.gmra.mrb[24].mxu0 %vm1664_vm1, %v1614_v19  ;;  %2024 = vperm.xlu1 %7222, %v295_v40   ;;  %v1549_v1 = vsel %vm1515_vm15, %v1506_v10, %v1070_v44  ;;  %v316_v44 = vld [vmem:[%s12047_s5 + $0x118] sm:$0xff] }
 0x1c3   : > { %2029 = vperm.xlu0 %7221, %v296_v47   ;;  %6800 = vmatprep.mubr.msk.bf16.mxu0 %vm7352_vm8, %v12273_v38 }
 0x1c4   : > { %v1291_v22 = vpop.permute.xlu1 %1290 }
 0x1c5   : > { %v1206_v42 = vpop.permute.xlu0 %1205 }
 0x1c6   : > { %v1592_v21 = vsel %vm1558_vm6, %v1549_v1, %v1206_v42  ;;  %2034 = vperm.xlu1 %7222, %v297_v8   ;;  %v318_v42 = vld [vmem:[%s12047_s5 + $0x128] sm:$0xff] }
 0x1c7   : > { %2039 = vperm.xlu0 %7221, %v298_v13   ;;  %v1634_v62 = vsel %vm322_vm0, %v1592_v21, %v1291_v22  ;;  %v317_v22 = vld [vmem:[%s12047_s5 + $0x120] sm:$0xff] }
 0x1c8   : > { %6837 = vmatmul.mubr.msk.bf16.gmra.mrb[20].mxu1 %vm1664_vm1, %v1634_v62  ;;  %v1004_v15 = vpop.permute.xlu1 %1003 }
 0x1c9   : > { %v920_v3 = vpop.permute.xlu0 %919  ;;  %6840 = vmatprep.mubr.msk.bf16.mxu1 %vm7352_vm8, %v12273_v38 }
 0x1ca   : > { %2044 = vperm.xlu1 %7222, %v299_v2   ;;  %v1445_v60 = vsel %vm1429_vm13, %v12330_v20, %v920_v3  ;;  %v320_v3 = vld [vmem:[%s12047_s5 + $0x138] sm:$0xff] }
 0x1cb   : > { %2049 = vperm.xlu0 %7221, %v300_v23   ;;  %v1488_v39 = vsel %vm1472_vm14, %v1445_v60, %v1004_v15  ;;  %v319_v15 = vld [vmem:[%s12047_s5 + $0x130] sm:$0xff] }
 0x1cc   : > { %v1052_v51 = vpop.permute.xlu1 %1051  ;;  %v12332_v20 = vld [vmem:[#allocation36_spill] sm:$0xff] }
 0x1cd   : > { %v940_v31 = vpop.permute.xlu0 %939  ;;  %v1531_v34 = vsel %vm1515_vm15, %v1488_v39, %v1052_v51  ;;  %v321_v51 = vld [vmem:[%s12047_s5 + $0x140] sm:$0xf] }
 0x1ce   : > { %2054 = vperm.xlu1 %7222, %v301_v16   ;;  %v1465_v55 = vsel %vm1429_vm13, %v8497_v11, %v940_v31 }
 0x1cf   : > { %2059 = vperm.xlu0 %7221, %v302_v36  }
 0x1d0   : > { %v1188_v27 = vpop.permute.xlu1 %1187 }
 0x1d1   : > { %v1024_v59 = vpop.permute.xlu0 %1023  ;;  %v1574_v30 = vsel %vm1558_vm6, %v1531_v34, %v1188_v27 }
 0x1d2   : > { %2064 = vperm.xlu1 %7222, %v303_v25   ;;  %v1508_v49 = vsel %vm1472_vm14, %v1465_v55, %v1024_v59 }
 0x1d3   : > { %2069 = vperm.xlu0 %7221, %v304_v14  }
 0x1d4   : > { %v1273_v63 = vpop.permute.xlu1 %1272 }
 0x1d5   : > { %v1616_v33 = vsel %vm322_vm0, %v1574_v30, %v1273_v63  ;;  %v1072_v56 = vpop.permute.xlu0 %1071 }
 0x1d6   : > { %6801 = vmatmul.mubr.msk.bf16.gmra.mrb[28].mxu0 %vm1664_vm1, %v1616_v33  ;;  %2074 = vperm.xlu1 %7222, %v305_v50   ;;  %v1551_v12 = vsel %vm1515_vm15, %v1508_v49, %v1072_v56 }
 0x1d7   : > { %2079 = vperm.xlu0 %7221, %v306_v48   ;;  %6804 = vmatprep.mubr.msk.bf16.mxu0 %vm7352_vm8, %v12273_v38 }
 0x1d8   : > { %v1293_v37 = vpop.permute.xlu1 %1292 }
 0x1d9   : > { %v1208_v43 = vpop.permute.xlu0 %1207 }
 0x1da   : > { %v1594_v11 = vsel %vm1558_vm6, %v1551_v12, %v1208_v43  ;;  %2084 = vperm.xlu1 %7222, %v307_v35   ;;  %v12333_v43 = vld [vmem:[#allocation29_spill] sm:$0xff] }
 0x1db   : > { %v1636_v57 = vsel %vm322_vm0, %v1594_v11, %v1293_v37  ;;  %2089 = vperm.xlu0 %7221, %v308_v0  }
 0x1dc   : > { %6841 = vmatmul.mubr.msk.bf16.gmra.mrb[24].mxu1 %vm1664_vm1, %v1636_v57  ;;  %v1006_v17 = vpop.permute.xlu1 %1005 }
 0x1dd   : > { %v922_v24 = vpop.permute.xlu0 %921  ;;  %6844 = vmatprep.mubr.msk.bf16.mxu1 %vm7352_vm8, %v12273_v38 }
 0x1de   : > { %2094 = vperm.xlu1 %7222, %v309_v41   ;;  %v1447_v5 = vsel %vm1429_vm13, %v12331_v54, %v922_v24 }
 0x1df   : > { %2099 = vperm.xlu0 %7221, %v310_v61   ;;  %v1490_v40 = vsel %vm1472_vm14, %v1447_v5, %v1006_v17 }
 0x1e0   : > { %v1054_v28 = vpop.permute.xlu1 %1053 }
 0x1e1   : > { %v942_v7 = vpop.permute.xlu0 %941  ;;  %v1533_v32 = vsel %vm1515_vm15, %v1490_v40, %v1054_v28 }
 0x1e2   : > { %2104 = vperm.xlu1 %7222, %v311_v9   ;;  %v1467_v10 = vsel %vm1429_vm13, %v8519_v53, %v942_v7 }
 0x1e3   : > { %2109 = vperm.xlu0 %7221, %v312_v52  }
 0x1e4   : > { %v1190_v45 = vpop.permute.xlu1 %1189 }
 0x1e5   : > { %v1026_v46 = vpop.permute.xlu0 %1025  ;;  %v1576_v47 = vsel %vm1558_vm6, %v1533_v32, %v1190_v45 }
 0x1e6   : > { %2114 = vperm.xlu1 %7222, %v313_v58   ;;  %v1510_v13 = vsel %vm1472_vm14, %v1467_v10, %v1026_v46 }
 0x1e7   : > { %2119 = vperm.xlu0 %7221, %v314_v29  }
 0x1e8   : > { %v1275_v19 = vpop.permute.xlu1 %1274 }
 0x1e9   : > { %v1618_v4 = vsel %vm322_vm0, %v1576_v47, %v1275_v19  ;;  %v1074_v8 = vpop.permute.xlu0 %1073 }
 0x1ea   : > { %6805 = vmatmul.mubr.msk.bf16.gmra.mrb[32].mxu0 %vm1664_vm1, %v1618_v4  ;;  %2124 = vperm.xlu1 %7222, %v315_v6   ;;  %v1553_v21 = vsel %vm1515_vm15, %v1510_v13, %v1074_v8 }
 0x1eb   : > { %6808 = vmatprep.mubr.msk.bf16.mxu0 %vm7352_vm8, %v12273_v38  ;;  %2129 = vperm.xlu0 %7221, %v316_v44  }
 0x1ec   : > { %v1295_v1 = vpop.permute.xlu1 %1294 }
 0x1ed   : > { %v1210_v62 = vpop.permute.xlu0 %1209 }
 0x1ee   : > { %v1596_v53 = vsel %vm1558_vm6, %v1553_v21, %v1210_v62  ;;  %2134 = vperm.xlu1 %7222, %v317_v22  }
 0x1ef   : > { %v1638_v2 = vsel %vm322_vm0, %v1596_v53, %v1295_v1  ;;  %2139 = vperm.xlu0 %7221, %v318_v42  }
 0x1f0   : > { %6845 = vmatmul.mubr.msk.bf16.gmra.mrb[28].mxu1 %vm1664_vm1, %v1638_v2  ;;  %v1008_v23 = vpop.permute.xlu1 %1007 }
 0x1f1   : > { %v924_v16 = vpop.permute.xlu0 %923  ;;  %6848 = vmatprep.mubr.msk.bf16.mxu1 %vm7352_vm8, %v12273_v38 }
 0x1f2   : > { %2144 = vperm.xlu1 %7222, %v319_v15   ;;  %v1449_v60 = vsel %vm1429_vm13, %v12332_v20, %v924_v16 }
 0x1f3   : > { %2149 = vperm.xlu0 %7221, %v320_v3   ;;  %v1492_v14 = vsel %vm1472_vm14, %v1449_v60, %v1008_v23 }
 0x1f4   : > { %v1056_v36 = vpop.permute.xlu1 %1055 }
 0x1f5   : > { %v944_v31 = vpop.permute.xlu0 %943  ;;  %v1535_v59 = vsel %vm1515_vm15, %v1492_v14, %v1056_v36 }
 0x1f6   : > { %2154 = vperm.xlu1 %7222, %v321_v51   ;;  %v1469_v63 = vsel %vm1429_vm13, %v8515_v18, %v944_v31 }
 0x1f8   : > { %v1192_v25 = vpop.permute.xlu1 %1191 }
 0x1f9   : > { %v1028_v27 = vpop.permute.xlu0 %1027  ;;  %v1578_v39 = vsel %vm1558_vm6, %v1535_v59, %v1192_v25 }
 0x1fa   : > { %v1512_v48 = vsel %vm1472_vm14, %v1469_v63, %v1028_v27 }
 0x1fc   : > { %v1277_v34 = vpop.permute.xlu1 %1276 }
 0x1fd   : > { %v1620_v50 = vsel %vm322_vm0, %v1578_v39, %v1277_v34  ;;  %v1076_v30 = vpop.permute.xlu0 %1075 }
 0x1fe   : > { %6809 = vmatmul.mubr.msk.bf16.gmra.mrb[36].mxu0 %vm1664_vm1, %v1620_v50  ;;  %v1555_v56 = vsel %vm1515_vm15, %v1512_v48, %v1076_v30 }
 0x1ff   : > { %6812 = vmatprep.mubr.msk.bf16.mxu0 %vm7352_vm8, %v12273_v38 }
 0x200   : > { %v1297_v33 = vpop.permute.xlu1 %1296 }
 0x201   : > { %v1212_v55 = vpop.permute.xlu0 %1211 }
 0x202   : > { %v1598_v35 = vsel %vm1558_vm6, %v1555_v56, %v1212_v55 }
 0x203   : > { %v1640_v49 = vsel %vm322_vm0, %v1598_v35, %v1297_v33 }
 0x204   : > { %6849 = vmatmul.mubr.msk.bf16.gmra.mrb[32].mxu1 %vm1664_vm1, %v1640_v49  ;;  %v1010_v37 = vpop.permute.xlu1 %1009 }
 0x205   : > { %v926_v0 = vpop.permute.xlu0 %925  ;;  %6852 = vmatprep.mubr.msk.bf16.mxu1 %vm7352_vm8, %v12273_v38 }
 0x206   : > { %v1451_v11 = vsel %vm1429_vm13, %v12333_v43, %v926_v0 }
 0x207   : > { %v1494_v17 = vsel %vm1472_vm14, %v1451_v11, %v1010_v37 }
 0x208   : > { %v1058_v18 = vpop.permute.xlu1 %1057 }
 0x209   : > { %v946_v12 = vpop.permute.xlu0 %945  ;;  %v1537_v61 = vsel %vm1515_vm15, %v1494_v17, %v1058_v18 }
 0x20a   : > { %v1471_v38 = vsel %vm1429_vm13, %v8534_v26, %v946_v12  ;;  %v9162_v26 = vld [vmem:[#allocation3] ss:$0 sm:$0xff] }
 0x20c   : > { %v1194_v57 = vpop.permute.xlu1 %1193 }
 0x20d   : > { %v1030_v41 = vpop.permute.xlu0 %1029  ;;  %v1580_v24 = vsel %vm1558_vm6, %v1537_v61, %v1194_v57 }
 0x20e   : > { %v1514_v7 = vsel %vm1472_vm14, %v1471_v38, %v1030_v41 }
 0x210   : > { %v1279_v9 = vpop.permute.xlu1 %1278 }
 0x211   : > { %v1622_v28 = vsel %vm322_vm0, %v1580_v24, %v1279_v9  ;;  %v1078_v52 = vpop.permute.xlu0 %1077 }
 0x212   : > { %6813 = vmatmul.mubr.msk.bf16.gmra.mrb[40].mxu0 %vm1664_vm1, %v1622_v28  ;;  %v1557_v5 = vsel %vm1515_vm15, %v1514_v7, %v1078_v52 }
 0x214   : > { %v1299_v54 = vpop.permute.xlu1 %1298 }
 0x215   : > { %v1214_v58 = vpop.permute.xlu0 %1213 }
 0x216   : > { %v1600_v45 = vsel %vm1558_vm6, %v1557_v5, %v1214_v58 }
 0x217   : > { %v1642_v29 = vsel %vm322_vm0, %v1600_v45, %v1299_v54 }
 0x218   : > { %6853 = vmatmul.mubr.msk.bf16.gmra.mrb[36].mxu1 %vm1664_vm1, %v1642_v29  ;;  %vm2238_vm1 = vcmask 257024  }
 0x225   : > { %v9154_v46 = vpop.permute.xlu1 %1959 }
 0x226   : > { %12334 = vst [vmem:[#allocation27_spill] sm:$0xff] %v9154_v46  ;;  %v9156_v40 = vpop.permute.xlu0 %1954 }
 0x227   : > { %12335 = vst [vmem:[#allocation35_spill] sm:$0xff] %v9156_v40 }
 0x229   : > { %v9158_v32 = vpop.permute.xlu1 %1964 }
 0x22a   : > { %12336 = vst [vmem:[#allocation17_spill] sm:$0xff] %v9158_v32  ;;  %v9160_v6 = vpop.permute.xlu0 %1969 }
 0x22b   : > { %12337 = vst [vmem:[#allocation13_spill] sm:$0xff] %v9160_v6 }
 0x22d   : > { %v9164_v47 = vpop.permute.xlu1 %1974 }
 0x22e   : > { %12338 = vst [vmem:[#allocation32_spill] sm:$0xff] %v9164_v47  ;;  %v1745_v19 = vpop.f32.mrb[0].mxu0  ;;  %v9166_v44 = vpop.permute.xlu0 %1979 }
 0x22f   : > { %12339 = vst [vmem:[#allocation28_spill] sm:$0xff] %v9166_v44  ;;  %v1746_v4 = vadd.f32 %v9162_v26, %v1745_v19  ;;  %v6774_v8 = vpop.f32.mrb[1].mxu0 }
 0x230   : > { %v1748_v10 = vpop.f32.mrb[2].mxu0 }
 0x231   : > { %v1911_v22 = vmax.f32 %v1746_v4, 0.0  ;;  %v1749_v13 = vadd.f32 %v9162_v26, %v1748_v10  ;;  %v6775_v1 = vpop.f32.mrb[3].mxu0  ;;  %v9170_v42 = vpop.permute.xlu1 %1984 }
 0x232   : > { %12340 = vst [vmem:[#allocation15_spill] sm:$0xff] %v9170_v42  ;;  %v9172_v21 = vpop.permute.xlu0 %1989 }
 0x233   : > { %12341 = vst [vmem:[#allocation14_spill] sm:$0xff] %v9172_v21  ;;  %v2157_v62 = vmul.f32 %v9156_v40, %v1911_v22  ;;  %v1912_v53 = vmax.f32 %v1749_v13, 0.0 }
 0x235   : > { %2198 = vst.msk [vmem:[#allocation2 + $0x13] sm:$0xff] %vm322_vm0, %v2157_v62  ;;  %v2158_v2 = vmul.f32 %v9154_v46, %v1912_v53  ;;  %v9177_v15 = vpop.permute.xlu1 %1994 }
 0x236   : > { %12342 = vst [vmem:[#allocation31_spill] sm:$0xff] %v9177_v15  ;;  %v9179_v23 = vpop.permute.xlu0 %1999 }
 0x237   : > { %12343 = vst [vmem:[#allocation30_spill] sm:$0xff] %v9179_v23  ;;  %2199 = vst.msk [vmem:[#allocation2 + $0x1b] sm:$0xff] %vm322_vm0, %v2158_v2 }
 0x239   : > { %v1753_v3 = vpop.f32.mrb[4].mxu0  ;;  %v9182_v16 = vpop.permute.xlu1 %2004 }
 0x23a   : > { %12344 = vst [vmem:[#allocation11_spill] sm:$0xff] %v9182_v16  ;;  %v1754_v51 = vadd.f32 %v9162_v26, %v1753_v3  ;;  %v9185_v36 = vpop.permute.xlu0 %2009  ;;  %v6778_v31 = vpop.f32.mrb[5].mxu0 }
 0x23b   : > { %12345 = vst [vmem:[#allocation21_spill] sm:$0xff] %v9185_v36  ;;  %v1756_v20 = vpop.f32.mrb[6].mxu0 }
 0x23c   : > { %v1913_v60 = vmax.f32 %v1754_v51, 0.0  ;;  %v1757_v25 = vadd.f32 %v9162_v26, %v1756_v20  ;;  %v6779_v27 = vpop.f32.mrb[7].mxu0 }
 0x23d   : > { %v9188_v14 = vpop.permute.xlu1 %2014 }
 0x23e   : > { %12346 = vst [vmem:[#allocation16_spill] sm:$0xff] %v9188_v14  ;;  %v2159_v59 = vmul.f32 %v9158_v32, %v1913_v60  ;;  %v1914_v39 = vmax.f32 %v1757_v25, 0.0  ;;  %v9191_v34 = vpop.permute.xlu0 %2019 }
 0x23f   : > { %12347 = vst [vmem:[#allocation18_spill] sm:$0xff] %v9191_v34  ;;  %v1833_v50 = vpop.f32.mrb[0].mxu1 }
 0x240   : > { %2200 = vst.msk [vmem:[#allocation2 + $0x23] sm:$0xff] %vm322_vm0, %v2159_v59  ;;  %v2160_v30 = vmul.f32 %v9160_v6, %v1914_v39  ;;  %v6818_v63 = vpop.f32.mrb[1].mxu1  ;;  %v1834_v18 = vadd.f32 %v9162_v26, %v1833_v50 }
 0x241   : > { %v1836_v48 = vpop.f32.mrb[2].mxu1  ;;  %v9195_v33 = vpop.permute.xlu1 %2024 }
 0x242   : > { %12348 = vst [vmem:[#allocation22_spill] sm:$0xff] %v9195_v33  ;;  %2201 = vst.msk [vmem:[#allocation2 + $0x2b] sm:$0xff] %vm322_vm0, %v2160_v30  ;;  %v6819_v56 = vpop.f32.mrb[3].mxu1  ;;  %v9198_v55 = vpop.permute.xlu0 %2029  ;;  %v1837_v12 = vadd.f32 %v9162_v26, %v1836_v48  ;;  %v1933_v61 = vmax.f32 %v1834_v18, 0.0 }
 0x243   : > { %12349 = vst [vmem:[#allocation20_spill] sm:$0xff] %v9198_v55 }
 0x244   : > { %v1934_v9 = vmax.f32 %v1837_v12, 0.0 }
 0x245   : > { %v9200_v35 = vpop.permute.xlu1 %2034 }
 0x246   : > { %12350 = vst [vmem:[#allocation38_spill] sm:$0xff] %v9200_v35  ;;  %v9202_v49 = vpop.permute.xlu0 %2039 }
 0x247   : > { %12351 = vst [vmem:[#allocation19_spill] sm:$0xff] %v9202_v49 }
 0x249   : > { %v9204_v37 = vpop.permute.xlu1 %2044 }
 0x24a   : > { %12352 = vst [vmem:[#allocation25_spill] sm:$0xff] %v9204_v37  ;;  %v9206_v0 = vpop.permute.xlu0 %2049 }
 0x24b   : > { %12353 = vst [vmem:[#allocation23_spill] sm:$0xff] %v9206_v0 }
 0x24d   : > { %v9210_v43 = vpop.permute.xlu1 %2054 }
 0x24e   : > { %12354 = vst [vmem:[#allocation37_spill] sm:$0xff] %v9210_v43  ;;  %v1761_v11 = vpop.f32.mrb[8].mxu0  ;;  %v9212_v57 = vpop.permute.xlu0 %2059 }
 0x24f   : > { %12355 = vst [vmem:[#allocation10_spill] sm:$0xff] %v9212_v57  ;;  %v1762_v41 = vadd.f32 %v9162_v26, %v1761_v11  ;;  %v6782_v17 = vpop.f32.mrb[9].mxu0 }
 0x250   : > { %v1764_v24 = vpop.f32.mrb[10].mxu0 }
 0x251   : > { %v1915_v28 = vmax.f32 %v1762_v41, 0.0  ;;  %v1765_v52 = vadd.f32 %v9162_v26, %v1764_v24  ;;  %v6783_v38 = vpop.f32.mrb[11].mxu0  ;;  %v9216_v7 = vpop.permute.xlu1 %2064 }
 0x252   : > { %12356 = vst [vmem:[#allocation41_spill] sm:$0xff] %v9216_v7  ;;  %v1841_v54 = vpop.f32.mrb[4].mxu1  ;;  %v2179_v5 = vmul.f32 %v9216_v7, %v1933_v61  ;;  %v9219_v58 = vpop.permute.xlu0 %2069 }
 0x253   : > { %12357 = vst [vmem:[#allocation9_spill] sm:$0xff] %v9219_v58  ;;  %v2161_v45 = vmul.f32 %v9164_v47, %v1915_v28  ;;  %v1916_v29 = vmax.f32 %v1765_v52, 0.0  ;;  %v1842_v19 = vadd.f32 %v9162_v26, %v1841_v54  ;;  %v2180_v4 = vmul.f32 %v9219_v58, %v1934_v9  ;;  %v6822_v8 = vpop.f32.mrb[5].mxu1 }
 0x254   : > { %2220 = vst.msk [vmem:[#allocation2 + $0xc3] sm:$0xff] %vm322_vm0, %v2179_v5  ;;  %v1844_v10 = vpop.f32.mrb[6].mxu1 }
 0x255   : > { %2202 = vst.msk [vmem:[#allocation2 + $0x33] sm:$0xff] %vm322_vm0, %v2161_v45  ;;  %v2162_v22 = vmul.f32 %v9166_v44, %v1916_v29  ;;  %v1935_v13 = vmax.f32 %v1842_v19, 0.0  ;;  %2221 = vst.msk [vmem:[#allocation2 + $0xcb] sm:$0xff] %vm322_vm0, %v2180_v4  ;;  %v1845_v1 = vadd.f32 %v9162_v26, %v1844_v10  ;;  %v6823_v62 = vpop.f32.mrb[7].mxu1  ;;  %v9229_v53 = vpop.permute.xlu1 %2074 }
 0x256   : > { %12358 = vst [vmem:[#allocation24_spill] sm:$0xff] %v9229_v53  ;;  %v9231_v2 = vpop.permute.xlu0 %2079 }
 0x257   : > { %12359 = vst [vmem:[#allocation39_spill] sm:$0xff] %v9231_v2  ;;  %2203 = vst.msk [vmem:[#allocation2 + $0x3b] sm:$0xff] %vm322_vm0, %v2162_v22  ;;  %v1936_v3 = vmax.f32 %v1845_v1, 0.0  ;;  %v2181_v51 = vmul.f32 %v9229_v53, %v1935_v13 }
 0x259   : > { %2222 = vst.msk [vmem:[#allocation2 + $0xd3] sm:$0xff] %vm322_vm0, %v2181_v51  ;;  %v2182_v31 = vmul.f32 %v9231_v2, %v1936_v3  ;;  %v9244_v41 = vpop.permute.xlu1 %2084 }
 0x25a   : > { %12360 = vst [vmem:[#allocation40_spill] sm:$0xff] %v9244_v41  ;;  %v9248_v9 = vpop.permute.xlu0 %2089 }
 0x25b   : > { %2223 = vst.msk [vmem:[#allocation2 + $0xdb] sm:$0xff] %vm322_vm0, %v2182_v31  ;;  %12361 = vst [vmem:[#allocation33_spill] sm:$0xff] %v9248_v9 }
 0x25d   : > { %v1769_v20 = vpop.f32.mrb[12].mxu0  ;;  %v9258_v51 = vpop.permute.xlu1 %2094 }
 0x25e   : > { %v1770_v60 = vadd.f32 %v9162_v26, %v1769_v20  ;;  %v6786_v25 = vpop.f32.mrb[13].mxu0  ;;  %12362 = vst [vmem:[#allocation12_spill] sm:$0xff] %v9258_v51 }
 0x25f   : > { %v1772_v27 = vpop.f32.mrb[14].mxu0 }
 0x260   : > { %v1917_v59 = vmax.f32 %v1770_v60, 0.0  ;;  %v1773_v39 = vadd.f32 %v9162_v26, %v1772_v27  ;;  %v6787_v50 = vpop.f32.mrb[15].mxu0  ;;  %v9263_v27 = vpop.permute.xlu0 %2099 }
 0x261   : > { %12363 = vst [vmem:[#allocation34_spill] sm:$0xff] %v9263_v27 }
 0x262   : > { %v2163_v30 = vmul.f32 %v9170_v42, %v1917_v59  ;;  %v1918_v63 = vmax.f32 %v1773_v39, 0.0 }
 0x263   : > { %v1849_v48 = vpop.f32.mrb[8].mxu1 }
 0x264   : > { %2204 = vst.msk [vmem:[#allocation2 + $0x43] sm:$0xff] %vm322_vm0, %v2163_v30  ;;  %v2164_v56 = vmul.f32 %v9172_v21, %v1918_v63  ;;  %v1850_v18 = vadd.f32 %v9162_v26, %v1849_v48  ;;  %v6826_v12 = vpop.f32.mrb[9].mxu1 }
 0x265   : > { %v1852_v11 = vpop.f32.mrb[10].mxu1 }
 0x266   : > { %2205 = vst.msk [vmem:[#allocation2 + $0x4b] sm:$0xff] %vm322_vm0, %v2164_v56  ;;  %v1937_v17 = vmax.f32 %v1850_v18, 0.0  ;;  %v1853_v61 = vadd.f32 %v9162_v26, %v1852_v11  ;;  %v6827_v24 = vpop.f32.mrb[11].mxu1 }
 0x268   : > { %v1938_v28 = vmax.f32 %v1853_v61, 0.0  ;;  %v2183_v52 = vmul.f32 %v9244_v41, %v1937_v17 }
 0x26a   : > { %2224 = vst.msk [vmem:[#allocation2 + $0xe3] sm:$0xff] %vm322_vm0, %v2183_v52  ;;  %v2184_v38 = vmul.f32 %v9248_v9, %v1938_v28 }
 0x26c   : > { %2225 = vst.msk [vmem:[#allocation2 + $0xeb] sm:$0xff] %vm322_vm0, %v2184_v38 }
 0x272   : > { %v1777_v54 = vpop.f32.mrb[16].mxu0 }
 0x273   : > { %v1778_v5 = vadd.f32 %v9162_v26, %v1777_v54  ;;  %v6790_v45 = vpop.f32.mrb[17].mxu0 }
 0x274   : > { %v1780_v29 = vpop.f32.mrb[18].mxu0 }
 0x275   : > { %v1919_v19 = vmax.f32 %v1778_v5, 0.0  ;;  %v1781_v4 = vadd.f32 %v9162_v26, %v1780_v29  ;;  %v6791_v8 = vpop.f32.mrb[19].mxu0  ;;  %v9276_v5 = vpop.permute.xlu1 %2104 }
 0x276   : > { %v1857_v10 = vpop.f32.mrb[12].mxu1  ;;  %12364 = vst [vmem:[#allocation26_spill] sm:$0xff] %v9276_v5 }
 0x277   : > { %v2165_v22 = vmul.f32 %v9177_v15, %v1919_v19  ;;  %v1920_v13 = vmax.f32 %v1781_v4, 0.0  ;;  %v1858_v1 = vadd.f32 %v9162_v26, %v1857_v10  ;;  %v6830_v62 = vpop.f32.mrb[13].mxu1  ;;  %v9280_v4 = vpop.permute.xlu0 %2109 }
 0x278   : > { %v1860_v3 = vpop.f32.mrb[14].mxu1  ;;  %12365 = vst [vmem:[#allocation36_spill] sm:$0xff] %v9280_v4 }
 0x279   : > { %2206 = vst.msk [vmem:[#allocation2 + $0x53] sm:$0xff] %vm322_vm0, %v2165_v22  ;;  %v2166_v31 = vmul.f32 %v9179_v23, %v1920_v13  ;;  %v1939_v20 = vmax.f32 %v1858_v1, 0.0  ;;  %v1861_v60 = vadd.f32 %v9162_v26, %v1860_v3  ;;  %v6831_v25 = vpop.f32.mrb[15].mxu1 }
 0x27b   : > { %2207 = vst.msk [vmem:[#allocation2 + $0x5b] sm:$0xff] %vm322_vm0, %v2166_v31  ;;  %v1940_v59 = vmax.f32 %v1861_v60, 0.0  ;;  %v2185_v39 = vmul.f32 %v9258_v51, %v1939_v20 }
 0x27d   : > { %2226 = vst.msk [vmem:[#allocation2 + $0xf3] sm:$0xff] %vm322_vm0, %v2185_v39  ;;  %v2186_v50 = vmul.f32 %v9263_v27, %v1940_v59 }
 0x27f   : > { %2227 = vst.msk [vmem:[#allocation2 + $0xfb] sm:$0xff] %vm322_vm0, %v2186_v50 }
 0x281   : > { %v1785_v30 = vpop.f32.mrb[20].mxu0 }
 0x282   : > { %v1786_v63 = vadd.f32 %v9162_v26, %v1785_v30  ;;  %v6794_v48 = vpop.f32.mrb[21].mxu0 }
 0x283   : > { %v1788_v56 = vpop.f32.mrb[22].mxu0 }
 0x284   : > { %v1921_v18 = vmax.f32 %v1786_v63, 0.0  ;;  %v1789_v12 = vadd.f32 %v9162_v26, %v1788_v56  ;;  %v6795_v11 = vpop.f32.mrb[23].mxu0 }
 0x285   : > { %v9294_v11 = vpop.permute.xlu1 %2114 }
 0x286   : > { %v2167_v17 = vmul.f32 %v9182_v16, %v1921_v18  ;;  %v1922_v61 = vmax.f32 %v1789_v12, 0.0  ;;  %12366 = vst [vmem:[#allocation29_spill] sm:$0xff] %v9294_v11 }
 0x287   : > { %v1865_v24 = vpop.f32.mrb[16].mxu1 }
 0x288   : > { %2208 = vst.msk [vmem:[#allocation2 + $0x63] sm:$0xff] %vm322_vm0, %v2167_v17  ;;  %v2168_v28 = vmul.f32 %v9185_v36, %v1922_v61  ;;  %v1866_v52 = vadd.f32 %v9162_v26, %v1865_v24  ;;  %v6834_v38 = vpop.f32.mrb[17].mxu1  ;;  %v9297_v24 = vpop.permute.xlu0 %2119 }
 0x289   : > { %v1868_v54 = vpop.f32.mrb[18].mxu1  ;;  %12367 = vst [vmem:[#allocation42_spill] sm:$0xff] %v9297_v24 }
 0x28a   : > { %2209 = vst.msk [vmem:[#allocation2 + $0x6b] sm:$0xff] %vm322_vm0, %v2168_v28  ;;  %v1941_v45 = vmax.f32 %v1866_v52, 0.0  ;;  %v1869_v29 = vadd.f32 %v9162_v26, %v1868_v54  ;;  %v6835_v19 = vpop.f32.mrb[19].mxu1 }
 0x28c   : > { %v1942_v8 = vmax.f32 %v1869_v29, 0.0  ;;  %v2187_v10 = vmul.f32 %v9276_v5, %v1941_v45 }
 0x28e   : > { %2228 = vst.msk [vmem:[#allocation2 + $0x103] sm:$0xff] %vm322_vm0, %v2187_v10  ;;  %v2188_v22 = vmul.f32 %v9280_v4, %v1942_v8 }
 0x290   : > { %2229 = vst.msk [vmem:[#allocation2 + $0x10b] sm:$0xff] %vm322_vm0, %v2188_v22 }
 0x295   : > { %v1793_v13 = vpop.f32.mrb[24].mxu0 }
 0x296   : > { %v1794_v1 = vadd.f32 %v9162_v26, %v1793_v13  ;;  %v6798_v62 = vpop.f32.mrb[25].mxu0 }
 0x297   : > { %v1796_v3 = vpop.f32.mrb[26].mxu0 }
 0x298   : > { %v1923_v31 = vmax.f32 %v1794_v1, 0.0  ;;  %v1797_v20 = vadd.f32 %v9162_v26, %v1796_v3  ;;  %v6799_v60 = vpop.f32.mrb[27].mxu0 }
 0x29a   : > { %v2169_v25 = vmul.f32 %v9188_v14, %v1923_v31  ;;  %v1924_v59 = vmax.f32 %v1797_v20, 0.0 }
 0x29b   : > { %v1873_v39 = vpop.f32.mrb[20].mxu1 }
 0x29c   : > { %2210 = vst.msk [vmem:[#allocation2 + $0x73] sm:$0xff] %vm322_vm0, %v2169_v25  ;;  %v2170_v50 = vmul.f32 %v9191_v34, %v1924_v59  ;;  %v1874_v30 = vadd.f32 %v9162_v26, %v1873_v39  ;;  %v6838_v63 = vpop.f32.mrb[21].mxu1  ;;  %v9310_v59 = vpop.permute.xlu1 %2124 }
 0x29d   : > { %v1876_v48 = vpop.f32.mrb[22].mxu1  ;;  %12368 = vst [vmem:[#allocation43_spill] sm:$0xff] %v9310_v59 }
 0x29e   : > { %2211 = vst.msk [vmem:[#allocation2 + $0x7b] sm:$0xff] %vm322_vm0, %v2170_v50  ;;  %v1943_v56 = vmax.f32 %v1874_v30, 0.0  ;;  %v1877_v18 = vadd.f32 %v9162_v26, %v1876_v48  ;;  %v6839_v12 = vpop.f32.mrb[23].mxu1  ;;  %v9313_v30 = vpop.permute.xlu0 %2129 }
 0x29f   : > { %12369 = vst [vmem:[#allocation44_spill] sm:$0xff] %v9313_v30 }
 0x2a0   : > { %v2189_v17 = vmul.f32 %v9294_v11, %v1943_v56  ;;  %v1944_v61 = vmax.f32 %v1877_v18, 0.0 }
 0x2a2   : > { %2230 = vst.msk [vmem:[#allocation2 + $0x113] sm:$0xff] %vm322_vm0, %v2189_v17  ;;  %v2190_v28 = vmul.f32 %v9297_v24, %v1944_v61 }
 0x2a4   : > { %2231 = vst.msk [vmem:[#allocation2 + $0x11b] sm:$0xff] %vm322_vm0, %v2190_v28 }
 0x2a9   : > { %v1801_v52 = vpop.f32.mrb[28].mxu0 }
 0x2aa   : > { %v1802_v38 = vadd.f32 %v9162_v26, %v1801_v52  ;;  %v6802_v54 = vpop.f32.mrb[29].mxu0 }
 0x2ab   : > { %v1804_v45 = vpop.f32.mrb[30].mxu0 }
 0x2ac   : > { %v1925_v29 = vmax.f32 %v1802_v38, 0.0  ;;  %v1805_v19 = vadd.f32 %v9162_v26, %v1804_v45  ;;  %v6803_v8 = vpop.f32.mrb[31].mxu0 }
 0x2ae   : > { %v2171_v10 = vmul.f32 %v9195_v33, %v1925_v29  ;;  %v1926_v22 = vmax.f32 %v1805_v19, 0.0 }
 0x2af   : > { %v1881_v13 = vpop.f32.mrb[24].mxu1 }
 0x2b0   : > { %2212 = vst.msk [vmem:[#allocation2 + $0x83] sm:$0xff] %vm322_vm0, %v2171_v10  ;;  %v2172_v1 = vmul.f32 %v9198_v55, %v1926_v22  ;;  %v1882_v62 = vadd.f32 %v9162_v26, %v1881_v13  ;;  %v6842_v3 = vpop.f32.mrb[25].mxu1 }
 0x2b1   : > { %v1884_v31 = vpop.f32.mrb[26].mxu1 }
 0x2b2   : > { %2213 = vst.msk [vmem:[#allocation2 + $0x8b] sm:$0xff] %vm322_vm0, %v2172_v1  ;;  %v1945_v20 = vmax.f32 %v1882_v62, 0.0  ;;  %v1885_v60 = vadd.f32 %v9162_v26, %v1884_v31  ;;  %v6843_v25 = vpop.f32.mrb[27].mxu1  ;;  %v9326_v1 = vpop.permute.xlu1 %2134 }
 0x2b3   : > { %12370 = vst [vmem:[#allocation45_spill] sm:$0xff] %v9326_v1  ;;  %v9329_v31 = vpop.permute.xlu0 %2139 }
 0x2b4   : > { %v2191_v39 = vmul.f32 %v9310_v59, %v1945_v20  ;;  %v1946_v50 = vmax.f32 %v1885_v60, 0.0  ;;  %12371 = vst [vmem:[#allocation46_spill] sm:$0xff] %v9329_v31 }
 0x2b6   : > { %2232 = vst.msk [vmem:[#allocation2 + $0x123] sm:$0xff] %vm322_vm0, %v2191_v39  ;;  %v2192_v63 = vmul.f32 %v9313_v30, %v1946_v50 }
 0x2b8   : > { %2233 = vst.msk [vmem:[#allocation2 + $0x12b] sm:$0xff] %vm322_vm0, %v2192_v63 }
 0x2bd   : > { %v1809_v48 = vpop.f32.mrb[32].mxu0 }
 0x2be   : > { %v1810_v56 = vadd.f32 %v9162_v26, %v1809_v48  ;;  %v6806_v18 = vpop.f32.mrb[33].mxu0 }
 0x2bf   : > { %v1812_v12 = vpop.f32.mrb[34].mxu0 }
 0x2c0   : > { %v1927_v17 = vmax.f32 %v1810_v56, 0.0  ;;  %v1813_v61 = vadd.f32 %v9162_v26, %v1812_v12  ;;  %v6807_v28 = vpop.f32.mrb[35].mxu0 }
 0x2c2   : > { %v2173_v52 = vmul.f32 %v9200_v35, %v1927_v17  ;;  %v1928_v38 = vmax.f32 %v1813_v61, 0.0 }
 0x2c3   : > { %v1889_v54 = vpop.f32.mrb[28].mxu1 }
 0x2c4   : > { %2214 = vst.msk [vmem:[#allocation2 + $0x93] sm:$0xff] %vm322_vm0, %v2173_v52  ;;  %v2174_v45 = vmul.f32 %v9202_v49, %v1928_v38  ;;  %v1890_v29 = vadd.f32 %v9162_v26, %v1889_v54  ;;  %v6846_v19 = vpop.f32.mrb[29].mxu1 }
 0x2c5   : > { %v1892_v8 = vpop.f32.mrb[30].mxu1  ;;  %v9342_v19 = vpop.permute.xlu1 %2144 }
 0x2c6   : > { %2215 = vst.msk [vmem:[#allocation2 + $0x9b] sm:$0xff] %vm322_vm0, %v2174_v45  ;;  %v1947_v10 = vmax.f32 %v1890_v29, 0.0  ;;  %v1893_v22 = vadd.f32 %v9162_v26, %v1892_v8  ;;  %v6847_v13 = vpop.f32.mrb[31].mxu1  ;;  %12372 = vst [vmem:[#allocation47_spill] sm:$0xff] %v9342_v19 }
 0x2c8   : > { %v2193_v62 = vmul.f32 %v9326_v1, %v1947_v10  ;;  %v1948_v3 = vmax.f32 %v1893_v22, 0.0  ;;  %v9345_v22 = vpop.permute.xlu0 %2149 }
 0x2c9   : > { %12373 = vst [vmem:[#allocation48_spill] sm:$0xff] %v9345_v22 }
 0x2ca   : > { %2234 = vst.msk [vmem:[#allocation2 + $0x133] sm:$0xff] %vm322_vm0, %v2193_v62  ;;  %v2194_v20 = vmul.f32 %v9329_v31, %v1948_v3 }
 0x2cc   : > { %2235 = vst.msk [vmem:[#allocation2 + $0x13b] sm:$0xff] %vm322_vm0, %v2194_v20 }
 0x2d1   : > { %v1817_v60 = vpop.f32.mrb[36].mxu0 }
 0x2d2   : > { %v1818_v25 = vadd.f32 %v9162_v26, %v1817_v60  ;;  %v6810_v39 = vpop.f32.mrb[37].mxu0 }
 0x2d3   : > { %v1820_v50 = vpop.f32.mrb[38].mxu0 }
 0x2d4   : > { %v1929_v63 = vmax.f32 %v1818_v25, 0.0  ;;  %v1821_v48 = vadd.f32 %v9162_v26, %v1820_v50  ;;  %v6811_v56 = vpop.f32.mrb[39].mxu0 }
 0x2d6   : > { %v2175_v18 = vmul.f32 %v9204_v37, %v1929_v63  ;;  %v1930_v12 = vmax.f32 %v1821_v48, 0.0 }
 0x2d7   : > { %v1897_v17 = vpop.f32.mrb[32].mxu1 }
 0x2d8   : > { %2216 = vst.msk [vmem:[#allocation2 + $0xa3] sm:$0xff] %vm322_vm0, %v2175_v18  ;;  %v2176_v61 = vmul.f32 %v9206_v0, %v1930_v12  ;;  %v1898_v28 = vadd.f32 %v9162_v26, %v1897_v17  ;;  %v6850_v52 = vpop.f32.mrb[33].mxu1 }
 0x2d9   : > { %v1900_v38 = vpop.f32.mrb[34].mxu1 }
 0x2da   : > { %2217 = vst.msk [vmem:[#allocation2 + $0xab] sm:$0xff] %vm322_vm0, %v2176_v61  ;;  %v1949_v54 = vmax.f32 %v1898_v28, 0.0  ;;  %v1901_v45 = vadd.f32 %v9162_v26, %v1900_v38  ;;  %v6851_v29 = vpop.f32.mrb[35].mxu1  ;;  %v9357_v38 = vpop.permute.xlu1 %2154 }
 0x2db   : > { %12374 = vst [vmem:[#allocation49_spill] sm:$0xff] %v9357_v38 }
 0x2dc   : > { %v2195_v8 = vmul.f32 %v9342_v19, %v1949_v54  ;;  %v1950_v10 = vmax.f32 %v1901_v45, 0.0 }
 0x2de   : > { %2236 = vst.msk [vmem:[#allocation2 + $0x143] sm:$0xff] %vm322_vm0, %v2195_v8  ;;  %v2196_v13 = vmul.f32 %v9345_v22, %v1950_v10 }
 0x2e0   : > { %2237 = vst.msk [vmem:[#allocation2 + $0x14b] sm:$0xff] %vm322_vm0, %v2196_v13 }
 0x2e5   : > { %v1825_v62 = vpop.f32.mrb[40].mxu0 }
 0x2e6   : > { %v1826_v3 = vadd.f32 %v9162_v26, %v1825_v62  ;;  %v6814_v20 = vpop.f32.mrb[41].mxu0 }
 0x2e7   : > { %v1828_v60 = vpop.f32.mrb[42].mxu0 }
 0x2e8   : > { %v1931_v25 = vmax.f32 %v1826_v3, 0.0  ;;  %v1829_v39 = vadd.f32 %v9162_v26, %v1828_v60  ;;  %v6815_v50 = vpop.f32.mrb[43].mxu0 }
 0x2ea   : > { %v2177_v63 = vmul.f32 %v9210_v43, %v1931_v25  ;;  %v1932_v48 = vmax.f32 %v1829_v39, 0.0 }
 0x2eb   : > { %v1905_v56 = vpop.f32.mrb[36].mxu1 }
 0x2ec   : > { %2218 = vst.msk [vmem:[#allocation2 + $0xb3] sm:$0xff] %vm322_vm0, %v2177_v63  ;;  %v2178_v18 = vmul.f32 %v9212_v57, %v1932_v48  ;;  %v1906_v12 = vadd.f32 %v9162_v26, %v1905_v56  ;;  %v6854_v17 = vpop.f32.mrb[37].mxu1 }
 0x2ed   : > { %v1908_v61 = vpop.f32.mrb[38].mxu1 }
 0x2ee   : > { %2219 = vst.msk [vmem:[#allocation2 + $0xbb] sm:$0xff] %vm322_vm0, %v2178_v18  ;;  %v1951_v28 = vmax.f32 %v1906_v12, 0.0  ;;  %v6855_v52 = vpop.f32.mrb[39].mxu1 }
 0x2f0   : > { %v2197_v54 = vmul.f32 %v9357_v38, %v1951_v28 }
 0x2f2   : > { %2239 = vst.msk [vmem:[#allocation2 + $0x153] sm:$0xf] %vm2238_vm1, %v2197_v54 }
 0x2f3 LB: >> { %v2292_v26 = vld [vmem:[#allocation2 + $0x20] sm:$0xff]  ;;  %v2293_v45 = vld [vmem:[#allocation2 + $0x28] sm:$0xff]  ;;  %v2294_v29 = vld [vmem:[#allocation2 + $0x30] sm:$0xff]  ;;  %v12117_v3 = vmov 0   ;;  %s6654_s26 = smul.u32 288, %s7341_s23  ;;  %s7359_s24 = smov 64   ;;  %s7341_s23 = sphi %s9361_s23, %s2245_s23  }
 0x2f4   : >> { %v2295_v8 = vld [vmem:[#allocation2 + $0x38] sm:$0xff]  ;;  %v9366_v10 = vpack.c.bf16 %v2293_v45, %v2292_v26  ;;  %v2290_v13 = vld [vmem:[#allocation2 + $0x10] sm:$0xff]  ;;  %3657 = vmatprep.subr.bf16.mxu0 %v12117_v3  ;;  %5548 = vmatprep.subr.bf16.mxu1 %v12117_v3  ;;  %v2288_v25 = vld [vmem:[#allocation2] sm:$0xff]  ;;  %s7360_s29 = smov 32   ;;  %s7361_s25 = smov 96   ;;  %vm3205_vm8 = vcmask 523264  }
 0x2f5   : >> { %v2291_v62 = vld [vmem:[#allocation2 + $0x18] sm:$0xff]  ;;  %v9370_v20 = vpack.c.bf16 %v2295_v8, %v2294_v29  ;;  %v2289_v39 = vld [vmem:[#allocation2 + $0x8] sm:$0xff]  ;;  %v2296_v8 = vld [vmem:[#allocation2 + $0x40] sm:$0xff]  ;;  %s9413_s8 = scalar_lea.vmem %s12045_s3, %s6654_s26  ;;  %vm3248_vm10 = vcmask 785408   ;;  %vm7363_vm11 = vmmov 0   ;;  %s6488_s27 = sshll.u32 %s7341_s23, 1 }
 0x2f6   : >> { %v9372_v60 = vpack.c.bf16 %v2291_v62, %v2290_v13  ;;  %v2856_v50 = vrot.slane %v9366_v10, 2  ;;  %v9375_v63 = vpack.c.bf16 %v2289_v39, %v2288_v25  ;;  %v9378_v48 = vshll.u32 %v9366_v10, 16  ;;  %v2297_v13 = vld [vmem:[#allocation2 + $0x48] sm:$0xff]  ;;  %v7226_v19 = vld [vmem:[%s9413_s8] sm:$0xff]   ;;  %s10302_s28 = scalar_lea.vmem [#allocation5], %s6488_s27  ;;  %s2245_s23 = sadd.s32 1, %s7341_s23  }
 0x2f7   : >> { %v12116_v56 = vrot.slane %v9370_v20, 2  ;;  %v9388_v54 = vshrl.u32 %v9366_v10, 16  ;;  %v2634_v29 = vrot.slane %v9366_v10, 1  ;;  %v9401_v39 = vshll.u32 %v9370_v20, 16  ;;  %3658 = vmatpush1.bf16.msra.mxu0 %v7226_v19  ;;  %v7230_v24 = vld [vmem:[%s9413_s8 + $0x20] sm:$0xff]   ;;  %p2242_p5 = scmp.ge.s32.totalorder %s2245_s23, 6  }
 0x2f8   : >> { %v2855_v18 = vrot.slane %v9372_v60, 2  ;;  %v2632_v12 = vrot.slane %v9372_v60, 1  ;;  %v12121_v17 = vshll.u32 %v9372_v60, 16  ;;  %v2631_v61 = vrot.slane %v9375_v63, 1  ;;  %v7234_v51 = vld [vmem:[%s9413_s8 + $0x40] sm:$0xff]  }
 0x2f9   : >> { %v2402_v28 = vshrl.u32 %v9375_v63, 16  ;;  %v2404_v52 = vshll.u32 %v9375_v63, 16  ;;  %v2859_v26 = vsel %vm947_vm7, %v2856_v50, %v12116_v56  ;;  %v2986_v56 = vrot.slane %v9388_v54, 2 }
 0x2fa   : >> { %v2857_v45 = vsel %vm947_vm7, %v2855_v18, %v2856_v50  ;;  %2944 = vrot.lane.b32.xlu1 %v2859_v26, %s7359_s24  ;;  %v2411_v25 = vrot.slane %v12121_v17, 1  ;;  %v9404_v50 = vshrl.u32 %v9370_v20, 16  ;;  %v2633_v18 = vsel %vm679_vm3, %v2631_v61, %v2632_v12 }
 0x2fb   : >> { %2896 = vrot.lane.b32.xlu0 %v2857_v45, %s7360_s29  ;;  %v2406_v62 = vrot.slane %v2404_v52, 1  ;;  %v2987_v3 = vrot.slane %v9378_v48, 3  ;;  %v2990_v17 = vrot.slane %v9401_v39, 3  ;;  %v9417_v22 = vpack.c.bf16 %v2297_v13, %v2296_v8  ;;  %v7227_v8 = vld [vmem:[%s9413_s8 + $0x8] sm:$0xff]  }
 0x2fc   : >> { %v2989_v45 = vrot.slane %v9404_v50, 2  ;;  %v2635_v1 = vsel %vm679_vm3, %v2632_v12, %v2634_v29  ;;  %v2419_v30 = vrot.slane %v9378_v48, 1  ;;  %v7228_v12 = vld [vmem:[%s9413_s8 + $0x10] sm:$0xff]  }
 0x2fd   : >> { %v2407_v52 = vor.u32 %v2406_v62, %v2402_v28  ;;  %12375 = vst [vmem:[#allocation50_spill] sm:$0xff] %v9417_v22  ;;  %v2988_v61 = vor.u32 %v2987_v3, %v2986_v56  ;;  %v12376_v28 = vshrl.u32 %v9372_v60, 16  ;;  %v9430_v56 = vshll.u32 %v9417_v22, 16 }
 0x2fe   : >> { %2672 = vrot.lane.b32.xlu1 %v2633_v18, %s7359_s24  ;;  %v2991_v31 = vor.u32 %v2990_v17, %v2989_v45  ;;  %v9433_v13 = vshrl.u32 %v9417_v22, 16  ;;  %v12377_v17 = vmov 0   ;;  %v2860_v19 = vrot.slane %v9417_v22, 2  ;;  %v2299_v45 = vld [vmem:[#allocation2 + $0x58] sm:$0xff] }
 0x2ff   : >> { %v2412_v38 = vsel %vm448_vm2, %v2407_v52, %v2411_v25  ;;  %v2415_v62 = vor.u32 %v12376_v28, %v2411_v25  ;;  %3659 = vmatprep.subr.bf16.mxu0 %v12377_v17  ;;  %v2994_v18 = vrot.slane %v9430_v56, 3  ;;  %v2298_v52 = vld [vmem:[#allocation2 + $0x50] sm:$0xff]  ;;  %v7229_v28 = vld [vmem:[%s9413_s8 + $0x18] sm:$0xff]  }
 0x300   : >> { %2568 = vrot.lane.b32.xlu0 %v2412_v38, %s7360_s29  ;;  %v2992_v3 = vsel %vm1079_vm5, %v2988_v61, %v2991_v31  ;;  %3660 = vmatpush1.bf16.msra.mxu0 %v7227_v8  ;;  %v2993_v25 = vrot.slane %v9433_v13, 2  ;;  %v2636_v61 = vrot.slane %v9370_v20, 1  ;;  %v9451_v59 = vpack.c.bf16 %v2299_v45, %v2298_v52  ;;  %v2300_v45 = vld [vmem:[#allocation2 + $0x60] sm:$0xff] }
 0x301   : >> { %v2420_v38 = vsel %vm448_vm2, %v2415_v62, %v2419_v30  ;;  %3661 = vmatprep.subr.bf16.mxu0 %v12377_v17  ;;  %v12378_v62 = vrot.slane %v9370_v20, 2 }
 0x302   : >> { %2720 = vrot.lane.b32.xlu1 %v2635_v1, %s7361_s25  ;;  %12379 = vst [vmem:[#allocation51_spill] sm:$0xff] %v9451_v59 }
 0x303   : >> { %v2861_v8 = vsel %vm947_vm7, %v12378_v62, %v2860_v19 }
 0x304   : >> { %3079 = vrot.lane.b32.xlu0 %v2992_v3, %s7361_s25  ;;  %3662 = vmatpush1.bf16.msra.mxu0 %v7228_v12  ;;  %v2995_v3 = vor.u32 %v2994_v18, %v2993_v25  ;;  %v2427_v12 = vrot.slane %v9401_v39, 1  ;;  %v9462_v25 = vshll.u32 %v9451_v59, 16  ;;  %v9465_v18 = vshrl.u32 %v9451_v59, 16 }
 0x305   : >> { %3663 = vmatprep.subr.bf16.mxu0 %v12377_v17 }
 0x306   : >> { %2570 = vrot.lane.b32.xlu1 %v2420_v38, %s7360_s29  ;;  %v2423_v38 = vor.u32 %v9388_v54, %v2419_v30  ;;  %v2996_v62 = vsel %vm1079_vm5, %v2991_v31, %v2995_v3  ;;  %v2997_v31 = vrot.slane %v9465_v18, 2  ;;  %v2998_v52 = vrot.slane %v9462_v25, 3 }
 0x307   : >> { %v2431_v5 = vor.u32 %v9404_v50, %v2427_v12 }
 0x308   : >> { %2898 = vrot.lane.b32.xlu0 %v2859_v26, %s7360_s29  ;;  %v2637_v26 = vsel %vm679_vm3, %v2634_v29, %v2636_v61  ;;  %3664 = vmatpush1.bf16.msra.mxu0 %v7229_v28  ;;  %v2428_v30 = vsel %vm448_vm2, %v2423_v38, %v2427_v12  ;;  %v2862_v29 = vrot.slane %v9451_v59, 2  ;;  %v2301_v28 = vld [vmem:[#allocation2 + $0x68] sm:$0xff]  ;;  %v2999_v4 = vor.u32 %v2998_v52, %v2997_v31  ;;  %v2303_v52 = vld [vmem:[#allocation2 + $0x78] sm:$0xff] }
 0x309   : >> { %3665 = vmatprep.subr.bf16.mxu0 %v12377_v17  ;;  %v9479_v38 = vpack.c.bf16 %v2301_v28, %v2300_v45  ;;  %v2766_v12 = vrot.slane %v9378_v48, 2 }
 0x30a   : >> { %2674 = vrot.lane.b32.xlu1 %v2635_v1, %s7359_s24  ;;  %v7231_v1 = vld [vmem:[%s9413_s8 + $0x28] sm:$0xff]   ;;  %v2863_v11 = vsel %vm947_vm7, %v2860_v19, %v2862_v29  ;;  %v3000_v19 = vsel %vm1079_vm5, %v2995_v3, %v2999_v4 }
 0x30b   : >> { %12380 = vst [vmem:[#allocation52_spill] sm:$0xff] %v9479_v38  ;;  %v9490_v45 = vshll.u32 %v9479_v38, 16  ;;  %v9495_v31 = vshrl.u32 %v9479_v38, 16  ;;  %v2864_v28 = vrot.slane %v9479_v38, 2 }
 0x30c   : >> { %2946 = vrot.lane.b32.xlu0 %v2861_v8, %s7359_s24  ;;  %3666 = vmatpush1.bf16.msra.mxu0 %v7230_v24  ;;  %v7232_v24 = vld [vmem:[%s9413_s8 + $0x30] sm:$0xff]  }
 0x30d   : >> { %3667 = vmatprep.subr.bf16.mxu0 %v12377_v17  ;;  %v3001_v48 = vrot.slane %v9495_v31, 2  ;;  %v3002_v2 = vrot.slane %v9490_v45, 3 }
 0x30e   : >> { %2722 = vrot.lane.b32.xlu1 %v2637_v26, %s7361_s25 }
 0x310   : >> { %3081 = vrot.lane.b32.xlu0 %v2996_v62, %s7361_s25  ;;  %v2638_v62 = vrot.slane %v9417_v22, 1  ;;  %3668 = vmatpush1.bf16.msra.mxu0 %v7231_v1  ;;  %v7233_v1 = vld [vmem:[%s9413_s8 + $0x38] sm:$0xff]  }
 0x311   : >> { %3669 = vmatprep.subr.bf16.mxu0 %v12377_v17 }
 0x312   : >> { %2572 = vrot.lane.b32.xlu1 %v2428_v30, %s7360_s29  ;;  %v2639_v30 = vsel %vm679_vm3, %v2636_v61, %v2638_v62  ;;  %v2302_v61 = vld [vmem:[#allocation2 + $0x70] sm:$0xff] }
 0x314   : >> { %2900 = vrot.lane.b32.xlu0 %v2861_v8, %s7360_s29  ;;  %v2435_v8 = vrot.slane %v9430_v56, 1  ;;  %3670 = vmatpush1.bf16.msra.mxu0 %v7232_v24  ;;  %v12381_v24 = vshrl.u32 %v9372_v60, 16 }
 0x315   : >> { %3671 = vmatprep.subr.bf16.mxu0 %v12377_v17 }
 0x316   : >> { %2676 = vrot.lane.b32.xlu1 %v2637_v26, %s7359_s24  ;;  %v2765_v26 = vrot.slane %v9388_v54, 1  ;;  %v2762_v27 = vrot.slane %v12381_v24, 1  ;;  %v2436_v3 = vsel %vm448_vm2, %v2431_v5, %v2435_v8  ;;  %v12382_v54 = vshll.u32 %v9372_v60, 16 }
 0x317   : >> { %v9514_v24 = vpack.c.bf16 %v2303_v52, %v2302_v61  ;;  %v2769_v5 = vrot.slane %v9404_v50, 1  ;;  %v2443_v50 = vrot.slane %v9462_v25, 1  ;;  %v2774_v52 = vrot.slane %v9430_v56, 2 }
 0x318   : >> { %2948 = vrot.lane.b32.xlu0 %v2863_v11, %s7359_s24  ;;  %3672 = vmatpush1.bf16.msra.mxu0 %v7233_v1  ;;  %v2767_v9 = vor.u32 %v2766_v12, %v2765_v26  ;;  %v2763_v41 = vrot.slane %v12382_v54, 2  ;;  %v7235_v1 = vld [vmem:[%s9413_s8 + $0x48] sm:$0xff]   ;;  %v2770_v12 = vrot.slane %v9401_v39, 2  ;;  %v7236_v39 = vld [vmem:[%s9413_s8 + $0x50] sm:$0xff]  }
 0x319   : >> { %3673 = vmatprep.subr.bf16.mxu0 %v12377_v17  ;;  %v9540_v61 = vshll.u32 %v9514_v24, 16  ;;  %v12383_v58 = vrot.slane %v9514_v24, 2 }
 0x31a   : >> { %2724 = vrot.lane.b32.xlu1 %v2639_v30, %s7361_s25  ;;  %v2764_v53 = vor.u32 %v2763_v41, %v2762_v27  ;;  %v2865_v41 = vsel %vm947_vm7, %v2862_v29, %v2864_v28  ;;  %v3003_v27 = vor.u32 %v3002_v2, %v3001_v48  ;;  %v2773_v29 = vrot.slane %v9433_v13, 1 }
 0x31b   : >> { %v3006_v48 = vrot.slane %v9540_v61, 3 }
 0x31c   : >> { %3083 = vrot.lane.b32.xlu0 %v3000_v19, %s7361_s25  ;;  %v2640_v19 = vrot.slane %v9451_v59, 1  ;;  %3674 = vmatpush1.bf16.msra.mxu0 %v7234_v51  ;;  %v9520_v26 = vsel %vm811_vm4, %v2764_v53, %v2767_v9  ;;  %v2439_v51 = vor.u32 %v9433_v13, %v2435_v8  ;;  %v2304_v8 = vld [vmem:[#allocation2 + $0x80] sm:$0xff]  ;;  %v2775_v54 = vor.u32 %v2774_v52, %v2773_v29  ;;  %v7237_v13 = vld [vmem:[%s9413_s8 + $0x58] sm:$0xff]  }
 0x31d   : >> { %3675 = vmatprep.subr.bf16.mxu0 %v12377_v17 }
 0x31e   : >> { %2574 = vrot.lane.b32.xlu1 %v2436_v3, %s7360_s29  ;;  %v2771_v3 = vor.u32 %v2770_v12, %v2769_v5  ;;  %v2641_v53 = vsel %vm679_vm3, %v2638_v62, %v2640_v19  ;;  %v12154_v62 = vrot.slane %v9514_v24, 2  ;;  %v2305_v5 = vld [vmem:[#allocation2 + $0x88] sm:$0xff]  ;;  %v2778_v12 = vrot.slane %v9462_v25, 2 }
 0x31f   : >> { %v9560_v29 = vpack.c.bf16 %v2305_v5, %v2304_v8  ;;  %v2447_v8 = vor.u32 %v9465_v18, %v2443_v50 }
 0x320   : >> { %2902 = vrot.lane.b32.xlu0 %v2863_v11, %s7360_s29  ;;  %v9528_v11 = vshrl.u32 %v9514_v24, 16  ;;  %3676 = vmatpush1.bf16.msra.mxu0 %v7235_v1  ;;  %v9535_v2 = vsel %vm811_vm4, %v2767_v9, %v2771_v3  ;;  %v2444_v9 = vsel %vm448_vm2, %v2439_v51, %v2443_v50  ;;  %v9553_v56 = vsel %vm811_vm4, %v2771_v3, %v2775_v54 }
 0x321   : >> { %3677 = vmatprep.subr.bf16.mxu0 %v12377_v17  ;;  %v2777_v1 = vrot.slane %v9465_v18, 1  ;;  %v2867_v3 = vsel %vm947_vm7, %v2864_v28, %v12154_v62  ;;  %v2451_v28 = vrot.slane %v9490_v45, 1 }
 0x322   : >> { %2678 = vrot.lane.b32.xlu1 %v2639_v30, %s7359_s24  ;;  %v3004_v30 = vsel %vm1079_vm5, %v2999_v4, %v3003_v27  ;;  %v3005_v4 = vrot.slane %v9528_v11, 2 }
 0x323   : >> { %v2779_v51 = vor.u32 %v2778_v12, %v2777_v1  ;;  %v9581_v1 = vshll.u32 %v9560_v29, 16  ;;  %v2868_v12 = vrot.slane %v9560_v29, 2 }
 0x324   : >> { %2950 = vrot.lane.b32.xlu0 %v2865_v41, %s7359_s24  ;;  %3678 = vmatpush1.bf16.msra.mxu0 %v7236_v39  ;;  %v2642_v39 = vrot.slane %v9479_v38, 1  ;;  %v3007_v52 = vor.u32 %v3006_v48, %v3005_v4  ;;  %v7239_v4 = vld [vmem:[%s9413_s8 + $0x68] sm:$0xff]  }
 0x325   : >> { %3679 = vmatprep.subr.bf16.mxu0 %v12377_v17  ;;  %v9568_v25 = vsel %vm811_vm4, %v2775_v54, %v2779_v51  ;;  %v2785_v54 = vrot.slane %v9528_v11, 1  ;;  %v2869_v7 = vsel %vm947_vm7, %v12383_v58, %v2868_v12 }
 0x326   : >> { %2726 = vrot.lane.b32.xlu1 %v2641_v53, %s7361_s25  ;;  %v3008_v5 = vsel %vm1079_vm5, %v3003_v27, %v3007_v52  ;;  %v7240_v27 = vld [vmem:[%s9413_s8 + $0x70] sm:$0xff]  }
 0x328   : >> { %3085 = vrot.lane.b32.xlu0 %v3004_v30, %s7361_s25  ;;  %3680 = vmatpush1.bf16.msra.mxu0 %v7237_v13  ;;  %v7238_v30 = vld [vmem:[%s9413_s8 + $0x60] sm:$0xff]   ;;  %v2643_v13 = vsel %vm679_vm3, %v2640_v19, %v2642_v39  ;;  %v2452_v19 = vsel %vm448_vm2, %v2447_v8, %v2451_v28  ;;  %v2790_v8 = vrot.slane %v9581_v1, 2 }
 0x329   : >> { %3681 = vmatprep.subr.bf16.mxu0 %v12377_v17 }
 0x32a   : >> { %2576 = vrot.lane.b32.xlu1 %v2444_v9, %s7360_s29  ;;  %v2781_v9 = vrot.slane %v9495_v31, 1 }
 0x32c   : >> { %2904 = vrot.lane.b32.xlu0 %v2865_v41, %s7360_s29  ;;  %v2782_v41 = vrot.slane %v9490_v45, 2  ;;  %3682 = vmatpush1.bf16.msra.mxu0 %v7238_v30  ;;  %v2786_v45 = vrot.slane %v9540_v61, 2 }
 0x32d   : >> { %3683 = vmatprep.subr.bf16.mxu0 %v12377_v17 }
 0x32e   : >> { %2680 = vrot.lane.b32.xlu1 %v2641_v53, %s7359_s24  ;;  %v2783_v48 = vor.u32 %v2782_v41, %v2781_v9  ;;  %v9584_v53 = vshrl.u32 %v9560_v29, 16  ;;  %v2787_v50 = vor.u32 %v2786_v45, %v2785_v54  ;;  %v3010_v9 = vrot.slane %v9581_v1, 3  ;;  %v2307_v41 = vld [vmem:[#allocation2 + $0x98] sm:$0xff] }
 0x32f   : >> { %v7241_v45 = vld [vmem:[%s9413_s8 + $0x78] sm:$0xff]  }
 0x330   : >> { %2952 = vrot.lane.b32.xlu0 %v2867_v3, %s7359_s24  ;;  %v9588_v18 = vsel %vm811_vm4, %v2779_v51, %v2783_v48  ;;  %3684 = vmatpush1.bf16.msra.mxu0 %v7239_v4  ;;  %v3009_v30 = vrot.slane %v9584_v53, 2  ;;  %v2306_v51 = vld [vmem:[#allocation2 + $0x90] sm:$0xff]  ;;  %v9600_v62 = vsel %vm811_vm4, %v2783_v48, %v2787_v50  ;;  %v2644_v4 = vrot.slane %v9514_v24, 1 }
 0x331   : >> { %3685 = vmatprep.subr.bf16.mxu0 %v12377_v17  ;;  %v9607_v54 = vpack.c.bf16 %v2307_v41, %v2306_v51  ;;  %v2455_v51 = vor.u32 %v9495_v31, %v2451_v28 }
 0x332   : >> { %2728 = vrot.lane.b32.xlu1 %v2643_v13, %s7361_s25  ;;  %v3011_v48 = vor.u32 %v3010_v9, %v3009_v30 }
 0x333   : >> { %v9623_v41 = vshll.u32 %v9607_v54, 16  ;;  %v9626_v58 = vshrl.u32 %v9607_v54, 16  ;;  %v2870_v28 = vrot.slane %v9607_v54, 2 }
 0x334   : >> { %3087 = vrot.lane.b32.xlu0 %v3008_v5, %s7361_s25  ;;  %v2789_v5 = vrot.slane %v9584_v53, 1  ;;  %3686 = vmatpush1.bf16.msra.mxu0 %v7240_v27  ;;  %v2645_v27 = vsel %vm679_vm3, %v2642_v39, %v2644_v4 }
 0x335   : >> { %3687 = vmatprep.subr.bf16.mxu0 %v12377_v17  ;;  %v3013_v30 = vrot.slane %v9626_v58, 2  ;;  %v3014_v9 = vrot.slane %v9623_v41, 3 }
 0x336   : >> { %2578 = vrot.lane.b32.xlu1 %v2452_v19, %s7360_s29  ;;  %v2791_v57 = vor.u32 %v2790_v8, %v2789_v5  ;;  %v2459_v19 = vrot.slane %v9540_v61, 1  ;;  %v2793_v61 = vrot.slane %v9626_v58, 1  ;;  %v2308_v5 = vld [vmem:[#allocation2 + $0xa0] sm:$0xff]  ;;  %v2309_v8 = vld [vmem:[#allocation2 + $0xa8] sm:$0xff] }
 0x338   : >> { %2906 = vrot.lane.b32.xlu0 %v2867_v3, %s7360_s29  ;;  %v9617_v3 = vsel %vm811_vm4, %v2787_v50, %v2791_v57  ;;  %3688 = vmatpush1.bf16.msra.mxu0 %v7241_v45  ;;  %v2794_v50 = vrot.slane %v9623_v41, 2  ;;  %v2460_v39 = vsel %vm448_vm2, %v2455_v51, %v2459_v19  ;;  %v2646_v45 = vrot.slane %v9560_v29, 1 }
 0x339   : >> { %v2871_v51 = vsel %vm947_vm7, %v2868_v12, %v2870_v28  ;;  %v2463_v43 = vor.u32 %v9528_v11, %v2459_v19  ;;  %v12163_v12 = vmov 0.0  }
 0x33a   : >> { %2682 = vrot.lane.b32.xlu1 %v2643_v13, %s7359_s24  ;;  %v3012_v13 = vsel %vm1079_vm5, %v3007_v52, %v3011_v48  ;;  %v2795_v31 = vor.u32 %v2794_v50, %v2793_v61  ;;  %v3015_v61 = vor.u32 %v3014_v9, %v3013_v30  ;;  %v2647_v50 = vsel %vm679_vm3, %v2644_v4, %v2646_v45  ;;  %v2310_v9 = vld [vmem:[#allocation2 + $0xb0] sm:$0xff] }
 0x33b   : >> { %6856 = vmatprep.subr.bf16.mxu0 %v12163_v12 }
 0x33c   : >> { %2954 = vrot.lane.b32.xlu0 %v2869_v7, %s7359_s24  ;;  %v9638_v52 = vsel %vm811_vm4, %v2791_v57, %v2795_v31  ;;  %v2467_v57 = vrot.slane %v9581_v1, 1 }
 0x33e   : >> { %2730 = vrot.lane.b32.xlu1 %v2645_v27, %s7361_s25  ;;  %v2468_v11 = vsel %vm448_vm2, %v2463_v43, %v2467_v57  ;;  %v2471_v37 = vor.u32 %v9584_v53, %v2467_v57 }
 0x340   : >> { %3089 = vrot.lane.b32.xlu0 %v3012_v13, %s7361_s25  ;;  %v9643_v13 = vpack.c.bf16 %v2309_v8, %v2308_v5  ;;  %v3016_v5 = vsel %vm1079_vm5, %v3011_v48, %v3015_v61  ;;  %v2311_v8 = vld [vmem:[#allocation2 + $0xb8] sm:$0xff] }
 0x341   : >> { %v9673_v0 = vpack.c.bf16 %v2311_v8, %v2310_v9 }
 0x342   : >> { %2580 = vrot.lane.b32.xlu1 %v2460_v39, %s7360_s29  ;;  %v9652_v39 = vshll.u32 %v9643_v13, 16  ;;  %v2872_v19 = vrot.slane %v9643_v13, 2 }
 0x343   : >> { %v2874_v53 = vrot.slane %v9673_v0, 2 }
 0x344   : >> { %2908 = vrot.lane.b32.xlu0 %v2869_v7, %s7360_s29  ;;  %v9655_v7 = vshrl.u32 %v9643_v13, 16  ;;  %v2798_v4 = vrot.slane %v9652_v39, 2  ;;  %v3018_v48 = vrot.slane %v9652_v39, 3  ;;  %v2873_v43 = vsel %vm947_vm7, %v2870_v28, %v2872_v19 }
 0x345   : >> { %v2483_v35 = vrot.slane %v9652_v39, 1 }
 0x346   : >> { %2684 = vrot.lane.b32.xlu1 %v2645_v27, %s7359_s24  ;;  %v2797_v27 = vrot.slane %v9655_v7, 1  ;;  %v3017_v30 = vrot.slane %v9655_v7, 2 }
 0x348   : >> { %2956 = vrot.lane.b32.xlu0 %v2871_v51, %s7359_s24  ;;  %v2799_v1 = vor.u32 %v2798_v4, %v2797_v27  ;;  %v3019_v27 = vor.u32 %v3018_v48, %v3017_v30  ;;  %v2475_v4 = vrot.slane %v9623_v41, 1  ;;  %v2312_v48 = vld [vmem:[#allocation2 + $0xc0] sm:$0xff] }
 0x34a   : >> { %2732 = vrot.lane.b32.xlu1 %v2647_v50, %s7361_s25  ;;  %v9668_v12 = vsel %vm811_vm4, %v2795_v31, %v2799_v1  ;;  %v3020_v9 = vsel %vm1079_vm5, %v3015_v61, %v3019_v27  ;;  %v2476_v41 = vsel %vm448_vm2, %v2471_v37, %v2475_v4  ;;  %v2313_v61 = vld [vmem:[#allocation2 + $0xc8] sm:$0xff]  ;;  %v2650_v37 = vrot.slane %v9643_v13, 1 }
 0x34c   : >> { %3091 = vrot.lane.b32.xlu0 %v3016_v5, %s7361_s25  ;;  %v2648_v5 = vrot.slane %v9607_v54, 1 }
 0x34e   : >> { %2582 = vrot.lane.b32.xlu1 %v2468_v11, %s7360_s29  ;;  %v2649_v31 = vsel %vm679_vm3, %v2646_v45, %v2648_v5  ;;  %v9682_v11 = vshll.u32 %v9673_v0, 16  ;;  %v2651_v49 = vsel %vm679_vm3, %v2648_v5, %v2650_v37 }
 0x350   : >> { %2910 = vrot.lane.b32.xlu0 %v2871_v51, %s7360_s29  ;;  %v9685_v51 = vshrl.u32 %v9673_v0, 16  ;;  %v3022_v30 = vrot.slane %v9682_v11, 3  ;;  %v2491_v55 = vrot.slane %v9682_v11, 1 }
 0x352   : >> { %2686 = vrot.lane.b32.xlu1 %v2647_v50, %s7359_s24  ;;  %v2801_v28 = vrot.slane %v9685_v51, 1  ;;  %v2802_v50 = vrot.slane %v9682_v11, 2  ;;  %v3021_v57 = vrot.slane %v9685_v51, 2 }
 0x354   : >> { %2958 = vrot.lane.b32.xlu0 %v2873_v43, %s7359_s24  ;;  %v9693_v45 = vor.u32 %v2802_v50, %v2801_v28  ;;  %v3023_v28 = vor.u32 %v3022_v30, %v3021_v57  ;;  %v9706_v50 = vpack.c.bf16 %v2313_v61, %v2312_v48  ;;  %v2652_v57 = vrot.slane %v9673_v0, 1 }
 0x356   : >> { %2734 = vrot.lane.b32.xlu1 %v2649_v31, %s7361_s25  ;;  %v9700_v8 = vsel %vm811_vm4, %v2799_v1, %v9693_v45  ;;  %v2479_v1 = vor.u32 %v9626_v58, %v2475_v4  ;;  %v2876_v5 = vrot.slane %v9706_v50, 2  ;;  %v2314_v4 = vld [vmem:[#allocation2 + $0xd0] sm:$0xff] }
 0x358   : >> { %3093 = vrot.lane.b32.xlu0 %v3020_v9, %s7361_s25  ;;  %v2875_v9 = vsel %vm947_vm7, %v2872_v19, %v2874_v53  ;;  %v9718_v19 = vshrl.u32 %v9706_v50, 16  ;;  %v2877_v30 = vsel %vm947_vm7, %v2874_v53, %v2876_v5 }
 0x35a   : >> { %2584 = vrot.lane.b32.xlu1 %v2476_v41, %s7360_s29  ;;  %v3024_v41 = vsel %vm1079_vm5, %v3019_v27, %v3023_v28  ;;  %v3025_v58 = vrot.slane %v9718_v19, 2  ;;  %v2315_v27 = vld [vmem:[#allocation2 + $0xd8] sm:$0xff] }
 0x35b   : >> { %v9730_v61 = vpack.c.bf16 %v2315_v27, %v2314_v4 }
 0x35c   : >> { %2912 = vrot.lane.b32.xlu0 %v2873_v43, %s7360_s29  ;;  %v9715_v43 = vshll.u32 %v9706_v50, 16 }
 0x35d   : >> { %v9739_v34 = vshll.u32 %v9730_v61, 16  ;;  %v9742_v53 = vshrl.u32 %v9730_v61, 16 }
 0x35e   : >> { %2688 = vrot.lane.b32.xlu1 %v2649_v31, %s7359_s24  ;;  %v2484_v31 = vsel %vm448_vm2, %v2479_v1, %v2483_v35  ;;  %v3026_v39 = vrot.slane %v9715_v43, 3  ;;  %v2653_v1 = vsel %vm679_vm3, %v2650_v37, %v2652_v57 }
 0x35f   : >> { %v3030_v11 = vrot.slane %v9739_v34, 3 }
 0x360   : >> { %2960 = vrot.lane.b32.xlu0 %v2875_v9, %s7359_s24  ;;  %v3027_v48 = vor.u32 %v3026_v39, %v3025_v58  ;;  %v2316_v58 = vld [vmem:[#allocation2 + $0xe0] sm:$0xff]  ;;  %v2317_v39 = vld [vmem:[#allocation2 + $0xe8] sm:$0xff] }
 0x361   : >> { %v9759_v23 = vpack.c.bf16 %v2317_v39, %v2316_v58  ;;  %v12384_v58 = vmov 0.0  }
 0x362   : >> { %2736 = vrot.lane.b32.xlu1 %v2651_v49, %s7361_s25 }
 0x364   : >> { %3095 = vrot.lane.b32.xlu0 %v3024_v41, %s7361_s25  ;;  %v2487_v41 = vor.u32 %v9655_v7, %v2483_v35  ;;  %v2878_v35 = vrot.slane %v9730_v61, 2  ;;  %v3029_v7 = vrot.slane %v9742_v53, 2 }
 0x366   : >> { %2586 = vrot.lane.b32.xlu1 %v2484_v31, %s7360_s29  ;;  %v2879_v14 = vsel %vm947_vm7, %v2876_v5, %v2878_v35  ;;  %v3031_v16 = vor.u32 %v3030_v11, %v3029_v7  ;;  %v2499_v7 = vrot.slane %v9715_v43, 1 }
 0x368   : >> { %2914 = vrot.lane.b32.xlu0 %v2875_v9, %s7360_s29  ;;  %v3028_v9 = vsel %vm1079_vm5, %v3023_v28, %v3027_v48 }
 0x36a   : >> { %2690 = vrot.lane.b32.xlu1 %v2651_v49, %s7359_s24  ;;  %v2492_v49 = vsel %vm448_vm2, %v2487_v41, %v2491_v55  ;;  %v2654_v41 = vrot.slane %v9706_v50, 1 }
 0x36c   : >> { %2962 = vrot.lane.b32.xlu0 %v2877_v30, %s7359_s24  ;;  %v2945_v31 = vpop.permute.xlu1 %2944  ;;  %v2655_v5 = vsel %vm679_vm3, %v2652_v57, %v2654_v41  ;;  %v2880_v57 = vrot.slane %v9759_v23, 2 }
 0x36d   : >> { %v2897_v33 = vpop.permute.xlu0 %2896 }
 0x36e   : >> { %2738 = vrot.lane.b32.xlu1 %v2653_v1, %s7361_s25  ;;  %v3314_v4 = vsel %vm322_vm0, %v9520_v26, %v2897_v33 }
 0x36f   : >> { %v3376_v26 = vsel %vm3205_vm8, %v3314_v4, %v2945_v31  ;;  %v3032_v31 = vsel %vm1079_vm5, %v3027_v48, %v3031_v16  ;;  %v2318_v4 = vld [vmem:[#allocation2 + $0xf0] sm:$0xff] }
 0x370   : >> { %3097 = vrot.lane.b32.xlu0 %v3028_v9, %s7361_s25  ;;  %v2673_v37 = vpop.permute.xlu1 %2672 }
 0x372   : >> { %v2569_v28 = vpop.permute.xlu0 %2568  ;;  %2588 = vrot.lane.b32.xlu1 %v2492_v49, %s7360_s29  ;;  %v7242_v49 = vld [vmem:[%s9413_s8 + $0x80] sm:$0xff]  }
 0x373   : >> { %v3164_v27 = vsel %vm322_vm0, %v9375_v63, %v2569_v28 }
 0x374   : >> { %2916 = vrot.lane.b32.xlu0 %v2877_v30, %s7360_s29  ;;  %v2721_v9 = vpop.permute.xlu1 %2720  ;;  %v3207_v36 = vsel %vm3205_vm8, %v3164_v27, %v2673_v37  ;;  %v2495_v37 = vor.u32 %v9685_v51, %v2491_v55  ;;  %v2319_v27 = vld [vmem:[#allocation2 + $0xf8] sm:$0xff] }
 0x375   : >> { %v3250_v63 = vsel %vm3248_vm10, %v3207_v36, %v2721_v9  ;;  %v9772_v36 = vshll.u32 %v9759_v23, 16 }
 0x376   : >> { %v3080_v33 = vpop.permute.xlu0 %3079  ;;  %2692 = vrot.lane.b32.xlu1 %v2653_v1, %s7359_s24  ;;  %v9775_v1 = vshrl.u32 %v9759_v23, 16  ;;  %v2500_v55 = vsel %vm448_vm2, %v2495_v37, %v2499_v7 }
 0x377   : >> { %v3418_v30 = vsel %vm3248_vm10, %v3376_v26, %v3080_v33  ;;  %v3034_v39 = vrot.slane %v9772_v36, 3  ;;  %v2656_v26 = vrot.slane %v9730_v61, 1 }
 0x378   : >> { %2964 = vrot.lane.b32.xlu0 %v2879_v14, %s7359_s24  ;;  %3689 = vmatprep.mubr.bf16.mxu0 %v3418_v30  ;;  %v2571_v11 = vpop.permute.xlu1 %2570  ;;  %v3033_v48 = vrot.slane %v9775_v1, 2 }
 0x379   : >> { %3690 = vmatmul.mubr.bf16.vlgmr.msra.gmra.mrb[0].mxu0 %v3250_v63  ;;  %v3166_v33 = vsel %vm322_vm0, %v9372_v60, %v2571_v11  ;;  %v9789_v63 = vpack.c.bf16 %v2319_v27, %v2318_v4  ;;  %v2503_v11 = vor.u32 %v9718_v19, %v2499_v7 }
 0x37a   : >> { %v2899_v28 = vpop.permute.xlu0 %2898  ;;  %6857 = vmatpush3.bf16.msra.mxu0 %v7242_v49  ;;  %2740 = vrot.lane.b32.xlu1 %v2655_v5, %s7361_s25  ;;  %v3035_v15 = vor.u32 %v3034_v39, %v3033_v48 }
 0x37b   : >> { %6858 = vmatprep.subr.bf16.mxu0 %v12384_v58  ;;  %v3317_v49 = vsel %vm322_vm0, %v9535_v2, %v2899_v28  ;;  %v2657_v2 = vsel %vm679_vm3, %v2654_v41, %v2656_v26  ;;  %v2507_v28 = vrot.slane %v9739_v34, 1  ;;  %v9805_v48 = vshll.u32 %v9789_v63, 16 }
 0x37c   : >> { %3099 = vrot.lane.b32.xlu0 %v3032_v31, %s7361_s25  ;;  %v2675_v51 = vpop.permute.xlu1 %2674  ;;  %v2881_v31 = vsel %vm947_vm7, %v2878_v35, %v2880_v57  ;;  %v2882_v7 = vrot.slane %v9789_v63, 2 }
 0x37d   : >> { %v3209_v30 = vsel %vm3205_vm8, %v3166_v33, %v2675_v51  ;;  %v3036_v51 = vsel %vm1079_vm5, %v3031_v16, %v3035_v15  ;;  %v2508_v41 = vsel %vm448_vm2, %v2503_v11, %v2507_v28  ;;  %v3038_v16 = vrot.slane %v9805_v48, 3  ;;  %v2321_v33 = vld [vmem:[#allocation2 + $0x108] sm:$0xff] }
 0x37e   : >> { %v2947_v9 = vpop.permute.xlu0 %2946  ;;  %2590 = vrot.lane.b32.xlu1 %v2500_v55, %s7360_s29 }
 0x37f   : >> { %v3378_v55 = vsel %vm3205_vm8, %v3317_v49, %v2947_v9  ;;  %v2320_v9 = vld [vmem:[#allocation2 + $0x100] sm:$0xff] }
 0x380   : >> { %2918 = vrot.lane.b32.xlu0 %v2879_v14, %s7360_s29  ;;  %v2723_v37 = vpop.permute.xlu1 %2722 }
 0x381   : >> { %v3253_v60 = vsel %vm3248_vm10, %v3209_v30, %v2723_v37  ;;  %v2883_v30 = vsel %vm947_vm7, %v2880_v57, %v2882_v7  ;;  %v2658_v37 = vrot.slane %v9759_v23, 1 }
 0x382   : >> { %v3082_v21 = vpop.permute.xlu0 %3081  ;;  %2694 = vrot.lane.b32.xlu1 %v2655_v5, %s7359_s24  ;;  %v9808_v5 = vshrl.u32 %v9789_v63, 16 }
 0x383   : >> { %v3421_v14 = vsel %vm3248_vm10, %v3378_v55, %v3082_v21 }
 0x384   : >> { %2966 = vrot.lane.b32.xlu0 %v2881_v31, %s7359_s24  ;;  %3697 = vmatprep.mubr.bf16.mxu0 %v3421_v14  ;;  %v2573_v35 = vpop.permute.xlu1 %2572  ;;  %v3037_v4 = vrot.slane %v9808_v5, 2 }
 0x385   : >> { %3698 = vmatmul.mubr.bf16.gmra.mrb[4].mxu0 %v3253_v60  ;;  %v3168_v49 = vsel %vm322_vm0, %v9366_v10, %v2573_v35 }
 0x386   : >> { %v2901_v21 = vpop.permute.xlu0 %2900  ;;  %2742 = vrot.lane.b32.xlu1 %v2657_v2, %s7361_s25  ;;  %v3039_v11 = vor.u32 %v3038_v16, %v3037_v4 }
 0x387   : >> { %v3320_v55 = vsel %vm322_vm0, %v9553_v56, %v2901_v21  ;;  %v2659_v56 = vsel %vm679_vm3, %v2656_v26, %v2658_v37  ;;  %v2515_v21 = vrot.slane %v9772_v36, 1 }
 0x388   : >> { %3101 = vrot.lane.b32.xlu0 %v3036_v51, %s7361_s25  ;;  %v2677_v39 = vpop.permute.xlu1 %2676  ;;  %v9825_v51 = vpack.c.bf16 %v2321_v33, %v2320_v9  ;;  %v3040_v4 = vsel %vm1079_vm5, %v3035_v15, %v3039_v11 }
 0x389   : >> { %v3211_v60 = vsel %vm3205_vm8, %v3168_v49, %v2677_v39  ;;  %v2322_v49 = vld [vmem:[#allocation2 + $0x110] sm:$0xff] }
 0x38a   : >> { %v2949_v27 = vpop.permute.xlu0 %2948  ;;  %2592 = vrot.lane.b32.xlu1 %v2508_v41, %s7360_s29  ;;  %v9837_v16 = vshll.u32 %v9825_v51, 16 }
 0x38b   : >> { %v3380_v41 = vsel %vm3205_vm8, %v3320_v55, %v2949_v27  ;;  %v2323_v55 = vld [vmem:[#allocation2 + $0x118] sm:$0xff] }
 0x38c   : >> { %2920 = vrot.lane.b32.xlu0 %v2881_v31, %s7360_s29  ;;  %v2725_v14 = vpop.permute.xlu1 %2724  ;;  %v2511_v31 = vor.u32 %v9742_v53, %v2507_v28  ;;  %v2884_v28 = vrot.slane %v9825_v51, 2  ;;  %v3042_v15 = vrot.slane %v9837_v16, 3  ;;  %v9857_v44 = vpack.c.bf16 %v2323_v55, %v2322_v49 }
 0x38d   : >> { %v3256_v35 = vsel %vm3248_vm10, %v3211_v60, %v2725_v14 }
 0x38e   : >> { %v3084_v42 = vpop.permute.xlu0 %3083  ;;  %2696 = vrot.lane.b32.xlu1 %v2657_v2, %s7359_s24  ;;  %v9840_v2 = vshrl.u32 %v9825_v51, 16  ;;  %v2516_v26 = vsel %vm448_vm2, %v2511_v31, %v2515_v21  ;;  %v2885_v14 = vsel %vm947_vm7, %v2882_v7, %v2884_v28  ;;  %v2886_v49 = vrot.slane %v9857_v44, 2 }
 0x38f   : >> { %v3424_v57 = vsel %vm3248_vm10, %v3380_v41, %v3084_v42  ;;  %v2660_v41 = vrot.slane %v9789_v63, 1 }
 0x390   : >> { %2968 = vrot.lane.b32.xlu0 %v2883_v30, %s7359_s24  ;;  %3705 = vmatprep.mubr.bf16.mxu0 %v3424_v57  ;;  %v2575_v39 = vpop.permute.xlu1 %2574  ;;  %v3041_v9 = vrot.slane %v9840_v2, 2 }
 0x391   : >> { %3706 = vmatmul.mubr.bf16.gmra.mrb[8].mxu0 %v3256_v35  ;;  %v3170_v60 = vsel %vm322_vm0, %v9370_v20, %v2575_v39 }
 0x392   : >> { %v2903_v42 = vpop.permute.xlu0 %2902  ;;  %2744 = vrot.lane.b32.xlu1 %v2659_v56, %s7361_s25 }
 0x393   : >> { %v3323_v35 = vsel %vm322_vm0, %v9568_v25, %v2903_v42  ;;  %v2661_v25 = vsel %vm679_vm3, %v2658_v37, %v2660_v41  ;;  %v2519_v42 = vor.u32 %v9775_v1, %v2515_v21 }
 0x394   : >> { %3103 = vrot.lane.b32.xlu0 %v3040_v4, %s7361_s25  ;;  %v2679_v27 = vpop.permute.xlu1 %2678  ;;  %v3043_v4 = vor.u32 %v3042_v15, %v3041_v9 }
 0x395   : >> { %v3213_v57 = vsel %vm3205_vm8, %v3170_v60, %v2679_v27  ;;  %v2523_v27 = vrot.slane %v9805_v48, 1  ;;  %v2324_v60 = vld [vmem:[#allocation2 + $0x120] sm:$0xff] }
 0x396   : >> { %v2951_v33 = vpop.permute.xlu0 %2950  ;;  %2594 = vrot.lane.b32.xlu1 %v2516_v26, %s7360_s29  ;;  %v3044_v15 = vsel %vm1079_vm5, %v3039_v11, %v3043_v4 }
 0x397   : >> { %v3382_v26 = vsel %vm3205_vm8, %v3323_v35, %v2951_v33  ;;  %v9870_v33 = vshll.u32 %v9857_v44, 16  ;;  %v2524_v37 = vsel %vm448_vm2, %v2519_v42, %v2523_v27  ;;  %v2325_v35 = vld [vmem:[#allocation2 + $0x128] sm:$0xff] }
 0x398   : >> { %2922 = vrot.lane.b32.xlu0 %v2883_v30, %s7360_s29  ;;  %v2727_v31 = vpop.permute.xlu1 %2726  ;;  %v7243_v30 = vld [vmem:[%s9413_s8 + $0x88] sm:$0xff]  }
 0x399   : >> { %v3259_v39 = vsel %vm3248_vm10, %v3213_v57, %v2727_v31  ;;  %6859 = vmatpush3.bf16.msra.mxu0 %v7243_v30  ;;  %v3046_v11 = vrot.slane %v9870_v33, 3 }
 0x39a   : >> { %v3086_v47 = vpop.permute.xlu0 %3085  ;;  %2698 = vrot.lane.b32.xlu1 %v2659_v56, %s7359_s24  ;;  %v9873_v56 = vshrl.u32 %v9857_v44, 16 }
 0x39b   : >> { %v3427_v7 = vsel %vm3248_vm10, %v3382_v26, %v3086_v47  ;;  %v2662_v26 = vrot.slane %v9825_v51, 1 }
 0x39c   : >> { %2970 = vrot.lane.b32.xlu0 %v2885_v14, %s7359_s24  ;;  %3713 = vmatprep.mubr.bf16.mxu0 %v3427_v7  ;;  %v2577_v9 = vpop.permute.xlu1 %2576  ;;  %v3045_v55 = vrot.slane %v9873_v56, 2 }
 0x39d   : >> { %3714 = vmatmul.mubr.bf16.gmra.mrb[12].mxu0 %v3259_v39  ;;  %v3172_v31 = vsel %vm322_vm0, %v9417_v22, %v2577_v9  ;;  %v9886_v39 = vpack.c.bf16 %v2325_v35, %v2324_v60 }
 0x39e   : >> { %v2905_v47 = vpop.permute.xlu0 %2904  ;;  %2746 = vrot.lane.b32.xlu1 %v2661_v25, %s7361_s25  ;;  %v3047_v6 = vor.u32 %v3046_v11, %v3045_v55 }
 0x39f   : >> { %v3326_v7 = vsel %vm322_vm0, %v9588_v18, %v2905_v47  ;;  %v2663_v18 = vsel %vm679_vm3, %v2660_v41, %v2662_v26  ;;  %v2527_v47 = vor.u32 %v9808_v5, %v2523_v27  ;;  %v9902_v11 = vshll.u32 %v9886_v39, 16 }
 0x3a0   : >> { %3105 = vrot.lane.b32.xlu0 %v3044_v15, %s7361_s25  ;;  %v2681_v21 = vpop.permute.xlu1 %2680  ;;  %v2887_v15 = vsel %vm947_vm7, %v2884_v28, %v2886_v49  ;;  %v3048_v55 = vsel %vm1079_vm5, %v3043_v4, %v3047_v6  ;;  %v2888_v27 = vrot.slane %v9886_v39, 2 }
 0x3a1   : >> { %v3215_v30 = vsel %vm3205_vm8, %v3172_v31, %v2681_v21  ;;  %v2531_v21 = vrot.slane %v9837_v16, 1  ;;  %v3050_v4 = vrot.slane %v9902_v11, 3  ;;  %v2326_v31 = vld [vmem:[#allocation2 + $0x130] sm:$0xff] }
 0x3a2   : >> { %v2953_v57 = vpop.permute.xlu0 %2952  ;;  %2596 = vrot.lane.b32.xlu1 %v2524_v37, %s7360_s29 }
 0x3a3   : >> { %v3384_v37 = vsel %vm3205_vm8, %v3326_v7, %v2953_v57  ;;  %v2532_v41 = vsel %vm448_vm2, %v2527_v47, %v2531_v21  ;;  %v2327_v7 = vld [vmem:[#allocation2 + $0x138] sm:$0xff] }
 0x3a4   : >> { %2924 = vrot.lane.b32.xlu0 %v2885_v14, %s7360_s29  ;;  %v2729_v42 = vpop.permute.xlu1 %2728  ;;  %v9922_v46 = vpack.c.bf16 %v2327_v7, %v2326_v31 }
 0x3a5   : >> { %v3262_v9 = vsel %vm3248_vm10, %v3215_v30, %v2729_v42  ;;  %v2889_v42 = vsel %vm947_vm7, %v2886_v49, %v2888_v27 }
 0x3a6   : >> { %v3088_v32 = vpop.permute.xlu0 %3087  ;;  %2700 = vrot.lane.b32.xlu1 %v2661_v25, %s7359_s24  ;;  %v9905_v25 = vshrl.u32 %v9886_v39, 16 }
 0x3a7   : >> { %v3430_v14 = vsel %vm3248_vm10, %v3384_v37, %v3088_v32  ;;  %v2664_v37 = vrot.slane %v9857_v44, 1 }
 0x3a8   : >> { %2972 = vrot.lane.b32.xlu0 %v2887_v15, %s7359_s24  ;;  %3721 = vmatprep.mubr.bf16.mxu0 %v3430_v14  ;;  %v2579_v28 = vpop.permute.xlu1 %2578  ;;  %v3049_v35 = vrot.slane %v9905_v25, 2 }
 0x3a9   : >> { %3722 = vmatmul.mubr.bf16.gmra.mrb[16].mxu0 %v3262_v9  ;;  %v3174_v30 = vsel %vm322_vm0, %v9451_v59, %v2579_v28 }
 0x3aa   : >> { %v2907_v32 = vpop.permute.xlu0 %2906  ;;  %2748 = vrot.lane.b32.xlu1 %v2663_v18, %s7361_s25 }
 0x3ab   : >> { %v3329_v9 = vsel %vm322_vm0, %v9600_v62, %v2907_v32  ;;  %v2665_v62 = vsel %vm679_vm3, %v2662_v26, %v2664_v37  ;;  %v2539_v32 = vrot.slane %v9870_v33, 1 }
 0x3ac   : >> { %3107 = vrot.lane.b32.xlu0 %v3048_v55, %s7361_s25  ;;  %v2683_v60 = vpop.permute.xlu1 %2682  ;;  %v3051_v55 = vor.u32 %v3050_v4, %v3049_v35  ;;  %v9934_v4 = vshll.u32 %v9922_v46, 16 }
 0x3ad   : >> { %v3217_v14 = vsel %vm3205_vm8, %v3174_v30, %v2683_v60  ;;  %v9945_v30 = vld [vmem:[#allocation2 + $0x140] sm:$0xff] }
 0x3ae   : >> { %v2955_v57 = vpop.permute.xlu0 %2954  ;;  %2598 = vrot.lane.b32.xlu1 %v2532_v41, %s7360_s29  ;;  %v3052_v35 = vsel %vm1079_vm5, %v3047_v6, %v3051_v55  ;;  %v3054_v6 = vrot.slane %v9934_v4, 3 }
 0x3af   : >> { %v3386_v41 = vsel %vm3205_vm8, %v3329_v9, %v2955_v57  ;;  %v2329_v9 = vld [vmem:[#allocation2 + $0x148] sm:$0xff] }
 0x3b0   : >> { %2926 = vrot.lane.b32.xlu0 %v2887_v15, %s7360_s29  ;;  %v2731_v47 = vpop.permute.xlu1 %2730  ;;  %v2535_v15 = vor.u32 %v9840_v2, %v2531_v21  ;;  %v2890_v21 = vrot.slane %v9922_v46, 2  ;;  %v9957_v17 = vpack.c.bf16 %v2329_v9, %v9945_v30 }
 0x3b1   : >> { %v3265_v28 = vsel %vm3248_vm10, %v3217_v14, %v2731_v47 }
 0x3b2   : >> { %v3090_v40 = vpop.permute.xlu0 %3089  ;;  %2702 = vrot.lane.b32.xlu1 %v2663_v18, %s7359_s24  ;;  %v9937_v18 = vshrl.u32 %v9922_v46, 16  ;;  %v2540_v26 = vsel %vm448_vm2, %v2535_v15, %v2539_v32  ;;  %v2891_v47 = vsel %vm947_vm7, %v2888_v27, %v2890_v21 }
 0x3b3   : >> { %v3433_v49 = vsel %vm3248_vm10, %v3386_v41, %v3090_v40  ;;  %v2666_v41 = vrot.slane %v9886_v39, 1 }
 0x3b4   : >> { %2974 = vrot.lane.b32.xlu0 %v2889_v42, %s7359_s24  ;;  %3729 = vmatprep.mubr.bf16.mxu0 %v3433_v49  ;;  %v2581_v60 = vpop.permute.xlu1 %2580  ;;  %v3053_v31 = vrot.slane %v9937_v18, 2 }
 0x3b5   : >> { %3730 = vmatmul.mubr.bf16.gmra.mrb[20].mxu0 %v3265_v28  ;;  %v3176_v14 = vsel %vm322_vm0, %v9479_v38, %v2581_v60 }
 0x3b6   : >> { %v2909_v40 = vpop.permute.xlu0 %2908  ;;  %2750 = vrot.lane.b32.xlu1 %v2665_v62, %s7361_s25 }
 0x3b7   : >> { %v3332_v28 = vsel %vm322_vm0, %v9617_v3, %v2909_v40  ;;  %v2667_v3 = vsel %vm679_vm3, %v2664_v37, %v2666_v41  ;;  %v2547_v40 = vrot.slane %v9902_v11, 1 }
 0x3b8   : >> { %3109 = vrot.lane.b32.xlu0 %v3052_v35, %s7361_s25  ;;  %v2685_v57 = vpop.permute.xlu1 %2684  ;;  %v3055_v35 = vor.u32 %v3054_v6, %v3053_v31  ;;  %v12208_v6 = vshrl.u32 %v9957_v17, 16 }
 0x3b9   : >> { %v3219_v49 = vsel %vm3205_vm8, %v3176_v14, %v2685_v57  ;;  %v2330_v14 = vld [vmem:[#allocation2 + $0x150] sm:$0xff] }
 0x3ba   : >> { %v2957_v7 = vpop.permute.xlu0 %2956  ;;  %2600 = vrot.lane.b32.xlu1 %v2540_v26, %s7360_s29  ;;  %v3056_v31 = vsel %vm1079_vm5, %v3051_v55, %v3055_v35  ;;  %v3057_v9 = vrot.slane %v12208_v6, 2 }
 0x3bb   : >> { %v3388_v26 = vsel %vm3205_vm8, %v3332_v28, %v2957_v7  ;;  %v12207_v7 = vshll.u32 %v9957_v17, 16  ;;  %v2331_v28 = vld [vmem:[#allocation2 + $0x158] sm:$0xff] }
 0x3bc   : >> { %2928 = vrot.lane.b32.xlu0 %v2889_v42, %s7360_s29  ;;  %v2733_v15 = vpop.permute.xlu1 %2732  ;;  %v2543_v42 = vor.u32 %v9873_v56, %v2539_v32  ;;  %v9974_v32 = vrot.slane %v9957_v17, 2 }
 0x3bd   : >> { %v3268_v60 = vsel %vm3248_vm10, %v3219_v49, %v2733_v15  ;;  %v3058_v55 = vrot.slane %v12207_v7, 3  ;;  %v9982_v15 = vrot.slane %v9922_v46, 1 }
 0x3be   : >> { %v3092_v59 = vpop.permute.xlu0 %3091  ;;  %2704 = vrot.lane.b32.xlu1 %v2665_v62, %s7359_s24  ;;  %v2893_v7 = vsel %vm947_vm7, %v2890_v21, %v9974_v32  ;;  %v2555_v21 = vrot.slane %v9934_v4, 1 }
 0x3bf   : >> { %v3436_v27 = vsel %vm3248_vm10, %v3388_v26, %v3092_v59  ;;  %v2548_v59 = vsel %vm448_vm2, %v2543_v42, %v2547_v40 }
 0x3c0   : >> { %2976 = vrot.lane.b32.xlu0 %v2891_v47, %s7359_s24  ;;  %3737 = vmatprep.mubr.bf16.mxu0 %v3436_v27  ;;  %v2583_v57 = vpop.permute.xlu1 %2582 }
 0x3c1   : >> { %3738 = vmatmul.mubr.bf16.gmra.mrb[24].mxu0 %v3268_v60  ;;  %v3178_v26 = vsel %vm322_vm0, %v9514_v24, %v2583_v57  ;;  %v9987_v60 = vpack.c.bf16 %v2331_v28, %v2330_v14  ;;  %v2669_v57 = vsel %vm679_vm3, %v2666_v41, %v9982_v15  ;;  %v10012_v28 = vpack.c.bf16 %v9945_v30, %v9945_v30 }
 0x3c2   : >> { %v2911_v62 = vpop.permute.xlu0 %2910  ;;  %2752 = vrot.lane.b32.xlu1 %v2667_v3, %s7361_s25 }
 0x3c3   : >> { %12385 = vst [vmem:[#allocation53_spill] sm:$0xff] %v9987_v60  ;;  %v3335_v27 = vsel %vm322_vm0, %v9638_v52, %v2911_v62  ;;  %v2551_v52 = vor.u32 %v9905_v25, %v2547_v40  ;;  %v3062_v62 = vshrl.u32 %v9987_v60, 16  ;;  %v2561_v30 = vshll.u32 %v10012_v28, 16 }
 0x3c4   : >> { %3111 = vrot.lane.b32.xlu0 %v3056_v31, %s7361_s25  ;;  %v2687_v37 = vpop.permute.xlu1 %2686 }
 0x3c5   : >> { %v3221_v42 = vsel %vm3205_vm8, %v3178_v26, %v2687_v37  ;;  %v3065_v37 = vshll.u32 %v9987_v60, 16  ;;  %v2556_v41 = vsel %vm448_vm2, %v2551_v52, %v2555_v21  ;;  %v3064_v40 = vrot.slane %v3062_v62, 2  ;;  %v2332_v26 = vld [vmem:[#allocation2 + $0x160] sm:$0xff] }
 0x3c6   : >> { %v2959_v49 = vpop.permute.xlu0 %2958  ;;  %2602 = vrot.lane.b32.xlu1 %v2548_v59, %s7360_s29  ;;  %v3059_v59 = vor.u32 %v3058_v55, %v3057_v9 }
 0x3c7   : >> { %v3390_v6 = vsel %vm3205_vm8, %v3335_v27, %v2959_v49  ;;  %v2333_v27 = vld [vmem:[#allocation2 + $0x168] sm:$0x3] }
 0x3c8   : >> { %2930 = vrot.lane.b32.xlu0 %v2891_v47, %s7360_s29  ;;  %v2735_v31 = vpop.permute.xlu1 %2734 }
 0x3c9   : >> { %v3271_v22 = vsel %vm3248_vm10, %v3221_v42, %v2735_v31  ;;  %v2716_v31 = vrot.slane %v9957_v17, 1 }
 0x3ca   : >> { %v3094_v38 = vpop.permute.xlu0 %3093  ;;  %2706 = vrot.lane.b32.xlu1 %v2667_v3, %s7359_s24  ;;  %v3060_v3 = vsel %vm1079_vm5, %v3055_v35, %v3059_v59 }
 0x3cb   : >> { %v3439_v47 = vsel %vm3248_vm10, %v3390_v6, %v3094_v38  ;;  %v2940_v38 = vrot.slane %v9987_v60, 2  ;;  %v3067_v6 = vrot.slane %v3065_v37, 3 }
 0x3cc   : >> { %2978 = vrot.lane.b32.xlu0 %v2893_v7, %s7359_s24  ;;  %3745 = vmatprep.mubr.bf16.mxu0 %v3439_v47  ;;  %v2585_v9 = vpop.permute.xlu1 %2584 }
 0x3cd   : >> { %3746 = vmatmul.mubr.bf16.gmra.mrb[28].mxu0 %v3271_v22  ;;  %v2941_v35 = vsel %vm947_vm7, %v9974_v32, %v2940_v38  ;;  %v3180_v42 = vsel %vm322_vm0, %v9560_v29, %v2585_v9  ;;  %v3068_v47 = vor.u32 %v3067_v6, %v3064_v40  ;;  %v2563_v6 = vrot.slane %v2561_v30, 1 }
 0x3ce   : >> { %v2913_v55 = vpop.permute.xlu0 %2912  ;;  %2754 = vrot.lane.b32.xlu1 %v2669_v57, %s7361_s25 }
 0x3cf   : >> { %v3338_v52 = vsel %vm322_vm0, %v9668_v12, %v2913_v55  ;;  %v2717_v12 = vsel %vm679_vm3, %v9982_v15, %v2716_v31  ;;  %v2559_v55 = vor.u32 %v9937_v18, %v2555_v21 }
 0x3d0   : >> { %3113 = vrot.lane.b32.xlu0 %v3060_v3, %s7361_s25  ;;  %v2689_v49 = vpop.permute.xlu1 %2688  ;;  %v10025_v3 = vpack.c.bf16 %v2330_v14, %v2330_v14  ;;  %v3069_v14 = vsel %vm1079_vm5, %v3059_v59, %v3068_v47  ;;  %v2670_v59 = vrot.slane %v10012_v28, 1 }
 0x3d1   : >> { %v3223_v62 = vsel %vm3205_vm8, %v3180_v42, %v2689_v49 }
 0x3d2   : >> { %v2961_v22 = vpop.permute.xlu0 %2960  ;;  %2604 = vrot.lane.b32.xlu1 %v2556_v41, %s7360_s29  ;;  %v10027_v41 = vpack.c.bf16 %v2333_v27, %v2332_v26  ;;  %v2399_v27 = vpack.c.bf16 %v2332_v26, %v2332_v26 }
 0x3d3   : >> { %v3392_v60 = vsel %vm3205_vm8, %v3338_v52, %v2961_v22  ;;  %v2894_v22 = vrot.slane %v10025_v3, 2 }
 0x3d4   : >> { %2932 = vrot.lane.b32.xlu0 %v2893_v7, %s7360_s29  ;;  %v2737_v37 = vpop.permute.xlu1 %2736  ;;  %v2942_v52 = vrot.slane %v2399_v27, 2 }
 0x3d5   : >> { %v3274_v7 = vsel %vm3248_vm10, %v3223_v62, %v2737_v37  ;;  %v2895_v30 = vsel %vm947_vm7, %v9974_v32, %v2894_v22 }
 0x3d6   : >> { %v3096_v9 = vpop.permute.xlu0 %3095  ;;  %2708 = vrot.lane.b32.xlu1 %v2669_v57, %s7359_s24  ;;  %v3071_v57 = vshrl.u32 %v10027_v41, 16 }
 0x3d7   : >> { %v3442_v40 = vsel %vm3248_vm10, %v3392_v60, %v3096_v9  ;;  %v3074_v60 = vshll.u32 %v10027_v41, 16 }
 0x3d8   : >> { %2980 = vrot.lane.b32.xlu0 %v2941_v35, %s7359_s24  ;;  %3753 = vmatprep.mubr.bf16.mxu0 %v3442_v40  ;;  %v2587_v49 = vpop.permute.xlu1 %2586  ;;  %v2564_v35 = vsel %vm448_vm2, %v2559_v55, %v2563_v6  ;;  %v3073_v62 = vrot.slane %v3071_v57, 2  ;;  %v2718_v40 = vrot.slane %v10025_v3, 1  ;;  %v2943_v55 = vsel %vm947_vm7, %v2940_v38, %v2942_v52 }
 0x3d9   : >> { %3754 = vmatmul.mubr.bf16.gmra.mrb[32].mxu0 %v3274_v7  ;;  %v3076_v26 = vrot.slane %v3074_v60, 3  ;;  %v3182_v9 = vsel %vm322_vm0, %v9607_v54, %v2587_v49  ;;  %v2671_v7 = vsel %vm679_vm3, %v9982_v15, %v2670_v59  ;;  %v2806_v15 = vrot.slane %v9715_v43, 2 }
 0x3da   : >> { %v2915_v42 = vpop.permute.xlu0 %2914  ;;  %2756 = vrot.lane.b32.xlu1 %v2717_v12, %s7361_s25  ;;  %v2719_v38 = vsel %vm679_vm3, %v2716_v31, %v2718_v40 }
 0x3db   : >> { %v3341_v12 = vsel %vm322_vm0, %v9700_v8, %v2915_v42  ;;  %v3077_v27 = vor.u32 %v3076_v26, %v3073_v62  ;;  %v2565_v8 = vshrl.u32 %v10012_v28, 16 }
 0x3dc   : >> { %3115 = vrot.lane.b32.xlu0 %v3069_v14, %s7361_s25  ;;  %v2691_v21 = vpop.permute.xlu1 %2690 }
 0x3dd   : >> { %v3225_v32 = vsel %vm3205_vm8, %v3182_v9, %v2691_v21  ;;  %v3078_v21 = vsel %vm1079_vm5, %v3068_v47, %v3077_v27  ;;  %v2567_v43 = vor.u32 %v2565_v8, %v2563_v6 }
 0x3de   : >> { %v2963_v37 = vpop.permute.xlu0 %2962  ;;  %2606 = vrot.lane.b32.xlu1 %v2564_v35, %s7360_s29  ;;  %v2805_v35 = vrot.slane %v9718_v19, 1 }
 0x3df   : >> { %v3394_v57 = vsel %vm3205_vm8, %v3341_v12, %v2963_v37 }
 0x3e0   : >> { %2934 = vrot.lane.b32.xlu0 %v2895_v30, %s7360_s29  ;;  %v2739_v14 = vpop.permute.xlu1 %2738  ;;  %v2807_v62 = vor.u32 %v2806_v15, %v2805_v35 }
 0x3e1   : >> { %v3277_v49 = vsel %vm3248_vm10, %v3225_v32, %v2739_v14 }
 0x3e2   : >> { %v3098_v60 = vpop.permute.xlu0 %3097  ;;  %2710 = vrot.lane.b32.xlu1 %v2671_v7, %s7359_s24  ;;  %v2808_v37 = vsel %vm811_vm4, %v9693_v45, %v2807_v62  ;;  %v2809_v45 = vrot.slane %v9742_v53, 1 }
 0x3e3   : >> { %v3445_v30 = vsel %vm3248_vm10, %v3394_v57, %v3098_v60 }
 0x3e4   : >> { %2982 = vrot.lane.b32.xlu0 %v2943_v55, %s7359_s24  ;;  %3761 = vmatprep.mubr.bf16.mxu0 %v3445_v30  ;;  %v2589_v42 = vpop.permute.xlu1 %2588  ;;  %v2810_v55 = vrot.slane %v9739_v34, 2 }
 0x3e5   : >> { %3762 = vmatmul.mubr.bf16.gmra.mrb[36].mxu0 %v3277_v49  ;;  %v3184_v31 = vsel %vm322_vm0, %v9643_v13, %v2589_v42 }
 0x3e6   : >> { %v2917_v26 = vpop.permute.xlu0 %2916  ;;  %2758 = vrot.lane.b32.xlu1 %v2719_v38, %s7361_s25  ;;  %v2811_v60 = vor.u32 %v2810_v55, %v2809_v45 }
 0x3e7   : >> { %v3344_v47 = vsel %vm322_vm0, %v2808_v37, %v2917_v26 }
 0x3e8   : >> { %3117 = vrot.lane.b32.xlu0 %v3078_v21, %s7361_s25  ;;  %v2693_v19 = vpop.permute.xlu1 %2692  ;;  %v2812_v53 = vsel %vm811_vm4, %v2807_v62, %v2811_v60 }
 0x3e9   : >> { %v3227_v7 = vsel %vm3205_vm8, %v3184_v31, %v2693_v19 }
 0x3ea   : >> { %v2965_v9 = vpop.permute.xlu0 %2964  ;;  %2608 = vrot.lane.b32.xlu1 %v2567_v43, %s7360_s29 }
 0x3eb   : >> { %v3396_v6 = vsel %vm3205_vm8, %v3344_v47, %v2965_v9 }
 0x3ec   : >> { %2936 = vrot.lane.b32.xlu0 %v2894_v22, %s7360_s29  ;;  %v2741_v12 = vpop.permute.xlu1 %2740 }
 0x3ed   : >> { %v3280_v14 = vsel %vm3248_vm10, %v3227_v7, %v2741_v12 }
 0x3ee   : >> { %v3100_v32 = vpop.permute.xlu0 %3099  ;;  %2712 = vrot.lane.b32.xlu1 %v2670_v59, %s7359_s24 }
 0x3ef   : >> { %v3448_v57 = vsel %vm3248_vm10, %v3396_v6, %v3100_v32  ;;  %v2817_v32 = vrot.slane %v9808_v5, 1 }
 0x3f0   : >> { %2984 = vrot.lane.b32.xlu0 %v2942_v52, %s7359_s24  ;;  %3769 = vmatprep.mubr.bf16.mxu0 %v3448_v57  ;;  %v2591_v22 = vpop.permute.xlu1 %2590 }
 0x3f1   : >> { %3770 = vmatmul.mubr.bf16.gmra.mrb[40].mxu0 %v3280_v14  ;;  %v3186_v34 = vsel %vm322_vm0, %v9673_v0, %v2591_v22  ;;  %v2818_v14 = vrot.slane %v9805_v48, 2 }
 0x3f2   : >> { %v2919_v49 = vpop.permute.xlu0 %2918  ;;  %2760 = vrot.lane.b32.xlu1 %v2718_v40, %s7361_s25  ;;  %v2813_v40 = vrot.slane %v9775_v1, 1 }
 0x3f3   : >> { %v3347_v59 = vsel %vm322_vm0, %v2812_v53, %v2919_v49  ;;  %v2819_v57 = vor.u32 %v2818_v14, %v2817_v32 }
 0x3f4   : >> { %3119 = vrot.lane.b32.xlu0 %v3077_v27, %s7361_s25  ;;  %v2695_v35 = vpop.permute.xlu1 %2694  ;;  %v2814_v27 = vrot.slane %v9772_v36, 2 }
 0x3f5   : >> { %v3229_v52 = vsel %vm3205_vm8, %v3186_v34, %v2695_v35 }
 0x3f6   : >> { %v2967_v15 = vpop.permute.xlu0 %2966  ;;  %v2815_v26 = vor.u32 %v2814_v27, %v2813_v40 }
 0x3f7   : >> { %v3398_v8 = vsel %vm3205_vm8, %v3347_v59, %v2967_v15 }
 0x3f8   : >> { %v2743_v30 = vpop.permute.xlu1 %2742  ;;  %v2816_v37 = vsel %vm811_vm4, %v2811_v60, %v2815_v26  ;;  %v2820_v49 = vsel %vm811_vm4, %v2815_v26, %v2819_v57 }
 0x3f9   : >> { %v3283_v42 = vsel %vm3248_vm10, %v3229_v52, %v2743_v30  ;;  %v2821_v30 = vrot.slane %v9840_v2, 1 }
 0x3fa   : >> { %v3102_v38 = vpop.permute.xlu0 %3101 }
 0x3fb   : >> { %v3451_v21 = vsel %vm3248_vm10, %v3398_v8, %v3102_v38  ;;  %v2822_v8 = vrot.slane %v9837_v16, 2 }
 0x3fc   : >> { %3777 = vmatprep.mubr.bf16.mxu0 %v3451_v21  ;;  %v2593_v62 = vpop.permute.xlu1 %2592 }
 0x3fd   : >> { %3778 = vmatmul.mubr.bf16.gmra.mrb[44].mxu0 %v3283_v42  ;;  %v3188_v31 = vsel %vm322_vm0, %v9706_v50, %v2593_v62  ;;  %v2823_v40 = vor.u32 %v2822_v8, %v2821_v30 }
 0x3fe   : >> { %v2921_v43 = vpop.permute.xlu0 %2920 }
 0x3ff   : >> { %v3350_v47 = vsel %vm322_vm0, %v2816_v37, %v2921_v43  ;;  %v2824_v62 = vsel %vm811_vm4, %v2819_v57, %v2823_v40 }
 0x400   : >> { %v2697_v19 = vpop.permute.xlu1 %2696 }
 0x401   : >> { %v3231_v1 = vsel %vm3205_vm8, %v3188_v31, %v2697_v19 }
 0x402   : >> { %v2969_v9 = vpop.permute.xlu0 %2968 }
 0x403   : >> { %v3400_v36 = vsel %vm3205_vm8, %v3350_v47, %v2969_v9  ;;  %v2825_v47 = vrot.slane %v9873_v56, 1 }
 0x404   : >> { %v2745_v7 = vpop.permute.xlu1 %2744 }
 0x405   : >> { %v3286_v6 = vsel %vm3248_vm10, %v3231_v1, %v2745_v7  ;;  %v2826_v1 = vrot.slane %v9870_v33, 2 }
 0x406   : >> { %v3104_v12 = vpop.permute.xlu0 %3103 }
 0x407   : >> { %v3454_v45 = vsel %vm3248_vm10, %v3400_v36, %v3104_v12  ;;  %v2827_v12 = vor.u32 %v2826_v1, %v2825_v47 }
 0x408   : >> { %3785 = vmatprep.mubr.bf16.mxu0 %v3454_v45  ;;  %v2595_v55 = vpop.permute.xlu1 %2594 }
 0x409   : >> { %3786 = vmatmul.mubr.bf16.gmra.mrb[48].mxu0 %v3286_v6  ;;  %v3190_v53 = vsel %vm322_vm0, %v9730_v61, %v2595_v55  ;;  %v2828_v14 = vsel %vm811_vm4, %v2823_v40, %v2827_v12 }
 0x40a   : >> { %v2923_v22 = vpop.permute.xlu0 %2922 }
 0x40b   : >> { %v3353_v15 = vsel %vm322_vm0, %v2820_v49, %v2923_v22 }
 0x40c   : >> { %v2699_v60 = vpop.permute.xlu1 %2698 }
 0x40d   : >> { %v3233_v5 = vsel %vm3205_vm8, %v3190_v53, %v2699_v60  ;;  %v2830_v53 = vrot.slane %v9902_v11, 2 }
 0x40e   : >> { %v2971_v35 = vpop.permute.xlu0 %2970 }
 0x40f   : >> { %v3402_v48 = vsel %vm3205_vm8, %v3353_v15, %v2971_v35  ;;  %v2829_v35 = vrot.slane %v9905_v25, 1 }
 0x410   : >> { %v2747_v34 = vpop.permute.xlu1 %2746 }
 0x411   : >> { %v3289_v52 = vsel %vm3248_vm10, %v3233_v5, %v2747_v34  ;;  %v2831_v34 = vor.u32 %v2830_v53, %v2829_v35  ;;  %v2850_v35 = vshll.u32 %v10025_v3, 16 }
 0x412   : >> { %v3106_v59 = vpop.permute.xlu0 %3105 }
 0x413   : >> { %v3457_v38 = vsel %vm3248_vm10, %v3402_v48, %v3106_v59 }
 0x414   : >> { %3793 = vmatprep.mubr.bf16.mxu0 %v3457_v38  ;;  %v2597_v42 = vpop.permute.xlu1 %2596 }
 0x415   : >> { %3794 = vmatmul.mubr.bf16.gmra.mrb[52].mxu0 %v3289_v52  ;;  %v3192_v43 = vsel %vm322_vm0, %v9759_v23, %v2597_v42  ;;  %v2832_v52 = vsel %vm811_vm4, %v2827_v12, %v2831_v34  ;;  %v12386_v12 = vshrl.u32 %v9957_v17, 16 }
 0x416   : >> { %v2925_v27 = vpop.permute.xlu0 %2924 }
 0x417   : >> { %v3356_v19 = vsel %vm322_vm0, %v2824_v62, %v2925_v27  ;;  %v2834_v62 = vrot.slane %v9934_v4, 2 }
 0x418   : >> { %v2701_v21 = vpop.permute.xlu1 %2700 }
 0x419   : >> { %v3235_v2 = vsel %vm3205_vm8, %v3192_v43, %v2701_v21  ;;  %v2833_v21 = vrot.slane %v9937_v18, 1 }
 0x41a   : >> { %v2973_v26 = vpop.permute.xlu0 %2972 }
 0x41b   : >> { %v3404_v16 = vsel %vm3205_vm8, %v3356_v19, %v2973_v26  ;;  %v2835_v19 = vor.u32 %v2834_v62, %v2833_v21 }
 0x41c   : >> { %v2749_v37 = vpop.permute.xlu1 %2748 }
 0x41d   : >> { %v3292_v31 = vsel %vm3248_vm10, %v3235_v2, %v2749_v37 }
 0x41e   : >> { %v3108_v9 = vpop.permute.xlu0 %3107 }
 0x41f   : >> { %v3460_v7 = vsel %vm3248_vm10, %v3404_v16, %v3108_v9  ;;  %v2836_v16 = vsel %vm811_vm4, %v2831_v34, %v2835_v19 }
 0x420   : >> { %3801 = vmatprep.mubr.bf16.mxu0 %v3460_v7  ;;  %v2599_v36 = vpop.permute.xlu1 %2598 }
 0x421   : >> { %3802 = vmatmul.mubr.bf16.gmra.mrb[56].mxu0 %v3292_v31  ;;  %v3194_v55 = vsel %vm322_vm0, %v9789_v63, %v2599_v36 }
 0x422   : >> { %v2927_v6 = vpop.permute.xlu0 %2926 }
 0x423   : >> { %v3359_v57 = vsel %vm322_vm0, %v2828_v14, %v2927_v6  ;;  %v2840_v6 = vrot.slane %v12386_v12, 1 }
 0x424   : >> { %v2703_v32 = vpop.permute.xlu1 %2702 }
 0x425   : >> { %v3237_v56 = vsel %vm3205_vm8, %v3194_v55, %v2703_v32  ;;  %v12387_v32 = vshll.u32 %v9957_v17, 16 }
 0x426   : >> { %v2975_v45 = vpop.permute.xlu0 %2974 }
 0x427   : >> { %v3406_v33 = vsel %vm3205_vm8, %v3359_v57, %v2975_v45  ;;  %v2843_v14 = vrot.slane %v12387_v32, 2 }
 0x428   : >> { %v2751_v22 = vpop.permute.xlu1 %2750 }
 0x429   : >> { %v3295_v49 = vsel %vm3248_vm10, %v3237_v56, %v2751_v22  ;;  %v2844_v57 = vor.u32 %v2843_v14, %v2840_v6 }
 0x42a   : >> { %v3110_v60 = vpop.permute.xlu0 %3109 }
 0x42b   : >> { %v3463_v15 = vsel %vm3248_vm10, %v3406_v33, %v3110_v60  ;;  %v2845_v33 = vsel %vm811_vm4, %v2835_v19, %v2844_v57 }
 0x42c   : >> { %3809 = vmatprep.mubr.bf16.mxu0 %v3463_v15  ;;  %v2601_v5 = vpop.permute.xlu1 %2600 }
 0x42d   : >> { %3810 = vmatmul.mubr.bf16.gmra.mrb[60].mxu0 %v3295_v49  ;;  %v3196_v8 = vsel %vm322_vm0, %v9825_v51, %v2601_v5  ;;  %v2847_v49 = vshrl.u32 %v10025_v3, 16 }
 0x42e   : >> { %v2929_v48 = vpop.permute.xlu0 %2928 }
 0x42f   : >> { %v3362_v38 = vsel %vm322_vm0, %v2832_v52, %v2929_v48 }
 0x430   : >> { %v2705_v59 = vpop.permute.xlu1 %2704 }
 0x431   : >> { %v3239_v25 = vsel %vm3205_vm8, %v3196_v8, %v2705_v59  ;;  %v2852_v8 = vrot.slane %v2850_v35, 2 }
 0x432   : >> { %v2977_v30 = vpop.permute.xlu0 %2976 }
 0x433   : >> { %v3408_v11 = vsel %vm3205_vm8, %v3362_v38, %v2977_v30  ;;  %v2849_v30 = vrot.slane %v2847_v49, 1 }
 0x434   : >> { %v2753_v42 = vpop.permute.xlu1 %2752 }
 0x435   : >> { %v3298_v27 = vsel %vm3248_vm10, %v3239_v25, %v2753_v42  ;;  %v2853_v25 = vor.u32 %v2852_v8, %v2849_v30  ;;  %v3141_v30 = vrot.slane %v9706_v50, 3  ;;  %v3143_v8 = vrot.slane %v9730_v61, 3 }
 0x436   : >> { %v3112_v40 = vpop.permute.xlu0 %3111 }
 0x437   : >> { %v3466_v26 = vsel %vm3248_vm10, %v3408_v11, %v3112_v40  ;;  %v2854_v40 = vsel %vm811_vm4, %v2844_v57, %v2853_v25  ;;  %v12388_v57 = vld [vmem:[#allocation50_spill] sm:$0xff] }
 0x438   : >> { %3817 = vmatprep.mubr.bf16.mxu0 %v3466_v26  ;;  %v2603_v43 = vpop.permute.xlu1 %2602 }
 0x439   : >> { %3818 = vmatmul.mubr.bf16.gmra.mrb[64].mxu0 %v3298_v27  ;;  %v3198_v31 = vsel %vm322_vm0, %v9857_v44, %v2603_v43 }
 0x43a   : >> { %v2931_v2 = vpop.permute.xlu0 %2930 }
 0x43b   : >> { %v3365_v47 = vsel %vm322_vm0, %v2836_v16, %v2931_v2 }
 0x43c   : >> { %v2707_v37 = vpop.permute.xlu1 %2706 }
 0x43d   : >> { %v3241_v18 = vsel %vm3205_vm8, %v3198_v31, %v2707_v37 }
 0x43e   : >> { %v2979_v9 = vpop.permute.xlu0 %2978 }
 0x43f   : >> { %v3410_v4 = vsel %vm3205_vm8, %v3365_v47, %v2979_v9 }
 0x440   : >> { %v2755_v1 = vpop.permute.xlu1 %2754 }
 0x441   : >> { %v3301_v36 = vsel %vm3248_vm10, %v3241_v18, %v2755_v1 }
 0x442   : >> { %v3114_v7 = vpop.permute.xlu0 %3113 }
 0x443   : >> { %v3469_v45 = vsel %vm3248_vm10, %v3410_v4, %v3114_v7 }
 0x444   : >> { %3825 = vmatprep.mubr.bf16.mxu0 %v3469_v45  ;;  %v2605_v55 = vpop.permute.xlu1 %2604  ;;  %v3123_v45 = vrot.slane %v9370_v20, 3 }
 0x445   : >> { %3826 = vmatmul.mubr.bf16.gmra.mrb[68].mxu0 %v3301_v36  ;;  %v3200_v53 = vsel %vm322_vm0, %v9886_v39, %v2605_v55 }
 0x446   : >> { %v2933_v56 = vpop.permute.xlu0 %2932 }
 0x447   : >> { %v3368_v15 = vsel %vm322_vm0, %v2845_v33, %v2933_v56  ;;  %v3125_v56 = vrot.slane %v12388_v57, 3  ;;  %v12389_v33 = vld [vmem:[#allocation51_spill] sm:$0xff] }
 0x448   : >> { %v2709_v22 = vpop.permute.xlu1 %2708 }
 0x449   : >> { %v3243_v5 = vsel %vm3205_vm8, %v3200_v53, %v2709_v22  ;;  %v3126_v22 = vsel %vm1216_vm9, %v3123_v45, %v3125_v56  ;;  %v3131_v53 = vrot.slane %v9514_v24, 3 }
 0x44a   : >> { %v2981_v60 = vpop.permute.xlu0 %2980 }
 0x44b   : >> { %v3412_v48 = vsel %vm3205_vm8, %v3368_v15, %v2981_v60  ;;  %v12390_v60 = vld [vmem:[#allocation52_spill] sm:$0xff] }
 0x44c   : >> { %v2757_v34 = vpop.permute.xlu1 %2756  ;;  %v3129_v49 = vrot.slane %v12390_v60, 3  ;;  %v7253_v60 = vld [vmem:[%s9413_s8 + $0xd8] sm:$0xff]  }
 0x44d   : >> { %v3304_v52 = vsel %vm3248_vm10, %v3243_v5, %v2757_v34  ;;  %v3133_v5 = vrot.slane %v9560_v29, 3 }
 0x44e   : >> { %v3116_v59 = vpop.permute.xlu0 %3115  ;;  %v3132_v15 = vsel %vm1216_vm9, %v3129_v49, %v3131_v53 }
 0x44f   : >> { %v3472_v38 = vsel %vm3248_vm10, %v3412_v48, %v3116_v59  ;;  %v3134_v34 = vsel %vm1216_vm9, %v3131_v53, %v3133_v5  ;;  %v3135_v48 = vrot.slane %v9607_v54, 3  ;;  %v3137_v59 = vrot.slane %v9643_v13, 3 }
 0x450   : >> { %3833 = vmatprep.mubr.bf16.mxu0 %v3472_v38  ;;  %v2607_v3 = vpop.permute.xlu1 %2606  ;;  %v3145_v38 = vrot.slane %v9759_v23, 3 }
 0x451   : >> { %3834 = vmatmul.mubr.bf16.gmra.mrb[72].mxu0 %v3304_v52  ;;  %v3202_v21 = vsel %vm322_vm0, %v9922_v46, %v2607_v3  ;;  %v3136_v24 = vsel %vm1216_vm9, %v3133_v5, %v3135_v48  ;;  %v3138_v29 = vsel %vm1216_vm9, %v3135_v48, %v3137_v59  ;;  %v3139_v52 = vrot.slane %v9673_v0, 3 }
 0x452   : >> { %v2935_v42 = vpop.permute.xlu0 %2934  ;;  %v3144_v0 = vsel %vm1216_vm9, %v3141_v30, %v3143_v8  ;;  %v3146_v50 = vsel %vm1216_vm9, %v3143_v8, %v3145_v38  ;;  %v3147_v3 = vrot.slane %v9789_v63, 3  ;;  %v10333_v8 = vld [vmem:[#allocation2 + $0x2b] sm:$0xff] }
 0x453   : >> { %v3371_v62 = vsel %vm322_vm0, %v2854_v40, %v2935_v42  ;;  %v3140_v54 = vsel %vm1216_vm9, %v3137_v59, %v3139_v52  ;;  %v3142_v13 = vsel %vm1216_vm9, %v3139_v52, %v3141_v30  ;;  %v3151_v42 = vrot.slane %v9857_v44, 3  ;;  %v7254_v59 = vld [vmem:[%s9413_s8 + $0xe0] sm:$0xff]  }
 0x454   : >> { %v2711_v11 = vpop.permute.xlu1 %2710  ;;  %v3148_v61 = vsel %vm1216_vm9, %v3145_v38, %v3147_v3  ;;  %v3155_v40 = vrot.slane %v9922_v46, 3 }
 0x455   : >> { %v3245_v26 = vsel %vm3205_vm8, %v3202_v21, %v2711_v11  ;;  %v3153_v11 = vrot.slane %v9886_v39, 3  ;;  %v12391_v21 = vld [vmem:[#allocation53_spill] sm:$0xff] }
 0x456   : >> { %v2983_v27 = vpop.permute.xlu0 %2982  ;;  %v3159_v46 = vrot.slane %v12391_v21, 3  ;;  %12399 = vst [vmem:[#allocation53_spill] sm:$0xff] %v10333_v8 }
 0x457   : >> { %v3414_v19 = vsel %vm3205_vm8, %v3371_v62, %v2983_v27  ;;  %v3156_v44 = vsel %vm1216_vm9, %v3153_v11, %v3155_v40  ;;  %v3157_v27 = vrot.slane %v9957_v17, 3  ;;  %v3161_v17 = vrot.slane %v10027_v41, 3  ;;  %v7246_v41 = vld [vmem:[%s9413_s8 + $0xa0] sm:$0xff]  }
 0x458   : >> { %v2759_v43 = vpop.permute.xlu1 %2758 }
 0x459   : >> { %v3307_v37 = vsel %vm3248_vm10, %v3245_v26, %v2759_v43  ;;  %v3158_v39 = vsel %vm1216_vm9, %v3155_v40, %v3157_v27  ;;  %v3160_v62 = vsel %vm1216_vm9, %v3157_v27, %v3159_v46  ;;  %v3162_v26 = vsel %vm1216_vm9, %v3159_v46, %v3161_v17  ;;  %v7244_v43 = vld [vmem:[%s9413_s8 + $0x90] sm:$0xff]  }
 0x45a   : >> { %v3118_v2 = vpop.permute.xlu0 %3117  ;;  %5549 = vmatpush1.bf16.msra.mxu1 %v7244_v43 }
 0x45b   : >> { %v3475_v16 = vsel %vm3248_vm10, %v3414_v19, %v3118_v2  ;;  %v12392_v19 = vmov 0   ;;  %v7245_v2 = vld [vmem:[%s9413_s8 + $0x98] sm:$0xff]  }
 0x45c   : >> { %3841 = vmatprep.mubr.bf16.mxu0 %v3475_v16  ;;  %v2609_v9 = vpop.permute.xlu1 %2608  ;;  %5550 = vmatprep.subr.bf16.mxu1 %v12392_v19  ;;  %v7248_v16 = vld [vmem:[%s9413_s8 + $0xb0] sm:$0xff]  }
 0x45d   : >> { %3842 = vmatmul.mubr.bf16.gmra.mrb[76].mxu0 %v3307_v37  ;;  %v3204_v1 = vsel %vm322_vm0, %v10012_v28, %v2609_v9  ;;  %v3122_v28 = vrot.slane %v9366_v10, 3  ;;  %v3127_v10 = vrot.slane %v12389_v33, 3  ;;  %v7247_v37 = vld [vmem:[%s9413_s8 + $0xa8] sm:$0xff]   ;;  %v7249_v9 = vld [vmem:[%s9413_s8 + $0xb8] sm:$0xff]  }
 0x45e   : >> { %v2937_v31 = vpop.permute.xlu0 %2936  ;;  %5551 = vmatpush1.bf16.msra.mxu1 %v7245_v2  ;;  %v10316_v33 = vld [vmem:[#allocation2 + $0x1b] sm:$0xff] }
 0x45f   : >> { %v3374_v4 = vsel %vm322_vm0, %v2853_v25, %v2937_v31  ;;  %v3124_v55 = vsel %vm1216_vm9, %v3122_v28, %v3123_v45  ;;  %v3128_v20 = vsel %vm1216_vm9, %v3125_v56, %v3127_v10  ;;  %v3130_v35 = vsel %vm1216_vm9, %v3127_v10, %v3129_v49  ;;  %5552 = vmatprep.subr.bf16.mxu1 %v12392_v19  ;;  %v7250_v31 = vld [vmem:[%s9413_s8 + $0xc0] sm:$0xff]   ;;  %v10313_v28 = vld [vmem:[#allocation2 + $0x13] sm:$0xff] }
 0x460   : >> { %v2713_v47 = vpop.permute.xlu1 %2712  ;;  %v3149_v25 = vrot.slane %v9825_v51, 3  ;;  %v3154_v51 = vsel %vm1216_vm9, %v3151_v42, %v3153_v11  ;;  %12393 = vst [vmem:[#allocation50_spill] sm:$0xff] %v10313_v28  ;;  %v12394_v45 = vld [vmem:[#allocation35_spill] sm:$0xff]  ;;  %v4180_v56 = vld [vmem:[#allocation2] sm:$0xff]  ;;  %12395 = vst [vmem:[#allocation51_spill] sm:$0xff] %v10316_v33 }
 0x461   : >> { %v3247_v7 = vsel %vm3205_vm8, %v3204_v1, %v2713_v47  ;;  %v10305_v47 = vld [vmem:[%s10302_s28] ss:$0 sm:$0xff]  ;;  %v12396_v10 = vld [vmem:[#allocation27_spill] sm:$0xff]  ;;  %v12402_v2 = vld [vmem:[#allocation32_spill] sm:$0xff] }
 0x462   : >> { %v2985_v18 = vpop.permute.xlu0 %2984  ;;  %v3150_v23 = vsel %vm1216_vm9, %v3147_v3, %v3149_v25  ;;  %v3152_v63 = vsel %vm1216_vm9, %v3149_v25, %v3151_v42  ;;  %5553 = vmatpush1.bf16.msra.mxu1 %v7246_v41 }
 0x463   : >> { %v3416_v12 = vsel %vm3205_vm8, %v3374_v4, %v2985_v18  ;;  %5554 = vmatprep.subr.bf16.mxu1 %v12392_v19  ;;  %v7251_v18 = vld [vmem:[%s9413_s8 + $0xc8] sm:$0xff]  }
 0x464   : >> { %v2761_v36 = vpop.permute.xlu1 %2760 }
 0x465   : >> { %v3310_v32 = vsel %vm3248_vm10, %v3247_v7, %v2761_v36 }
 0x466   : >> { %v3120_v6 = vpop.permute.xlu0 %3119  ;;  %5555 = vmatpush1.bf16.msra.mxu1 %v7247_v37 }
 0x467   : >> { %v3478_v14 = vsel %vm3248_vm10, %v3416_v12, %v3120_v6  ;;  %5556 = vmatprep.subr.bf16.mxu1 %v12392_v19 }
 0x468   : >> { %3849 = vmatprep.mubr.bf16.mxu0 %v3478_v14  ;;  %v7252_v14 = vld [vmem:[%s9413_s8 + $0xd0] sm:$0xff]  }
 0x469   : >> { %3850 = vmatmul.mubr.bf16.gmra.mrb[80].mxu0 %v3310_v32 }
 0x46a   : >> { %6860 = vmatprep.mubr.msk.bf16.mxu0 %vm7363_vm11, %v12384_v58  ;;  %5557 = vmatpush1.bf16.msra.mxu1 %v7248_v16 }
 0x46b   : >> { %5558 = vmatprep.subr.bf16.mxu1 %v12392_v19 }
 0x46e   : >> { %5559 = vmatpush1.bf16.msra.mxu1 %v7249_v9 }
 0x46f   : >> { %5560 = vmatprep.subr.bf16.mxu1 %v12392_v19 }
 0x471   : >> { %6861 = vmatmul.mubr.msk.bf16.vlgmr.msra.gmra.mrb[0].mxu0 %vm322_vm0, %v3124_v55 }
 0x472   : >> { %6864 = vmatprep.mubr.msk.bf16.mxu0 %vm7363_vm11, %v12384_v58  ;;  %5561 = vmatpush1.bf16.msra.mxu1 %v7250_v31  ;;  %v7256_v31 = vld [vmem:[%s9413_s8 + $0xf0] sm:$0xff]  }
 0x473   : >> { %5562 = vmatprep.subr.bf16.mxu1 %v12392_v19 }
 0x476   : >> { %5563 = vmatpush1.bf16.msra.mxu1 %v7251_v18  ;;  %v10357_v18 = vld [vmem:[#allocation2 + $0x3b] sm:$0xff] }
 0x477   : >> { %5564 = vmatprep.subr.bf16.mxu1 %v12392_v19  ;;  %12403 = vst [vmem:[#allocation55_spill] sm:$0xff] %v10357_v18 }
 0x479   : >> { %6865 = vmatmul.mubr.msk.bf16.gmra.mrb[4].mxu0 %vm322_vm0, %v3126_v22  ;;  %v4181_v22 = vld [vmem:[#allocation2 + $0x8] sm:$0xff] }
 0x47a   : >> { %6868 = vmatprep.mubr.msk.bf16.mxu0 %vm7363_vm11, %v12384_v58  ;;  %5565 = vmatpush1.bf16.msra.mxu1 %v7252_v14 }
 0x47b   : >> { %5566 = vmatprep.subr.bf16.mxu1 %v12392_v19 }
 0x47e   : >> { %5567 = vmatpush1.bf16.msra.mxu1 %v7253_v60 }
 0x47f   : >> { %5568 = vmatprep.subr.bf16.mxu1 %v12392_v19 }
 0x481   : >> { %6869 = vmatmul.mubr.msk.bf16.gmra.mrb[8].mxu0 %vm322_vm0, %v3128_v20 }
 0x482   : >> { %6872 = vmatprep.mubr.msk.bf16.mxu0 %vm7363_vm11, %v12384_v58  ;;  %5569 = vmatpush1.bf16.msra.mxu1 %v7254_v59 }
 0x483   : >> { %5570 = vmatprep.subr.bf16.mxu1 %v12392_v19 }
 0x489   : >> { %6873 = vmatmul.mubr.msk.bf16.gmra.mrb[12].mxu0 %vm322_vm0, %v3130_v35  ;;  %v10322_v35 = vpack.c.bf16 %v4181_v22, %v4180_v56 }
 0x48a   : >> { %6876 = vmatprep.mubr.msk.bf16.mxu0 %vm7363_vm11, %v12384_v58 }
 0x48b   : >> { %v4297_v52 = vshll.u32 %v10322_v35, 16  ;;  %v4524_v40 = vrot.slane %v10322_v35, 1 }
 0x48d   : >> { %v4299_v42 = vrot.slane %v4297_v52, 1 }
 0x491   : >> { %6877 = vmatmul.mubr.msk.bf16.gmra.mrb[16].mxu0 %vm322_vm0, %v3132_v15 }
 0x492   : >> { %6880 = vmatprep.mubr.msk.bf16.mxu0 %vm7363_vm11, %v12384_v58 }
 0x499   : >> { %6881 = vmatmul.mubr.msk.bf16.gmra.mrb[20].mxu0 %vm322_vm0, %v3134_v34 }
 0x49a   : >> { %6884 = vmatprep.mubr.msk.bf16.mxu0 %vm7363_vm11, %v12384_v58 }
 0x4a1   : >> { %6885 = vmatmul.mubr.msk.bf16.gmra.mrb[24].mxu0 %vm322_vm0, %v3136_v24 }
 0x4a2   : >> { %6888 = vmatprep.mubr.msk.bf16.mxu0 %vm7363_vm11, %v12384_v58 }
 0x4a9   : >> { %6889 = vmatmul.mubr.msk.bf16.gmra.mrb[28].mxu0 %vm322_vm0, %v3138_v29  ;;  %v10329_v29 = vld [vmem:[#allocation2 + $0x23] sm:$0xff] }
 0x4aa   : >> { %6892 = vmatprep.mubr.msk.bf16.mxu0 %vm7363_vm11, %v12384_v58  ;;  %12397 = vst [vmem:[#allocation52_spill] sm:$0xff] %v10329_v29  ;;  %v10930_v29 = vld [vmem:[#allocation2 + $0x113] sm:$0xff] }
 0x4ab   : >> { %12496 = vst [vmem:[#allocation94_spill] sm:$0xff] %v10930_v29 }
 0x4b1   : >> { %6893 = vmatmul.mubr.msk.bf16.gmra.mrb[32].mxu0 %vm322_vm0, %v3140_v54  ;;  %v12398_v54 = vld [vmem:[#allocation17_spill] sm:$0xff] }
 0x4b2   : >> { %6896 = vmatprep.mubr.msk.bf16.mxu0 %vm7363_vm11, %v12384_v58 }
 0x4b9   : >> { %6897 = vmatmul.mubr.msk.bf16.gmra.mrb[36].mxu0 %vm322_vm0, %v3142_v13 }
 0x4ba   : >> { %6900 = vmatprep.mubr.msk.bf16.mxu0 %vm7363_vm11, %v12384_v58 }
 0x4c1   : >> { %6901 = vmatmul.mubr.msk.bf16.gmra.mrb[40].mxu0 %vm322_vm0, %v3144_v0  ;;  %v12400_v0 = vld [vmem:[#allocation13_spill] sm:$0xff] }
 0x4c2   : >> { %6904 = vmatprep.mubr.msk.bf16.mxu0 %vm7363_vm11, %v12384_v58 }
 0x4c9   : >> { %6905 = vmatmul.mubr.msk.bf16.gmra.mrb[44].mxu0 %vm322_vm0, %v3146_v50  ;;  %v7255_v50 = vld [vmem:[%s9413_s8 + $0xe8] sm:$0xff]  }
 0x4ca   : >> { %6908 = vmatprep.mubr.msk.bf16.mxu0 %vm7363_vm11, %v12384_v58  ;;  %5571 = vmatpush1.bf16.msra.mxu1 %v7255_v50 }
 0x4cb   : >> { %5572 = vmatprep.subr.bf16.mxu1 %v12392_v19 }
 0x4ce   : >> { %5573 = vmatpush1.bf16.msra.mxu1 %v7256_v31 }
 0x4cf   : >> { %5574 = vmatprep.subr.bf16.mxu1 %v12392_v19 }
 0x4d1   : >> { %6909 = vmatmul.mubr.msk.bf16.gmra.mrb[48].mxu0 %vm322_vm0, %v3148_v61 }
 0x4d2   : >> { %6912 = vmatprep.mubr.msk.bf16.mxu0 %vm7363_vm11, %v12384_v58 }
 0x4d9   : >> { %6913 = vmatmul.mubr.msk.bf16.gmra.mrb[52].mxu0 %vm322_vm0, %v3150_v23  ;;  %v4295_v23 = vshrl.u32 %v10322_v35, 16 }
 0x4da   : >> { %6916 = vmatprep.mubr.msk.bf16.mxu0 %vm7363_vm11, %v12384_v58 }
 0x4e1   : >> { %6917 = vmatmul.mubr.msk.bf16.gmra.mrb[56].mxu0 %vm322_vm0, %v3152_v63 }
 0x4e2   : >> { %6920 = vmatprep.mubr.msk.bf16.mxu0 %vm7363_vm11, %v12384_v58 }
 0x4e9   : >> { %6921 = vmatmul.mubr.msk.bf16.gmra.mrb[60].mxu0 %vm322_vm0, %v3154_v51 }
 0x4ea   : >> { %6924 = vmatprep.mubr.msk.bf16.mxu0 %vm7363_vm11, %v12384_v58 }
 0x4f1   : >> { %6925 = vmatmul.mubr.msk.bf16.gmra.mrb[64].mxu0 %vm322_vm0, %v3156_v44 }
 0x4f2   : >> { %6928 = vmatprep.mubr.msk.bf16.mxu0 %vm7363_vm11, %v12384_v58 }
 0x4f9   : >> { %6929 = vmatmul.mubr.msk.bf16.gmra.mrb[68].mxu0 %vm322_vm0, %v3158_v39 }
 0x4fa   : >> { %6932 = vmatprep.mubr.msk.bf16.mxu0 %vm7363_vm11, %v12384_v58 }
 0x501   : >> { %6933 = vmatmul.mubr.msk.bf16.gmra.mrb[72].mxu0 %vm322_vm0, %v3160_v62 }
 0x502   : >> { %6936 = vmatprep.mubr.msk.bf16.mxu0 %vm7363_vm11, %v12384_v58 }
 0x509   : >> { %6937 = vmatmul.mubr.msk.bf16.gmra.mrb[76].mxu0 %vm322_vm0, %v3162_v26  ;;  %v4300_v26 = vor.u32 %v4299_v42, %v4295_v23  ;;  %v12409_v42 = vld [vmem:[#allocation14_spill] sm:$0xff] }
 0x50a   : >> { %6940 = vmatprep.mubr.msk.bf16.mxu0 %vm7363_vm11, %v12384_v58 }
 0x511   : >> { %6941 = vmatmul.mubr.msk.bf16.gmra.mrb[80].mxu0 %vm322_vm0, %v3161_v17  ;;  %v10349_v17 = vld [vmem:[#allocation2 + $0x33] sm:$0xff] }
 0x512   : >> { %12401 = vst [vmem:[#allocation54_spill] sm:$0xff] %v10349_v17 }
 0x544   : >> { %v3891_v1 = vpop.f32.mrb[0].mxu0 }
 0x545   : >> { %v7038_v4 = vadd.f32 %v10305_v47, %v3891_v1  ;;  %v6862_v7 = vpop.f32.mrb[1].mxu0 }
 0x546   : >> { %v3894_v36 = vpop.f32.mrb[2].mxu0  ;;  %v12404_v7 = vld [vmem:[#allocation28_spill] sm:$0xff] }
 0x547   : >> { %v4057_v12 = vmax.f32 %v7038_v4, 0.0  ;;  %v7039_v6 = vadd.f32 %v10305_v47, %v3894_v36  ;;  %v6863_v32 = vpop.f32.mrb[3].mxu0 }
 0x549   : >> { %v4098_v55 = vmul.f32 %v4057_v12, %v12394_v45  ;;  %v4058_v57 = vmax.f32 %v7039_v6, 0.0 }
 0x54b   : >> { %4139 = vst.msk [vmem:[#allocation2 + $0x13] sm:$0xff] %vm322_vm0, %v4098_v55  ;;  %v4099_v20 = vmul.f32 %v4058_v57, %v12396_v10 }
 0x54c   : >> { %v3899_v49 = vpop.f32.mrb[4].mxu0 }
 0x54d   : >> { %4140 = vst.msk [vmem:[#allocation2 + $0x1b] sm:$0xff] %vm322_vm0, %v4099_v20  ;;  %v7040_v53 = vadd.f32 %v10305_v47, %v3899_v49  ;;  %v6866_v15 = vpop.f32.mrb[5].mxu0  ;;  %v7257_v20 = vld [vmem:[%s9413_s8 + $0xf8] sm:$0xff]  }
 0x54e   : >> { %v3902_v5 = vpop.f32.mrb[6].mxu0  ;;  %5575 = vmatpush1.bf16.msra.mxu1 %v7257_v20 }
 0x54f   : >> { %v4059_v34 = vmax.f32 %v7040_v53, 0.0  ;;  %v7041_v48 = vadd.f32 %v10305_v47, %v3902_v5  ;;  %v6867_v24 = vpop.f32.mrb[7].mxu0  ;;  %5576 = vmatprep.subr.bf16.mxu1 %v12392_v19 }
 0x550   : >> { %v10383_v24 = vld [vmem:[#allocation2 + $0x43] sm:$0xff] }
 0x551   : >> { %v4100_v30 = vmul.f32 %v4059_v34, %v12398_v54  ;;  %v4060_v13 = vmax.f32 %v7041_v48, 0.0  ;;  %12406 = vst [vmem:[#allocation57_spill] sm:$0xff] %v10383_v24  ;;  %v10798_v24 = vld [vmem:[#allocation2 + $0xe3] sm:$0xff] }
 0x552   : >> { %v4182_v61 = vld [vmem:[#allocation2 + $0x10] sm:$0xff]  ;;  %12471 = vst [vmem:[#allocation84_spill] sm:$0xff] %v10798_v24 }
 0x553   : >> { %4141 = vst.msk [vmem:[#allocation2 + $0x23] sm:$0xff] %vm322_vm0, %v4100_v30  ;;  %v4101_v38 = vmul.f32 %v4060_v13, %v12400_v0  ;;  %v12407_v30 = vld [vmem:[#allocation15_spill] sm:$0xff] }
 0x554   : >> { %v3907_v3 = vpop.f32.mrb[8].mxu0  ;;  %v4183_v25 = vld [vmem:[#allocation2 + $0x18] sm:$0xff] }
 0x555   : >> { %4142 = vst.msk [vmem:[#allocation2 + $0x2b] sm:$0xff] %vm322_vm0, %v4101_v38  ;;  %v7042_v63 = vadd.f32 %v10305_v47, %v3907_v3  ;;  %v6870_v11 = vpop.f32.mrb[9].mxu0  ;;  %v10342_v51 = vpack.c.bf16 %v4183_v25, %v4182_v61  ;;  %v7258_v61 = vld [vmem:[%s9413_s8 + $0x100] sm:$0xff]   ;;  %v10396_v25 = vld [vmem:[#allocation2 + $0x4b] sm:$0xff] }
 0x556   : >> { %v3910_v44 = vpop.f32.mrb[10].mxu0  ;;  %12408 = vst [vmem:[#allocation58_spill] sm:$0xff] %v10396_v25  ;;  %5577 = vmatpush1.bf16.msra.mxu1 %v7258_v61 }
 0x557   : >> { %v4061_v27 = vmax.f32 %v7042_v63, 0.0  ;;  %v7043_v39 = vadd.f32 %v10305_v47, %v3910_v44  ;;  %v6871_v21 = vpop.f32.mrb[11].mxu0  ;;  %v4525_v46 = vrot.slane %v10342_v51, 1  ;;  %v4302_v62 = vshll.u32 %v10342_v51, 16  ;;  %5578 = vmatprep.subr.bf16.mxu1 %v12392_v19 }
 0x558   : >> { %v4306_v43 = vshrl.u32 %v10342_v51, 16  ;;  %v4748_v49 = vrot.slane %v10342_v51, 2 }
 0x559   : >> { %v4102_v41 = vmul.f32 %v4061_v27, %v12402_v2  ;;  %v4062_v37 = vmax.f32 %v7043_v39, 0.0  ;;  %v4526_v16 = vsel %vm679_vm3, %v4524_v40, %v4525_v46  ;;  %v10354_v9 = vrot.slane %v4302_v62, 1 }
 0x55a   : >> { %4565 = vrot.lane.b32.xlu1 %v4526_v16, %s7359_s24  ;;  %v10362_v1 = vrot.slane %v4306_v43, 1  ;;  %v10364_v4 = vrot.slane %v4302_v62, 2  ;;  %v4184_v6 = vld [vmem:[#allocation2 + $0x20] sm:$0xff] }
 0x55b   : >> { %4143 = vst.msk [vmem:[#allocation2 + $0x33] sm:$0xff] %vm322_vm0, %v4102_v41  ;;  %v4103_v36 = vmul.f32 %v4062_v37, %v12404_v7  ;;  %v4305_v56 = vsel %vm448_vm2, %v4300_v26, %v10354_v9  ;;  %v7259_v41 = vld [vmem:[%s9413_s8 + $0x108] sm:$0xff]  }
 0x55c   : >> { %v3915_v12 = vpop.f32.mrb[12].mxu0  ;;  %v4185_v32 = vld [vmem:[#allocation2 + $0x28] sm:$0xff]  ;;  %v4657_v14 = vor.u32 %v10364_v4, %v10362_v1  ;;  %v4308_v4 = vor.u32 %v4306_v43, %v10354_v9  ;;  %5579 = vmatpush1.bf16.msra.mxu1 %v7259_v41 }
 0x55d   : >> { %4144 = vst.msk [vmem:[#allocation2 + $0x3b] sm:$0xff] %vm322_vm0, %v4103_v36  ;;  %v7044_v55 = vadd.f32 %v10305_v47, %v3915_v12  ;;  %v6874_v57 = vpop.f32.mrb[13].mxu0  ;;  %v10375_v22 = vpack.c.bf16 %v4185_v32, %v4184_v6  ;;  %v10417_v36 = vld [vmem:[#allocation2 + $0x53] sm:$0xff]  ;;  %6944 = vmatprep.subr.bf16.mxu1 %v12384_v58 }
 0x55e   : >> { %v3918_v60 = vpop.f32.mrb[14].mxu0  ;;  %4461 = vrot.lane.b32.xlu1 %v4305_v56, %s7360_s29  ;;  %12410 = vst [vmem:[#allocation59_spill] sm:$0xff] %v10417_v36  ;;  %v12411_v57 = vld [vmem:[#allocation31_spill] sm:$0xff] }
 0x55f   : >> { %12405 = vst [vmem:[#allocation56_spill] sm:$0xff] %v10375_v22  ;;  %v4063_v53 = vmax.f32 %v7044_v55, 0.0  ;;  %v7045_v15 = vadd.f32 %v10305_v47, %v3918_v60  ;;  %v6875_v5 = vpop.f32.mrb[15].mxu0  ;;  %v4749_v34 = vrot.slane %v10375_v22, 2  ;;  %v4527_v48 = vrot.slane %v10375_v22, 1  ;;  %v10433_v60 = vld [vmem:[#allocation2 + $0x5b] sm:$0xff] }
 0x560   : >> { %v10386_v59 = vshll.u32 %v10375_v22, 16  ;;  %v10389_v52 = vshrl.u32 %v10375_v22, 16  ;;  %12412 = vst [vmem:[#allocation60_spill] sm:$0xff] %v10433_v60 }
 0x561   : >> { %v4104_v13 = vmul.f32 %v4063_v53, %v12407_v30  ;;  %v4064_v38 = vmax.f32 %v7045_v15, 0.0  ;;  %v4750_v50 = vsel %vm947_vm7, %v4748_v49, %v4749_v34  ;;  %v4528_v3 = vsel %vm679_vm3, %v4525_v46, %v4527_v48  ;;  %v12413_v15 = vld [vmem:[#allocation30_spill] sm:$0xff] }
 0x562   : >> { %4789 = vrot.lane.b32.xlu0 %v4750_v50, %s7360_s29  ;;  %4613 = vrot.lane.b32.xlu1 %v4528_v3, %s7361_s25  ;;  %v4658_v23 = vrot.slane %v10389_v52, 1  ;;  %v4659_v11 = vrot.slane %v10386_v59, 2  ;;  %v4186_v44 = vld [vmem:[#allocation2 + $0x30] sm:$0xff]  ;;  %v4312_v62 = vrot.slane %v10386_v59, 1 }
 0x563   : >> { %4145 = vst.msk [vmem:[#allocation2 + $0x43] sm:$0xff] %vm322_vm0, %v4104_v13  ;;  %v4105_v63 = vmul.f32 %v4064_v38, %v12409_v42  ;;  %v4880_v13 = vrot.slane %v10386_v59, 3 }
 0x564   : >> { %v3923_v40 = vpop.f32.mrb[16].mxu0  ;;  %v4187_v27 = vld [vmem:[#allocation2 + $0x38] sm:$0xff]  ;;  %v4660_v26 = vor.u32 %v4659_v11, %v4658_v23  ;;  %v4313_v9 = vsel %vm448_vm2, %v4308_v4, %v4312_v62 }
 0x565   : >> { %4146 = vst.msk [vmem:[#allocation2 + $0x4b] sm:$0xff] %vm322_vm0, %v4105_v63  ;;  %v7046_v39 = vadd.f32 %v10305_v47, %v3923_v40  ;;  %v6878_v21 = vpop.f32.mrb[17].mxu0  ;;  %v10407_v46 = vpack.c.bf16 %v4187_v27, %v4186_v44 }
 0x566   : >> { %v3926_v37 = vpop.f32.mrb[18].mxu0  ;;  %4567 = vrot.lane.b32.xlu1 %v4528_v3, %s7359_s24  ;;  %v10427_v55 = vsel %vm811_vm4, %v4657_v14, %v4660_v26 }
 0x567   : >> { %v4065_v16 = vmax.f32 %v7046_v39, 0.0  ;;  %v7047_v31 = vadd.f32 %v10305_v47, %v3926_v37  ;;  %v6879_v1 = vpop.f32.mrb[19].mxu0  ;;  %v4751_v19 = vrot.slane %v10407_v46, 2  ;;  %v4529_v12 = vrot.slane %v10407_v46, 1 }
 0x568   : >> { %v10421_v6 = vshll.u32 %v10407_v46, 16  ;;  %v10424_v32 = vshrl.u32 %v10407_v46, 16 }
 0x569   : >> { %v4106_v56 = vmul.f32 %v4065_v16, %v12411_v57  ;;  %v4066_v20 = vmax.f32 %v7047_v31, 0.0  ;;  %v4752_v43 = vsel %vm947_vm7, %v4749_v34, %v4751_v19  ;;  %v4879_v34 = vrot.slane %v10389_v52, 2  ;;  %v10458_v16 = vld [vmem:[#allocation2 + $0x63] sm:$0xff] }
 0x56a   : >> { %4837 = vrot.lane.b32.xlu0 %v4752_v43, %s7359_s24  ;;  %4463 = vrot.lane.b32.xlu1 %v4313_v9, %s7360_s29  ;;  %v4882_v49 = vrot.slane %v10424_v32, 2  ;;  %v4883_v14 = vrot.slane %v10421_v6, 3  ;;  %v4662_v53 = vrot.slane %v10424_v32, 1  ;;  %v4663_v38 = vrot.slane %v10421_v6, 2  ;;  %v4188_v61 = vld [vmem:[#allocation2 + $0x40] sm:$0xff]  ;;  %12414 = vst [vmem:[#allocation61_spill] sm:$0xff] %v10458_v16 }
 0x56b   : >> { %4147 = vst.msk [vmem:[#allocation2 + $0x53] sm:$0xff] %vm322_vm0, %v4106_v56  ;;  %v4107_v5 = vmul.f32 %v4066_v20, %v12413_v15  ;;  %v4530_v3 = vsel %vm679_vm3, %v4527_v48, %v4529_v12  ;;  %v4881_v41 = vor.u32 %v4880_v13, %v4879_v34  ;;  %v4320_v37 = vrot.slane %v10421_v6, 1  ;;  %v12415_v20 = vld [vmem:[#allocation11_spill] sm:$0xff] }
 0x56c   : >> { %v3931_v50 = vpop.f32.mrb[20].mxu0  ;;  %v4189_v23 = vld [vmem:[#allocation2 + $0x48] sm:$0xff]  ;;  %v10450_v40 = vor.u32 %v4883_v14, %v4882_v49  ;;  %v4664_v27 = vor.u32 %v4663_v38, %v4662_v53  ;;  %v4316_v14 = vor.u32 %v10389_v52, %v4312_v62  ;;  %v10669_v16 = vld [vmem:[#allocation2 + $0xb3] sm:$0xff] }
 0x56d   : >> { %4148 = vst.msk [vmem:[#allocation2 + $0x5b] sm:$0xff] %vm322_vm0, %v4107_v5  ;;  %v7048_v63 = vadd.f32 %v10305_v47, %v3931_v50  ;;  %v6882_v11 = vpop.f32.mrb[21].mxu0  ;;  %v10452_v44 = vpack.c.bf16 %v4189_v23, %v4188_v61  ;;  %v10473_v6 = vld [vmem:[#allocation2 + $0x6b] sm:$0xff]  ;;  %12446 = vst [vmem:[#allocation74_spill] sm:$0xff] %v10669_v16 }
 0x56e   : >> { %v3934_v59 = vpop.f32.mrb[22].mxu0  ;;  %4791 = vrot.lane.b32.xlu0 %v4752_v43, %s7360_s29  ;;  %4615 = vrot.lane.b32.xlu1 %v4530_v3, %s7361_s25  ;;  %v10468_v56 = vsel %vm811_vm4, %v4660_v26, %v4664_v27  ;;  %v4885_v49 = vsel %vm1079_vm5, %v4881_v41, %v10450_v40  ;;  %12416 = vst [vmem:[#allocation62_spill] sm:$0xff] %v10473_v6  ;;  %v12417_v26 = vld [vmem:[#allocation21_spill] sm:$0xff] }
 0x56f   : >> { %v4067_v39 = vmax.f32 %v7048_v63, 0.0  ;;  %v7049_v48 = vadd.f32 %v10305_v47, %v3934_v59  ;;  %v6883_v21 = vpop.f32.mrb[23].mxu0  ;;  %v12213_v31 = vrot.slane %v10452_v44, 2  ;;  %v10462_v1 = vshll.u32 %v10452_v44, 16 }
 0x570   : >> { %v10465_v4 = vshrl.u32 %v10452_v44, 16  ;;  %v4321_v50 = vsel %vm448_vm2, %v4316_v14, %v4320_v37  ;;  %v12212_v61 = vrot.slane %v10452_v44, 1 }
 0x571   : >> { %v4108_v43 = vmul.f32 %v4067_v39, %v12415_v20  ;;  %v4068_v9 = vmax.f32 %v7049_v48, 0.0  ;;  %v4667_v34 = vrot.slane %v10462_v1, 2  ;;  %v4754_v38 = vsel %vm947_vm7, %v4751_v19, %v12213_v31 }
 0x572   : >> { %4972 = vrot.lane.b32.xlu0 %v4885_v49, %s7361_s25  ;;  %4569 = vrot.lane.b32.xlu1 %v4530_v3, %s7359_s24  ;;  %v4666_v53 = vrot.slane %v10465_v4, 1  ;;  %v4886_v3 = vrot.slane %v10465_v4, 2  ;;  %v4190_v52 = vld [vmem:[#allocation2 + $0x50] sm:$0xff]  ;;  %v4887_v11 = vrot.slane %v10462_v1, 3 }
 0x573   : >> { %4149 = vst.msk [vmem:[#allocation2 + $0x63] sm:$0xff] %vm322_vm0, %v4108_v43  ;;  %v4109_v5 = vmul.f32 %v4068_v9, %v12417_v26  ;;  %v10496_v43 = vld [vmem:[#allocation2 + $0x73] sm:$0xff] }
 0x574   : >> { %v3939_v13 = vpop.f32.mrb[24].mxu0  ;;  %v4191_v62 = vld [vmem:[#allocation2 + $0x58] sm:$0xff]  ;;  %v4668_v39 = vor.u32 %v4667_v34, %v4666_v53  ;;  %12418 = vst [vmem:[#allocation63_spill] sm:$0xff] %v10496_v43 }
 0x575   : >> { %4150 = vst.msk [vmem:[#allocation2 + $0x6b] sm:$0xff] %vm322_vm0, %v4109_v5  ;;  %v7050_v23 = vadd.f32 %v10305_v47, %v3939_v13  ;;  %v6886_v63 = vpop.f32.mrb[25].mxu0  ;;  %v10491_v59 = vpack.c.bf16 %v4191_v62, %v4190_v52  ;;  %v12419_v53 = vld [vmem:[#allocation16_spill] sm:$0xff]  ;;  %v4532_v13 = vsel %vm679_vm3, %v4529_v12, %v12212_v61  ;;  %v12421_v62 = vld [vmem:[#allocation18_spill] sm:$0xff] }
 0x576   : >> { %v3942_v48 = vpop.f32.mrb[26].mxu0  ;;  %4839 = vrot.lane.b32.xlu0 %v4754_v38, %s7359_s24  ;;  %4465 = vrot.lane.b32.xlu1 %v4321_v50, %s7360_s29  ;;  %v10505_v14 = vsel %vm811_vm4, %v4664_v27, %v4668_v39  ;;  %v10513_v50 = vor.u32 %v4887_v11, %v4886_v3  ;;  %v10515_v52 = vld [vmem:[#allocation2 + $0x7b] sm:$0xff]  ;;  %v12214_v63 = vrot.slane %v10462_v1, 1  ;;  %v4324_v3 = vor.u32 %v10424_v32, %v4320_v37 }
 0x577   : >> { %v4069_v19 = vmax.f32 %v7050_v23, 0.0  ;;  %v7051_v21 = vadd.f32 %v10305_v47, %v3942_v48  ;;  %v6887_v41 = vpop.f32.mrb[27].mxu0  ;;  %v10499_v9 = vshll.u32 %v10491_v59, 16  ;;  %v10502_v49 = vshrl.u32 %v10491_v59, 16  ;;  %12420 = vst [vmem:[#allocation64_spill] sm:$0xff] %v10515_v52 }
 0x579   : >> { %v4110_v5 = vmul.f32 %v4069_v19, %v12419_v53  ;;  %v4070_v34 = vmax.f32 %v7051_v21, 0.0  ;;  %v4670_v27 = vrot.slane %v10502_v49, 1  ;;  %v4671_v48 = vrot.slane %v10499_v9, 2 }
 0x57a   : >> { %4793 = vrot.lane.b32.xlu0 %v4754_v38, %s7360_s29  ;;  %4617 = vrot.lane.b32.xlu1 %v4532_v13, %s7361_s25  ;;  %v4192_v11 = vld [vmem:[#allocation2 + $0x60] sm:$0xff]  ;;  %v4336_v26 = vrot.slane %v10499_v9, 1 }
 0x57b   : >> { %4151 = vst.msk [vmem:[#allocation2 + $0x73] sm:$0xff] %vm322_vm0, %v4110_v5  ;;  %v4111_v23 = vmul.f32 %v4070_v34, %v12421_v62  ;;  %v4889_v5 = vsel %vm1079_vm5, %v10450_v40, %v10513_v50  ;;  %v4672_v61 = vor.u32 %v4671_v48, %v4670_v27  ;;  %v12423_v40 = vrot.slane %v10491_v59, 2 }
 0x57c   : >> { %v3947_v19 = vpop.f32.mrb[28].mxu0  ;;  %v4193_v21 = vld [vmem:[#allocation2 + $0x68] sm:$0xff]  ;;  %v12424_v27 = vrot.slane %v10452_v44, 2 }
 0x57d   : >> { %4152 = vst.msk [vmem:[#allocation2 + $0x7b] sm:$0xff] %vm322_vm0, %v4111_v23  ;;  %v7052_v38 = vadd.f32 %v10305_v47, %v3947_v19  ;;  %v6890_v41 = vpop.f32.mrb[29].mxu0  ;;  %v10531_v34 = vpack.c.bf16 %v4193_v21, %v4192_v11  ;;  %v4329_v23 = vsel %vm448_vm2, %v4324_v3, %v12214_v63  ;;  %v12425_v3 = vld [vmem:[#allocation22_spill] sm:$0xff] }
 0x57e   : >> { %v3950_v31 = vpop.f32.mrb[30].mxu0  ;;  %4974 = vrot.lane.b32.xlu0 %v4889_v5, %s7361_s25  ;;  %4571 = vrot.lane.b32.xlu1 %v4532_v13, %s7359_s24  ;;  %v10540_v41 = vld [vmem:[#allocation2 + $0x83] sm:$0xff]  ;;  %v4756_v48 = vsel %vm947_vm7, %v12424_v27, %v12423_v40  ;;  %v4891_v5 = vrot.slane %v10499_v9, 3  ;;  %v10559_v63 = vld [vmem:[#allocation2 + $0x8b] sm:$0xff]  ;;  %v12427_v27 = vld [vmem:[#allocation20_spill] sm:$0xff] }
 0x57f   : >> { %v4071_v32 = vmax.f32 %v7052_v38, 0.0  ;;  %v7053_v37 = vadd.f32 %v10305_v47, %v3950_v31  ;;  %v6891_v12 = vpop.f32.mrb[31].mxu0  ;;  %12422 = vst [vmem:[#allocation65_spill] sm:$0xff] %v10540_v41  ;;  %v10548_v13 = vshll.u32 %v10531_v34, 16  ;;  %v10551_v31 = vshrl.u32 %v10531_v34, 16  ;;  %12426 = vst [vmem:[#allocation66_spill] sm:$0xff] %v10559_v63 }
 0x580   : >> { %v10554_v12 = vsel %vm811_vm4, %v4668_v39, %v4672_v61  ;;  %v4890_v38 = vrot.slane %v10502_v49, 2 }
 0x581   : >> { %v4112_v11 = vmul.f32 %v4071_v32, %v12425_v3  ;;  %v4072_v21 = vmax.f32 %v7053_v37, 0.0  ;;  %v4674_v40 = vrot.slane %v10551_v31, 1  ;;  %v4675_v19 = vrot.slane %v10548_v13, 2 }
 0x582   : >> { %4841 = vrot.lane.b32.xlu0 %v4756_v48, %s7359_s24  ;;  %4467 = vrot.lane.b32.xlu1 %v4329_v23, %s7360_s29  ;;  %v12428_v37 = vrot.slane %v10491_v59, 1  ;;  %v12429_v3 = vrot.slane %v10452_v44, 1  ;;  %v4194_v63 = vld [vmem:[#allocation2 + $0x70] sm:$0xff]  ;;  %v10574_v52 = vor.u32 %v4891_v5, %v4890_v38 }
 0x583   : >> { %4153 = vst.msk [vmem:[#allocation2 + $0x83] sm:$0xff] %vm322_vm0, %v4112_v11  ;;  %v4113_v39 = vmul.f32 %v4072_v21, %v12427_v27  ;;  %v4676_v21 = vor.u32 %v4675_v19, %v4674_v40  ;;  %v12432_v19 = vld [vmem:[#allocation38_spill] sm:$0xff]  ;;  %v10598_v40 = vld [vmem:[#allocation2 + $0x9b] sm:$0xff] }
 0x584   : >> { %v3955_v32 = vpop.f32.mrb[32].mxu0  ;;  %v4534_v41 = vsel %vm679_vm3, %v12429_v3, %v12428_v37  ;;  %v4195_v62 = vld [vmem:[#allocation2 + $0x78] sm:$0xff]  ;;  %v4893_v9 = vsel %vm1079_vm5, %v10513_v50, %v10574_v52  ;;  %12433 = vst [vmem:[#allocation69_spill] sm:$0xff] %v10598_v40  ;;  %v12436_v50 = vrot.slane %v10491_v59, 2 }
 0x585   : >> { %4154 = vst.msk [vmem:[#allocation2 + $0x8b] sm:$0xff] %vm322_vm0, %v4113_v39  ;;  %v7054_v23 = vadd.f32 %v10305_v47, %v3955_v32  ;;  %v6894_v53 = vpop.f32.mrb[33].mxu0  ;;  %v10576_v11 = vpack.c.bf16 %v4195_v62, %v4194_v63  ;;  %v10582_v39 = vld [vmem:[#allocation2 + $0x93] sm:$0xff]  ;;  %v10592_v63 = vsel %vm811_vm4, %v4672_v61, %v4676_v21 }
 0x586   : >> { %v3958_v27 = vpop.f32.mrb[34].mxu0  ;;  %4795 = vrot.lane.b32.xlu0 %v4756_v48, %s7360_s29  ;;  %4619 = vrot.lane.b32.xlu1 %v4534_v41, %s7361_s25  ;;  %12431 = vst [vmem:[#allocation68_spill] sm:$0xff] %v10582_v39  ;;  %v12215_v53 = vrot.slane %v10531_v34, 2 }
 0x587   : >> { %12430 = vst [vmem:[#allocation67_spill] sm:$0xff] %v10576_v11  ;;  %v4073_v43 = vmax.f32 %v7054_v23, 0.0  ;;  %v7055_v3 = vadd.f32 %v10305_v47, %v3958_v27  ;;  %v6895_v37 = vpop.f32.mrb[35].mxu0  ;;  %v10586_v38 = vshll.u32 %v10576_v11, 16  ;;  %v10589_v62 = vshrl.u32 %v10576_v11, 16 }
 0x588   : >> { %v12434_v27 = vrot.slane %v10462_v1, 1  ;;  %v10625_v1 = vld [vmem:[#allocation2 + $0xa3] sm:$0xff] }
 0x589   : >> { %v4114_v48 = vmul.f32 %v4073_v43, %v12432_v19  ;;  %v4074_v5 = vmax.f32 %v7055_v3, 0.0  ;;  %v4678_v61 = vrot.slane %v10589_v62, 1  ;;  %v12435_v43 = vld [vmem:[#allocation19_spill] sm:$0xff]  ;;  %v4679_v3 = vrot.slane %v10586_v38, 2  ;;  %12438 = vst [vmem:[#allocation71_spill] sm:$0xff] %v10625_v1 }
 0x58a   : >> { %4976 = vrot.lane.b32.xlu0 %v4893_v9, %s7361_s25  ;;  %4573 = vrot.lane.b32.xlu1 %v4534_v41, %s7359_s24  ;;  %v4332_v32 = vor.u32 %v10465_v4, %v12434_v27  ;;  %v4758_v9 = vsel %vm947_vm7, %v12436_v50, %v12215_v53  ;;  %v4894_v4 = vrot.slane %v10551_v31, 2  ;;  %v4196_v27 = vld [vmem:[#allocation2 + $0x80] sm:$0xff]  ;;  %v4352_v42 = vrot.slane %v10586_v38, 1 }
 0x58b   : >> { %4155 = vst.msk [vmem:[#allocation2 + $0x93] sm:$0xff] %vm322_vm0, %v4114_v48  ;;  %v4115_v23 = vmul.f32 %v4074_v5, %v12435_v43  ;;  %v4895_v43 = vrot.slane %v10548_v13, 3  ;;  %v4680_v39 = vor.u32 %v4679_v3, %v4678_v61  ;;  %v12439_v61 = vld [vmem:[#allocation25_spill] sm:$0xff] }
 0x58c   : >> { %v3963_v37 = vpop.f32.mrb[36].mxu0  ;;  %v4337_v41 = vsel %vm448_vm2, %v4332_v32, %v4336_v26  ;;  %v4197_v19 = vld [vmem:[#allocation2 + $0x88] sm:$0xff] }
 0x58d   : >> { %4156 = vst.msk [vmem:[#allocation2 + $0x9b] sm:$0xff] %vm322_vm0, %v4115_v23  ;;  %v7056_v48 = vadd.f32 %v10305_v47, %v3963_v37  ;;  %v6898_v5 = vpop.f32.mrb[37].mxu0  ;;  %v10620_v40 = vpack.c.bf16 %v4197_v19, %v4196_v27  ;;  %v10634_v19 = vsel %vm811_vm4, %v4676_v21, %v4680_v39 }
 0x58e   : >> { %v3966_v20 = vpop.f32.mrb[38].mxu0  ;;  %4843 = vrot.lane.b32.xlu0 %v4758_v9, %s7359_s24  ;;  %4469 = vrot.lane.b32.xlu1 %v4337_v41, %s7360_s29  ;;  %v12440_v41 = vrot.slane %v10531_v34, 1  ;;  %v10644_v5 = vld [vmem:[#allocation2 + $0xab] sm:$0xff] }
 0x58f   : >> { %12437 = vst [vmem:[#allocation70_spill] sm:$0xff] %v10620_v40  ;;  %v4075_v32 = vmax.f32 %v7056_v48, 0.0  ;;  %v7057_v50 = vadd.f32 %v10305_v47, %v3966_v20  ;;  %v6899_v53 = vpop.f32.mrb[39].mxu0  ;;  %v10628_v23 = vshll.u32 %v10620_v40, 16  ;;  %v10631_v37 = vshrl.u32 %v10620_v40, 16  ;;  %12442 = vst [vmem:[#allocation72_spill] sm:$0xff] %v10644_v5 }
 0x590   : >> { %v12441_v48 = vrot.slane %v10491_v59, 1  ;;  %v10642_v53 = vor.u32 %v4895_v43, %v4894_v4  ;;  %v4340_v4 = vor.u32 %v10502_v49, %v4336_v26 }
 0x591   : >> { %v4116_v3 = vmul.f32 %v4075_v32, %v12439_v61  ;;  %v4076_v27 = vmax.f32 %v7057_v50, 0.0  ;;  %v4682_v21 = vrot.slane %v10631_v37, 1  ;;  %v12443_v32 = vld [vmem:[#allocation23_spill] sm:$0xff]  ;;  %v4683_v1 = vrot.slane %v10628_v23, 2 }
 0x592   : >> { %v4536_v20 = vsel %vm679_vm3, %v12441_v48, %v12440_v41  ;;  %4797 = vrot.lane.b32.xlu0 %v4758_v9, %s7360_s29  ;;  %v4198_v41 = vld [vmem:[#allocation2 + $0x90] sm:$0xff] }
 0x593   : >> { %4621 = vrot.lane.b32.xlu1 %v4536_v20, %s7361_s25  ;;  %4157 = vst.msk [vmem:[#allocation2 + $0xa3] sm:$0xff] %vm322_vm0, %v4116_v3  ;;  %v4117_v50 = vmul.f32 %v4076_v27, %v12443_v32  ;;  %v4897_v3 = vsel %vm1079_vm5, %v10574_v52, %v10642_v53  ;;  %v4684_v61 = vor.u32 %v4683_v1, %v4682_v21  ;;  %v12447_v52 = vrot.slane %v10576_v11, 2 }
 0x594   : >> { %v3971_v6 = vpop.f32.mrb[40].mxu0  ;;  %v4199_v48 = vld [vmem:[#allocation2 + $0x98] sm:$0xff]  ;;  %v12448_v1 = vrot.slane %v10531_v34, 2 }
 0x595   : >> { %4158 = vst.msk [vmem:[#allocation2 + $0xab] sm:$0xff] %vm322_vm0, %v4117_v50  ;;  %v7058_v9 = vadd.f32 %v10305_v47, %v3971_v6  ;;  %v6902_v5 = vpop.f32.mrb[41].mxu0  ;;  %v10660_v27 = vpack.c.bf16 %v4199_v48, %v4198_v41  ;;  %v12445_v50 = vrot.slane %v10548_v13, 1 }
 0x596   : >> { %v3974_v32 = vpop.f32.mrb[42].mxu0  ;;  %4978 = vrot.lane.b32.xlu0 %v4897_v3, %s7361_s25  ;;  %v4760_v21 = vsel %vm947_vm7, %v12448_v1, %v12447_v52  ;;  %v4899_v3 = vrot.slane %v10586_v38, 3  ;;  %v12451_v1 = vld [vmem:[#allocation10_spill] sm:$0xff] }
 0x597   : >> { %12444 = vst [vmem:[#allocation73_spill] sm:$0xff] %v10660_v27  ;;  %4575 = vrot.lane.b32.xlu1 %v4536_v20, %s7359_s24  ;;  %v4077_v26 = vmax.f32 %v7058_v9, 0.0  ;;  %v7059_v49 = vadd.f32 %v10305_v47, %v3974_v32  ;;  %v6903_v43 = vpop.f32.mrb[43].mxu0  ;;  %v4345_v6 = vsel %vm448_vm2, %v4340_v4, %v12445_v50  ;;  %v10677_v20 = vshll.u32 %v10660_v27, 16  ;;  %v12449_v4 = vld [vmem:[#allocation37_spill] sm:$0xff] }
 0x598   : >> { %v10680_v32 = vshrl.u32 %v10660_v27, 16  ;;  %v10683_v43 = vsel %vm811_vm4, %v4680_v39, %v4684_v61  ;;  %v4898_v9 = vrot.slane %v10589_v62, 2  ;;  %v10688_v50 = vld [vmem:[#allocation2 + $0xbb] sm:$0xff] }
 0x599   : >> { %v4118_v41 = vmul.f32 %v4077_v26, %v12449_v4  ;;  %v4078_v48 = vmax.f32 %v7059_v49, 0.0  ;;  %12450 = vst [vmem:[#allocation75_spill] sm:$0xff] %v10688_v50  ;;  %v4687_v5 = vrot.slane %v10677_v20, 2  ;;  %v12452_v49 = vrot.slane %v10576_v11, 1 }
 0x59a   : >> { %4845 = vrot.lane.b32.xlu0 %v4760_v21, %s7359_s24  ;;  %v4686_v52 = vrot.slane %v10680_v32, 1  ;;  %v12453_v4 = vrot.slane %v10531_v34, 1  ;;  %v4200_v50 = vld [vmem:[#allocation2 + $0xa0] sm:$0xff]  ;;  %v10703_v60 = vor.u32 %v4899_v3, %v4898_v9  ;;  %v4368_v0 = vrot.slane %v10677_v20, 1 }
 0x59b   : >> { %4471 = vrot.lane.b32.xlu1 %v4345_v6, %s7360_s29  ;;  %4159 = vst.msk [vmem:[#allocation2 + $0xb3] sm:$0xff] %vm322_vm0, %v4118_v41  ;;  %v4119_v39 = vmul.f32 %v4078_v48, %v12451_v1 }
 0x59c   : >> { %v3979_v26 = vpop.f32.mrb[44].mxu0  ;;  %v4538_v16 = vsel %vm679_vm3, %v12453_v4, %v12452_v49  ;;  %v4201_v15 = vld [vmem:[#allocation2 + $0xa8] sm:$0xff]  ;;  %v4688_v48 = vor.u32 %v4687_v5, %v4686_v52  ;;  %v4901_v38 = vsel %vm1079_vm5, %v10642_v53, %v10703_v60  ;;  %v12461_v53 = vrot.slane %v10576_v11, 2 }
 0x59d   : >> { %4160 = vst.msk [vmem:[#allocation2 + $0xbb] sm:$0xff] %vm322_vm0, %v4119_v39  ;;  %v7060_v6 = vadd.f32 %v10305_v47, %v3979_v26  ;;  %v6906_v57 = vpop.f32.mrb[45].mxu0  ;;  %v10705_v41 = vpack.c.bf16 %v4201_v15, %v4200_v50  ;;  %v10711_v39 = vld [vmem:[#allocation2 + $0xc3] sm:$0xff]  ;;  %v10727_v52 = vld [vmem:[#allocation2 + $0xcb] sm:$0xff] }
 0x59e   : >> { %v3982_v1 = vpop.f32.mrb[46].mxu0  ;;  %4799 = vrot.lane.b32.xlu0 %v4760_v21, %s7360_s29  ;;  %12455 = vst [vmem:[#allocation77_spill] sm:$0xff] %v10711_v39  ;;  %v12216_v57 = vrot.slane %v10620_v40, 2  ;;  %v10721_v5 = vsel %vm811_vm4, %v4684_v61, %v4688_v48  ;;  %v12457_v21 = vld [vmem:[#allocation41_spill] sm:$0xff]  ;;  %12458 = vst [vmem:[#allocation79_spill] sm:$0xff] %v10727_v52 }
 0x59f   : >> { %12454 = vst [vmem:[#allocation76_spill] sm:$0xff] %v10705_v41  ;;  %4623 = vrot.lane.b32.xlu1 %v4538_v16, %s7361_s25  ;;  %v4079_v36 = vmax.f32 %v7060_v6, 0.0  ;;  %v7061_v4 = vadd.f32 %v10305_v47, %v3982_v1  ;;  %v6907_v49 = vpop.f32.mrb[47].mxu0  ;;  %v10715_v9 = vshll.u32 %v10705_v41, 16  ;;  %v10718_v15 = vshrl.u32 %v10705_v41, 16  ;;  %12456 = vst [vmem:[#allocation78_spill] sm:$0xff] %v10721_v5 }
 0x5a0   : >> { %v12459_v1 = vrot.slane %v10548_v13, 1  ;;  %v10754_v13 = vld [vmem:[#allocation2 + $0xd3] sm:$0xff]  ;;  %v12504_v29 = vrot.slane %v10705_v41, 1  ;;  %v11070_v5 = vld [vmem:[#allocation2 + $0x143] sm:$0xff] }
 0x5a1   : >> { %v4120_v3 = vmul.f32 %v4079_v36, %v12457_v21  ;;  %v4080_v50 = vmax.f32 %v7061_v4, 0.0  ;;  %v4690_v61 = vrot.slane %v10718_v15, 1  ;;  %v12460_v36 = vld [vmem:[#allocation9_spill] sm:$0xff]  ;;  %v4691_v4 = vrot.slane %v10715_v9, 2  ;;  %12463 = vst [vmem:[#allocation81_spill] sm:$0xff] %v10754_v13  ;;  %12522 = vst [vmem:[#allocation103_spill] sm:$0xff] %v11070_v5 }
 0x5a2   : >> { %4980 = vrot.lane.b32.xlu0 %v4901_v38, %s7361_s25  ;;  %v4348_v26 = vor.u32 %v10551_v31, %v12459_v1  ;;  %v4762_v38 = vsel %vm947_vm7, %v12461_v53, %v12216_v57  ;;  %v4902_v31 = vrot.slane %v10631_v37, 2  ;;  %v4202_v1 = vld [vmem:[#allocation2 + $0xb0] sm:$0xff] }
 0x5a3   : >> { %4577 = vrot.lane.b32.xlu1 %v4538_v16, %s7359_s24  ;;  %4161 = vst.msk [vmem:[#allocation2 + $0xc3] sm:$0xff] %vm322_vm0, %v4120_v3  ;;  %v4121_v6 = vmul.f32 %v4080_v50, %v12460_v36  ;;  %v4903_v36 = vrot.slane %v10628_v23, 3  ;;  %v4692_v39 = vor.u32 %v4691_v4, %v4690_v61  ;;  %v12465_v61 = vld [vmem:[#allocation24_spill] sm:$0xff] }
 0x5a4   : >> { %v3987_v49 = vpop.f32.mrb[48].mxu0  ;;  %v4353_v16 = vsel %vm448_vm2, %v4348_v26, %v4352_v42  ;;  %v4203_v21 = vld [vmem:[#allocation2 + $0xb8] sm:$0xff] }
 0x5a5   : >> { %4162 = vst.msk [vmem:[#allocation2 + $0xcb] sm:$0xff] %vm322_vm0, %v4121_v6  ;;  %v7062_v3 = vadd.f32 %v10305_v47, %v3987_v49  ;;  %v6910_v50 = vpop.f32.mrb[49].mxu0  ;;  %v10749_v52 = vpack.c.bf16 %v4203_v21, %v4202_v1  ;;  %v10763_v21 = vsel %vm811_vm4, %v4688_v48, %v4692_v39 }
 0x5a6   : >> { %v3990_v30 = vpop.f32.mrb[50].mxu0  ;;  %4847 = vrot.lane.b32.xlu0 %v4762_v38, %s7359_s24  ;;  %12464 = vst [vmem:[#allocation82_spill] sm:$0xff] %v10763_v21  ;;  %v10773_v50 = vld [vmem:[#allocation2 + $0xdb] sm:$0xff] }
 0x5a7   : >> { %12462 = vst [vmem:[#allocation80_spill] sm:$0xff] %v10749_v52  ;;  %4473 = vrot.lane.b32.xlu1 %v4353_v16, %s7360_s29  ;;  %v4081_v26 = vmax.f32 %v7062_v3, 0.0  ;;  %v7063_v53 = vadd.f32 %v10305_v47, %v3990_v30  ;;  %v6911_v57 = vpop.f32.mrb[51].mxu0  ;;  %v10757_v6 = vshll.u32 %v10749_v52, 16  ;;  %v10760_v49 = vshrl.u32 %v10749_v52, 16  ;;  %12468 = vst [vmem:[#allocation83_spill] sm:$0xff] %v10773_v50 }
 0x5a8   : >> { %v12466_v16 = vrot.slane %v10620_v40, 1  ;;  %v12467_v3 = vrot.slane %v10576_v11, 1  ;;  %v10771_v57 = vor.u32 %v4903_v36, %v4902_v31  ;;  %v4356_v31 = vor.u32 %v10589_v62, %v4352_v42 }
 0x5a9   : >> { %v4122_v4 = vmul.f32 %v4081_v26, %v12465_v61  ;;  %v4082_v1 = vmax.f32 %v7063_v53, 0.0  ;;  %v4694_v48 = vrot.slane %v10760_v49, 1  ;;  %v12469_v26 = vld [vmem:[#allocation39_spill] sm:$0xff]  ;;  %v4695_v13 = vrot.slane %v10757_v6, 2 }
 0x5aa   : >> { %v4540_v30 = vsel %vm679_vm3, %v12467_v3, %v12466_v16  ;;  %4801 = vrot.lane.b32.xlu0 %v4762_v38, %s7360_s29  ;;  %v4204_v16 = vld [vmem:[#allocation2 + $0xc0] sm:$0xff] }
 0x5ab   : >> { %4625 = vrot.lane.b32.xlu1 %v4540_v30, %s7361_s25  ;;  %4163 = vst.msk [vmem:[#allocation2 + $0xd3] sm:$0xff] %vm322_vm0, %v4122_v4  ;;  %v4123_v53 = vmul.f32 %v4082_v1, %v12469_v26  ;;  %v4905_v4 = vsel %vm1079_vm5, %v10703_v60, %v10771_v57  ;;  %v4696_v61 = vor.u32 %v4695_v13, %v4694_v48  ;;  %v12472_v60 = vrot.slane %v10660_v27, 2 }
 0x5ac   : >> { %v3995_v25 = vpop.f32.mrb[52].mxu0  ;;  %v4205_v3 = vld [vmem:[#allocation2 + $0xc8] sm:$0xff]  ;;  %v12473_v13 = vrot.slane %v10620_v40, 2 }
 0x5ad   : >> { %4164 = vst.msk [vmem:[#allocation2 + $0xdb] sm:$0xff] %vm322_vm0, %v4123_v53  ;;  %v7064_v38 = vadd.f32 %v10305_v47, %v3995_v25  ;;  %v6914_v50 = vpop.f32.mrb[53].mxu0  ;;  %v10789_v1 = vpack.c.bf16 %v4205_v3, %v4204_v16  ;;  %v12470_v53 = vrot.slane %v10628_v23, 1 }
 0x5ae   : >> { %v3998_v26 = vpop.f32.mrb[54].mxu0  ;;  %4982 = vrot.lane.b32.xlu0 %v4905_v4, %s7361_s25  ;;  %v4764_v48 = vsel %vm947_vm7, %v12473_v13, %v12472_v60  ;;  %v4907_v4 = vrot.slane %v10677_v20, 3  ;;  %v12477_v13 = vld [vmem:[#allocation33_spill] sm:$0xff] }
 0x5af   : >> { %4579 = vrot.lane.b32.xlu1 %v4540_v30, %s7359_s24  ;;  %v4083_v42 = vmax.f32 %v7064_v38, 0.0  ;;  %v7065_v62 = vadd.f32 %v10305_v47, %v3998_v26  ;;  %v6915_v36 = vpop.f32.mrb[55].mxu0  ;;  %v4361_v25 = vsel %vm448_vm2, %v4356_v31, %v12470_v53  ;;  %v10806_v30 = vshll.u32 %v10789_v1, 16  ;;  %v12475_v31 = vld [vmem:[#allocation40_spill] sm:$0xff]  ;;  %v10817_v53 = vld [vmem:[#allocation2 + $0xeb] sm:$0xff] }
 0x5b0   : >> { %v10809_v26 = vshrl.u32 %v10789_v1, 16  ;;  %v10812_v36 = vsel %vm811_vm4, %v4692_v39, %v4696_v61  ;;  %v4906_v38 = vrot.slane %v10680_v32, 2  ;;  %12476 = vst [vmem:[#allocation86_spill] sm:$0xff] %v10817_v53 }
 0x5b1   : >> { %12474 = vst [vmem:[#allocation85_spill] sm:$0xff] %v10812_v36  ;;  %v4124_v16 = vmul.f32 %v4083_v42, %v12475_v31  ;;  %v4084_v3 = vmax.f32 %v7065_v62, 0.0  ;;  %v4699_v50 = vrot.slane %v10806_v30, 2  ;;  %v12478_v62 = vrot.slane %v10660_v27, 1 }
 0x5b2   : >> { %4849 = vrot.lane.b32.xlu0 %v4764_v48, %s7359_s24  ;;  %v4698_v60 = vrot.slane %v10809_v26, 1  ;;  %v12479_v31 = vrot.slane %v10620_v40, 1  ;;  %v4206_v53 = vld [vmem:[#allocation2 + $0xd0] sm:$0xff]  ;;  %v10832_v18 = vor.u32 %v4907_v4, %v4906_v38 }
 0x5b3   : >> { %4475 = vrot.lane.b32.xlu1 %v4361_v25, %s7360_s29  ;;  %4165 = vst.msk [vmem:[#allocation2 + $0xe3] sm:$0xff] %vm322_vm0, %v4124_v16  ;;  %v4125_v39 = vmul.f32 %v4084_v3, %v12477_v13 }
 0x5b4   : >> { %v4003_v42 = vpop.f32.mrb[56].mxu0  ;;  %v4542_v24 = vsel %vm679_vm3, %v12479_v31, %v12478_v62  ;;  %v4207_v7 = vld [vmem:[#allocation2 + $0xd8] sm:$0xff]  ;;  %v4700_v3 = vor.u32 %v4699_v50, %v4698_v60  ;;  %v4909_v20 = vsel %vm1079_vm5, %v10771_v57, %v10832_v18  ;;  %v12486_v57 = vrot.slane %v10660_v27, 2 }
 0x5b5   : >> { %4166 = vst.msk [vmem:[#allocation2 + $0xeb] sm:$0xff] %vm322_vm0, %v4125_v39  ;;  %v7066_v25 = vadd.f32 %v10305_v47, %v4003_v42  ;;  %v6918_v2 = vpop.f32.mrb[57].mxu0  ;;  %v10834_v16 = vpack.c.bf16 %v4207_v7, %v4206_v53  ;;  %v10840_v39 = vld [vmem:[#allocation2 + $0xf3] sm:$0xff]  ;;  %v10856_v60 = vld [vmem:[#allocation2 + $0xfb] sm:$0xff] }
 0x5b6   : >> { %v4006_v13 = vpop.f32.mrb[58].mxu0  ;;  %4803 = vrot.lane.b32.xlu0 %v4764_v48, %s7360_s29  ;;  %12480 = vst [vmem:[#allocation87_spill] sm:$0xff] %v10840_v39  ;;  %v12217_v2 = vrot.slane %v10705_v41, 2  ;;  %v10850_v50 = vsel %vm811_vm4, %v4696_v61, %v4700_v3  ;;  %v12482_v48 = vld [vmem:[#allocation12_spill] sm:$0xff]  ;;  %12483 = vst [vmem:[#allocation89_spill] sm:$0xff] %v10856_v60 }
 0x5b7   : >> { %4627 = vrot.lane.b32.xlu1 %v4542_v24, %s7361_s25  ;;  %v4085_v17 = vmax.f32 %v7066_v25, 0.0  ;;  %v7067_v31 = vadd.f32 %v10305_v47, %v4006_v13  ;;  %v6919_v62 = vpop.f32.mrb[59].mxu0  ;;  %v10844_v38 = vshll.u32 %v10834_v16, 16  ;;  %v10847_v7 = vshrl.u32 %v10834_v16, 16  ;;  %12481 = vst [vmem:[#allocation88_spill] sm:$0xff] %v10850_v50 }
 0x5b8   : >> { %v12484_v13 = vrot.slane %v10628_v23, 1 }
 0x5b9   : >> { %v4126_v4 = vmul.f32 %v4085_v17, %v12482_v48  ;;  %v4086_v53 = vmax.f32 %v7067_v31, 0.0  ;;  %v4702_v61 = vrot.slane %v10847_v7, 1  ;;  %v12485_v17 = vld [vmem:[#allocation34_spill] sm:$0xff]  ;;  %v4703_v31 = vrot.slane %v10844_v38, 2 }
 0x5ba   : >> { %4984 = vrot.lane.b32.xlu0 %v4909_v20, %s7361_s25  ;;  %v4364_v42 = vor.u32 %v10631_v37, %v12484_v13  ;;  %v4766_v20 = vsel %vm947_vm7, %v12486_v57, %v12217_v2  ;;  %v4910_v37 = vrot.slane %v10718_v15, 2  ;;  %v4208_v13 = vld [vmem:[#allocation2 + $0xe0] sm:$0xff]  ;;  %v4911_v48 = vrot.slane %v10715_v9, 3 }
 0x5bb   : >> { %4581 = vrot.lane.b32.xlu1 %v4542_v24, %s7359_s24  ;;  %4167 = vst.msk [vmem:[#allocation2 + $0xf3] sm:$0xff] %vm322_vm0, %v4126_v4  ;;  %v4127_v25 = vmul.f32 %v4086_v53, %v12485_v17  ;;  %v4704_v39 = vor.u32 %v4703_v31, %v4702_v61  ;;  %v10883_v2 = vld [vmem:[%s10302_s28] ss:$0 sm:$0xff]  ;;  %v12489_v31 = vld [vmem:[#allocation26_spill] sm:$0xff] }
 0x5bc   : >> { %v4011_v62 = vpop.f32.mrb[60].mxu0  ;;  %v4369_v24 = vsel %vm448_vm2, %v4364_v42, %v4368_v0  ;;  %v4209_v4 = vld [vmem:[#allocation2 + $0xe8] sm:$0xff] }
 0x5bd   : >> { %4168 = vst.msk [vmem:[#allocation2 + $0xfb] sm:$0xff] %vm322_vm0, %v4127_v25  ;;  %v7068_v53 = vadd.f32 %v10305_v47, %v4011_v62  ;;  %v6922_v17 = vpop.f32.mrb[61].mxu0  ;;  %v10878_v60 = vpack.c.bf16 %v4209_v4, %v4208_v13  ;;  %v10886_v25 = vld [vmem:[#allocation2 + $0x103] sm:$0xff]  ;;  %v10895_v61 = vsel %vm811_vm4, %v4700_v3, %v4704_v39  ;;  %v12490_v13 = vrot.slane %v10705_v41, 1 }
 0x5be   : >> { %v4014_v57 = vpop.f32.mrb[62].mxu0  ;;  %4851 = vrot.lane.b32.xlu0 %v4766_v20, %s7359_s24  ;;  %12487 = vst [vmem:[#allocation90_spill] sm:$0xff] %v10886_v25  ;;  %12488 = vst [vmem:[#allocation91_spill] sm:$0xff] %v10895_v61  ;;  %v12491_v4 = vrot.slane %v10660_v27, 1  ;;  %v10973_v61 = vld [vmem:[#allocation2 + $0x123] sm:$0xff] }
 0x5bf   : >> { %4477 = vrot.lane.b32.xlu1 %v4369_v24, %s7360_s29  ;;  %v4087_v42 = vmax.f32 %v7068_v53, 0.0  ;;  %v7069_v23 = vadd.f32 %v10883_v2, %v4014_v57  ;;  %v6923_v54 = vpop.f32.mrb[63].mxu0  ;;  %v10889_v47 = vshll.u32 %v10878_v60, 16  ;;  %v10892_v17 = vshrl.u32 %v10878_v60, 16  ;;  %v10905_v57 = vld [vmem:[#allocation2 + $0x10b] sm:$0xff]  ;;  %12505 = vst [vmem:[#allocation97_spill] sm:$0xff] %v10973_v61 }
 0x5c0   : >> { %v4544_v54 = vsel %vm679_vm3, %v12491_v4, %v12490_v13  ;;  %v10903_v53 = vor.u32 %v4911_v48, %v4910_v37  ;;  %12492 = vst [vmem:[#allocation92_spill] sm:$0xff] %v10905_v57  ;;  %v4372_v37 = vor.u32 %v10680_v32, %v4368_v0 }
 0x5c1   : >> { %v4128_v62 = vmul.f32 %v4087_v42, %v12489_v31  ;;  %v4088_v24 = vmax.f32 %v7069_v23, 0.0  ;;  %v4706_v3 = vrot.slane %v10892_v17, 1  ;;  %v12493_v42 = vld [vmem:[#allocation36_spill] sm:$0xff]  ;;  %v4707_v25 = vrot.slane %v10889_v47, 2 }
 0x5c2   : >> { %4805 = vrot.lane.b32.xlu0 %v4766_v20, %s7360_s29  ;;  %v4210_v13 = vld [vmem:[#allocation2 + $0xf0] sm:$0xff] }
 0x5c3   : >> { %4629 = vrot.lane.b32.xlu1 %v4544_v54, %s7361_s25  ;;  %4169 = vst.msk [vmem:[#allocation2 + $0x103] sm:$0xff] %vm322_vm0, %v4128_v62  ;;  %v4129_v23 = vmul.f32 %v4088_v24, %v12493_v42  ;;  %v4913_v62 = vsel %vm1079_vm5, %v10832_v18, %v10903_v53  ;;  %v4708_v31 = vor.u32 %v4707_v25, %v4706_v3  ;;  %v12497_v18 = vrot.slane %v10749_v52, 2 }
 0x5c4   : >> { %v4019_v8 = vpop.f32.mrb[64].mxu0  ;;  %v4211_v4 = vld [vmem:[#allocation2 + $0xf8] sm:$0xff]  ;;  %v12498_v25 = vrot.slane %v10705_v41, 2 }
 0x5c5   : >> { %4170 = vst.msk [vmem:[#allocation2 + $0x10b] sm:$0xff] %vm322_vm0, %v4129_v23  ;;  %v7070_v20 = vadd.f32 %v10883_v2, %v4019_v8  ;;  %v6926_v57 = vpop.f32.mrb[65].mxu0  ;;  %v10921_v24 = vpack.c.bf16 %v4211_v4, %v4210_v13  ;;  %v12495_v23 = vrot.slane %v10715_v9, 1 }
 0x5c6   : >> { %v4022_v42 = vpop.f32.mrb[66].mxu0  ;;  %4986 = vrot.lane.b32.xlu0 %v4913_v62, %s7361_s25  ;;  %v4768_v3 = vsel %vm947_vm7, %v12498_v25, %v12497_v18  ;;  %v4915_v62 = vrot.slane %v10757_v6, 3  ;;  %v12502_v25 = vld [vmem:[#allocation42_spill] sm:$0xff] }
 0x5c7   : >> { %12494 = vst [vmem:[#allocation93_spill] sm:$0xff] %v10921_v24  ;;  %4583 = vrot.lane.b32.xlu1 %v4544_v54, %s7359_s24  ;;  %v4089_v0 = vmax.f32 %v7070_v20, 0.0  ;;  %v7071_v32 = vadd.f32 %v10883_v2, %v4022_v42  ;;  %v6927_v48 = vpop.f32.mrb[67].mxu0  ;;  %v4377_v8 = vsel %vm448_vm2, %v4372_v37, %v12495_v23  ;;  %v10938_v54 = vshll.u32 %v10921_v24, 16  ;;  %v12500_v37 = vld [vmem:[#allocation29_spill] sm:$0xff] }
 0x5c8   : >> { %v10941_v42 = vshrl.u32 %v10921_v24, 16  ;;  %v10944_v48 = vsel %vm811_vm4, %v4704_v39, %v4708_v31  ;;  %v4914_v20 = vrot.slane %v10760_v49, 2  ;;  %v10949_v23 = vld [vmem:[#allocation2 + $0x11b] sm:$0xff] }
 0x5c9   : >> { %12499 = vst [vmem:[#allocation95_spill] sm:$0xff] %v10944_v48  ;;  %v4130_v13 = vmul.f32 %v4089_v0, %v12500_v37  ;;  %v4090_v4 = vmax.f32 %v7071_v32, 0.0  ;;  %12501 = vst [vmem:[#allocation96_spill] sm:$0xff] %v10949_v23  ;;  %v4711_v57 = vrot.slane %v10938_v54, 2  ;;  %v12503_v37 = vrot.slane %v10749_v52, 1 }
 0x5ca   : >> { %4853 = vrot.lane.b32.xlu0 %v4768_v3, %s7359_s24  ;;  %v4710_v18 = vrot.slane %v10941_v42, 1  ;;  %v4212_v10 = vld [vmem:[#allocation2 + $0x100] sm:$0xff]  ;;  %v10966_v33 = vor.u32 %v4915_v62, %v4914_v20 }
 0x5cb   : >> { %4479 = vrot.lane.b32.xlu1 %v4377_v8, %s7360_s29  ;;  %4171 = vst.msk [vmem:[#allocation2 + $0x113] sm:$0xff] %vm322_vm0, %v4130_v13  ;;  %v4131_v39 = vmul.f32 %v4090_v4, %v12502_v25  ;;  %v4546_v23 = vsel %vm679_vm3, %v12504_v29, %v12503_v37 }
 0x5cc   : >> { %v4027_v0 = vpop.f32.mrb[68].mxu0  ;;  %v10957_v32 = vpop.permute.xlu1 %4565  ;;  %v4213_v45 = vld [vmem:[#allocation2 + $0x108] sm:$0xff]  ;;  %v4712_v25 = vor.u32 %v4711_v57, %v4710_v18 }
 0x5cd   : >> { %4172 = vst.msk [vmem:[#allocation2 + $0x11b] sm:$0xff] %vm322_vm0, %v4131_v39  ;;  %v7072_v8 = vadd.f32 %v10883_v2, %v4027_v0  ;;  %v6930_v13 = vpop.f32.mrb[69].mxu0  ;;  %v10968_v4 = vpack.c.bf16 %v4213_v45, %v4212_v10  ;;  %v12507_v57 = vld [vmem:[#allocation43_spill] sm:$0xff] }
 0x5ce   : >> { %v4030_v28 = vpop.f32.mrb[70].mxu0  ;;  %4807 = vrot.lane.b32.xlu0 %v4768_v3, %s7360_s29  ;;  %v10985_v10 = vsel %vm811_vm4, %v4708_v31, %v4712_v25  ;;  %v12509_v13 = vrot.slane %v10715_v9, 1 }
 0x5cf   : >> { %4631 = vrot.lane.b32.xlu1 %v4546_v23, %s7361_s25  ;;  %v4091_v48 = vmax.f32 %v7072_v8, 0.0  ;;  %v7073_v29 = vadd.f32 %v10883_v2, %v4030_v28  ;;  %v6931_v37 = vpop.f32.mrb[71].mxu0  ;;  %v10979_v20 = vshll.u32 %v10968_v4, 16  ;;  %v10982_v45 = vshrl.u32 %v10968_v4, 16  ;;  %12506 = vst [vmem:[#allocation98_spill] sm:$0xff] %v10985_v10  ;;  %v10992_v8 = vld [vmem:[#allocation2 + $0x12b] sm:$0xff] }
 0x5d0   : >> { %v10975_v39 = vpop.permute.xlu1 %4461  ;;  %v4917_v28 = vsel %vm1079_vm5, %v10903_v53, %v10966_v33  ;;  %12508 = vst [vmem:[#allocation99_spill] sm:$0xff] %v10992_v8  ;;  %v4380_v31 = vor.u32 %v10718_v15, %v12509_v13  ;;  %v4918_v37 = vrot.slane %v10809_v26, 2  ;;  %v12511_v53 = vrot.slane %v10757_v6, 1 }
 0x5d1   : >> { %v4132_v3 = vmul.f32 %v4091_v48, %v12507_v57  ;;  %v4092_v62 = vmax.f32 %v7073_v29, 0.0  ;;  %v12510_v48 = vld [vmem:[#allocation44_spill] sm:$0xff]  ;;  %v4919_v57 = vrot.slane %v10806_v30, 3  ;;  %v4715_v9 = vrot.slane %v10979_v20, 2 }
 0x5d2   : >> { %4988 = vrot.lane.b32.xlu0 %v4917_v28, %s7361_s25  ;;  %v4385_v18 = vsel %vm448_vm2, %v4380_v31, %v12511_v53  ;;  %v4214_v28 = vld [vmem:[#allocation2 + $0x110] sm:$0xff]  ;;  %v12512_v13 = vrot.slane %v10789_v1, 2 }
 0x5d3   : >> { %4585 = vrot.lane.b32.xlu1 %v4546_v23, %s7359_s24  ;;  %4173 = vst.msk [vmem:[#allocation2 + $0x123] sm:$0xff] %vm322_vm0, %v4132_v3  ;;  %v4133_v29 = vmul.f32 %v4092_v62, %v12510_v48  ;;  %v4714_v23 = vrot.slane %v10982_v45, 1  ;;  %v12513_v48 = vrot.slane %v10749_v52, 2  ;;  %v11025_v36 = vor.u32 %v4919_v57, %v4918_v37  ;;  %v11041_v57 = vld [vmem:[#allocation2 + $0x13b] sm:$0xff] }
 0x5d4   : >> { %v4035_v0 = vpop.f32.mrb[72].mxu0  ;;  %v4215_v8 = vld [vmem:[#allocation2 + $0x118] sm:$0xff]  ;;  %v11010_v3 = vpop.permute.xlu1 %4613  ;;  %12518 = vst [vmem:[#allocation101_spill] sm:$0xff] %v11041_v57 }
 0x5d5   : >> { %4174 = vst.msk [vmem:[#allocation2 + $0x12b] sm:$0xff] %vm322_vm0, %v4133_v29  ;;  %v7074_v15 = vadd.f32 %v10883_v2, %v4035_v0  ;;  %v6934_v62 = vpop.f32.mrb[73].mxu0  ;;  %v4770_v31 = vsel %vm947_vm7, %v12513_v48, %v12512_v13  ;;  %v11018_v61 = vpack.c.bf16 %v4215_v8, %v4214_v28  ;;  %v4790_v41 = vpop.permute.xlu0 %4789  ;;  %v4716_v28 = vor.u32 %v4715_v9, %v4714_v23  ;;  %v12515_v13 = vld [vmem:[#allocation45_spill] sm:$0xff]  ;;  %v12520_v23 = vld [vmem:[#allocation46_spill] sm:$0xff] }
 0x5d6   : >> { %v4038_v10 = vpop.f32.mrb[74].mxu0  ;;  %4855 = vrot.lane.b32.xlu0 %v4770_v31, %s7359_s24  ;;  %v11023_v62 = vld [vmem:[#allocation2 + $0x133] sm:$0xff] }
 0x5d7   : >> { %4481 = vrot.lane.b32.xlu1 %v4385_v18, %s7360_s29  ;;  %v4093_v29 = vmax.f32 %v7074_v15, 0.0  ;;  %v7075_v0 = vadd.f32 %v10883_v2, %v4038_v10  ;;  %v6935_v50 = vpop.f32.mrb[75].mxu0  ;;  %12514 = vst [vmem:[#allocation100_spill] sm:$0xff] %v11023_v62  ;;  %v11028_v48 = vshll.u32 %v11018_v61, 16  ;;  %v11031_v8 = vshrl.u32 %v11018_v61, 16 }
 0x5d8   : >> { %v11034_v18 = vpop.permute.xlu1 %4567  ;;  %v12516_v10 = vrot.slane %v10789_v1, 1  ;;  %v12517_v50 = vrot.slane %v10749_v52, 1  ;;  %v11046_v37 = vsel %vm811_vm4, %v4712_v25, %v4716_v28 }
 0x5d9   : >> { %v4134_v53 = vmul.f32 %v4093_v29, %v12515_v13  ;;  %v4094_v27 = vmax.f32 %v7075_v0, 0.0  ;;  %12519 = vst [vmem:[#allocation102_spill] sm:$0xff] %v11046_v37  ;;  %v4718_v29 = vrot.slane %v11031_v8, 1  ;;  %v4719_v0 = vrot.slane %v11028_v48, 2 }
 0x5da   : >> { %v4548_v15 = vsel %vm679_vm3, %v12517_v50, %v12516_v10  ;;  %4809 = vrot.lane.b32.xlu0 %v4770_v31, %s7360_s29  ;;  %v4921_v10 = vsel %vm1079_vm5, %v10966_v33, %v11025_v36  ;;  %v4216_v50 = vld [vmem:[#allocation2 + $0x120] sm:$0xff] }
 0x5db   : >> { %4633 = vrot.lane.b32.xlu1 %v4548_v15, %s7361_s25  ;;  %4175 = vst.msk [vmem:[#allocation2 + $0x133] sm:$0xff] %vm322_vm0, %v4134_v53  ;;  %v4135_v9 = vmul.f32 %v4094_v27, %v12520_v23  ;;  %v12226_v23 = vrot.slane %v10834_v16, 2  ;;  %v4720_v52 = vor.u32 %v4719_v0, %v4718_v29  ;;  %v4923_v29 = vrot.slane %v10844_v38, 3 }
 0x5dc   : >> { %v4043_v13 = vpop.f32.mrb[76].mxu0  ;;  %v4838_v62 = vpop.permute.xlu0 %4837  ;;  %v4217_v57 = vld [vmem:[#allocation2 + $0x128] sm:$0xff] }
 0x5dd   : >> { %4176 = vst.msk [vmem:[#allocation2 + $0x13b] sm:$0xff] %vm322_vm0, %v4135_v9  ;;  %v7076_v25 = vadd.f32 %v10883_v2, %v4043_v13  ;;  %v11058_v53 = vpop.permute.xlu1 %4463  ;;  %v6938_v27 = vpop.f32.mrb[77].mxu0  ;;  %v11061_v37 = vpack.c.bf16 %v4217_v57, %v4216_v50  ;;  %v12521_v9 = vrot.slane %v10757_v6, 1  ;;  %v12524_v6 = vld [vmem:[#allocation47_spill] sm:$0xff]  ;;  %v12525_v50 = vrot.slane %v10789_v1, 2 }
 0x5de   : >> { %v4046_v21 = vpop.f32.mrb[78].mxu0  ;;  %4990 = vrot.lane.b32.xlu0 %v4921_v10, %s7361_s25  ;;  %v4922_v27 = vrot.slane %v10847_v7, 2 }
 0x5df   : >> { %4587 = vrot.lane.b32.xlu1 %v4548_v15, %s7359_s24  ;;  %v4095_v33 = vmax.f32 %v7076_v25, 0.0  ;;  %v7077_v31 = vadd.f32 %v10883_v2, %v4046_v21  ;;  %v6939_v40 = vpop.f32.mrb[79].mxu0  ;;  %v4388_v13 = vor.u32 %v10760_v49, %v12521_v9  ;;  %v11076_v0 = vshll.u32 %v11061_v37, 16 }
 0x5e0   : >> { %v11072_v57 = vpop.permute.xlu0 %4791  ;;  %v11079_v15 = vshrl.u32 %v11061_v37, 16  ;;  %v11082_v40 = vsel %vm811_vm4, %v4716_v28, %v4720_v52  ;;  %v4772_v25 = vsel %vm947_vm7, %v12525_v50, %v12226_v23  ;;  %v12526_v9 = vrot.slane %v10806_v30, 1  ;;  %v12528_v50 = vld [vmem:[#allocation48_spill] sm:$0xff] }
 0x5e1   : >> { %12523 = vst [vmem:[#allocation104_spill] sm:$0xff] %v11082_v40  ;;  %v4136_v21 = vmul.f32 %v4095_v33, %v12524_v6  ;;  %v4096_v49 = vmax.f32 %v7077_v31, 0.0  ;;  %v11085_v10 = vpop.permute.xlu1 %4615  ;;  %v5057_v28 = vsel %vm322_vm0, %v10322_v35, %v10975_v39  ;;  %v11098_v40 = vld [vmem:[#allocation2 + $0x14b] sm:$0xff]  ;;  %v5205_v33 = vsel %vm322_vm0, %v10427_v55, %v4790_v41 }
 0x5e2   : >> { %v4393_v5 = vsel %vm448_vm2, %v4388_v13, %v12526_v9  ;;  %12527 = vst [vmem:[#allocation105_spill] sm:$0xff] %v11098_v40  ;;  %4857 = vrot.lane.b32.xlu0 %v4772_v25, %s7359_s24  ;;  %v4722_v9 = vrot.slane %v11079_v15, 1  ;;  %v4723_v35 = vrot.slane %v11076_v0, 2  ;;  %v5267_v39 = vsel %vm3205_vm8, %v5205_v33, %v4838_v62  ;;  %v7260_v31 = vld [vmem:[%s9413_s8 + $0x110] sm:$0xff]  }
 0x5e3   : >> { %4483 = vrot.lane.b32.xlu1 %v4393_v5, %s7360_s29  ;;  %4177 = vst.msk [vmem:[#allocation2 + $0x143] sm:$0xff] %vm322_vm0, %v4136_v21  ;;  %v4137_v13 = vmul.f32 %v4096_v49, %v12528_v50  ;;  %v11110_v40 = vor.u32 %v4923_v29, %v4922_v27  ;;  %v4218_v5 = vld [vmem:[#allocation2 + $0x130] sm:$0xff]  ;;  %v5099_v50 = vsel %vm3205_vm8, %v5057_v28, %v10957_v32  ;;  %v12529_v27 = vrot.slane %v10834_v16, 1 }
 0x5e4   : >> { %v4051_v23 = vpop.f32.mrb[80].mxu0  ;;  %v4973_v6 = vpop.permute.xlu0 %4972  ;;  %v4219_v11 = vld [vmem:[#allocation2 + $0x138] sm:$0xff]  ;;  %v12530_v29 = vrot.slane %v10789_v1, 1 }
 0x5e5   : >> { %4178 = vst.msk [vmem:[#allocation2 + $0x14b] sm:$0xff] %vm322_vm0, %v4137_v13  ;;  %v7078_v55 = vadd.f32 %v10883_v2, %v4051_v23  ;;  %v11115_v41 = vpop.permute.xlu1 %4569  ;;  %v6942_v21 = vpop.f32.mrb[81].mxu0  ;;  %v5309_v49 = vsel %vm3248_vm10, %v5267_v39, %v4973_v6  ;;  %v11120_v62 = vpack.c.bf16 %v4219_v11, %v4218_v5  ;;  %v5141_v23 = vsel %vm3248_vm10, %v5099_v50, %v11010_v3  ;;  %v12533_v3 = vld [vmem:[#allocation49_spill] sm:$0xff] }
 0x5e6   : >> { %v4054_v33 = vpop.f32.mrb[82].mxu0  ;;  %4811 = vrot.lane.b32.xlu0 %v4772_v25, %s7360_s29  ;;  %5580 = vmatprep.mubr.bf16.mxu1 %v5309_v49  ;;  %v4550_v2 = vsel %vm679_vm3, %v12530_v29, %v12529_v27  ;;  %v4724_v13 = vor.u32 %v4723_v35, %v4722_v9  ;;  %v11134_v25 = vld [vmem:[#allocation2 + $0x153] sm:$0xf]  ;;  %v4925_v35 = vsel %vm1079_vm5, %v11025_v36, %v11110_v40  ;;  %v4400_v21 = vrot.slane %v10844_v38, 1 }
 0x5e7   : >> { %v4097_v6 = vmax.f32 %v7078_v55, 0.0  ;;  %4635 = vrot.lane.b32.xlu1 %v4550_v2, %s7361_s25  ;;  %v6943_v32 = vpop.f32.mrb[83].mxu0  ;;  %5581 = vmatmul.mubr.bf16.vlgmr.msra.gmra.mrb[0].mxu1 %v5141_v23  ;;  %v11132_v11 = vshll.u32 %v11120_v62, 16  ;;  %12531 = vst [vmem:[#allocation106_spill] sm:$0xff] %v11134_v25  ;;  %v11137_v39 = vshrl.u32 %v11120_v62, 16  ;;  %v4773_v55 = vrot.slane %v10878_v60, 2 }
 0x5e8   : >> { %v4840_v28 = vpop.permute.xlu0 %4839  ;;  %6945 = vmatpush3.bf16.msra.mxu1 %v7260_v31  ;;  %v11140_v5 = vsel %vm811_vm4, %v4720_v52, %v4724_v13  ;;  %v12534_v33 = vrot.slane %v10806_v30, 1  ;;  %v12535_v38 = vrot.slane %v10834_v16, 2  ;;  %v4927_v32 = vrot.slane %v10889_v47, 3 }
 0x5e9   : >> { %12532 = vst [vmem:[#allocation107_spill] sm:$0xff] %v11140_v5  ;;  %v4138_v50 = vmul.f32 %v4097_v6, %v12533_v3  ;;  %v11143_v9 = vpop.permute.xlu1 %4465  ;;  %6946 = vmatprep.subr.bf16.mxu1 %v12384_v58  ;;  %v4726_v52 = vrot.slane %v11137_v39, 1  ;;  %v4727_v31 = vrot.slane %v11132_v11, 2  ;;  %v5059_v30 = vsel %vm322_vm0, %v10342_v51, %v11058_v53  ;;  %v11184_v53 = vld [vmem:[#allocation2 + $0x160] sm:$0xff]  ;;  %v4225_v58 = vld [vmem:[#allocation2 + $0x168] sm:$0x3] }
 0x5ea   : >> { %4992 = vrot.lane.b32.xlu0 %v4925_v35, %s7361_s25  ;;  %v4396_v36 = vor.u32 %v10809_v26, %v12534_v33  ;;  %v11159_v27 = vld [vmem:[#allocation2 + $0x140] sm:$0xff]  ;;  %v4774_v6 = vsel %vm947_vm7, %v12535_v38, %v4773_v55  ;;  %v12231_v35 = vrot.slane %v10878_v60, 1  ;;  %v5208_v38 = vsel %vm322_vm0, %v10468_v56, %v11072_v57  ;;  %v4223_v51 = vld [vmem:[#allocation2 + $0x158] sm:$0xff] }
 0x5eb   : >> { %4179 = vst.msk [vmem:[#allocation2 + $0x153] sm:$0xf] %vm2238_vm1, %v4138_v50  ;;  %4589 = vrot.lane.b32.xlu1 %v4550_v2, %s7359_s24  ;;  %v4926_v2 = vrot.slane %v10892_v17, 2  ;;  %v4728_v33 = vor.u32 %v4727_v31, %v4726_v52  ;;  %v5101_v56 = vsel %vm3205_vm8, %v5059_v30, %v11034_v18  ;;  %v4408_v18 = vrot.slane %v10889_v47, 1 }
 0x5ec   : >> { %v4794_v49 = vpop.permute.xlu0 %4793  ;;  %v4221_v29 = vld [vmem:[#allocation2 + $0x148] sm:$0xff]  ;;  %v4401_v26 = vsel %vm448_vm2, %v4396_v36, %v4400_v21 }
 0x5ed   : >> { %v11161_v23 = vpop.permute.xlu1 %4617  ;;  %v11169_v50 = vpack.c.bf16 %v4221_v29, %v11159_v27  ;;  %v5269_v29 = vsel %vm3205_vm8, %v5208_v38, %v4840_v28  ;;  %v11187_v36 = vsel %vm811_vm4, %v4724_v13, %v4728_v33  ;;  %v4928_v57 = vor.u32 %v4927_v32, %v4926_v2 }
 0x5ee   : >> { %4859 = vrot.lane.b32.xlu0 %v4774_v6, %s7359_s24  ;;  %12536 = vst [vmem:[#allocation108_spill] sm:$0xff] %v11187_v36  ;;  %v12537_v28 = vrot.slane %v10834_v16, 1  ;;  %v5144_v13 = vsel %vm3248_vm10, %v5101_v56, %v11085_v10  ;;  %v4775_v2 = vrot.slane %v10921_v24, 2  ;;  %v4404_v56 = vor.u32 %v10847_v7, %v4400_v21 }
 0x5ef   : >> { %4485 = vrot.lane.b32.xlu1 %v4401_v26, %s7360_s29  ;;  %v12230_v25 = vshrl.u32 %v11169_v50, 16  ;;  %v12538_v30 = vshll.u32 %v11169_v50, 16  ;;  %v12539_v36 = vrot.slane %v11169_v50, 3 }
 0x5f0   : >> { %v4975_v3 = vpop.permute.xlu0 %4974  ;;  %v4552_v26 = vsel %vm679_vm3, %v12537_v28, %v12231_v35  ;;  %v4930_v35 = vrot.slane %v10941_v42, 2 }
 0x5f1   : >> { %v11189_v52 = vpop.permute.xlu1 %4571  ;;  %v5312_v31 = vsel %vm3248_vm10, %v5269_v29, %v4975_v3  ;;  %v11205_v3 = vpack.c.bf16 %v4225_v58, %v11184_v53  ;;  %v4733_v32 = vrot.slane %v12230_v25, 1  ;;  %v4736_v29 = vrot.slane %v12538_v30, 2 }
 0x5f2   : >> { %4813 = vrot.lane.b32.xlu0 %v4774_v6, %s7360_s29  ;;  %5588 = vmatprep.mubr.bf16.mxu1 %v5312_v31  ;;  %v4222_v38 = vld [vmem:[#allocation2 + $0x150] sm:$0xff]  ;;  %v4929_v31 = vsel %vm1079_vm5, %v11110_v40, %v4928_v57  ;;  %v4409_v58 = vsel %vm448_vm2, %v4404_v56, %v4408_v18  ;;  %v4776_v30 = vsel %vm947_vm7, %v4773_v55, %v4775_v2  ;;  %v4931_v40 = vrot.slane %v10938_v54, 3 }
 0x5f3   : >> { %4637 = vrot.lane.b32.xlu1 %v4552_v26, %s7361_s25  ;;  %5589 = vmatmul.mubr.bf16.gmra.mrb[4].mxu1 %v5144_v13  ;;  %v11215_v28 = vpack.c.bf16 %v4223_v51, %v4222_v38  ;;  %v11217_v47 = vpack.c.bf16 %v4222_v38, %v4222_v38  ;;  %v4737_v7 = vor.u32 %v4736_v29, %v4733_v32  ;;  %v4553_v32 = vrot.slane %v10921_v24, 1 }
 0x5f4   : >> { %v4842_v6 = vpop.permute.xlu0 %4841  ;;  %v5061_v56 = vsel %vm322_vm0, %v10375_v22, %v11143_v9  ;;  %v5211_v55 = vsel %vm322_vm0, %v10505_v14, %v4794_v49  ;;  %v12540_v9 = vrot.slane %v11205_v3, 3 }
 0x5f5   : >> { %v4468_v10 = vpop.permute.xlu1 %4467  ;;  %v4740_v51 = vshrl.u32 %v11217_v47, 16  ;;  %v4743_v38 = vshll.u32 %v11217_v47, 16  ;;  %v11238_v29 = vsel %vm811_vm4, %v4728_v33, %v4737_v7  ;;  %v5271_v49 = vsel %vm3205_vm8, %v5211_v55, %v4842_v6 }
 0x5f6   : >> { %4994 = vrot.lane.b32.xlu0 %v4929_v31, %s7361_s25  ;;  %v4934_v55 = vrot.slane %v10982_v45, 2 }
 0x5f7   : >> { %4591 = vrot.lane.b32.xlu1 %v4552_v26, %s7359_s24  ;;  %v5052_v26 = vrot.slane %v11215_v28, 3  ;;  %v4742_v13 = vrot.slane %v4740_v51, 1  ;;  %v4745_v31 = vrot.slane %v4743_v38, 2  ;;  %v4932_v51 = vor.u32 %v4931_v40, %v4930_v35 }
 0x5f8   : >> { %v4796_v25 = vpop.permute.xlu0 %4795  ;;  %v4416_v40 = vrot.slane %v10938_v54, 1  ;;  %v4555_v54 = vrot.slane %v10968_v4, 1 }
 0x5f9   : >> { %v4620_v21 = vpop.permute.xlu1 %4619  ;;  %v11244_v5 = vsel %vm1216_vm9, %v12539_v36, %v5052_v26  ;;  %v11249_v14 = vsel %vm1216_vm9, %v5052_v26, %v12540_v9  ;;  %v11257_v38 = vor.u32 %v4745_v31, %v4742_v13  ;;  %v12541_v36 = vrot.slane %v10878_v60, 1 }
 0x5fa   : >> { %4861 = vrot.lane.b32.xlu0 %v4776_v30, %s7359_s24  ;;  %v4933_v13 = vsel %vm1079_vm5, %v4928_v57, %v4932_v51  ;;  %v4412_v31 = vor.u32 %v10892_v17, %v4408_v18  ;;  %v4935_v9 = vrot.slane %v10979_v20, 3  ;;  %v5063_v57 = vsel %vm322_vm0, %v10407_v46, %v4468_v10  ;;  %v7261_v17 = vld [vmem:[%s9413_s8 + $0x118] sm:$0xff]  }
 0x5fb   : >> { %4487 = vrot.lane.b32.xlu1 %v4409_v58, %s7360_s29  ;;  %v5103_v58 = vsel %vm3205_vm8, %v5061_v56, %v11115_v41  ;;  %v4554_v26 = vsel %vm679_vm3, %v12541_v36, %v4553_v32  ;;  %v5105_v10 = vsel %vm3205_vm8, %v5063_v57, %v11189_v52  ;;  %6947 = vmatpush3.bf16.msra.mxu1 %v7261_v17  ;;  %v4424_v52 = vrot.slane %v10979_v20, 1 }
 0x5fc   : >> { %v4977_v22 = vpop.permute.xlu0 %4976  ;;  %v5147_v6 = vsel %vm3248_vm10, %v5103_v58, %v11161_v23  ;;  %v4939_v57 = vrot.slane %v11028_v48, 3  ;;  %v4557_v20 = vrot.slane %v11018_v61, 1 }
 0x5fd   : >> { %v11252_v24 = vpop.permute.xlu1 %4573  ;;  %v5315_v33 = vsel %vm3248_vm10, %v5271_v49, %v4977_v22  ;;  %v11268_v22 = vsel %vm811_vm4, %v4737_v7, %v11257_v38  ;;  %v4417_v49 = vsel %vm448_vm2, %v4412_v31, %v4416_v40  ;;  %v4779_v31 = vrot.slane %v11018_v61, 2 }
 0x5fe   : >> { %4815 = vrot.lane.b32.xlu0 %v4776_v30, %s7360_s29  ;;  %5596 = vmatprep.mubr.bf16.mxu1 %v5315_v33  ;;  %v4777_v30 = vrot.slane %v10968_v4, 2  ;;  %v5214_v33 = vsel %vm322_vm0, %v10554_v12, %v4796_v25  ;;  %v5150_v12 = vsel %vm3248_vm10, %v5105_v10, %v4620_v21 }
 0x5ff   : >> { %4639 = vrot.lane.b32.xlu1 %v4554_v26, %s7361_s25  ;;  %5597 = vmatmul.mubr.bf16.gmra.mrb[8].mxu1 %v5147_v6  ;;  %v4556_v6 = vsel %vm679_vm3, %v4553_v32, %v4555_v54  ;;  %v4420_v32 = vor.u32 %v10941_v42, %v4416_v40 }
 0x600   : >> { %v4844_v41 = vpop.permute.xlu0 %4843  ;;  %v4778_v7 = vsel %vm947_vm7, %v4775_v2, %v4777_v30  ;;  %v4780_v21 = vsel %vm947_vm7, %v4777_v30, %v4779_v31 }
 0x601   : >> { %v4470_v35 = vpop.permute.xlu1 %4469  ;;  %v5273_v18 = vsel %vm3205_vm8, %v5214_v33, %v4844_v41 }
 0x602   : >> { %4996 = vrot.lane.b32.xlu0 %v4933_v13, %s7361_s25 }
 0x603   : >> { %4593 = vrot.lane.b32.xlu1 %v4554_v26, %s7359_s24  ;;  %v4936_v26 = vor.u32 %v4935_v9, %v4934_v55  ;;  %v4938_v9 = vrot.slane %v11031_v8, 2 }
 0x604   : >> { %v4798_v23 = vpop.permute.xlu0 %4797 }
 0x605   : >> { %v4622_v56 = vpop.permute.xlu1 %4621  ;;  %v4937_v13 = vsel %vm1079_vm5, %v4932_v51, %v4936_v26  ;;  %v5065_v51 = vsel %vm322_vm0, %v10452_v44, %v4470_v35  ;;  %v5217_v33 = vsel %vm322_vm0, %v10592_v63, %v4798_v23 }
 0x606   : >> { %4863 = vrot.lane.b32.xlu0 %v4778_v7, %s7359_s24  ;;  %v5107_v35 = vsel %vm3205_vm8, %v5065_v51, %v11252_v24  ;;  %v4432_v24 = vrot.slane %v11028_v48, 1  ;;  %v4559_v48 = vrot.slane %v11061_v37, 1 }
 0x607   : >> { %4489 = vrot.lane.b32.xlu1 %v4417_v49, %s7360_s29  ;;  %v4425_v49 = vsel %vm448_vm2, %v4420_v32, %v4424_v52  ;;  %v5153_v63 = vsel %vm3248_vm10, %v5107_v35, %v4622_v56  ;;  %v4943_v32 = vrot.slane %v11076_v0, 3 }
 0x608   : >> { %v4979_v2 = vpop.permute.xlu0 %4978 }
 0x609   : >> { %v11289_v58 = vpop.permute.xlu1 %4575  ;;  %v5318_v36 = vsel %vm3248_vm10, %v5273_v18, %v4979_v2  ;;  %v4940_v18 = vor.u32 %v4939_v57, %v4938_v9  ;;  %v4558_v2 = vsel %vm679_vm3, %v4555_v54, %v4557_v20  ;;  %v4428_v54 = vor.u32 %v10982_v45, %v4424_v52 }
 0x60a   : >> { %4817 = vrot.lane.b32.xlu0 %v4778_v7, %s7360_s29  ;;  %5604 = vmatprep.mubr.bf16.mxu1 %v5318_v36 }
 0x60b   : >> { %4641 = vrot.lane.b32.xlu1 %v4556_v6, %s7361_s25  ;;  %5605 = vmatmul.mubr.bf16.gmra.mrb[12].mxu1 %v5150_v12  ;;  %v4941_v10 = vsel %vm1079_vm5, %v4936_v26, %v4940_v18 }
 0x60c   : >> { %v4846_v25 = vpop.permute.xlu0 %4845 }
 0x60d   : >> { %v4472_v41 = vpop.permute.xlu1 %4471  ;;  %v5275_v42 = vsel %vm3205_vm8, %v5217_v33, %v4846_v25 }
 0x60e   : >> { %4998 = vrot.lane.b32.xlu0 %v4937_v13, %s7361_s25  ;;  %v4942_v13 = vrot.slane %v11079_v15, 2  ;;  %v5067_v26 = vsel %vm322_vm0, %v10491_v59, %v4472_v41 }
 0x60f   : >> { %4595 = vrot.lane.b32.xlu1 %v4556_v6, %s7359_s24  ;;  %v4781_v6 = vrot.slane %v11061_v37, 2  ;;  %v5109_v52 = vsel %vm3205_vm8, %v5067_v26, %v11289_v58  ;;  %v4783_v58 = vrot.slane %v11120_v62, 2 }
 0x610   : >> { %v4800_v7 = vpop.permute.xlu0 %4799  ;;  %v4944_v51 = vor.u32 %v4943_v32, %v4942_v13 }
 0x611   : >> { %v4624_v55 = vpop.permute.xlu1 %4623  ;;  %v4782_v56 = vsel %vm947_vm7, %v4779_v31, %v4781_v6  ;;  %v5220_v9 = vsel %vm322_vm0, %v10634_v19, %v4800_v7 }
 0x612   : >> { %4865 = vrot.lane.b32.xlu0 %v4780_v21, %s7359_s24  ;;  %v5156_v19 = vsel %vm3248_vm10, %v5109_v52, %v4624_v55  ;;  %v4784_v55 = vsel %vm947_vm7, %v4781_v6, %v4783_v58  ;;  %v12542_v52 = vshrl.u32 %v11169_v50, 16 }
 0x613   : >> { %4491 = vrot.lane.b32.xlu1 %v4425_v49, %s7360_s29  ;;  %v4560_v49 = vsel %vm679_vm3, %v4557_v20, %v4559_v48  ;;  %v4436_v20 = vor.u32 %v11031_v8, %v4432_v24 }
 0x614   : >> { %v4981_v30 = vpop.permute.xlu0 %4980 }
 0x615   : >> { %v11316_v40 = vpop.permute.xlu1 %4577  ;;  %v5321_v17 = vsel %vm3248_vm10, %v5275_v42, %v4981_v30  ;;  %v4945_v42 = vsel %vm1079_vm5, %v4940_v18, %v4944_v51  ;;  %v4440_v30 = vrot.slane %v11076_v0, 1  ;;  %v4561_v0 = vrot.slane %v11120_v62, 1 }
 0x616   : >> { %4819 = vrot.lane.b32.xlu0 %v4780_v21, %s7360_s29  ;;  %5612 = vmatprep.mubr.bf16.mxu1 %v5321_v17  ;;  %v4433_v21 = vsel %vm448_vm2, %v4428_v54, %v4432_v24 }
 0x617   : >> { %4643 = vrot.lane.b32.xlu1 %v4558_v2, %s7361_s25  ;;  %5613 = vmatmul.mubr.bf16.gmra.mrb[16].mxu1 %v5153_v63  ;;  %v4947_v63 = vrot.slane %v11132_v11, 3  ;;  %v4562_v13 = vsel %vm679_vm3, %v4559_v48, %v4561_v0  ;;  %v4444_v48 = vor.u32 %v11079_v15, %v4440_v30 }
 0x618   : >> { %v4848_v23 = vpop.permute.xlu0 %4847 }
 0x619   : >> { %v4474_v36 = vpop.permute.xlu1 %4473  ;;  %v5277_v45 = vsel %vm3205_vm8, %v5220_v9, %v4848_v23  ;;  %v4441_v23 = vsel %vm448_vm2, %v4436_v20, %v4440_v30  ;;  %v11385_v9 = vpack.c.bf16 %v11159_v27, %v11159_v27 }
 0x61a   : >> { %5000 = vrot.lane.b32.xlu0 %v4941_v10, %s7361_s25  ;;  %v5069_v18 = vsel %vm322_vm0, %v10531_v34, %v4474_v36 }
 0x61b   : >> { %4597 = vrot.lane.b32.xlu1 %v4558_v2, %s7359_s24  ;;  %v4946_v2 = vrot.slane %v11137_v39, 2  ;;  %v5111_v24 = vsel %vm3205_vm8, %v5069_v18, %v11316_v40  ;;  %v4785_v40 = vrot.slane %v11169_v50, 2  ;;  %v4609_v18 = vrot.slane %v11169_v50, 1 }
 0x61c   : >> { %v4802_v12 = vpop.permute.xlu0 %4801 }
 0x61d   : >> { %v4626_v25 = vpop.permute.xlu1 %4625  ;;  %v5223_v10 = vsel %vm322_vm0, %v10683_v43, %v4802_v12 }
 0x61e   : >> { %4867 = vrot.lane.b32.xlu0 %v4782_v56, %s7359_s24  ;;  %v5159_v43 = vsel %vm3248_vm10, %v5111_v24, %v4626_v25  ;;  %v4610_v24 = vsel %vm679_vm3, %v4561_v0, %v4609_v18 }
 0x61f   : >> { %4493 = vrot.lane.b32.xlu1 %v4433_v21, %s7360_s29  ;;  %v4448_v21 = vrot.slane %v11132_v11, 1 }
 0x620   : >> { %v4983_v31 = vpop.permute.xlu0 %4982 }
 0x621   : >> { %v11345_v57 = vpop.permute.xlu1 %4579  ;;  %v5324_v41 = vsel %vm3248_vm10, %v5277_v45, %v4983_v31  ;;  %v4786_v31 = vsel %vm947_vm7, %v4783_v58, %v4785_v40  ;;  %v4449_v27 = vsel %vm448_vm2, %v4444_v48, %v4448_v21  ;;  %v4955_v48 = vshrl.u32 %v11215_v28, 16 }
 0x622   : >> { %4821 = vrot.lane.b32.xlu0 %v4782_v56, %s7360_s29  ;;  %5620 = vmatprep.mubr.bf16.mxu1 %v5324_v41  ;;  %v4948_v56 = vor.u32 %v4947_v63, %v4946_v2  ;;  %v4950_v41 = vrot.slane %v12542_v52, 2  ;;  %v12546_v52 = vld [vmem:[#allocation70_spill] sm:$0xff] }
 0x623   : >> { %4645 = vrot.lane.b32.xlu1 %v4560_v49, %s7361_s25  ;;  %5621 = vmatmul.mubr.bf16.gmra.mrb[20].mxu1 %v5156_v19  ;;  %v12544_v19 = vld [vmem:[#allocation67_spill] sm:$0xff] }
 0x624   : >> { %v4850_v7 = vpop.permute.xlu0 %4849  ;;  %v4949_v26 = vsel %vm1079_vm5, %v4944_v51, %v4948_v56  ;;  %v12543_v51 = vshll.u32 %v11169_v50, 16 }
 0x625   : >> { %v4476_v33 = vpop.permute.xlu1 %4475  ;;  %v5279_v8 = vsel %vm3205_vm8, %v5223_v10, %v4850_v7  ;;  %v4563_v7 = vrot.slane %v11385_v9, 1 }
 0x626   : >> { %5002 = vrot.lane.b32.xlu0 %v4945_v42, %s7361_s25  ;;  %v5071_v11 = vsel %vm322_vm0, %v12544_v19, %v4476_v33  ;;  %v12545_v42 = vld [vmem:[#allocation78_spill] sm:$0xff] }
 0x627   : >> { %4599 = vrot.lane.b32.xlu1 %v4560_v49, %s7359_s24  ;;  %v4951_v49 = vrot.slane %v12543_v51, 3  ;;  %v5113_v20 = vsel %vm3205_vm8, %v5071_v11, %v11345_v57  ;;  %v4564_v63 = vsel %vm679_vm3, %v4561_v0, %v4563_v7 }
 0x628   : >> { %v4804_v17 = vpop.permute.xlu0 %4803 }
 0x629   : >> { %v4628_v35 = vpop.permute.xlu1 %4627  ;;  %v5226_v15 = vsel %vm322_vm0, %v12545_v42, %v4804_v17  ;;  %v4952_v2 = vor.u32 %v4951_v49, %v4950_v41 }
 0x62a   : >> { %4869 = vrot.lane.b32.xlu0 %v4784_v55, %s7359_s24  ;;  %v5162_v17 = vsel %vm3248_vm10, %v5113_v20, %v4628_v35 }
 0x62b   : >> { %4495 = vrot.lane.b32.xlu1 %v4441_v23, %s7360_s29  ;;  %v4454_v23 = vshll.u32 %v11385_v9, 16 }
 0x62c   : >> { %v4985_v6 = vpop.permute.xlu0 %4984 }
 0x62d   : >> { %v11372_v54 = vpop.permute.xlu1 %4581  ;;  %v5327_v36 = vsel %vm3248_vm10, %v5279_v8, %v4985_v6  ;;  %v4953_v8 = vsel %vm1079_vm5, %v4948_v56, %v4952_v2  ;;  %v4833_v6 = vrot.slane %v11215_v28, 2 }
 0x62e   : >> { %4823 = vrot.lane.b32.xlu0 %v4784_v55, %s7360_s29  ;;  %5628 = vmatprep.mubr.bf16.mxu1 %v5327_v36  ;;  %v4456_v36 = vrot.slane %v4454_v23, 1  ;;  %v4967_v23 = vshll.u32 %v11205_v3, 16 }
 0x62f   : >> { %4647 = vrot.lane.b32.xlu1 %v4562_v13, %s7361_s25  ;;  %5629 = vmatmul.mubr.bf16.gmra.mrb[24].mxu1 %v5159_v43  ;;  %v4787_v43 = vrot.slane %v11217_v47, 2  ;;  %v4834_v56 = vsel %vm947_vm7, %v4785_v40, %v4833_v6 }
 0x630   : >> { %v4852_v12 = vpop.permute.xlu0 %4851 }
 0x631   : >> { %v4478_v32 = vpop.permute.xlu1 %4477  ;;  %v5281_v58 = vsel %vm3205_vm8, %v5226_v15, %v4852_v12  ;;  %v4292_v12 = vpack.c.bf16 %v11184_v53, %v11184_v53  ;;  %v4788_v11 = vsel %vm947_vm7, %v4785_v40, %v4787_v43  ;;  %v4957_v15 = vrot.slane %v4955_v48, 2 }
 0x632   : >> { %5004 = vrot.lane.b32.xlu0 %v4949_v26, %s7361_s25  ;;  %v5073_v0 = vsel %vm322_vm0, %v12546_v52, %v4478_v32  ;;  %v4458_v40 = vshrl.u32 %v11385_v9, 16 }
 0x633   : >> { %4601 = vrot.lane.b32.xlu1 %v4562_v13, %s7359_s24  ;;  %v4452_v13 = vor.u32 %v11137_v39, %v4448_v21  ;;  %v4611_v39 = vrot.slane %v11217_v47, 1  ;;  %v12547_v21 = vld [vmem:[#allocation82_spill] sm:$0xff]  ;;  %v5115_v32 = vsel %vm3205_vm8, %v5073_v0, %v11372_v54  ;;  %v4964_v54 = vshrl.u32 %v11205_v3, 16 }
 0x634   : >> { %v4806_v25 = vpop.permute.xlu0 %4805 }
 0x635   : >> { %v4630_v45 = vpop.permute.xlu1 %4629  ;;  %v4457_v41 = vsel %vm448_vm2, %v4452_v13, %v4456_v36  ;;  %v5229_v51 = vsel %vm322_vm0, %v12547_v21, %v4806_v25  ;;  %v4612_v47 = vsel %vm679_vm3, %v4609_v18, %v4611_v39  ;;  %v12548_v13 = vld [vmem:[#allocation73_spill] sm:$0xff] }
 0x636   : >> { %4871 = vrot.lane.b32.xlu0 %v4786_v31, %s7359_s24  ;;  %v5165_v25 = vsel %vm3248_vm10, %v5115_v32, %v4630_v45 }
 0x637   : >> { %4497 = vrot.lane.b32.xlu1 %v4449_v27, %s7360_s29 }
 0x638   : >> { %v4987_v30 = vpop.permute.xlu0 %4986 }
 0x639   : >> { %v11405_v55 = vpop.permute.xlu1 %4583  ;;  %v5330_v33 = vsel %vm3248_vm10, %v5281_v58, %v4987_v30 }
 0x63a   : >> { %4825 = vrot.lane.b32.xlu0 %v4786_v31, %s7360_s29  ;;  %5636 = vmatprep.mubr.bf16.mxu1 %v5330_v33  ;;  %v4958_v31 = vshll.u32 %v11215_v28, 16  ;;  %v4835_v28 = vrot.slane %v4292_v12, 2 }
 0x63b   : >> { %4603 = vrot.lane.b32.xlu1 %v4564_v63, %s7359_s24  ;;  %5637 = vmatmul.mubr.bf16.gmra.mrb[28].mxu1 %v5162_v17  ;;  %v4460_v63 = vor.u32 %v4458_v40, %v4456_v36 }
 0x63c   : >> { %v4854_v57 = vpop.permute.xlu0 %4853  ;;  %v4960_v58 = vrot.slane %v4958_v31, 3  ;;  %v4836_v33 = vsel %vm947_vm7, %v4833_v6, %v4835_v28  ;;  %v12549_v6 = vld [vmem:[#allocation85_spill] sm:$0xff] }
 0x63d   : >> { %v4480_v10 = vpop.permute.xlu1 %4479  ;;  %v5283_v53 = vsel %vm3205_vm8, %v5229_v51, %v4854_v57 }
 0x63e   : >> { %5006 = vrot.lane.b32.xlu0 %v4953_v8, %s7361_s25  ;;  %v4961_v17 = vor.u32 %v4960_v58, %v4957_v15  ;;  %v4966_v8 = vrot.slane %v4964_v54, 2  ;;  %v5075_v12 = vsel %vm322_vm0, %v12548_v13, %v4480_v10 }
 0x63f   : >> { %4649 = vrot.lane.b32.xlu1 %v4610_v24, %s7361_s25  ;;  %v4969_v24 = vrot.slane %v4967_v23, 3 }
 0x640   : >> { %v4808_v35 = vpop.permute.xlu0 %4807  ;;  %v4962_v57 = vsel %vm1079_vm5, %v4952_v2, %v4961_v17  ;;  %v5117_v2 = vsel %vm3205_vm8, %v5075_v12, %v11405_v55 }
 0x641   : >> { %v4632_v26 = vpop.permute.xlu1 %4631  ;;  %v5232_v36 = vsel %vm322_vm0, %v12549_v6, %v4808_v35 }
 0x642   : >> { %4873 = vrot.lane.b32.xlu0 %v4834_v56, %s7359_s24  ;;  %v5168_v10 = vsel %vm3248_vm10, %v5117_v2, %v4632_v26 }
 0x643   : >> { %4499 = vrot.lane.b32.xlu1 %v4457_v41, %s7360_s29  ;;  %v4970_v41 = vor.u32 %v4969_v24, %v4966_v8 }
 0x644   : >> { %v4989_v49 = vpop.permute.xlu0 %4988 }
 0x645   : >> { %v4586_v27 = vpop.permute.xlu1 %4585  ;;  %v5333_v42 = vsel %vm3248_vm10, %v5283_v53, %v4989_v49  ;;  %v4971_v21 = vsel %vm1079_vm5, %v4961_v17, %v4970_v41  ;;  %v12550_v53 = vld [vmem:[#allocation76_spill] sm:$0xff] }
 0x646   : >> { %4827 = vrot.lane.b32.xlu0 %v4788_v11, %s7360_s29  ;;  %5644 = vmatprep.mubr.bf16.mxu1 %v5333_v42 }
 0x647   : >> { %4651 = vrot.lane.b32.xlu1 %v4612_v47, %s7361_s25  ;;  %5645 = vmatmul.mubr.bf16.gmra.mrb[32].mxu1 %v5165_v25 }
 0x648   : >> { %v4856_v30 = vpop.permute.xlu0 %4855 }
 0x649   : >> { %v4482_v20 = vpop.permute.xlu1 %4481  ;;  %v5285_v56 = vsel %vm3205_vm8, %v5232_v36, %v4856_v30  ;;  %v12552_v30 = vld [vmem:[#allocation80_spill] sm:$0xff]  ;;  %v12554_v36 = vld [vmem:[#allocation95_spill] sm:$0xff] }
 0x64a   : >> { %4875 = vrot.lane.b32.xlu0 %v4836_v33, %s7359_s24  ;;  %v5077_v49 = vsel %vm322_vm0, %v12550_v53, %v4482_v20  ;;  %v12553_v20 = vld [vmem:[#allocation91_spill] sm:$0xff] }
 0x64b   : >> { %4501 = vrot.lane.b32.xlu1 %v4460_v63, %s7360_s29  ;;  %v5119_v32 = vsel %vm3205_vm8, %v5077_v49, %v4586_v27  ;;  %v12555_v49 = vld [vmem:[#allocation98_spill] sm:$0xff] }
 0x64c   : >> { %v4810_v45 = vpop.permute.xlu0 %4809 }
 0x64d   : >> { %v4634_v18 = vpop.permute.xlu1 %4633 }
 0x64e   : >> { %5008 = vrot.lane.b32.xlu0 %v4962_v57, %s7361_s25  ;;  %v5171_v58 = vsel %vm3248_vm10, %v5119_v32, %v4634_v18 }
 0x64f   : >> { %4605 = vrot.lane.b32.xlu1 %v4563_v7, %s7359_s24 }
 0x650   : >> { %v4991_v48 = vpop.permute.xlu0 %4990 }
 0x651   : >> { %v4588_v31 = vpop.permute.xlu1 %4587  ;;  %v5336_v0 = vsel %vm3248_vm10, %v5285_v56, %v4991_v48 }
 0x652   : >> { %4829 = vrot.lane.b32.xlu0 %v4787_v43, %s7360_s29  ;;  %5652 = vmatprep.mubr.bf16.mxu1 %v5336_v0  ;;  %v12551_v43 = vld [vmem:[#allocation88_spill] sm:$0xff] }
 0x653   : >> { %4653 = vrot.lane.b32.xlu1 %v4611_v39, %s7361_s25  ;;  %5653 = vmatmul.mubr.bf16.gmra.mrb[36].mxu1 %v5168_v10  ;;  %v5235_v11 = vsel %vm322_vm0, %v12551_v43, %v4810_v45 }
 0x654   : >> { %v4858_v35 = vpop.permute.xlu0 %4857 }
 0x655   : >> { %v4484_v7 = vpop.permute.xlu1 %4483  ;;  %v5287_v26 = vsel %vm3205_vm8, %v5235_v11, %v4858_v35 }
 0x656   : >> { %5010 = vrot.lane.b32.xlu0 %v4971_v21, %s7361_s25  ;;  %v5079_v54 = vsel %vm322_vm0, %v12552_v30, %v4484_v7 }
 0x657   : >> { %v5121_v17 = vsel %vm3205_vm8, %v5079_v54, %v4588_v31  ;;  %v12556_v54 = vld [vmem:[#allocation102_spill] sm:$0xff] }
 0x658   : >> { %v4812_v51 = vpop.permute.xlu0 %4811 }
 0x659   : >> { %v4636_v55 = vpop.permute.xlu1 %4635  ;;  %v5238_v33 = vsel %vm322_vm0, %v12553_v20, %v4812_v51 }
 0x65a   : >> { %4877 = vrot.lane.b32.xlu0 %v4835_v28, %s7359_s24  ;;  %v5174_v18 = vsel %vm3248_vm10, %v5121_v17, %v4636_v55 }
 0x65c   : >> { %v4993_v39 = vpop.permute.xlu0 %4992 }
 0x65d   : >> { %v4590_v42 = vpop.permute.xlu1 %4589  ;;  %v5339_v15 = vsel %vm3248_vm10, %v5287_v26, %v4993_v39 }
 0x65e   : >> { %5012 = vrot.lane.b32.xlu0 %v4970_v41, %s7361_s25  ;;  %5660 = vmatprep.mubr.bf16.mxu1 %v5339_v15 }
 0x65f   : >> { %5661 = vmatmul.mubr.bf16.gmra.mrb[40].mxu1 %v5171_v58 }
 0x660   : >> { %v4860_v47 = vpop.permute.xlu0 %4859 }
 0x661   : >> { %v4486_v25 = vpop.permute.xlu1 %4485  ;;  %v5289_v27 = vsel %vm3205_vm8, %v5238_v33, %v4860_v47 }
 0x662   : >> { %v5081_v6 = vsel %vm322_vm0, %v10789_v1, %v4486_v25 }
 0x663   : >> { %v5123_v31 = vsel %vm3205_vm8, %v5081_v6, %v4590_v42 }
 0x664   : >> { %v4814_v28 = vpop.permute.xlu0 %4813 }
 0x665   : >> { %v4638_v40 = vpop.permute.xlu1 %4637  ;;  %v5241_v56 = vsel %vm322_vm0, %v12554_v36, %v4814_v28  ;;  %v12558_v36 = vld [vmem:[#allocation104_spill] sm:$0xff] }
 0x666   : >> { %v5177_v10 = vsel %vm3248_vm10, %v5123_v31, %v4638_v40 }
 0x668   : >> { %v4995_v63 = vpop.permute.xlu0 %4994 }
 0x669   : >> { %v4592_v23 = vpop.permute.xlu1 %4591  ;;  %v5342_v45 = vsel %vm3248_vm10, %v5289_v27, %v4995_v63 }
 0x66a   : >> { %5668 = vmatprep.mubr.bf16.mxu1 %v5342_v45 }
 0x66b   : >> { %5669 = vmatmul.mubr.bf16.gmra.mrb[44].mxu1 %v5174_v18 }
 0x66c   : >> { %v4862_v57 = vpop.permute.xlu0 %4861 }
 0x66d   : >> { %v4488_v8 = vpop.permute.xlu1 %4487  ;;  %v5291_v48 = vsel %vm3205_vm8, %v5241_v56, %v4862_v57 }
 0x66e   : >> { %v5083_v55 = vsel %vm322_vm0, %v10834_v16, %v4488_v8 }
 0x66f   : >> { %v5125_v39 = vsel %vm3205_vm8, %v5083_v55, %v4592_v23 }
 0x670   : >> { %v4816_v24 = vpop.permute.xlu0 %4815 }
 0x671   : >> { %v4640_v12 = vpop.permute.xlu1 %4639  ;;  %v5244_v43 = vsel %vm322_vm0, %v12555_v49, %v4816_v24  ;;  %v12559_v49 = vld [vmem:[#allocation107_spill] sm:$0xff] }
 0x672   : >> { %v5180_v15 = vsel %vm3248_vm10, %v5125_v39, %v4640_v12  ;;  %v12557_v12 = vld [vmem:[#allocation93_spill] sm:$0xff] }
 0x674   : >> { %v4997_v2 = vpop.permute.xlu0 %4996 }
 0x675   : >> { %v4594_v0 = vpop.permute.xlu1 %4593  ;;  %v5345_v41 = vsel %vm3248_vm10, %v5291_v48, %v4997_v2 }
 0x676   : >> { %5676 = vmatprep.mubr.bf16.mxu1 %v5345_v41 }
 0x677   : >> { %5677 = vmatmul.mubr.bf16.gmra.mrb[48].mxu1 %v5177_v10 }
 0x678   : >> { %v4864_v35 = vpop.permute.xlu0 %4863 }
 0x679   : >> { %v4490_v7 = vpop.permute.xlu1 %4489  ;;  %v5293_v11 = vsel %vm3205_vm8, %v5244_v43, %v4864_v35 }
 0x67a   : >> { %v5085_v40 = vsel %vm322_vm0, %v10878_v60, %v4490_v7 }
 0x67b   : >> { %v5127_v63 = vsel %vm3205_vm8, %v5085_v40, %v4594_v0 }
 0x67c   : >> { %v4818_v21 = vpop.permute.xlu0 %4817 }
 0x67d   : >> { %v4642_v51 = vpop.permute.xlu1 %4641  ;;  %v5247_v20 = vsel %vm322_vm0, %v12556_v54, %v4818_v21  ;;  %v12560_v54 = vld [vmem:[#allocation108_spill] sm:$0xff] }
 0x67e   : >> { %v5183_v45 = vsel %vm3248_vm10, %v5127_v63, %v4642_v51 }
 0x680   : >> { %v4999_v26 = vpop.permute.xlu0 %4998 }
 0x681   : >> { %v4596_v32 = vpop.permute.xlu1 %4595  ;;  %v5348_v42 = vsel %vm3248_vm10, %v5293_v11, %v4999_v26 }
 0x682   : >> { %5684 = vmatprep.mubr.bf16.mxu1 %v5348_v42 }
 0x683   : >> { %5685 = vmatmul.mubr.bf16.gmra.mrb[52].mxu1 %v5180_v15 }
 0x684   : >> { %v4866_v58 = vpop.permute.xlu0 %4865 }
 0x685   : >> { %v4492_v47 = vpop.permute.xlu1 %4491  ;;  %v5295_v33 = vsel %vm3205_vm8, %v5247_v20, %v4866_v58 }
 0x686   : >> { %v5087_v6 = vsel %vm322_vm0, %v12557_v12, %v4492_v47 }
 0x687   : >> { %v5129_v31 = vsel %vm3205_vm8, %v5087_v6, %v4596_v32 }
 0x688   : >> { %v4820_v25 = vpop.permute.xlu0 %4819 }
 0x689   : >> { %v4644_v28 = vpop.permute.xlu1 %4643  ;;  %v5250_v56 = vsel %vm322_vm0, %v12558_v36, %v4820_v25 }
 0x68a   : >> { %v5186_v10 = vsel %vm3248_vm10, %v5129_v31, %v4644_v28 }
 0x68c   : >> { %v5001_v27 = vpop.permute.xlu0 %5000 }
 0x68d   : >> { %v4598_v17 = vpop.permute.xlu1 %4597  ;;  %v5351_v23 = vsel %vm3248_vm10, %v5295_v33, %v5001_v27 }
 0x68e   : >> { %5692 = vmatprep.mubr.bf16.mxu1 %v5351_v23 }
 0x68f   : >> { %5693 = vmatmul.mubr.bf16.gmra.mrb[56].mxu1 %v5183_v45 }
 0x690   : >> { %v4868_v18 = vpop.permute.xlu0 %4867 }
 0x691   : >> { %v4494_v57 = vpop.permute.xlu1 %4493  ;;  %v5297_v48 = vsel %vm3205_vm8, %v5250_v56, %v4868_v18 }
 0x692   : >> { %v5089_v55 = vsel %vm322_vm0, %v10968_v4, %v4494_v57 }
 0x693   : >> { %v5131_v39 = vsel %vm3205_vm8, %v5089_v55, %v4598_v17 }
 0x694   : >> { %v4822_v8 = vpop.permute.xlu0 %4821 }
 0x695   : >> { %v4646_v24 = vpop.permute.xlu1 %4645  ;;  %v5253_v43 = vsel %vm322_vm0, %v12559_v49, %v4822_v8 }
 0x696   : >> { %v5189_v15 = vsel %vm3248_vm10, %v5131_v39, %v4646_v24 }
 0x698   : >> { %v5003_v2 = vpop.permute.xlu0 %5002 }
 0x699   : >> { %v4600_v0 = vpop.permute.xlu1 %4599  ;;  %v5354_v41 = vsel %vm3248_vm10, %v5297_v48, %v5003_v2 }
 0x69a   : >> { %5700 = vmatprep.mubr.bf16.mxu1 %v5354_v41 }
 0x69b   : >> { %5701 = vmatmul.mubr.bf16.gmra.mrb[60].mxu1 %v5186_v10 }
 0x69c   : >> { %v4870_v35 = vpop.permute.xlu0 %4869 }
 0x69d   : >> { %v4496_v7 = vpop.permute.xlu1 %4495  ;;  %v5299_v11 = vsel %vm3205_vm8, %v5253_v43, %v4870_v35 }
 0x69e   : >> { %v5091_v40 = vsel %vm322_vm0, %v11018_v61, %v4496_v7 }
 0x69f   : >> { %v5133_v63 = vsel %vm3205_vm8, %v5091_v40, %v4600_v0 }
 0x6a0   : >> { %v4824_v21 = vpop.permute.xlu0 %4823 }
 0x6a1   : >> { %v4648_v51 = vpop.permute.xlu1 %4647  ;;  %v5256_v20 = vsel %vm322_vm0, %v12560_v54, %v4824_v21 }
 0x6a2   : >> { %v5192_v45 = vsel %vm3248_vm10, %v5133_v63, %v4648_v51 }
 0x6a4   : >> { %v5005_v26 = vpop.permute.xlu0 %5004 }
 0x6a5   : >> { %v4602_v32 = vpop.permute.xlu1 %4601  ;;  %v5357_v42 = vsel %vm3248_vm10, %v5299_v11, %v5005_v26 }
 0x6a6   : >> { %5708 = vmatprep.mubr.bf16.mxu1 %v5357_v42 }
 0x6a7   : >> { %5709 = vmatmul.mubr.bf16.gmra.mrb[64].mxu1 %v5189_v15 }
 0x6a8   : >> { %v4872_v58 = vpop.permute.xlu0 %4871 }
 0x6a9   : >> { %v4498_v47 = vpop.permute.xlu1 %4497  ;;  %v5301_v33 = vsel %vm3205_vm8, %v5256_v20, %v4872_v58 }
 0x6aa   : >> { %v5093_v31 = vsel %vm322_vm0, %v11061_v37, %v4498_v47 }
 0x6ab   : >> { %v5135_v35 = vsel %vm3205_vm8, %v5093_v31, %v4602_v32 }
 0x6ac   : >> { %v4826_v25 = vpop.permute.xlu0 %4825 }
 0x6ad   : >> { %v4604_v28 = vpop.permute.xlu1 %4603  ;;  %v5259_v0 = vsel %vm322_vm0, %v11238_v29, %v4826_v25 }
 0x6b0   : >> { %v5007_v27 = vpop.permute.xlu0 %5006 }
 0x6b1   : >> { %v4650_v17 = vpop.permute.xlu1 %4649  ;;  %v5360_v23 = vsel %vm3248_vm10, %v5301_v33, %v5007_v27 }
 0x6b2   : >> { %5716 = vmatprep.mubr.bf16.mxu1 %v5360_v23  ;;  %v5195_v21 = vsel %vm3248_vm10, %v5135_v35, %v4650_v17 }
 0x6b3   : >> { %5717 = vmatmul.mubr.bf16.gmra.mrb[68].mxu1 %v5192_v45 }
 0x6b4   : >> { %v4874_v18 = vpop.permute.xlu0 %4873 }
 0x6b5   : >> { %v4500_v57 = vpop.permute.xlu1 %4499  ;;  %v5303_v41 = vsel %vm3205_vm8, %v5259_v0, %v4874_v18 }
 0x6b6   : >> { %v5095_v49 = vsel %vm322_vm0, %v11120_v62, %v4500_v57  ;;  %v5016_v57 = vrot.slane %v10407_v46, 3  ;;  %v5020_v46 = vrot.slane %v10491_v59, 3 }
 0x6b7   : >> { %v5137_v42 = vsel %vm3205_vm8, %v5095_v49, %v4604_v28 }
 0x6b8   : >> { %v4828_v8 = vpop.permute.xlu0 %4827 }
 0x6b9   : >> { %v4652_v48 = vpop.permute.xlu1 %4651  ;;  %v5262_v29 = vsel %vm322_vm0, %v11268_v22, %v4828_v8  ;;  %v12562_v8 = vld [vmem:[#allocation56_spill] sm:$0xff] }
 0x6ba   : >> { %v11535_v24 = vpop.f32.mrb[0].mxu1  ;;  %v5198_v25 = vsel %vm3248_vm10, %v5137_v42, %v4652_v48 }
 0x6bb   : >> { %v5584_v6 = vpop.f32.mrb[1].mxu1 }
 0x6bc   : >> { %v4876_v36 = vpop.permute.xlu0 %4875  ;;  %v11537_v56 = vpop.f32.mrb[2].mxu1  ;;  %v5015_v6 = vrot.slane %v12562_v8, 3 }
 0x6bd   : >> { %v5587_v2 = vpop.f32.mrb[3].mxu1  ;;  %v4502_v51 = vpop.permute.xlu1 %4501  ;;  %v5305_v26 = vsel %vm3205_vm8, %v5262_v29, %v4876_v36  ;;  %v5024_v29 = vrot.slane %v12544_v19, 3 }
 0x6be   : >> { %v5097_v20 = vsel %vm322_vm0, %v11385_v9, %v4502_v51  ;;  %v5017_v36 = vsel %vm1216_vm9, %v5015_v6, %v5016_v57  ;;  %v5018_v2 = vrot.slane %v10452_v44, 3  ;;  %v5036_v6 = vrot.slane %v10834_v16, 3 }
 0x6c0   : >> { %v5009_v10 = vpop.permute.xlu0 %5008 }
 0x6c1   : >> { %v5363_v7 = vsel %vm3248_vm10, %v5303_v41, %v5009_v10  ;;  %v4606_v15 = vpop.permute.xlu1 %4605  ;;  %v5019_v10 = vsel %vm1216_vm9, %v5016_v57, %v5018_v2  ;;  %v5034_v57 = vrot.slane %v10789_v1, 3  ;;  %v5038_v1 = vrot.slane %v10878_v60, 3 }
 0x6c2   : >> { %5724 = vmatprep.mubr.bf16.mxu1 %v5363_v7  ;;  %v5139_v28 = vsel %vm3205_vm8, %v5097_v20, %v4606_v15  ;;  %v5021_v7 = vsel %vm1216_vm9, %v5018_v2, %v5020_v46 }
 0x6c3   : >> { %5725 = vmatmul.mubr.bf16.gmra.mrb[72].mxu1 %v5195_v21 }
 0x6c4   : >> { %v4830_v55 = vpop.permute.xlu0 %4829 }
 0x6c5   : >> { %v5265_v22 = vsel %vm322_vm0, %v11257_v38, %v4830_v55  ;;  %v4654_v54 = vpop.permute.xlu1 %4653  ;;  %v12561_v38 = vmov 0.0   ;;  %v5022_v55 = vrot.slane %v10531_v34, 3  ;;  %v5026_v34 = vrot.slane %v12546_v52, 3 }
 0x6c6   : >> { %v11549_v43 = vpop.f32.mrb[4].mxu1  ;;  %v5201_v23 = vsel %vm3248_vm10, %v5139_v28, %v4654_v54  ;;  %v5030_v54 = vrot.slane %v12550_v53, 3 }
 0x6c7   : >> { %v5592_v11 = vpop.f32.mrb[5].mxu1  ;;  %v5023_v49 = vsel %vm1216_vm9, %v5020_v46, %v5022_v55  ;;  %v5025_v42 = vsel %vm1216_vm9, %v5022_v55, %v5024_v29  ;;  %v5039_v46 = vsel %vm1216_vm9, %v5036_v6, %v5038_v1 }
 0x6c8   : >> { %v5011_v39 = vpop.permute.xlu0 %5010  ;;  %v11554_v32 = vpop.f32.mrb[6].mxu1 }
 0x6c9   : >> { %v5595_v58 = vpop.f32.mrb[7].mxu1  ;;  %v5366_v47 = vsel %vm3248_vm10, %v5305_v26, %v5011_v39 }
 0x6ca   : >> { %5732 = vmatprep.mubr.bf16.mxu1 %v5366_v47  ;;  %v5027_v58 = vsel %vm1216_vm9, %v5024_v29, %v5026_v34 }
 0x6cb   : >> { %5733 = vmatmul.mubr.bf16.gmra.mrb[76].mxu1 %v5198_v25 }
 0x6cc   : >> { %v4878_v40 = vpop.permute.xlu0 %4877 }
 0x6cd   : >> { %v5307_v33 = vsel %vm3205_vm8, %v5265_v22, %v4878_v40  ;;  %v5028_v40 = vrot.slane %v12548_v13, 3  ;;  %v5032_v13 = vrot.slane %v12552_v30, 3 }
 0x6cf   : >> { %v5029_v22 = vsel %vm1216_vm9, %v5026_v34, %v5028_v40  ;;  %v5031_v28 = vsel %vm1216_vm9, %v5028_v40, %v5030_v54  ;;  %v5035_v8 = vsel %vm1216_vm9, %v5032_v13, %v5034_v57  ;;  %v5046_v40 = vrot.slane %v11061_v37, 3 }
 0x6d0   : >> { %v5013_v27 = vpop.permute.xlu0 %5012 }
 0x6d1   : >> { %v5369_v63 = vsel %vm3248_vm10, %v5307_v33, %v5013_v27 }
 0x6d2   : >> { %v11566_v17 = vpop.f32.mrb[8].mxu1  ;;  %5740 = vmatprep.mubr.bf16.mxu1 %v5369_v63 }
 0x6d3   : >> { %v5600_v45 = vpop.f32.mrb[9].mxu1  ;;  %5741 = vmatmul.mubr.bf16.gmra.mrb[80].mxu1 %v5201_v23  ;;  %v5033_v23 = vsel %vm1216_vm9, %v5030_v54, %v5032_v13  ;;  %v5048_v54 = vrot.slane %v11120_v62, 3 }
 0x6d4   : >> { %v11569_v18 = vpop.f32.mrb[10].mxu1  ;;  %6948 = vmatprep.mubr.msk.bf16.mxu1 %vm7363_vm11, %v12561_v38 }
 0x6d5   : >> { %v5603_v9 = vpop.f32.mrb[11].mxu1  ;;  %v5049_v13 = vsel %vm1216_vm9, %v5046_v40, %v5048_v54 }
 0x6db   : >> { %6949 = vmatmul.mubr.msk.bf16.vlgmr.msra.gmra.mrb[84].mxu1 %vm322_vm0, %v5017_v36 }
 0x6dc   : >> { %6952 = vmatprep.mubr.msk.bf16.mxu1 %vm7363_vm11, %v12561_v38 }
 0x6de   : >> { %v11579_v48 = vpop.f32.mrb[12].mxu1 }
 0x6df   : >> { %v5608_v31 = vpop.f32.mrb[13].mxu1 }
 0x6e0   : >> { %v11582_v0 = vpop.f32.mrb[14].mxu1 }
 0x6e1   : >> { %v5611_v41 = vpop.f32.mrb[15].mxu1 }
 0x6e2   : >> { %v5037_v41 = vsel %vm1216_vm9, %v5034_v57, %v5036_v6 }
 0x6e3   : >> { %6953 = vmatmul.mubr.msk.bf16.gmra.mrb[88].mxu1 %vm322_vm0, %v5019_v10 }
 0x6e4   : >> { %6956 = vmatprep.mubr.msk.bf16.mxu1 %vm7363_vm11, %v12561_v38 }
 0x6ea   : >> { %v11589_v35 = vpop.f32.mrb[16].mxu1 }
 0x6eb   : >> { %v5616_v21 = vpop.f32.mrb[17].mxu1  ;;  %6957 = vmatmul.mubr.msk.bf16.gmra.mrb[92].mxu1 %vm322_vm0, %v5021_v7 }
 0x6ec   : >> { %v11593_v44 = vpop.f32.mrb[18].mxu1  ;;  %6960 = vmatprep.mubr.msk.bf16.mxu1 %vm7363_vm11, %v12561_v38 }
 0x6ed   : >> { %v5619_v51 = vpop.f32.mrb[19].mxu1 }
 0x6ee   : >> { %v5040_v51 = vrot.slane %v12557_v12, 3  ;;  %v5044_v12 = vrot.slane %v11018_v61, 3 }
 0x6f0   : >> { %v5041_v55 = vsel %vm1216_vm9, %v5038_v1, %v5040_v51 }
 0x6f3   : >> { %6961 = vmatmul.mubr.msk.bf16.gmra.mrb[96].mxu1 %vm322_vm0, %v5023_v49  ;;  %v5042_v49 = vrot.slane %v10968_v4, 3 }
 0x6f4   : >> { %6964 = vmatprep.mubr.msk.bf16.mxu1 %vm7363_vm11, %v12561_v38 }
 0x6f6   : >> { %v11602_v59 = vpop.f32.mrb[20].mxu1 }
 0x6f7   : >> { %v5624_v11 = vpop.f32.mrb[21].mxu1 }
 0x6f8   : >> { %v11605_v26 = vpop.f32.mrb[22].mxu1 }
 0x6f9   : >> { %v5627_v39 = vpop.f32.mrb[23].mxu1 }
 0x6fb   : >> { %6965 = vmatmul.mubr.msk.bf16.gmra.mrb[100].mxu1 %vm322_vm0, %v5025_v42  ;;  %v5043_v42 = vsel %vm1216_vm9, %v5040_v51, %v5042_v49 }
 0x6fc   : >> { %6968 = vmatprep.mubr.msk.bf16.mxu1 %vm7363_vm11, %v12561_v38 }
 0x702   : >> { %v11612_v15 = vpop.f32.mrb[24].mxu1 }
 0x703   : >> { %v5632_v47 = vpop.f32.mrb[25].mxu1  ;;  %6969 = vmatmul.mubr.msk.bf16.gmra.mrb[104].mxu1 %vm322_vm0, %v5027_v58  ;;  %v5045_v58 = vsel %vm1216_vm9, %v5042_v49, %v5044_v12 }
 0x704   : >> { %v11616_v19 = vpop.f32.mrb[26].mxu1  ;;  %6972 = vmatprep.mubr.msk.bf16.mxu1 %vm7363_vm11, %v12561_v38 }
 0x705   : >> { %v5635_v25 = vpop.f32.mrb[27].mxu1 }
 0x70b   : >> { %6973 = vmatmul.mubr.msk.bf16.gmra.mrb[108].mxu1 %vm322_vm0, %v5029_v22  ;;  %v5047_v22 = vsel %vm1216_vm9, %v5044_v12, %v5046_v40 }
 0x70c   : >> { %6976 = vmatprep.mubr.msk.bf16.mxu1 %vm7363_vm11, %v12561_v38 }
 0x70e   : >> { %v11625_v52 = vpop.f32.mrb[28].mxu1 }
 0x70f   : >> { %v5640_v20 = vpop.f32.mrb[29].mxu1 }
 0x710   : >> { %v11628_v33 = vpop.f32.mrb[30].mxu1 }
 0x711   : >> { %v5643_v27 = vpop.f32.mrb[31].mxu1 }
 0x713   : >> { %6977 = vmatmul.mubr.msk.bf16.gmra.mrb[112].mxu1 %vm322_vm0, %v5031_v28 }
 0x714   : >> { %6980 = vmatprep.mubr.msk.bf16.mxu1 %vm7363_vm11, %v12561_v38 }
 0x71a   : >> { %v11635_v63 = vpop.f32.mrb[32].mxu1 }
 0x71b   : >> { %v5648_v45 = vpop.f32.mrb[33].mxu1  ;;  %6981 = vmatmul.mubr.msk.bf16.gmra.mrb[116].mxu1 %vm322_vm0, %v5033_v23  ;;  %v12563_v23 = vrot.slane %v11169_v50, 3 }
 0x71c   : >> { %v11639_v53 = vpop.f32.mrb[34].mxu1  ;;  %6984 = vmatprep.mubr.msk.bf16.mxu1 %vm7363_vm11, %v12561_v38 }
 0x71d   : >> { %v5651_v9 = vpop.f32.mrb[35].mxu1  ;;  %v5051_v45 = vsel %vm1216_vm9, %v5048_v54, %v12563_v23 }
 0x723   : >> { %6985 = vmatmul.mubr.msk.bf16.gmra.mrb[120].mxu1 %vm322_vm0, %v5035_v8 }
 0x724   : >> { %6988 = vmatprep.mubr.msk.bf16.mxu1 %vm7363_vm11, %v12561_v38 }
 0x726   : >> { %v11648_v30 = vpop.f32.mrb[36].mxu1 }
 0x727   : >> { %v5656_v36 = vpop.f32.mrb[37].mxu1 }
 0x728   : >> { %v11651_v2 = vpop.f32.mrb[38].mxu1 }
 0x729   : >> { %v5659_v31 = vpop.f32.mrb[39].mxu1 }
 0x72b   : >> { %6989 = vmatmul.mubr.msk.bf16.gmra.mrb[124].mxu1 %vm322_vm0, %v5037_v41 }
 0x72c   : >> { %6992 = vmatprep.mubr.msk.bf16.mxu1 %vm7363_vm11, %v12561_v38 }
 0x732   : >> { %v11658_v10 = vpop.f32.mrb[40].mxu1 }
 0x733   : >> { %v5664_v7 = vpop.f32.mrb[41].mxu1  ;;  %6993 = vmatmul.mubr.msk.bf16.gmra.mrb[128].mxu1 %vm322_vm0, %v5039_v46 }
 0x734   : >> { %v11662_v16 = vpop.f32.mrb[42].mxu1  ;;  %6996 = vmatprep.mubr.msk.bf16.mxu1 %vm7363_vm11, %v12561_v38 }
 0x735   : >> { %v5667_v21 = vpop.f32.mrb[43].mxu1 }
 0x73b   : >> { %6997 = vmatmul.mubr.msk.bf16.gmra.mrb[132].mxu1 %vm322_vm0, %v5041_v55 }
 0x73c   : >> { %7000 = vmatprep.mubr.msk.bf16.mxu1 %vm7363_vm11, %v12561_v38 }
 0x73e   : >> { %v11671_v60 = vpop.f32.mrb[44].mxu1 }
 0x73f   : >> { %v5672_v29 = vpop.f32.mrb[45].mxu1 }
 0x740   : >> { %v11674_v11 = vpop.f32.mrb[46].mxu1 }
 0x741   : >> { %v5675_v39 = vpop.f32.mrb[47].mxu1 }
 0x743   : >> { %7001 = vmatmul.mubr.msk.bf16.gmra.mrb[136].mxu1 %vm322_vm0, %v5043_v42 }
 0x744   : >> { %7004 = vmatprep.mubr.msk.bf16.mxu1 %vm7363_vm11, %v12561_v38 }
 0x74a   : >> { %v11681_v34 = vpop.f32.mrb[48].mxu1 }
 0x74b   : >> { %v5680_v47 = vpop.f32.mrb[49].mxu1  ;;  %7005 = vmatmul.mubr.msk.bf16.gmra.mrb[140].mxu1 %vm322_vm0, %v5045_v58 }
 0x74c   : >> { %v11685_v4 = vpop.f32.mrb[50].mxu1  ;;  %7008 = vmatprep.mubr.msk.bf16.mxu1 %vm7363_vm11, %v12561_v38 }
 0x74d   : >> { %v5683_v25 = vpop.f32.mrb[51].mxu1 }
 0x753   : >> { %7009 = vmatmul.mubr.msk.bf16.gmra.mrb[144].mxu1 %vm322_vm0, %v5047_v22  ;;  %v11747_v22 = vld [vmem:[%s10302_s28 + $0x1] ss:$0 sm:$0xff] }
 0x754   : >> { %7012 = vmatprep.mubr.msk.bf16.mxu1 %vm7363_vm11, %v12561_v38  ;;  %v5583_v54 = vadd.f32 %v11747_v22, %v11535_v24 }
 0x756   : >> { %v11694_v61 = vpop.f32.mrb[52].mxu1 }
 0x757   : >> { %v5688_v20 = vpop.f32.mrb[53].mxu1 }
 0x758   : >> { %v11697_v27 = vpop.f32.mrb[54].mxu1 }
 0x759   : >> { %v5691_v28 = vpop.f32.mrb[55].mxu1 }
 0x75a   : >> { %v5586_v28 = vadd.f32 %v11747_v22, %v11537_v56  ;;  %v5594_v56 = vadd.f32 %v11747_v22, %v11554_v32  ;;  %v12571_v32 = vld [vmem:[#allocation17_spill] sm:$0xff] }
 0x75b   : >> { %7013 = vmatmul.mubr.msk.bf16.gmra.mrb[148].mxu1 %vm322_vm0, %v5049_v13 }
 0x75c   : >> { %7016 = vmatprep.mubr.msk.bf16.mxu1 %vm7363_vm11, %v12561_v38 }
 0x762   : >> { %v11703_v37 = vpop.f32.mrb[56].mxu1 }
 0x763   : >> { %v5696_v9 = vpop.f32.mrb[57].mxu1  ;;  %7017 = vmatmul.mubr.msk.bf16.gmra.mrb[152].mxu1 %vm322_vm0, %v5051_v45 }
 0x764   : >> { %v11709_v62 = vpop.f32.mrb[58].mxu1  ;;  %7020 = vmatprep.mubr.msk.bf16.mxu1 %vm7363_vm11, %v12561_v38  ;;  %v12565_v9 = vld [vmem:[#allocation50_spill] sm:$0xff] }
 0x765   : >> { %v5699_v57 = vpop.f32.mrb[59].mxu1 }
 0x76b   : >> { %7021 = vmatmul.mubr.msk.bf16.gmra.mrb[156].mxu1 %vm322_vm0, %v11244_v5  ;;  %v12564_v5 = vrot.slane %v11205_v3, 3 }
 0x76c   : >> { %7024 = vmatprep.mubr.msk.bf16.mxu1 %vm7363_vm11, %v12561_v38 }
 0x76e   : >> { %v11717_v8 = vpop.f32.mrb[60].mxu1 }
 0x76f   : >> { %v5704_v50 = vpop.f32.mrb[61].mxu1 }
 0x770   : >> { %v11719_v6 = vpop.f32.mrb[62].mxu1 }
 0x771   : >> { %v5707_v36 = vpop.f32.mrb[63].mxu1 }
 0x773   : >> { %7025 = vmatmul.mubr.msk.bf16.gmra.mrb[160].mxu1 %vm322_vm0, %v11249_v14 }
 0x774   : >> { %7028 = vmatprep.mubr.msk.bf16.mxu1 %vm7363_vm11, %v12561_v38 }
 0x77a   : >> { %v11725_v31 = vpop.f32.mrb[64].mxu1 }
 0x77b   : >> { %v5712_v41 = vpop.f32.mrb[65].mxu1  ;;  %7029 = vmatmul.mubr.msk.bf16.gmra.mrb[164].mxu1 %vm322_vm0, %v12564_v5  ;;  %v12566_v5 = vld [vmem:[#allocation51_spill] sm:$0xff] }
 0x77c   : >> { %v11730_v1 = vpop.f32.mrb[66].mxu1 }
 0x77d   : >> { %v5715_v46 = vpop.f32.mrb[67].mxu1 }
 0x786   : >> { %v11732_v7 = vpop.f32.mrb[68].mxu1 }
 0x787   : >> { %v5720_v21 = vpop.f32.mrb[69].mxu1 }
 0x788   : >> { %v11734_v51 = vpop.f32.mrb[70].mxu1  ;;  %v5591_v21 = vadd.f32 %v11747_v22, %v11549_v43 }
 0x789   : >> { %v5723_v14 = vpop.f32.mrb[71].mxu1 }
 0x78a   : >> { %v12567_v14 = vld [vmem:[#allocation35_spill] sm:$0xff] }
 0x796   : >> { %v11736_v55 = vpop.f32.mrb[72].mxu1 }
 0x797   : >> { %v5728_v38 = vpop.f32.mrb[73].mxu1 }
 0x798   : >> { %v11738_v49 = vpop.f32.mrb[74].mxu1 }
 0x799   : >> { %v5731_v29 = vpop.f32.mrb[75].mxu1 }
 0x79e   : >> { %v11740_v39 = vpop.f32.mrb[76].mxu1 }
 0x79f   : >> { %v5736_v3 = vpop.f32.mrb[77].mxu1 }
 0x7a0   : >> { %v11742_v42 = vpop.f32.mrb[78].mxu1  ;;  %v12568_v3 = vld [vmem:[#allocation27_spill] sm:$0xff] }
 0x7a1   : >> { %v5739_v12 = vpop.f32.mrb[79].mxu1 }
 0x7a6   : >> { %v11744_v58 = vpop.f32.mrb[80].mxu1 }
 0x7a7   : >> { %v5744_v47 = vpop.f32.mrb[81].mxu1 }
 0x7a8   : >> { %v5745_v25 = vpop.f32.mrb[82].mxu1 }
 0x7a9   : >> { %v5746_v40 = vpop.f32.mrb[83].mxu1 }
 0x7ae   : >> { %v5782_v20 = vpop.f32.mrb[84].mxu1 }
 0x7af   : >> { %v5783_v13 = vadd.f32 %v5782_v20, %v5583_v54  ;;  %v6950_v23 = vpop.f32.mrb[85].mxu1  ;;  %v12569_v54 = vld [vmem:[#allocation52_spill] sm:$0xff] }
 0x7b0   : >> { %v5785_v45 = vpop.f32.mrb[86].mxu1  ;;  %v12570_v23 = vld [vmem:[#allocation53_spill] sm:$0xff] }
 0x7b1   : >> { %v5948_v57 = vadd.f32 %v5783_v13, %v12565_v9  ;;  %v5786_v50 = vadd.f32 %v5785_v45, %v5586_v28  ;;  %v6951_v36 = vpop.f32.mrb[87].mxu1  ;;  %v5599_v9 = vadd.f32 %v11747_v22, %v11566_v17 }
 0x7b3   : >> { %v5989_v41 = vmax.f32 %v5948_v57, 0.0  ;;  %v5949_v46 = vadd.f32 %v5786_v50, %v12566_v5  ;;  %v12572_v5 = vld [vmem:[#allocation13_spill] sm:$0xff] }
 0x7b5   : >> { %v6030_v38 = vmul.f32 %v5989_v41, %v12567_v14  ;;  %v5990_v24 = vmax.f32 %v5949_v46, 0.0  ;;  %v5602_v41 = vadd.f32 %v11747_v22, %v11569_v18  ;;  %v12575_v18 = vld [vmem:[#allocation32_spill] sm:$0xff] }
 0x7b6   : >> { %v5790_v29 = vpop.f32.mrb[88].mxu1 }
 0x7b7   : >> { %6071 = vst.msk [vmem:[#allocation2 + $0x13] sm:$0xff] %vm322_vm0, %v6030_v38  ;;  %v6031_v12 = vmul.f32 %v5990_v24, %v12568_v3  ;;  %v5791_v47 = vadd.f32 %v5790_v29, %v5591_v21  ;;  %v6954_v25 = vpop.f32.mrb[89].mxu1  ;;  %v12573_v24 = vld [vmem:[#allocation54_spill] sm:$0xff] }
 0x7b8   : >> { %v5793_v40 = vpop.f32.mrb[90].mxu1  ;;  %v5607_v25 = vadd.f32 %v11747_v22, %v11579_v48 }
 0x7b9   : >> { %6072 = vst.msk [vmem:[#allocation2 + $0x1b] sm:$0xff] %vm322_vm0, %v6031_v12  ;;  %v5950_v20 = vadd.f32 %v5791_v47, %v12569_v54  ;;  %v5794_v28 = vadd.f32 %v5793_v40, %v5594_v56  ;;  %v6955_v43 = vpop.f32.mrb[91].mxu1  ;;  %v12574_v12 = vld [vmem:[#allocation55_spill] sm:$0xff] }
 0x7ba   : >> { %v12576_v43 = vld [vmem:[#allocation28_spill] sm:$0xff] }
 0x7bb   : >> { %v5991_v13 = vmax.f32 %v5950_v20, 0.0  ;;  %v5951_v45 = vadd.f32 %v5794_v28, %v12570_v23  ;;  %v5610_v28 = vadd.f32 %v11747_v22, %v11582_v0  ;;  %v12579_v0 = vld [vmem:[#allocation15_spill] sm:$0xff] }
 0x7bd   : >> { %v6032_v57 = vmul.f32 %v5991_v13, %v12571_v32  ;;  %v5992_v50 = vmax.f32 %v5951_v45, 0.0  ;;  %v12577_v32 = vld [vmem:[#allocation57_spill] sm:$0xff] }
 0x7be   : >> { %v5798_v36 = vpop.f32.mrb[92].mxu1 }
 0x7bf   : >> { %6073 = vst.msk [vmem:[#allocation2 + $0x23] sm:$0xff] %vm322_vm0, %v6032_v57  ;;  %v6033_v46 = vmul.f32 %v5992_v50, %v12572_v5  ;;  %v5799_v21 = vadd.f32 %v5798_v36, %v5599_v9  ;;  %v6958_v14 = vpop.f32.mrb[93].mxu1 }
 0x7c0   : >> { %v5801_v38 = vpop.f32.mrb[94].mxu1 }
 0x7c1   : >> { %6074 = vst.msk [vmem:[#allocation2 + $0x2b] sm:$0xff] %vm322_vm0, %v6033_v46  ;;  %v5952_v29 = vadd.f32 %v5799_v21, %v12573_v24  ;;  %v5802_v56 = vadd.f32 %v5801_v38, %v5602_v41  ;;  %v6959_v17 = vpop.f32.mrb[95].mxu1  ;;  %v12578_v41 = vld [vmem:[#allocation58_spill] sm:$0xff]  ;;  %v5615_v46 = vadd.f32 %v11747_v22, %v11589_v35  ;;  %v5618_v24 = vadd.f32 %v11747_v22, %v11593_v44  ;;  %v12583_v44 = vld [vmem:[#allocation31_spill] sm:$0xff] }
 0x7c3   : >> { %v5993_v3 = vmax.f32 %v5952_v29, 0.0  ;;  %v5953_v47 = vadd.f32 %v5802_v56, %v12574_v12  ;;  %v12580_v29 = vld [vmem:[#allocation14_spill] sm:$0xff] }
 0x7c5   : >> { %v6034_v40 = vmul.f32 %v5993_v3, %v12575_v18  ;;  %v5994_v54 = vmax.f32 %v5953_v47, 0.0  ;;  %v12581_v47 = vld [vmem:[#allocation59_spill] sm:$0xff] }
 0x7c6   : >> { %v5806_v20 = vpop.f32.mrb[96].mxu1 }
 0x7c7   : >> { %6075 = vst.msk [vmem:[#allocation2 + $0x33] sm:$0xff] %vm322_vm0, %v6034_v40  ;;  %v6035_v13 = vmul.f32 %v5994_v54, %v12576_v43  ;;  %v5807_v23 = vadd.f32 %v5806_v20, %v5607_v25  ;;  %v6962_v45 = vpop.f32.mrb[97].mxu1  ;;  %v12582_v54 = vld [vmem:[#allocation60_spill] sm:$0xff] }
 0x7c8   : >> { %v5809_v9 = vpop.f32.mrb[98].mxu1  ;;  %v5626_v45 = vadd.f32 %v11747_v22, %v11605_v26  ;;  %v12587_v26 = vld [vmem:[#allocation11_spill] sm:$0xff] }
 0x7c9   : >> { %6076 = vst.msk [vmem:[#allocation2 + $0x3b] sm:$0xff] %vm322_vm0, %v6035_v13  ;;  %v5954_v57 = vadd.f32 %v5807_v23, %v12577_v32  ;;  %v5810_v50 = vadd.f32 %v5809_v9, %v5610_v28  ;;  %v6963_v48 = vpop.f32.mrb[99].mxu1  ;;  %v5623_v28 = vadd.f32 %v11747_v22, %v11602_v59  ;;  %v12584_v9 = vld [vmem:[#allocation30_spill] sm:$0xff] }
 0x7cb   : >> { %v5995_v36 = vmax.f32 %v5954_v57, 0.0  ;;  %v5955_v5 = vadd.f32 %v5810_v50, %v12578_v41 }
 0x7cd   : >> { %v6036_v21 = vmul.f32 %v5995_v36, %v12579_v0  ;;  %v5996_v14 = vmax.f32 %v5955_v5, 0.0  ;;  %v12585_v36 = vld [vmem:[#allocation61_spill] sm:$0xff]  ;;  %v12586_v0 = vld [vmem:[#allocation62_spill] sm:$0xff] }
 0x7ce   : >> { %v5814_v38 = vpop.f32.mrb[100].mxu1 }
 0x7cf   : >> { %6077 = vst.msk [vmem:[#allocation2 + $0x43] sm:$0xff] %vm322_vm0, %v6036_v21  ;;  %v6037_v56 = vmul.f32 %v5996_v14, %v12580_v29  ;;  %v5815_v17 = vadd.f32 %v5814_v38, %v5615_v46  ;;  %v6966_v3 = vpop.f32.mrb[101].mxu1  ;;  %v5631_v14 = vadd.f32 %v11747_v22, %v11612_v15 }
 0x7d0   : >> { %v5817_v12 = vpop.f32.mrb[102].mxu1 }
 0x7d1   : >> { %6078 = vst.msk [vmem:[#allocation2 + $0x4b] sm:$0xff] %vm322_vm0, %v6037_v56  ;;  %v5956_v25 = vadd.f32 %v5815_v17, %v12581_v47  ;;  %v5818_v18 = vadd.f32 %v5817_v12, %v5618_v24  ;;  %v6967_v35 = vpop.f32.mrb[103].mxu1  ;;  %v5634_v56 = vadd.f32 %v11747_v22, %v11616_v19  ;;  %v12588_v17 = vld [vmem:[#allocation21_spill] sm:$0xff]  ;;  %v12591_v19 = vld [vmem:[#allocation16_spill] sm:$0xff] }
 0x7d3   : >> { %v5997_v40 = vmax.f32 %v5956_v25, 0.0  ;;  %v5957_v20 = vadd.f32 %v5818_v18, %v12582_v54  ;;  %v12589_v18 = vld [vmem:[#allocation63_spill] sm:$0xff] }
 0x7d5   : >> { %v6038_v43 = vmul.f32 %v5997_v40, %v12583_v44  ;;  %v5998_v13 = vmax.f32 %v5957_v20, 0.0  ;;  %v12590_v20 = vld [vmem:[#allocation64_spill] sm:$0xff]  ;;  %v5639_v44 = vadd.f32 %v11747_v22, %v11625_v52 }
 0x7d6   : >> { %v5822_v23 = vpop.f32.mrb[104].mxu1 }
 0x7d7   : >> { %6079 = vst.msk [vmem:[#allocation2 + $0x53] sm:$0xff] %vm322_vm0, %v6038_v43  ;;  %v6039_v32 = vmul.f32 %v5998_v13, %v12584_v9  ;;  %v5823_v57 = vadd.f32 %v5822_v23, %v5623_v28  ;;  %v6970_v50 = vpop.f32.mrb[105].mxu1  ;;  %v12592_v9 = vld [vmem:[#allocation18_spill] sm:$0xff] }
 0x7d8   : >> { %v5825_v48 = vpop.f32.mrb[106].mxu1 }
 0x7d9   : >> { %6080 = vst.msk [vmem:[#allocation2 + $0x5b] sm:$0xff] %vm322_vm0, %v6039_v32  ;;  %v5958_v41 = vadd.f32 %v5823_v57, %v12585_v36  ;;  %v5826_v5 = vadd.f32 %v5825_v48, %v5626_v45  ;;  %v6971_v59 = vpop.f32.mrb[107].mxu1  ;;  %v5642_v45 = vadd.f32 %v11747_v22, %v11628_v33  ;;  %v12593_v36 = vld [vmem:[#allocation65_spill] sm:$0xff]  ;;  %v12595_v33 = vld [vmem:[#allocation22_spill] sm:$0xff] }
 0x7db   : >> { %v5999_v46 = vmax.f32 %v5958_v41, 0.0  ;;  %v5959_v21 = vadd.f32 %v5826_v5, %v12586_v0 }
 0x7dd   : >> { %v6040_v38 = vmul.f32 %v5999_v46, %v12587_v26  ;;  %v6000_v24 = vmax.f32 %v5959_v21, 0.0  ;;  %v12594_v46 = vld [vmem:[#allocation66_spill] sm:$0xff]  ;;  %v5647_v21 = vadd.f32 %v11747_v22, %v11635_v63 }
 0x7de   : >> { %v5830_v29 = vpop.f32.mrb[108].mxu1 }
 0x7df   : >> { %6081 = vst.msk [vmem:[#allocation2 + $0x63] sm:$0xff] %vm322_vm0, %v6040_v38  ;;  %v6041_v3 = vmul.f32 %v6000_v24, %v12588_v17  ;;  %v5831_v12 = vadd.f32 %v5830_v29, %v5631_v14  ;;  %v6974_v47 = vpop.f32.mrb[109].mxu1  ;;  %v5650_v24 = vadd.f32 %v11747_v22, %v11639_v53  ;;  %v12596_v29 = vld [vmem:[#allocation20_spill] sm:$0xff]  ;;  %v12599_v53 = vld [vmem:[#allocation38_spill] sm:$0xff] }
 0x7e0   : >> { %v5833_v25 = vpop.f32.mrb[110].mxu1  ;;  %v12597_v47 = vld [vmem:[#allocation68_spill] sm:$0xff] }
 0x7e1   : >> { %6082 = vst.msk [vmem:[#allocation2 + $0x6b] sm:$0xff] %vm322_vm0, %v6041_v3  ;;  %v5960_v35 = vadd.f32 %v5831_v12, %v12589_v18  ;;  %v5834_v40 = vadd.f32 %v5833_v25, %v5634_v56  ;;  %v6975_v15 = vpop.f32.mrb[111].mxu1 }
 0x7e3   : >> { %v6001_v54 = vmax.f32 %v5960_v35, 0.0  ;;  %v5961_v28 = vadd.f32 %v5834_v40, %v12590_v20  ;;  %v12598_v40 = vld [vmem:[#allocation69_spill] sm:$0xff] }
 0x7e5   : >> { %v6042_v43 = vmul.f32 %v6001_v54, %v12591_v19  ;;  %v6002_v13 = vmax.f32 %v5961_v28, 0.0  ;;  %v5655_v54 = vadd.f32 %v11747_v22, %v11648_v30  ;;  %v5658_v19 = vadd.f32 %v11747_v22, %v11651_v2  ;;  %v12603_v2 = vld [vmem:[#allocation25_spill] sm:$0xff] }
 0x7e6   : >> { %v5838_v23 = vpop.f32.mrb[112].mxu1 }
 0x7e7   : >> { %6083 = vst.msk [vmem:[#allocation2 + $0x73] sm:$0xff] %vm322_vm0, %v6042_v43  ;;  %v6043_v32 = vmul.f32 %v6002_v13, %v12592_v9  ;;  %v5839_v57 = vadd.f32 %v5838_v23, %v5639_v44  ;;  %v6978_v50 = vpop.f32.mrb[113].mxu1  ;;  %v12600_v43 = vld [vmem:[#allocation19_spill] sm:$0xff] }
 0x7e8   : >> { %v5841_v48 = vpop.f32.mrb[114].mxu1 }
 0x7e9   : >> { %6084 = vst.msk [vmem:[#allocation2 + $0x7b] sm:$0xff] %vm322_vm0, %v6043_v32  ;;  %v5962_v41 = vadd.f32 %v5839_v57, %v12593_v36  ;;  %v5842_v5 = vadd.f32 %v5841_v48, %v5642_v45  ;;  %v6979_v52 = vpop.f32.mrb[115].mxu1  ;;  %v12601_v32 = vld [vmem:[#allocation71_spill] sm:$0xff]  ;;  %v12602_v36 = vld [vmem:[#allocation72_spill] sm:$0xff] }
 0x7eb   : >> { %v6003_v59 = vmax.f32 %v5962_v41, 0.0  ;;  %v5963_v0 = vadd.f32 %v5842_v5, %v12594_v46  ;;  %v5663_v5 = vadd.f32 %v11747_v22, %v11658_v10 }
 0x7ed   : >> { %v6044_v14 = vmul.f32 %v6003_v59, %v12595_v33  ;;  %v6004_v26 = vmax.f32 %v5963_v0, 0.0  ;;  %v5666_v0 = vadd.f32 %v11747_v22, %v11662_v16  ;;  %v12607_v16 = vld [vmem:[#allocation37_spill] sm:$0xff] }
 0x7ee   : >> { %v5846_v38 = vpop.f32.mrb[116].mxu1 }
 0x7ef   : >> { %6085 = vst.msk [vmem:[#allocation2 + $0x83] sm:$0xff] %vm322_vm0, %v6044_v14  ;;  %v6045_v56 = vmul.f32 %v6004_v26, %v12596_v29  ;;  %v5847_v17 = vadd.f32 %v5846_v38, %v5647_v21  ;;  %v6982_v3 = vpop.f32.mrb[117].mxu1  ;;  %v12604_v21 = vld [vmem:[#allocation23_spill] sm:$0xff] }
 0x7f0   : >> { %v5849_v12 = vpop.f32.mrb[118].mxu1  ;;  %v12606_v3 = vld [vmem:[#allocation75_spill] sm:$0xff] }
 0x7f1   : >> { %6086 = vst.msk [vmem:[#allocation2 + $0x8b] sm:$0xff] %vm322_vm0, %v6045_v56  ;;  %v5964_v25 = vadd.f32 %v5847_v17, %v12597_v47  ;;  %v5850_v18 = vadd.f32 %v5849_v12, %v5650_v24  ;;  %v6983_v63 = vpop.f32.mrb[119].mxu1  ;;  %v12605_v24 = vld [vmem:[#allocation74_spill] sm:$0xff]  ;;  %v5671_v47 = vadd.f32 %v11747_v22, %v11671_v60 }
 0x7f3   : >> { %v6005_v35 = vmax.f32 %v5964_v25, 0.0  ;;  %v5965_v15 = vadd.f32 %v5850_v18, %v12598_v40  ;;  %v12608_v40 = vld [vmem:[#allocation10_spill] sm:$0xff] }
 0x7f5   : >> { %v6046_v20 = vmul.f32 %v6005_v35, %v12599_v53  ;;  %v6006_v28 = vmax.f32 %v5965_v15, 0.0  ;;  %v5674_v35 = vadd.f32 %v11747_v22, %v11674_v11  ;;  %v12611_v11 = vld [vmem:[#allocation41_spill] sm:$0xff] }
 0x7f6   : >> { %v5854_v44 = vpop.f32.mrb[120].mxu1 }
 0x7f7   : >> { %6087 = vst.msk [vmem:[#allocation2 + $0x93] sm:$0xff] %vm322_vm0, %v6046_v20  ;;  %v6047_v13 = vmul.f32 %v6006_v28, %v12600_v43  ;;  %v5855_v23 = vadd.f32 %v5854_v44, %v5655_v54  ;;  %v6986_v45 = vpop.f32.mrb[121].mxu1  ;;  %v12609_v28 = vld [vmem:[#allocation77_spill] sm:$0xff] }
 0x7f8   : >> { %v5857_v9 = vpop.f32.mrb[122].mxu1  ;;  %v5679_v45 = vadd.f32 %v11747_v22, %v11681_v34 }
 0x7f9   : >> { %6088 = vst.msk [vmem:[#allocation2 + $0x9b] sm:$0xff] %vm322_vm0, %v6047_v13  ;;  %v5966_v57 = vadd.f32 %v5855_v23, %v12601_v32  ;;  %v5858_v50 = vadd.f32 %v5857_v9, %v5658_v19  ;;  %v6987_v30 = vpop.f32.mrb[123].mxu1  ;;  %v12610_v13 = vld [vmem:[#allocation79_spill] sm:$0xff] }
 0x7fa   : >> { %v12612_v30 = vld [vmem:[#allocation9_spill] sm:$0xff] }
 0x7fb   : >> { %v6007_v48 = vmax.f32 %v5966_v57, 0.0  ;;  %v5967_v41 = vadd.f32 %v5858_v50, %v12602_v36  ;;  %v5682_v50 = vadd.f32 %v11747_v22, %v11685_v4  ;;  %v12615_v4 = vld [vmem:[#allocation24_spill] sm:$0xff] }
 0x7fd   : >> { %v6048_v52 = vmul.f32 %v6007_v48, %v12603_v2  ;;  %v6008_v59 = vmax.f32 %v5967_v41, 0.0  ;;  %v12613_v2 = vld [vmem:[#allocation81_spill] sm:$0xff] }
 0x7fe   : >> { %v5862_v46 = vpop.f32.mrb[124].mxu1 }
 0x7ff   : >> { %6089 = vst.msk [vmem:[#allocation2 + $0xa3] sm:$0xff] %vm322_vm0, %v6048_v52  ;;  %v6049_v33 = vmul.f32 %v6008_v59, %v12604_v21  ;;  %v5863_v14 = vadd.f32 %v5862_v46, %v5663_v5  ;;  %v6990_v26 = vpop.f32.mrb[125].mxu1 }
 0x800   : >> { %v5865_v38 = vpop.f32.mrb[126].mxu1 }
 0x801   : >> { %6090 = vst.msk [vmem:[#allocation2 + $0xab] sm:$0xff] %vm322_vm0, %v6049_v33  ;;  %v5968_v29 = vadd.f32 %v5863_v14, %v12605_v24  ;;  %v5866_v56 = vadd.f32 %v5865_v38, %v5666_v0  ;;  %v6991_v10 = vpop.f32.mrb[127].mxu1  ;;  %v12614_v0 = vld [vmem:[#allocation83_spill] sm:$0xff]  ;;  %v5687_v33 = vadd.f32 %v11747_v22, %v11694_v61  ;;  %v5690_v24 = vadd.f32 %v11747_v22, %v11697_v27  ;;  %v12619_v27 = vld [vmem:[#allocation40_spill] sm:$0xff] }
 0x803   : >> { %v6009_v17 = vmax.f32 %v5968_v29, 0.0  ;;  %v5969_v12 = vadd.f32 %v5866_v56, %v12606_v3  ;;  %v12616_v29 = vld [vmem:[#allocation39_spill] sm:$0xff] }
 0x805   : >> { %v6050_v25 = vmul.f32 %v6009_v17, %v12607_v16  ;;  %v6010_v18 = vmax.f32 %v5969_v12, 0.0  ;;  %v12617_v12 = vld [vmem:[#allocation84_spill] sm:$0xff] }
 0x806   : >> { %v5870_v63 = vpop.f32.mrb[128].mxu1 }
 0x807   : >> { %6091 = vst.msk [vmem:[#allocation2 + $0xb3] sm:$0xff] %vm322_vm0, %v6050_v25  ;;  %v6051_v15 = vmul.f32 %v6010_v18, %v12608_v40  ;;  %v5871_v54 = vadd.f32 %v5870_v63, %v5671_v47  ;;  %v6994_v53 = vpop.f32.mrb[129].mxu1  ;;  %v12618_v18 = vld [vmem:[#allocation86_spill] sm:$0xff] }
 0x808   : >> { %v5873_v20 = vpop.f32.mrb[130].mxu1  ;;  %v5698_v53 = vadd.f32 %v11747_v22, %v11709_v62  ;;  %v12623_v62 = vld [vmem:[#allocation12_spill] sm:$0xff] }
 0x809   : >> { %6092 = vst.msk [vmem:[#allocation2 + $0xbb] sm:$0xff] %vm322_vm0, %v6051_v15  ;;  %v5970_v44 = vadd.f32 %v5871_v54, %v12609_v28  ;;  %v5874_v19 = vadd.f32 %v5873_v20, %v5674_v35  ;;  %v6995_v60 = vpop.f32.mrb[131].mxu1  ;;  %v5695_v35 = vadd.f32 %v11747_v22, %v11703_v37  ;;  %v12620_v20 = vld [vmem:[#allocation33_spill] sm:$0xff] }
 0x80b   : >> { %v6011_v43 = vmax.f32 %v5970_v44, 0.0  ;;  %v5971_v23 = vadd.f32 %v5874_v19, %v12610_v13 }
 0x80d   : >> { %v6052_v9 = vmul.f32 %v6011_v43, %v12611_v11  ;;  %v6012_v32 = vmax.f32 %v5971_v23, 0.0  ;;  %v12621_v43 = vld [vmem:[#allocation87_spill] sm:$0xff]  ;;  %v12622_v11 = vld [vmem:[#allocation89_spill] sm:$0xff] }
 0x80e   : >> { %v5878_v57 = vpop.f32.mrb[132].mxu1 }
 0x80f   : >> { %6093 = vst.msk [vmem:[#allocation2 + $0xc3] sm:$0xff] %vm322_vm0, %v6052_v9  ;;  %v6053_v48 = vmul.f32 %v6012_v32, %v12612_v30  ;;  %v5879_v36 = vadd.f32 %v5878_v57, %v5679_v45  ;;  %v6998_v41 = vpop.f32.mrb[133].mxu1  ;;  %v5703_v32 = vadd.f32 %v11747_v22, %v11717_v8 }
 0x810   : >> { %v5881_v5 = vpop.f32.mrb[134].mxu1 }
 0x811   : >> { %6094 = vst.msk [vmem:[#allocation2 + $0xcb] sm:$0xff] %vm322_vm0, %v6053_v48  ;;  %v5972_v52 = vadd.f32 %v5879_v36, %v12613_v2  ;;  %v5882_v59 = vadd.f32 %v5881_v5, %v5682_v50  ;;  %v6999_v34 = vpop.f32.mrb[135].mxu1  ;;  %v5706_v48 = vadd.f32 %v11747_v22, %v11719_v6  ;;  %v12624_v36 = vld [vmem:[#allocation34_spill] sm:$0xff] }
 0x812   : >> { %v12627_v6 = vld [vmem:[#allocation26_spill] sm:$0xff] }
 0x813   : >> { %v6013_v46 = vmax.f32 %v5972_v52, 0.0  ;;  %v5973_v21 = vadd.f32 %v5882_v59, %v12614_v0  ;;  %v12625_v59 = vld [vmem:[#allocation90_spill] sm:$0xff] }
 0x815   : >> { %v6054_v14 = vmul.f32 %v6013_v46, %v12615_v4  ;;  %v6014_v26 = vmax.f32 %v5973_v21, 0.0  ;;  %v12626_v21 = vld [vmem:[#allocation92_spill] sm:$0xff]  ;;  %v5711_v4 = vadd.f32 %v11747_v22, %v11725_v31 }
 0x816   : >> { %v5886_v38 = vpop.f32.mrb[136].mxu1 }
 0x817   : >> { %6095 = vst.msk [vmem:[#allocation2 + $0xd3] sm:$0xff] %vm322_vm0, %v6054_v14  ;;  %v6055_v56 = vmul.f32 %v6014_v26, %v12616_v29  ;;  %v5887_v10 = vadd.f32 %v5886_v38, %v5687_v33  ;;  %v7002_v17 = vpop.f32.mrb[137].mxu1  ;;  %v12628_v29 = vld [vmem:[#allocation36_spill] sm:$0xff] }
 0x818   : >> { %v5889_v3 = vpop.f32.mrb[138].mxu1 }
 0x819   : >> { %6096 = vst.msk [vmem:[#allocation2 + $0xdb] sm:$0xff] %vm322_vm0, %v6055_v56  ;;  %v5974_v47 = vadd.f32 %v5887_v10, %v12617_v12  ;;  %v5890_v16 = vadd.f32 %v5889_v3, %v5690_v24  ;;  %v7003_v61 = vpop.f32.mrb[139].mxu1  ;;  %v5714_v24 = vadd.f32 %v11747_v22, %v11730_v1  ;;  %v12629_v12 = vld [vmem:[#allocation94_spill] sm:$0xff]  ;;  %v12631_v1 = vld [vmem:[#allocation29_spill] sm:$0xff] }
 0x81b   : >> { %v6015_v25 = vmax.f32 %v5974_v47, 0.0  ;;  %v5975_v63 = vadd.f32 %v5890_v16, %v12618_v18 }
 0x81d   : >> { %v6056_v40 = vmul.f32 %v6015_v25, %v12619_v27  ;;  %v6016_v15 = vmax.f32 %v5975_v63, 0.0  ;;  %v12630_v25 = vld [vmem:[#allocation96_spill] sm:$0xff]  ;;  %v5719_v63 = vadd.f32 %v11747_v22, %v11732_v7 }
 0x81e   : >> { %v5894_v54 = vpop.f32.mrb[140].mxu1 }
 0x81f   : >> { %6097 = vst.msk [vmem:[#allocation2 + $0xe3] sm:$0xff] %vm322_vm0, %v6056_v40  ;;  %v6057_v28 = vmul.f32 %v6016_v15, %v12620_v20  ;;  %v5895_v44 = vadd.f32 %v5894_v54, %v5695_v35  ;;  %v7006_v19 = vpop.f32.mrb[141].mxu1  ;;  %v5722_v15 = vadd.f32 %v11747_v22, %v11734_v51  ;;  %v12632_v54 = vld [vmem:[#allocation42_spill] sm:$0xff]  ;;  %v12635_v51 = vld [vmem:[#allocation43_spill] sm:$0xff] }
 0x820   : >> { %v5897_v60 = vpop.f32.mrb[142].mxu1  ;;  %v12633_v19 = vld [vmem:[#allocation97_spill] sm:$0xff] }
 0x821   : >> { %6098 = vst.msk [vmem:[#allocation2 + $0xeb] sm:$0xff] %vm322_vm0, %v6057_v28  ;;  %v5976_v13 = vadd.f32 %v5895_v44, %v12621_v43  ;;  %v5898_v23 = vadd.f32 %v5897_v60, %v5698_v53  ;;  %v7007_v37 = vpop.f32.mrb[143].mxu1 }
 0x823   : >> { %v6017_v45 = vmax.f32 %v5976_v13, 0.0  ;;  %v5977_v9 = vadd.f32 %v5898_v23, %v12622_v11  ;;  %v12634_v23 = vld [vmem:[#allocation99_spill] sm:$0xff] }
 0x825   : >> { %v6058_v57 = vmul.f32 %v6017_v45, %v12623_v62  ;;  %v6018_v50 = vmax.f32 %v5977_v9, 0.0  ;;  %v5727_v45 = vadd.f32 %v11747_v22, %v11736_v55  ;;  %v5730_v62 = vadd.f32 %v11747_v22, %v11738_v49  ;;  %v12639_v49 = vld [vmem:[#allocation45_spill] sm:$0xff] }
 0x826   : >> { %v5902_v30 = vpop.f32.mrb[144].mxu1 }
 0x827   : >> { %6099 = vst.msk [vmem:[#allocation2 + $0xf3] sm:$0xff] %vm322_vm0, %v6058_v57  ;;  %v6059_v41 = vmul.f32 %v6018_v50, %v12624_v36  ;;  %v5903_v5 = vadd.f32 %v5902_v30, %v5703_v32  ;;  %v7010_v2 = vpop.f32.mrb[145].mxu1  ;;  %v12636_v57 = vld [vmem:[#allocation44_spill] sm:$0xff] }
 0x828   : >> { %v5905_v52 = vpop.f32.mrb[146].mxu1 }
 0x829   : >> { %6100 = vst.msk [vmem:[#allocation2 + $0xfb] sm:$0xff] %vm322_vm0, %v6059_v41  ;;  %v5978_v34 = vadd.f32 %v5903_v5, %v12625_v59  ;;  %v5906_v46 = vadd.f32 %v5905_v52, %v5706_v48  ;;  %v7011_v8 = vpop.f32.mrb[147].mxu1  ;;  %v12637_v41 = vld [vmem:[#allocation100_spill] sm:$0xff]  ;;  %v12638_v59 = vld [vmem:[#allocation101_spill] sm:$0xff] }
 0x82b   : >> { %v6019_v0 = vmax.f32 %v5978_v34, 0.0  ;;  %v5979_v33 = vadd.f32 %v5906_v46, %v12626_v21  ;;  %v5735_v46 = vadd.f32 %v11747_v22, %v11740_v39 }
 0x82d   : >> { %v6060_v14 = vmul.f32 %v6019_v0, %v12627_v6  ;;  %v6020_v26 = vmax.f32 %v5979_v33, 0.0  ;;  %v5738_v33 = vadd.f32 %v11747_v22, %v11742_v42  ;;  %v12643_v42 = vld [vmem:[#allocation47_spill] sm:$0xff] }
 0x82e   : >> { %v5910_v38 = vpop.f32.mrb[148].mxu1 }
 0x82f   : >> { %6101 = vst.msk [vmem:[#allocation2 + $0x103] sm:$0xff] %vm322_vm0, %v6060_v14  ;;  %v6061_v56 = vmul.f32 %v6020_v26, %v12628_v29  ;;  %v5911_v10 = vadd.f32 %v5910_v38, %v5711_v4  ;;  %v7014_v17 = vpop.f32.mrb[149].mxu1  ;;  %v12640_v4 = vld [vmem:[#allocation46_spill] sm:$0xff] }
 0x830   : >> { %v5913_v3 = vpop.f32.mrb[150].mxu1  ;;  %v12642_v17 = vld [vmem:[#allocation105_spill] sm:$0xff] }
 0x831   : >> { %6102 = vst.msk [vmem:[#allocation2 + $0x10b] sm:$0xff] %vm322_vm0, %v6061_v56  ;;  %v5980_v47 = vadd.f32 %v5911_v10, %v12629_v12  ;;  %v5914_v16 = vadd.f32 %v5913_v3, %v5714_v24  ;;  %v7015_v31 = vpop.f32.mrb[151].mxu1  ;;  %v12641_v24 = vld [vmem:[#allocation103_spill] sm:$0xff]  ;;  %v5743_v12 = vadd.f32 %v11747_v22, %v11744_v58  ;;  %v6113_v22 = vld [vmem:[#allocation2 + $0x1b] sm:$0xff] (%p2242_p5) }
 0x832   : > { %v6112_v58 = vld [vmem:[#allocation2 + $0x13] sm:$0xff] (%p2242_p5) }
 0x833   : >> { %v6021_v61 = vmax.f32 %v5980_v47, 0.0  ;;  %v5981_v18 = vadd.f32 %v5914_v16, %v12630_v25 }
 0x835   : >> { %v6062_v35 = vmul.f32 %v6021_v61, %v12631_v1  ;;  %v6022_v27 = vmax.f32 %v5981_v18, 0.0  ;;  %v12644_v61 = vld [vmem:[#allocation48_spill] sm:$0xff] }
 0x836   : >> { %v5918_v40 = vpop.f32.mrb[152].mxu1 }
 0x837   : >> { %6103 = vst.msk [vmem:[#allocation2 + $0x113] sm:$0xff] %vm322_vm0, %v6062_v35  ;;  %v6063_v53 = vmul.f32 %v6022_v27, %v12632_v54  ;;  %v5919_v20 = vadd.f32 %v5918_v40, %v5719_v63  ;;  %v7018_v28 = vpop.f32.mrb[153].mxu1  ;;  %v12645_v35 = vld [vmem:[#allocation106_spill] sm:$0xff]  ;;  %v12646_v54 = vld [vmem:[#allocation49_spill] sm:$0xff] }
 0x838   : >> { %v5921_v44 = vpop.f32.mrb[154].mxu1  ;;  %v6655_v28 = vpack.c.bf16 (%p2242_p5), %v6112_v58, %v6112_v58 }
 0x839   : >> { %6104 = vst.msk [vmem:[#allocation2 + $0x11b] sm:$0xff] %vm322_vm0, %v6063_v53  ;;  %v5982_v60 = vadd.f32 %v5919_v20, %v12633_v19  ;;  %v5922_v43 = vadd.f32 %v5921_v44, %v5722_v15  ;;  %v7019_v7 = vpop.f32.mrb[155].mxu1  ;;  %v6114_v20 = vld [vmem:[#allocation2 + $0x23] sm:$0xff] (%p2242_p5)  ;;  %v6656_v44 = vpack.c.bf16 (%p2242_p5), %v6113_v22, %v6113_v22 }
 0x83a   : > { %v6657_v19 = vpack.c.bf16 (%p2242_p5), %v6114_v20, %v6114_v20  ;;  %v6117_v7 = vld [vmem:[#allocation2 + $0x3b] sm:$0xff] (%p2242_p5)  ;;  %6318 = vst.msk [vmem:[%s7587_s13] sm:$0xf] (%p2242_p5), %vm2238_vm1, %v6655_v28 }
 0x83b   : >> { %v6023_v13 = vmax.f32 %v5982_v60, 0.0  ;;  %v5983_v37 = vadd.f32 %v5922_v43, %v12634_v23  ;;  %v6115_v60 = vld [vmem:[#allocation2 + $0x2b] sm:$0xff] (%p2242_p5)  ;;  %v6116_v43 = vld [vmem:[#allocation2 + $0x33] sm:$0xff] (%p2242_p5)  ;;  %6319 = vst.msk [vmem:[%s7587_s13 + $0x4] sm:$0xf] (%p2242_p5), %vm2238_vm1, %v6656_v44 }
 0x83c   : > { %v6659_v23 = vpack.c.bf16 (%p2242_p5), %v6116_v43, %v6116_v43  ;;  %6320 = vst.msk [vmem:[%s7587_s13 + $0x8] sm:$0xf] (%p2242_p5), %vm2238_vm1, %v6657_v19 }
 0x83d   : >> { %v6064_v11 = vmul.f32 %v6023_v13, %v12635_v51  ;;  %v6024_v9 = vmax.f32 %v5983_v37, 0.0  ;;  %v6658_v13 = vpack.c.bf16 (%p2242_p5), %v6115_v60, %v6115_v60  ;;  %v6660_v37 = vpack.c.bf16 (%p2242_p5), %v6117_v7, %v6117_v7  ;;  %v6119_v51 = vld [vmem:[#allocation2 + $0x4b] sm:$0xff] (%p2242_p5) }
 0x83e   : >> { %v5926_v32 = vpop.f32.mrb[156].mxu1  ;;  %6322 = vst.msk [vmem:[%s7587_s13 + $0x10] sm:$0xf] (%p2242_p5), %vm2238_vm1, %v6659_v23 }
 0x83f   : >> { %6105 = vst.msk [vmem:[#allocation2 + $0x123] sm:$0xff] %vm322_vm0, %v6064_v11  ;;  %v6065_v50 = vmul.f32 %v6024_v9, %v12636_v57  ;;  %v5927_v30 = vadd.f32 %v5926_v32, %v5727_v45  ;;  %v7022_v48 = vpop.f32.mrb[157].mxu1  ;;  %v6118_v45 = vld [vmem:[#allocation2 + $0x43] sm:$0xff] (%p2242_p5)  ;;  %v6120_v11 = vld [vmem:[#allocation2 + $0x53] sm:$0xff] (%p2242_p5)  ;;  %v6662_v32 = vpack.c.bf16 (%p2242_p5), %v6119_v51, %v6119_v51  ;;  %v6121_v57 = vld [vmem:[#allocation2 + $0x5b] sm:$0xff] (%p2242_p5) }
 0x840   : >> { %v5929_v36 = vpop.f32.mrb[158].mxu1  ;;  %v6661_v9 = vpack.c.bf16 (%p2242_p5), %v6118_v45, %v6118_v45  ;;  %6321 = vst.msk [vmem:[%s7587_s13 + $0xc] sm:$0xf] (%p2242_p5), %vm2238_vm1, %v6658_v13  ;;  %6323 = vst.msk [vmem:[%s7587_s13 + $0x14] sm:$0xf] (%p2242_p5), %vm2238_vm1, %v6660_v37  ;;  %v6664_v48 = vpack.c.bf16 (%p2242_p5), %v6121_v57, %v6121_v57  ;;  %v6145_v20 = vld [vmem:[#allocation2 + $0x11b] sm:$0xff] (%p2242_p5) }
 0x841   : >> { %6106 = vst.msk [vmem:[#allocation2 + $0x12b] sm:$0xff] %vm322_vm0, %v6065_v50  ;;  %v5984_v5 = vadd.f32 %v5927_v30, %v12637_v41  ;;  %v5930_v2 = vadd.f32 %v5929_v36, %v5730_v62  ;;  %v7023_v55 = vpop.f32.mrb[159].mxu1  ;;  %v6663_v62 = vpack.c.bf16 (%p2242_p5), %v6120_v11, %v6120_v11  ;;  %v6122_v50 = vld [vmem:[#allocation2 + $0x63] sm:$0xff] (%p2242_p5)  ;;  %v6123_v30 = vld [vmem:[#allocation2 + $0x6b] sm:$0xff] (%p2242_p5)  ;;  %v6688_v19 = vpack.c.bf16 (%p2242_p5), %v6145_v20, %v6145_v20 }
 0x842   : > { %v6665_v36 = vpack.c.bf16 (%p2242_p5), %v6122_v50, %v6122_v50  ;;  %v6666_v41 = vpack.c.bf16 (%p2242_p5), %v6123_v30, %v6123_v30  ;;  %v6126_v55 = vld [vmem:[#allocation2 + $0x83] sm:$0xff] (%p2242_p5)  ;;  %6324 = vst.msk [vmem:[%s7587_s13 + $0x18] sm:$0xf] (%p2242_p5), %vm2238_vm1, %v6661_v9  ;;  %6325 = vst.msk [vmem:[%s7587_s13 + $0x1c] sm:$0xf] (%p2242_p5), %vm2238_vm1, %v6662_v32 }
 0x843   : >> { %v6025_v52 = vmax.f32 %v5984_v5, 0.0  ;;  %v5985_v34 = vadd.f32 %v5930_v2, %v12638_v59  ;;  %v6124_v5 = vld [vmem:[#allocation2 + $0x73] sm:$0xff] (%p2242_p5)  ;;  %v6125_v2 = vld [vmem:[#allocation2 + $0x7b] sm:$0xff] (%p2242_p5)  ;;  %6326 = vst.msk [vmem:[%s7587_s13 + $0x20] sm:$0xf] (%p2242_p5), %vm2238_vm1, %v6663_v62 }
 0x844   : > { %v6668_v59 = vpack.c.bf16 (%p2242_p5), %v6125_v2, %v6125_v2  ;;  %6327 = vst.msk [vmem:[%s7587_s13 + $0x24] sm:$0xf] (%p2242_p5), %vm2238_vm1, %v6664_v48  ;;  %6328 = vst.msk [vmem:[%s7587_s13 + $0x28] sm:$0xf] (%p2242_p5), %vm2238_vm1, %v6665_v36 }
 0x845   : >> { %v6066_v8 = vmul.f32 %v6025_v52, %v12639_v49  ;;  %v6026_v0 = vmax.f32 %v5985_v34, 0.0  ;;  %v6667_v52 = vpack.c.bf16 (%p2242_p5), %v6124_v5, %v6124_v5  ;;  %v6669_v34 = vpack.c.bf16 (%p2242_p5), %v6126_v55, %v6126_v55  ;;  %v6128_v49 = vld [vmem:[#allocation2 + $0x93] sm:$0xff] (%p2242_p5)  ;;  %6329 = vst.msk [vmem:[%s7587_s13 + $0x2c] sm:$0xf] (%p2242_p5), %vm2238_vm1, %v6666_v41  ;;  %6351 = vst.msk [vmem:[%s7587_s13 + $0x84] sm:$0xf] (%p2242_p5), %vm2238_vm1, %v6688_v19 }
 0x846   : >> { %v5934_v21 = vpop.f32.mrb[160].mxu1  ;;  %6331 = vst.msk [vmem:[%s7587_s13 + $0x34] sm:$0xf] (%p2242_p5), %vm2238_vm1, %v6668_v59  ;;  %v6146_v28 = vld [vmem:[#allocation2 + $0x123] sm:$0xff] (%p2242_p5) }
 0x847   : >> { %6107 = vst.msk [vmem:[#allocation2 + $0x133] sm:$0xff] %vm322_vm0, %v6066_v8  ;;  %v6067_v6 = vmul.f32 %v6026_v0, %v12640_v4  ;;  %v5935_v14 = vadd.f32 %v5934_v21, %v5735_v46  ;;  %v7026_v26 = vpop.f32.mrb[161].mxu1  ;;  %v6127_v46 = vld [vmem:[#allocation2 + $0x8b] sm:$0xff] (%p2242_p5)  ;;  %v6129_v8 = vld [vmem:[#allocation2 + $0x9b] sm:$0xff] (%p2242_p5)  ;;  %v6671_v21 = vpack.c.bf16 (%p2242_p5), %v6128_v49, %v6128_v49  ;;  %v6130_v4 = vld [vmem:[#allocation2 + $0xa3] sm:$0xff] (%p2242_p5)  ;;  %v6689_v60 = vpack.c.bf16 (%p2242_p5), %v6146_v28, %v6146_v28 }
 0x848   : >> { %v5937_v38 = vpop.f32.mrb[162].mxu1  ;;  %v6670_v0 = vpack.c.bf16 (%p2242_p5), %v6127_v46, %v6127_v46  ;;  %6330 = vst.msk [vmem:[%s7587_s13 + $0x30] sm:$0xf] (%p2242_p5), %vm2238_vm1, %v6667_v52  ;;  %6332 = vst.msk [vmem:[%s7587_s13 + $0x38] sm:$0xf] (%p2242_p5), %vm2238_vm1, %v6669_v34  ;;  %v6673_v26 = vpack.c.bf16 (%p2242_p5), %v6130_v4, %v6130_v4  ;;  %v6147_v44 = vld [vmem:[#allocation2 + $0x12b] sm:$0xff] (%p2242_p5) }
 0x849   : >> { %6108 = vst.msk [vmem:[#allocation2 + $0x13b] sm:$0xff] %vm322_vm0, %v6067_v6  ;;  %v5986_v29 = vadd.f32 %v5935_v14, %v12641_v24  ;;  %v5938_v56 = vadd.f32 %v5937_v38, %v5738_v33  ;;  %v7027_v39 = vpop.f32.mrb[163].mxu1  ;;  %v6672_v33 = vpack.c.bf16 (%p2242_p5), %v6129_v8, %v6129_v8  ;;  %v6131_v6 = vld [vmem:[#allocation2 + $0xab] sm:$0xff] (%p2242_p5)  ;;  %v6132_v14 = vld [vmem:[#allocation2 + $0xb3] sm:$0xff] (%p2242_p5)  ;;  %v6690_v43 = vpack.c.bf16 (%p2242_p5), %v6147_v44, %v6147_v44 }
 0x84a   : > { %v6674_v38 = vpack.c.bf16 (%p2242_p5), %v6131_v6, %v6131_v6  ;;  %v6675_v24 = vpack.c.bf16 (%p2242_p5), %v6132_v14, %v6132_v14  ;;  %v6135_v39 = vld [vmem:[#allocation2 + $0xcb] sm:$0xff] (%p2242_p5)  ;;  %6333 = vst.msk [vmem:[%s7587_s13 + $0x3c] sm:$0xf] (%p2242_p5), %vm2238_vm1, %v6670_v0  ;;  %6334 = vst.msk [vmem:[%s7587_s13 + $0x40] sm:$0xf] (%p2242_p5), %vm2238_vm1, %v6671_v21 }
 0x84b   : >> { %v6027_v10 = vmax.f32 %v5986_v29, 0.0  ;;  %v5987_v3 = vadd.f32 %v5938_v56, %v12642_v17  ;;  %v6133_v29 = vld [vmem:[#allocation2 + $0xbb] sm:$0xff] (%p2242_p5)  ;;  %v6134_v56 = vld [vmem:[#allocation2 + $0xc3] sm:$0xff] (%p2242_p5)  ;;  %6335 = vst.msk [vmem:[%s7587_s13 + $0x44] sm:$0xf] (%p2242_p5), %vm2238_vm1, %v6672_v33 }
 0x84c   : > { %v6677_v17 = vpack.c.bf16 (%p2242_p5), %v6134_v56, %v6134_v56  ;;  %6336 = vst.msk [vmem:[%s7587_s13 + $0x48] sm:$0xf] (%p2242_p5), %vm2238_vm1, %v6673_v26  ;;  %6337 = vst.msk [vmem:[%s7587_s13 + $0x4c] sm:$0xf] (%p2242_p5), %vm2238_vm1, %v6674_v38 }
 0x84d   : >> { %v6068_v47 = vmul.f32 %v6027_v10, %v12643_v42  ;;  %v6028_v16 = vmax.f32 %v5987_v3, 0.0  ;;  %v6676_v10 = vpack.c.bf16 (%p2242_p5), %v6133_v29, %v6133_v29  ;;  %v6678_v3 = vpack.c.bf16 (%p2242_p5), %v6135_v39, %v6135_v39  ;;  %v6137_v42 = vld [vmem:[#allocation2 + $0xdb] sm:$0xff] (%p2242_p5)  ;;  %6338 = vst.msk [vmem:[%s7587_s13 + $0x50] sm:$0xf] (%p2242_p5), %vm2238_vm1, %v6675_v24  ;;  %6352 = vst.msk [vmem:[%s7587_s13 + $0x88] sm:$0xf] (%p2242_p5), %vm2238_vm1, %v6689_v60 }
 0x84e   : >> { %v5942_v31 = vpop.f32.mrb[164].mxu1  ;;  %6340 = vst.msk [vmem:[%s7587_s13 + $0x58] sm:$0xf] (%p2242_p5), %vm2238_vm1, %v6677_v17  ;;  %v6148_v7 = vld [vmem:[#allocation2 + $0x133] sm:$0xff] (%p2242_p5)  ;;  %6353 = vst.msk [vmem:[%s7587_s13 + $0x8c] sm:$0xf] (%p2242_p5), %vm2238_vm1, %v6690_v43 }
 0x84f   : >> { %6109 = vst.msk [vmem:[#allocation2 + $0x143] sm:$0xff] %vm322_vm0, %v6068_v47  ;;  %v6069_v25 = vmul.f32 %v6028_v16, %v12644_v61  ;;  %v5943_v18 = vadd.f32 %v5942_v31, %v5743_v12  ;;  %v7030_v63 = vpop.f32.mrb[165].mxu1  ;;  %v6136_v12 = vld [vmem:[#allocation2 + $0xd3] sm:$0xff] (%p2242_p5)  ;;  %v6138_v47 = vld [vmem:[#allocation2 + $0xe3] sm:$0xff] (%p2242_p5)  ;;  %v6680_v31 = vpack.c.bf16 (%p2242_p5), %v6137_v42, %v6137_v42  ;;  %v6691_v37 = vpack.c.bf16 (%p2242_p5), %v6148_v7, %v6148_v7 }
 0x850   : >> { %v5945_v1 = vpop.f32.mrb[166].mxu1  ;;  %v6679_v16 = vpack.c.bf16 (%p2242_p5), %v6136_v12, %v6136_v12  ;;  %v6681_v61 = vpack.c.bf16 (%p2242_p5), %v6138_v47, %v6138_v47  ;;  %v6141_v63 = vld [vmem:[#allocation2 + $0xfb] sm:$0xff] (%p2242_p5)  ;;  %6339 = vst.msk [vmem:[%s7587_s13 + $0x54] sm:$0xf] (%p2242_p5), %vm2238_vm1, %v6676_v10  ;;  %6341 = vst.msk [vmem:[%s7587_s13 + $0x5c] sm:$0xf] (%p2242_p5), %vm2238_vm1, %v6678_v3 }
 0x851   : >> { %6110 = vst.msk [vmem:[#allocation2 + $0x14b] sm:$0xff] %vm322_vm0, %v6069_v25  ;;  %v5988_v27 = vadd.f32 %v5943_v18, %v12645_v35  ;;  %v7031_v40 = vpop.f32.mrb[167].mxu1  ;;  %2244 = sbr.rel (!%p2242_p5) target bundleno = 755 (0x2f3), region = 94  ;;  %v6139_v25 = vld [vmem:[#allocation2 + $0xeb] sm:$0xff] (%p2242_p5)  ;;  %v6140_v18 = vld [vmem:[#allocation2 + $0xf3] sm:$0xff] (%p2242_p5)  ;;  %v6149_v13 = vld [vmem:[#allocation2 + $0x13b] sm:$0xff] (%p2242_p5) }
 0x852   : > { %v6682_v1 = vpack.c.bf16 (%p2242_p5), %v6139_v25, %v6139_v25  ;;  %v6683_v35 = vpack.c.bf16 (%p2242_p5), %v6140_v18, %v6140_v18  ;;  %v6142_v40 = vld [vmem:[#allocation2 + $0x103] sm:$0xff] (%p2242_p5)  ;;  %6342 = vst.msk [vmem:[%s7587_s13 + $0x60] sm:$0xf] (%p2242_p5), %vm2238_vm1, %v6679_v16  ;;  %6343 = vst.msk [vmem:[%s7587_s13 + $0x64] sm:$0xf] (%p2242_p5), %vm2238_vm1, %v6680_v31  ;;  %v6692_v45 = vpack.c.bf16 (%p2242_p5), %v6149_v13, %v6149_v13  ;;  %vm12647_vm0 = vcmask (%p2242_p5), 254976  }
 0x853   : >> { %v6029_v15 = vmax.f32 %v5988_v27, 0.0  ;;  %v6684_v27 = vpack.c.bf16 (%p2242_p5), %v6141_v63, %v6141_v63  ;;  %6344 = vst.msk [vmem:[%s7587_s13 + $0x68] sm:$0xf] (%p2242_p5), %vm2238_vm1, %v6681_v61  ;;  %6354 = vst.msk [vmem:[%s7587_s13 + $0x90] sm:$0xf] (%p2242_p5), %vm2238_vm1, %v6691_v37 }
 0x854   : > { %6345 = vst.msk [vmem:[%s7587_s13 + $0x6c] sm:$0xf] (%p2242_p5), %vm2238_vm1, %v6682_v1  ;;  %6346 = vst.msk [vmem:[%s7587_s13 + $0x70] sm:$0xf] (%p2242_p5), %vm2238_vm1, %v6683_v35 }
 0x855   : >> { %v6070_v53 = vmul.f32 %v6029_v15, %v12646_v54  ;;  %v6143_v15 = vld [vmem:[#allocation2 + $0x10b] sm:$0xff] (%p2242_p5)  ;;  %v6144_v54 = vld [vmem:[#allocation2 + $0x113] sm:$0xff] (%p2242_p5)  ;;  %6347 = vst.msk [vmem:[%s7587_s13 + $0x74] sm:$0xf] (%p2242_p5), %vm2238_vm1, %v6684_v27  ;;  %6355 = vst.msk [vmem:[%s7587_s13 + $0x94] sm:$0xf] (%p2242_p5), %vm2238_vm1, %v6692_v45 }
 0x856   : > { %v6686_v58 = vpack.c.bf16 (%p2242_p5), %v6143_v15, %v6143_v15  ;;  %v6687_v22 = vpack.c.bf16 (%p2242_p5), %v6144_v54, %v6144_v54  ;;  %v6150_v23 = vld [vmem:[#allocation2 + $0x143] sm:$0xff] (%p2242_p5) }
 0x857   : >> { %6111 = vst.msk [vmem:[#allocation2 + $0x153] sm:$0xf] %vm2238_vm1, %v6070_v53  ;;  %v6685_v53 = vpack.c.bf16 (%p2242_p5), %v6142_v40, %v6142_v40  ;;  %v6693_v51 = vpack.c.bf16 (%p2242_p5), %v6150_v23, %v6150_v23 }
 0x858   : > { %6349 = vst.msk [vmem:[%s7587_s13 + $0x7c] sm:$0xf] %vm2238_vm1, %v6686_v58  ;;  %6350 = vst.msk [vmem:[%s7587_s13 + $0x80] sm:$0xf] %vm2238_vm1, %v6687_v22  ;;  %v6151_v11 = vld [vmem:[#allocation2 + $0x14b] sm:$0xff] }
 0x859   : > { %6348 = vst.msk [vmem:[%s7587_s13 + $0x78] sm:$0xf] %vm2238_vm1, %v6685_v53  ;;  %v6694_v32 = vpack.c.bf16 %v6151_v11, %v6151_v11  ;;  %6356 = vst.msk [vmem:[%s7587_s13 + $0x98] sm:$0xf] %vm2238_vm1, %v6693_v51 }
 0x85b   : > { %6357 = vst.msk [vmem:[%s7587_s13 + $0x9c] sm:$0xf] %vm2238_vm1, %v6694_v32 }
 0x85e   : > { %v6152_v9 = vld [vmem:[#allocation2 + $0x153] sm:$0xf] }
 0x85f   : > { %v6695_v62 = vpack.c.bf16 %v6152_v9, %v6152_v9 }
 0x861   : > { %6358 = vst.msk [vmem:[%s7587_s13 + $0xa0] sm:$0x3] %vm12647_vm0, %v6695_v62 }
 0x862 PF: > { %s18_s21 = sadd.s32 1, %s7337_s21  }
 0x863   : > { %p15_p10 = scmp.ge.s32.totalorder %s18_s21, 4  }
 0x865   :  { %17 = sbr.rel (!%p15_p10) target bundleno = 2 (0x2), region = 105 }
 0x86c   :  { %6380 = vsyncpa [#allocation4], 1 }
 0x86d   :  { %6382 = vsyncpa [#allocation4 + $0x1], 1 }
 0x86e   :  { %6383 = vsyncpa [#allocation6], 1 }

</bundles_post_ra>
